<compile_context>
chip_gen: v6e
topology: v6e:2x2x1
jax: 0.10.0
libtpu: 0.0.40
codegen_flags: <defaults>
</compile_context>

<pallas_src>
import functools

import jax
import jax.numpy as jnp
from jax.experimental import pallas as pl
from jax.experimental.pallas import tpu as pltpu


# ---------------------------------------------------------------------------
# Hardware-aware tiling helpers
# ---------------------------------------------------------------------------
def _round_up(x, m):
    return (x + m - 1) // m * m


@functools.lru_cache(maxsize=None)
def _tensorcores_per_chip():
    # v7x has 2 TensorCores per chip; only grid axes marked "parallel" are
    # sharded across them, so we must emit >= 2 grid steps there.
    try:
        kind = jax.devices()[0].device_kind.lower()
    except Exception:  # pragma: no cover - defensive; default to 1 TC
        return 1
    return 2 if "v7" in kind else 1


def _pick_tm(M):
    if M >= 1024:
        return 512          # measured tile curve: 512-wide ~85% HBM roofline
    if M > 256:
        return 256
    if _tensorcores_per_chip() >= 2 and M >= 32:
        # v7x: guarantee >= 2 "parallel" grid steps so both TCs get work.
        # Round to 16 so bf16 sublane packing stays aligned.
        return min(256, _round_up(pl.cdiv(M, 2), 16))
    # v5e/v6e (single TC): one full-extent block = fewest grid steps.
    return M


# ---------------------------------------------------------------------------
# Pallas kernels
# ---------------------------------------------------------------------------
def _conv_bn_relu_kernel(x_ref, w_ref, b_ref, o_ref):
    # x_ref: (TM, K) bf16 im2col patches, w_ref: (K, N) bf16 scale-folded
    # weights, b_ref: (1, N) f32 folded-BN bias, o_ref: (TM, N) bf16.
    acc = jnp.dot(x_ref[...], w_ref[...], preferred_element_type=jnp.float32)
    o_ref[...] = jnp.maximum(acc + b_ref[...], 0.0).astype(o_ref.dtype)


def _grouped_conv_bn_relu_kernel(x_ref, w_ref, b_ref, o_ref):
    # Same as above but with a leading "group" axis (per-group weights/bias).
    acc = jnp.dot(x_ref[0], w_ref[0], preferred_element_type=jnp.float32)
    o_ref[0] = jnp.maximum(acc + b_ref[0], 0.0).astype(o_ref.dtype)


def _maxpool_kernel(ee_ref, eo_ref, oe_ref, oo_ref, ee1_ref, oe1_ref, o_ref,
                    *, ho):
    # 3x3/s2 max over nine pre-aligned parity planes.  All in-kernel slices
    # are along the H axis (not the sublane/lane axes), so every read is a
    # plain aligned load; the +1 column shift was done in the XLA glue.
    m = ee_ref[:, 0:ho]                         # x[2h,   2w  ]
    m = jnp.maximum(m, eo_ref[:, 0:ho])         # x[2h,   2w+1]
    m = jnp.maximum(m, ee1_ref[:, 0:ho])        # x[2h,   2w+2]
    m = jnp.maximum(m, oe_ref[...])             # x[2h+1, 2w  ]
    m = jnp.maximum(m, oo_ref[...])             # x[2h+1, 2w+1]
    m = jnp.maximum(m, oe1_ref[...])            # x[2h+1, 2w+2]
    m = jnp.maximum(m, ee_ref[:, 1:ho + 1])     # x[2h+2, 2w  ]
    m = jnp.maximum(m, eo_ref[:, 1:ho + 1])     # x[2h+2, 2w+1]
    m = jnp.maximum(m, ee1_ref[:, 1:ho + 1])    # x[2h+2, 2w+2]
    o_ref[...] = m


# ---------------------------------------------------------------------------
# Pallas wrappers
# ---------------------------------------------------------------------------
def conv_bn_relu_matmul(patches, w, bias):
    """patches: (M, K), w: (K, N) scale-folded, bias: (N,) -> (M, N) bf16."""
    M, K = patches.shape
    _, N = w.shape
    TM = _pick_tm(M)
    grid_m = pl.cdiv(M, TM)

    return pl.pallas_call(
        _conv_bn_relu_kernel,
        out_shape=jax.ShapeDtypeStruct((M, N), jnp.bfloat16),
        grid=(grid_m,),
        in_specs=[
            pl.BlockSpec((TM, K), lambda i: (i, 0)),
            pl.BlockSpec((K, N), lambda i: (0, 0)),
            pl.BlockSpec((1, N), lambda i: (0, 0)),
        ],
        out_specs=pl.BlockSpec((TM, N), lambda i: (i, 0)),
        compiler_params=pltpu.CompilerParams(
            dimension_semantics=("parallel",)),
    )(patches.astype(jnp.bfloat16), w.astype(jnp.bfloat16),
      bias.reshape(1, N).astype(jnp.float32))


def conv_bn_relu_matmul_grouped(patches_g, w_g, bias_g):
    """Grouped sibling matmuls: (G,M,K) x (G,K,N) -> (G,M,N) bf16."""
    G, M, K = patches_g.shape
    _, _, N = w_g.shape
    TM = _pick_tm(M)
    grid = (G, pl.cdiv(M, TM))

    return pl.pallas_call(
        _grouped_conv_bn_relu_kernel,
        out_shape=jax.ShapeDtypeStruct((G, M, N), jnp.bfloat16),
        grid=grid,
        in_specs=[
            pl.BlockSpec((1, TM, K), lambda g, i: (g, i, 0)),
            pl.BlockSpec((1, K, N), lambda g, i: (g, 0, 0)),
            pl.BlockSpec((1, 1, N), lambda g, i: (g, 0, 0)),
        ],
        out_specs=pl.BlockSpec((1, TM, N), lambda g, i: (g, i, 0)),
        compiler_params=pltpu.CompilerParams(
            dimension_semantics=("parallel", "parallel")),
    )(patches_g.astype(jnp.bfloat16), w_g.astype(jnp.bfloat16),
      bias_g.reshape(G, 1, N).astype(jnp.float32))


def maxpool_3x3_s2(x_nhwc):
    """MaxPool2d(kernel=3, stride=2, padding=0) on NHWC input."""
    N, H, W, C = x_nhwc.shape
    # No runtime bounds check on VMEM refs -> guard shapes statically.
    assert H >= 3 and W >= 3, (H, W)
    Ho = (H - 3) // 2 + 1
    Wo = (W - 3) // 2 + 1

    # Parity planes (even/odd rows x even/odd cols).  The +1 column shift is
    # applied here in the XLA glue so the kernel never slides the W (sublane)
    # axis, which would force in-kernel VMEM relayouts.
    ee = x_nhwc[:, 0::2, 0::2, :]
    eo = x_nhwc[:, 0::2, 1::2, :]
    oe = x_nhwc[:, 1::2, 0::2, :]
    oo = x_nhwc[:, 1::2, 1::2, :]
    planes = (
        ee[:, :Ho + 1, :Wo, :],       # x[2h,   2w  ]
        eo[:, :Ho + 1, :Wo, :],       # x[2h,   2w+1]
        oe[:, :Ho, :Wo, :],           # x[2h+1, 2w  ]
        oo[:, :Ho, :Wo, :],           # x[2h+1, 2w+1]
        ee[:, :Ho + 1, 1:Wo + 1, :],  # x[2h,   2w+2]
        oe[:, :Ho, 1:Wo + 1, :],      # x[2h+1, 2w+2]
    )

    def spec(p):
        return pl.BlockSpec(p.shape, lambda i: (0, 0, 0, 0))

    # Whole batch in a single grid step: at Stem sizes the pool is pure launch
    # overhead, so one aligned-read max tree per call is the cheapest shape.
    return pl.pallas_call(
        functools.partial(_maxpool_kernel, ho=Ho),
        out_shape=jax.ShapeDtypeStruct((N, Ho, Wo, C), x_nhwc.dtype),
        grid=(1,),
        in_specs=[spec(p) for p in planes],
        out_specs=pl.BlockSpec((N, Ho, Wo, C), lambda i: (0, 0, 0, 0)),
    )(*planes)


# ---------------------------------------------------------------------------
# im2col glue (plain JAX, fused by XLA under jit; emitted in bf16)
# ---------------------------------------------------------------------------
def _im2col(x_nhwc, kh, kw, sh, sw, ph, pw):
    x = jnp.pad(x_nhwc, ((0, 0), (ph, ph), (pw, pw), (0, 0)))
    x = x.astype(jnp.bfloat16)
    N, H, W, C = x.shape
    Ho = (H - kh) // sh + 1
    Wo = (W - kw) // sw + 1
    cols = []
    for i in range(kh):
        for j in range(kw):
            cols.append(x[:, i:i + sh * Ho:sh, j:j + sw * Wo:sw, :])
    patches = jnp.stack(cols, axis=3)          # (N, Ho, Wo, kh*kw, C)
    return patches.reshape(N * Ho * Wo, kh * kw * C), (N, Ho, Wo)


def basic_conv2d(x_nhwc, p, stride, padding):
    """conv(no bias) -> BatchNorm(eps=1e-3, scale folded into w) -> ReLU."""
    w = p["w"]                                 # (kh, kw, cin, cout)
    kh, kw, cin, cout = w.shape
    sh, sw = (stride, stride) if isinstance(stride, int) else stride
    ph, pw = (padding, padding) if isinstance(padding, int) else padding
    patches, (N, Ho, Wo) = _im2col(x_nhwc, kh, kw, sh, sw, ph, pw)
    y = conv_bn_relu_matmul(patches, w.reshape(kh * kw * cin, cout), p["bias"])
    return y.reshape(N, Ho, Wo, cout)


# ---------------------------------------------------------------------------
# Parameter construction (deterministic, synthetic)
# ---------------------------------------------------------------------------
def make_conv_params(key, cin, cout, kh, kw):
    # NOTE: real PyTorch weights (cout, cin, kh, kw) must be permuted with
    # transpose(2, 3, 1, 0) to this (kh, kw, cin, cout) layout and folded the
    # same way with the real running statistics.
    k1, k2, k3 = jax.random.split(key, 3)
    fan_in = kh * kw * cin
    w = jax.random.normal(k1, (kh, kw, cin, cout), jnp.float32) / jnp.sqrt(
        jnp.float32(fan_in))
    gamma = 1.0 + 0.1 * jax.random.normal(k2, (cout,), jnp.float32)
    beta = 0.1 * jax.random.normal(k3, (cout,), jnp.float32)
    running_mean = jnp.zeros((cout,), jnp.float32)
    running_var = jnp.ones((cout,), jnp.float32)
    eps = 1e-3
    scale = gamma / jnp.sqrt(running_var + eps)
    bias = beta - running_mean * scale
    # Fold BN scale into the weights: (x @ w) * s + b == x @ (w * s) + b, so
    # the kernel epilogue is a single f32 bias-add + ReLU.
    w_folded = (w * scale).astype(jnp.bfloat16)
    return dict(w=w_folded, bias=bias)


def make_stem_params(key):
    names_shapes = [
        ("a1", 3, 32, 3, 3), ("a2", 32, 32, 3, 3), ("a3", 32, 64, 3, 3),
        ("ba1", 64, 96, 3, 3),
        ("b0_1", 160, 64, 1, 1), ("b0_2", 64, 96, 3, 3),
        ("b1_1", 160, 64, 1, 1), ("b1_2", 64, 64, 1, 7),
        ("b1_3", 64, 64, 7, 1), ("b1_4", 64, 96, 3, 3),
        ("c0", 192, 192, 3, 3),
    ]
    keys = jax.random.split(key, len(names_shapes))
    return {name: make_conv_params(k, cin, cout, kh, kw)
            for k, (name, cin, cout, kh, kw) in zip(keys, names_shapes)}


# ---------------------------------------------------------------------------
# StemBlock forward
# ---------------------------------------------------------------------------
def stem_block_forward(x_nchw, params):
    x = jnp.transpose(x_nchw, (0, 2, 3, 1))  # NCHW -> NHWC

    # model_a
    x = basic_conv2d(x, params["a1"], stride=2, padding=0)
    x = basic_conv2d(x, params["a2"], stride=1, padding=1)
    x = basic_conv2d(x, params["a3"], stride=1, padding=0)

    # branch a: maxpool || conv(64->96, s2)
    x0 = maxpool_3x3_s2(x)
    x1 = basic_conv2d(x, params["ba1"], stride=2, padding=0)
    x = jnp.concatenate([x0, x1], axis=-1)  # 160 channels

    # branch b
    # Fuse the two parallel 1x1 convs (160->64 each, same input) into one
    # lane-dense 160->128 matmul, then slice the two halves.
    Nb, Hb, Wb, Cb = x.shape
    cout01 = params["b0_1"]["w"].shape[-1]
    w01 = jnp.concatenate([params["b0_1"]["w"].reshape(Cb, cout01),
                           params["b1_1"]["w"].reshape(Cb, cout01)], axis=1)
    bias01 = jnp.concatenate([params["b0_1"]["bias"], params["b1_1"]["bias"]])
    y01 = conv_bn_relu_matmul(x.reshape(Nb * Hb * Wb, Cb), w01, bias01)
    y01 = y01.reshape(Nb, Hb, Wb, 2 * cout01)
    b0 = y01[..., :cout01]
    b1 = y01[..., cout01:]

    b1 = basic_conv2d(b1, params["b1_2"], stride=1, padding=(0, 3))
    b1 = basic_conv2d(b1, params["b1_3"], stride=1, padding=(3, 0))

    # b0_2 and b1_4 are the same shape (K=3*3*64, N=96): run them as one
    # grouped pallas_call (fewer launches, larger per-call M).
    p0, (Ng, Hg, Wg) = _im2col(b0, 3, 3, 1, 1, 0, 0)
    p1, _ = _im2col(b1, 3, 3, 1, 1, 0, 0)
    kg = params["b0_2"]["w"].shape
    wg = jnp.stack([params["b0_2"]["w"].reshape(kg[0] * kg[1] * kg[2], kg[3]),
                    params["b1_4"]["w"].reshape(kg[0] * kg[1] * kg[2], kg[3])],
                   axis=0)
    bg = jnp.stack([params["b0_2"]["bias"], params["b1_4"]["bias"]], axis=0)
    yg = conv_bn_relu_matmul_grouped(jnp.stack([p0, p1], axis=0), wg, bg)
    b0 = yg[0].reshape(Ng, Hg, Wg, kg[3])
    b1 = yg[1].reshape(Ng, Hg, Wg, kg[3])
    x = jnp.concatenate([b0, b1], axis=-1)  # 192 channels

    # branch c
    c0 = basic_conv2d(x, params["c0"], stride=2, padding=0)
    c1 = maxpool_3x3_s2(x)
    x = jnp.concatenate([c0, c1], axis=-1)  # 384 channels

    # Output stays bf16 (activations are kept bf16 end-to-end).
    return jnp.transpose(x, (0, 3, 1, 2))  # NHWC -> NCHW


if __name__ == "__main__":
    key = jax.random.PRNGKey(0)
    k_params, k_input = jax.random.split(key)

    params = make_stem_params(k_params)

    # Small but architecture-consistent input: 35x35 spatial, 3 channels fixed
    # by the module. Spatial: 35 -> 17 -> 17 -> 15 -> 7 -> 5 -> 2.
    x = jax.random.normal(k_input, (2, 3, 35, 35), jnp.float32)

    stem_forward = jax.jit(stem_block_forward)
    out = stem_forward(x, params)
    out = jax.block_until_ready(out)

    assert out.shape == (2, 384, 2, 2), out.shape
    assert bool(jnp.all(jnp.isfinite(out)))
    print("KERNEL_OK")
</pallas_src>

<mosaic_0001>
module attributes {stable_mosaic.version = 11 : i64} {
  func.func @_conv_bn_relu_kernel(%arg0: i32, %arg1: memref<256x27xbf16, #tpu.memory_space<vmem>>, %arg2: memref<27x32xbf16, #tpu.memory_space<vmem>>, %arg3: memref<1x32xf32, #tpu.memory_space<vmem>>, %arg4: memref<256x32xbf16, #tpu.memory_space<vmem>>) attributes {dimension_semantics = [#tpu.dimension_semantics<parallel>], iteration_bounds = array<i64: 3>, scalar_prefetch = 0 : i64, scratch_operands = 0 : i64, tpu.core_type = #tpu.core_type<tc>, window_params = [{transform_indices = @transform_0, window_bounds = array<i64: 256, 27>}, {pipeline_mode = #tpu.pipeline_mode<synchronous>, transform_indices = @transform_1, window_bounds = array<i64: 27, 32>}, {pipeline_mode = #tpu.pipeline_mode<synchronous>, transform_indices = @transform_2, window_bounds = array<i64: 1, 32>}, {transform_indices = @transform_3, window_bounds = array<i64: 256, 32>}]} {
    %c0 = arith.constant 0 : index
    %c0_0 = arith.constant 0 : index
    %0 = vector.load %arg1[%c0, %c0_0] : memref<256x27xbf16, #tpu.memory_space<vmem>>, vector<256x27xbf16>
    %c0_1 = arith.constant 0 : index
    %c0_2 = arith.constant 0 : index
    %1 = vector.load %arg2[%c0_1, %c0_2] : memref<27x32xbf16, #tpu.memory_space<vmem>>, vector<27x32xbf16>
    %cst = arith.constant dense<0.000000e+00> : vector<256x32xf32>
    %2 = tpu.matmul %0, %1, %cst {dimension_numbers = #tpu.dot_dimension_numbers<[1], [0], [0], [1], [0, 0, 1, 1], [], []>} : vector<256x27xbf16>, vector<27x32xbf16>, vector<256x32xf32> -> vector<256x32xf32>
    %c0_3 = arith.constant 0 : index
    %c0_4 = arith.constant 0 : index
    %3 = vector.load %arg3[%c0_3, %c0_4] : memref<1x32xf32, #tpu.memory_space<vmem>>, vector<1x32xf32>
    %4 = vector.broadcast %3 : vector<1x32xf32> to vector<256x32xf32>
    %5 = arith.addf %2, %4 : vector<256x32xf32>
    %cst_5 = arith.constant 0.000000e+00 : f32
    %6 = vector.broadcast %cst_5 : f32 to vector<256x32xf32>
    %7 = arith.maximumf %5, %6 : vector<256x32xf32>
    %8 = arith.truncf %7 : vector<256x32xf32> to vector<256x32xbf16>
    %c0_6 = arith.constant 0 : index
    %c0_7 = arith.constant 0 : index
    %9 = vector.load %arg4[%c0_6, %c0_7] : memref<256x32xbf16, #tpu.memory_space<vmem>>, vector<256x32xbf16>
    tpu.vector_store %arg4[%c0_6, %c0_7], %8 {strides = array<i32>} : memref<256x32xbf16, #tpu.memory_space<vmem>>, vector<256x32xbf16>,
    return
  }
  func.func @transform_0(%arg0: i32) -> (i32, i32) {
    %c0_i32 = arith.constant 0 : i32
    %c0_i32_0 = arith.constant 0 : i32
    return %arg0, %c0_i32 : i32, i32
  }
  func.func @transform_1(%arg0: i32) -> (i32, i32) {
    %c0_i32 = arith.constant 0 : i32
    %c0_i32_0 = arith.constant 0 : i32
    %c0_i32_1 = arith.constant 0 : i32
    return %c0_i32, %c0_i32_0 : i32, i32
  }
  func.func @transform_2(%arg0: i32) -> (i32, i32) {
    %c0_i32 = arith.constant 0 : i32
    %c0_i32_0 = arith.constant 0 : i32
    %c0_i32_1 = arith.constant 0 : i32
    return %c0_i32, %c0_i32_0 : i32, i32
  }
  func.func @transform_3(%arg0: i32) -> (i32, i32) {
    %c0_i32 = arith.constant 0 : i32
    %c0_i32_0 = arith.constant 0 : i32
    return %arg0, %c0_i32 : i32, i32
  }
}

module attributes {stable_mosaic.version = 11 : i64} {
  func.func @_conv_bn_relu_kernel(%arg0: i32, %arg1: memref<256x288xbf16, #tpu.memory_space<vmem>>, %arg2: memref<288x32xbf16, #tpu.memory_space<vmem>>, %arg3: memref<1x32xf32, #tpu.memory_space<vmem>>, %arg4: memref<256x32xbf16, #tpu.memory_space<vmem>>) attributes {dimension_semantics = [#tpu.dimension_semantics<parallel>], iteration_bounds = array<i64: 3>, scalar_prefetch = 0 : i64, scratch_operands = 0 : i64, tpu.core_type = #tpu.core_type<tc>, window_params = [{transform_indices = @transform_0, window_bounds = array<i64: 256, 288>}, {pipeline_mode = #tpu.pipeline_mode<synchronous>, transform_indices = @transform_1, window_bounds = array<i64: 288, 32>}, {pipeline_mode = #tpu.pipeline_mode<synchronous>, transform_indices = @transform_2, window_bounds = array<i64: 1, 32>}, {transform_indices = @transform_3, window_bounds = array<i64: 256, 32>}]} {
    %c0 = arith.constant 0 : index
    %c0_0 = arith.constant 0 : index
    %0 = vector.load %arg1[%c0, %c0_0] : memref<256x288xbf16, #tpu.memory_space<vmem>>, vector<256x288xbf16>
    %c0_1 = arith.constant 0 : index
    %c0_2 = arith.constant 0 : index
    %1 = vector.load %arg2[%c0_1, %c0_2] : memref<288x32xbf16, #tpu.memory_space<vmem>>, vector<288x32xbf16>
    %cst = arith.constant dense<0.000000e+00> : vector<256x32xf32>
    %2 = tpu.matmul %0, %1, %cst {dimension_numbers = #tpu.dot_dimension_numbers<[1], [0], [0], [1], [0, 0, 1, 1], [], []>} : vector<256x288xbf16>, vector<288x32xbf16>, vector<256x32xf32> -> vector<256x32xf32>
    %c0_3 = arith.constant 0 : index
    %c0_4 = arith.constant 0 : index
    %3 = vector.load %arg3[%c0_3, %c0_4] : memref<1x32xf32, #tpu.memory_space<vmem>>, vector<1x32xf32>
    %4 = vector.broadcast %3 : vector<1x32xf32> to vector<256x32xf32>
    %5 = arith.addf %2, %4 : vector<256x32xf32>
    %cst_5 = arith.constant 0.000000e+00 : f32
    %6 = vector.broadcast %cst_5 : f32 to vector<256x32xf32>
    %7 = arith.maximumf %5, %6 : vector<256x32xf32>
    %8 = arith.truncf %7 : vector<256x32xf32> to vector<256x32xbf16>
    %c0_6 = arith.constant 0 : index
    %c0_7 = arith.constant 0 : index
    %9 = vector.load %arg4[%c0_6, %c0_7] : memref<256x32xbf16, #tpu.memory_space<vmem>>, vector<256x32xbf16>
    tpu.vector_store %arg4[%c0_6, %c0_7], %8 {strides = array<i32>} : memref<256x32xbf16, #tpu.memory_space<vmem>>, vector<256x32xbf16>,
    return
  }
  func.func @transform_0(%arg0: i32) -> (i32, i32) {
    %c0_i32 = arith.constant 0 : i32
    %c0_i32_0 = arith.constant 0 : i32
    return %arg0, %c0_i32 : i32, i32
  }
  func.func @transform_1(%arg0: i32) -> (i32, i32) {
    %c0_i32 = arith.constant 0 : i32
    %c0_i32_0 = arith.constant 0 : i32
    %c0_i32_1 = arith.constant 0 : i32
    return %c0_i32, %c0_i32_0 : i32, i32
  }
  func.func @transform_2(%arg0: i32) -> (i32, i32) {
    %c0_i32 = arith.constant 0 : i32
    %c0_i32_0 = arith.constant 0 : i32
    %c0_i32_1 = arith.constant 0 : i32
    return %c0_i32, %c0_i32_0 : i32, i32
  }
  func.func @transform_3(%arg0: i32) -> (i32, i32) {
    %c0_i32 = arith.constant 0 : i32
    %c0_i32_0 = arith.constant 0 : i32
    return %arg0, %c0_i32 : i32, i32
  }
}

module attributes {stable_mosaic.version = 11 : i64} {
  func.func @_conv_bn_relu_kernel(%arg0: i32, %arg1: memref<256x288xbf16, #tpu.memory_space<vmem>>, %arg2: memref<288x64xbf16, #tpu.memory_space<vmem>>, %arg3: memref<1x64xf32, #tpu.memory_space<vmem>>, %arg4: memref<256x64xbf16, #tpu.memory_space<vmem>>) attributes {dimension_semantics = [#tpu.dimension_semantics<parallel>], iteration_bounds = array<i64: 2>, scalar_prefetch = 0 : i64, scratch_operands = 0 : i64, tpu.core_type = #tpu.core_type<tc>, window_params = [{transform_indices = @transform_0, window_bounds = array<i64: 256, 288>}, {pipeline_mode = #tpu.pipeline_mode<synchronous>, transform_indices = @transform_1, window_bounds = array<i64: 288, 64>}, {pipeline_mode = #tpu.pipeline_mode<synchronous>, transform_indices = @transform_2, window_bounds = array<i64: 1, 64>}, {transform_indices = @transform_3, window_bounds = array<i64: 256, 64>}]} {
    %c0 = arith.constant 0 : index
    %c0_0 = arith.constant 0 : index
    %0 = vector.load %arg1[%c0, %c0_0] : memref<256x288xbf16, #tpu.memory_space<vmem>>, vector<256x288xbf16>
    %c0_1 = arith.constant 0 : index
    %c0_2 = arith.constant 0 : index
    %1 = vector.load %arg2[%c0_1, %c0_2] : memref<288x64xbf16, #tpu.memory_space<vmem>>, vector<288x64xbf16>
    %cst = arith.constant dense<0.000000e+00> : vector<256x64xf32>
    %2 = tpu.matmul %0, %1, %cst {dimension_numbers = #tpu.dot_dimension_numbers<[1], [0], [0], [1], [0, 0, 1, 1], [], []>} : vector<256x288xbf16>, vector<288x64xbf16>, vector<256x64xf32> -> vector<256x64xf32>
    %c0_3 = arith.constant 0 : index
    %c0_4 = arith.constant 0 : index
    %3 = vector.load %arg3[%c0_3, %c0_4] : memref<1x64xf32, #tpu.memory_space<vmem>>, vector<1x64xf32>
    %4 = vector.broadcast %3 : vector<1x64xf32> to vector<256x64xf32>
    %5 = arith.addf %2, %4 : vector<256x64xf32>
    %cst_5 = arith.constant 0.000000e+00 : f32
    %6 = vector.broadcast %cst_5 : f32 to vector<256x64xf32>
    %7 = arith.maximumf %5, %6 : vector<256x64xf32>
    %8 = arith.truncf %7 : vector<256x64xf32> to vector<256x64xbf16>
    %c0_6 = arith.constant 0 : index
    %c0_7 = arith.constant 0 : index
    %9 = vector.load %arg4[%c0_6, %c0_7] : memref<256x64xbf16, #tpu.memory_space<vmem>>, vector<256x64xbf16>
    tpu.vector_store %arg4[%c0_6, %c0_7], %8 {strides = array<i32>} : memref<256x64xbf16, #tpu.memory_space<vmem>>, vector<256x64xbf16>,
    return
  }
  func.func @transform_0(%arg0: i32) -> (i32, i32) {
    %c0_i32 = arith.constant 0 : i32
    %c0_i32_0 = arith.constant 0 : i32
    return %arg0, %c0_i32 : i32, i32
  }
  func.func @transform_1(%arg0: i32) -> (i32, i32) {
    %c0_i32 = arith.constant 0 : i32
    %c0_i32_0 = arith.constant 0 : i32
    %c0_i32_1 = arith.constant 0 : i32
    return %c0_i32, %c0_i32_0 : i32, i32
  }
  func.func @transform_2(%arg0: i32) -> (i32, i32) {
    %c0_i32 = arith.constant 0 : i32
    %c0_i32_0 = arith.constant 0 : i32
    %c0_i32_1 = arith.constant 0 : i32
    return %c0_i32, %c0_i32_0 : i32, i32
  }
  func.func @transform_3(%arg0: i32) -> (i32, i32) {
    %c0_i32 = arith.constant 0 : i32
    %c0_i32_0 = arith.constant 0 : i32
    return %arg0, %c0_i32 : i32, i32
  }
}

module attributes {stable_mosaic.version = 11 : i64} {
  func.func @_maxpool_kernel(%arg0: i32, %arg1: memref<2x8x7x64xbf16, #tpu.memory_space<vmem>>, %arg2: memref<2x8x7x64xbf16, #tpu.memory_space<vmem>>, %arg3: memref<2x7x7x64xbf16, #tpu.memory_space<vmem>>, %arg4: memref<2x7x7x64xbf16, #tpu.memory_space<vmem>>, %arg5: memref<2x8x7x64xbf16, #tpu.memory_space<vmem>>, %arg6: memref<2x7x7x64xbf16, #tpu.memory_space<vmem>>, %arg7: memref<2x7x7x64xbf16, #tpu.memory_space<vmem>>) attributes {dimension_semantics = [#tpu.dimension_semantics<arbitrary>], iteration_bounds = array<i64: 1>, scalar_prefetch = 0 : i64, scratch_operands = 0 : i64, tpu.core_type = #tpu.core_type<tc>, window_params = [{pipeline_mode = #tpu.pipeline_mode<synchronous>, transform_indices = @transform_0, window_bounds = array<i64: 2, 8, 7, 64>}, {pipeline_mode = #tpu.pipeline_mode<synchronous>, transform_indices = @transform_1, window_bounds = array<i64: 2, 8, 7, 64>}, {pipeline_mode = #tpu.pipeline_mode<synchronous>, transform_indices = @transform_2, window_bounds = array<i64: 2, 7, 7, 64>}, {pipeline_mode = #tpu.pipeline_mode<synchronous>, transform_indices = @transform_3, window_bounds = array<i64: 2, 7, 7, 64>}, {pipeline_mode = #tpu.pipeline_mode<synchronous>, transform_indices = @transform_4, window_bounds = array<i64: 2, 8, 7, 64>}, {pipeline_mode = #tpu.pipeline_mode<synchronous>, transform_indices = @transform_5, window_bounds = array<i64: 2, 7, 7, 64>}, {pipeline_mode = #tpu.pipeline_mode<synchronous>, transform_indices = @transform_6, window_bounds = array<i64: 2, 7, 7, 64>}]} {
    %c0 = arith.constant 0 : index
    %c0_0 = arith.constant 0 : index
    %c0_1 = arith.constant 0 : index
    %c0_2 = arith.constant 0 : index
    %0 = vector.load %arg1[%c0, %c0_0, %c0_1, %c0_2] : memref<2x8x7x64xbf16, #tpu.memory_space<vmem>>, vector<2x7x7x64xbf16>
    %c0_3 = arith.constant 0 : index
    %c0_4 = arith.constant 0 : index
    %c0_5 = arith.constant 0 : index
    %c0_6 = arith.constant 0 : index
    %1 = vector.load %arg2[%c0_3, %c0_4, %c0_5, %c0_6] : memref<2x8x7x64xbf16, #tpu.memory_space<vmem>>, vector<2x7x7x64xbf16>
    %2 = arith.maximumf %0, %1 : vector<2x7x7x64xbf16>
    %c0_7 = arith.constant 0 : index
    %c0_8 = arith.constant 0 : index
    %c0_9 = arith.constant 0 : index
    %c0_10 = arith.constant 0 : index
    %3 = vector.load %arg5[%c0_7, %c0_8, %c0_9, %c0_10] : memref<2x8x7x64xbf16, #tpu.memory_space<vmem>>, vector<2x7x7x64xbf16>
    %4 = arith.maximumf %2, %3 : vector<2x7x7x64xbf16>
    %c0_11 = arith.constant 0 : index
    %c0_12 = arith.constant 0 : index
    %c0_13 = arith.constant 0 : index
    %c0_14 = arith.constant 0 : index
    %5 = vector.load %arg3[%c0_11, %c0_12, %c0_13, %c0_14] : memref<2x7x7x64xbf16, #tpu.memory_space<vmem>>, vector<2x7x7x64xbf16>
    %6 = arith.maximumf %4, %5 : vector<2x7x7x64xbf16>
    %c0_15 = arith.constant 0 : index
    %c0_16 = arith.constant 0 : index
    %c0_17 = arith.constant 0 : index
    %c0_18 = arith.constant 0 : index
    %7 = vector.load %arg4[%c0_15, %c0_16, %c0_17, %c0_18] : memref<2x7x7x64xbf16, #tpu.memory_space<vmem>>, vector<2x7x7x64xbf16>
    %8 = arith.maximumf %6, %7 : vector<2x7x7x64xbf16>
    %c0_19 = arith.constant 0 : index
    %c0_20 = arith.constant 0 : index
    %c0_21 = arith.constant 0 : index
    %c0_22 = arith.constant 0 : index
    %9 = vector.load %arg6[%c0_19, %c0_20, %c0_21, %c0_22] : memref<2x7x7x64xbf16, #tpu.memory_space<vmem>>, vector<2x7x7x64xbf16>
    %10 = arith.maximumf %8, %9 : vector<2x7x7x64xbf16>
    %c0_23 = arith.constant 0 : index
    %c1 = arith.constant 1 : index
    %c0_24 = arith.constant 0 : index
    %c0_25 = arith.constant 0 : index
    %11 = vector.load %arg1[%c0_23, %c1, %c0_24, %c0_25] : memref<2x8x7x64xbf16, #tpu.memory_space<vmem>>, vector<2x7x7x64xbf16>
    %12 = arith.maximumf %10, %11 : vector<2x7x7x64xbf16>
    %c0_26 = arith.constant 0 : index
    %c1_27 = arith.constant 1 : index
    %c0_28 = arith.constant 0 : index
    %c0_29 = arith.constant 0 : index
    %13 = vector.load %arg2[%c0_26, %c1_27, %c0_28, %c0_29] : memref<2x8x7x64xbf16, #tpu.memory_space<vmem>>, vector<2x7x7x64xbf16>
    %14 = arith.maximumf %12, %13 : vector<2x7x7x64xbf16>
    %c0_30 = arith.constant 0 : index
    %c1_31 = arith.constant 1 : index
    %c0_32 = arith.constant 0 : index
    %c0_33 = arith.constant 0 : index
    %15 = vector.load %arg5[%c0_30, %c1_31, %c0_32, %c0_33] : memref<2x8x7x64xbf16, #tpu.memory_space<vmem>>, vector<2x7x7x64xbf16>
    %16 = arith.maximumf %14, %15 : vector<2x7x7x64xbf16>
    %c0_34 = arith.constant 0 : index
    %c0_35 = arith.constant 0 : index
    %c0_36 = arith.constant 0 : index
    %c0_37 = arith.constant 0 : index
    %17 = vector.load %arg7[%c0_34, %c0_35, %c0_36, %c0_37] : memref<2x7x7x64xbf16, #tpu.memory_space<vmem>>, vector<2x7x7x64xbf16>
    tpu.vector_store %arg7[%c0_34, %c0_35, %c0_36, %c0_37], %16 {strides = array<i32>} : memref<2x7x7x64xbf16, #tpu.memory_space<vmem>>, vector<2x7x7x64xbf16>,
    return
  }
  func.func @transform_0(%arg0: i32) -> (i32, i32, i32, i32) {
    %c0_i32 = arith.constant 0 : i32
    %c0_i32_0 = arith.constant 0 : i32
    %c0_i32_1 = arith.constant 0 : i32
    %c0_i32_2 = arith.constant 0 : i32
    %c0_i32_3 = arith.constant 0 : i32
    return %c0_i32, %c0_i32_0, %c0_i32_1, %c0_i32_2 : i32, i32, i32, i32
  }
  func.func @transform_1(%arg0: i32) -> (i32, i32, i32, i32) {
    %c0_i32 = arith.constant 0 : i32
    %c0_i32_0 = arith.constant 0 : i32
    %c0_i32_1 = arith.constant 0 : i32
    %c0_i32_2 = arith.constant 0 : i32
    %c0_i32_3 = arith.constant 0 : i32
    return %c0_i32, %c0_i32_0, %c0_i32_1, %c0_i32_2 : i32, i32, i32, i32
  }
  func.func @transform_2(%arg0: i32) -> (i32, i32, i32, i32) {
    %c0_i32 = arith.constant 0 : i32
    %c0_i32_0 = arith.constant 0 : i32
    %c0_i32_1 = arith.constant 0 : i32
    %c0_i32_2 = arith.constant 0 : i32
    %c0_i32_3 = arith.constant 0 : i32
    return %c0_i32, %c0_i32_0, %c0_i32_1, %c0_i32_2 : i32, i32, i32, i32
  }
  func.func @transform_3(%arg0: i32) -> (i32, i32, i32, i32) {
    %c0_i32 = arith.constant 0 : i32
    %c0_i32_0 = arith.constant 0 : i32
    %c0_i32_1 = arith.constant 0 : i32
    %c0_i32_2 = arith.constant 0 : i32
    %c0_i32_3 = arith.constant 0 : i32
    return %c0_i32, %c0_i32_0, %c0_i32_1, %c0_i32_2 : i32, i32, i32, i32
  }
  func.func @transform_4(%arg0: i32) -> (i32, i32, i32, i32) {
    %c0_i32 = arith.constant 0 : i32
    %c0_i32_0 = arith.constant 0 : i32
    %c0_i32_1 = arith.constant 0 : i32
    %c0_i32_2 = arith.constant 0 : i32
    %c0_i32_3 = arith.constant 0 : i32
    return %c0_i32, %c0_i32_0, %c0_i32_1, %c0_i32_2 : i32, i32, i32, i32
  }
  func.func @transform_5(%arg0: i32) -> (i32, i32, i32, i32) {
    %c0_i32 = arith.constant 0 : i32
    %c0_i32_0 = arith.constant 0 : i32
    %c0_i32_1 = arith.constant 0 : i32
    %c0_i32_2 = arith.constant 0 : i32
    %c0_i32_3 = arith.constant 0 : i32
    return %c0_i32, %c0_i32_0, %c0_i32_1, %c0_i32_2 : i32, i32, i32, i32
  }
  func.func @transform_6(%arg0: i32) -> (i32, i32, i32, i32) {
    %c0_i32 = arith.constant 0 : i32
    %c0_i32_0 = arith.constant 0 : i32
    %c0_i32_1 = arith.constant 0 : i32
    %c0_i32_2 = arith.constant 0 : i32
    %c0_i32_3 = arith.constant 0 : i32
    return %c0_i32, %c0_i32_0, %c0_i32_1, %c0_i32_2 : i32, i32, i32, i32
  }
}

module attributes {stable_mosaic.version = 11 : i64} {
  func.func @_conv_bn_relu_kernel(%arg0: i32, %arg1: memref<98x576xbf16, #tpu.memory_space<vmem>>, %arg2: memref<576x96xbf16, #tpu.memory_space<vmem>>, %arg3: memref<1x96xf32, #tpu.memory_space<vmem>>, %arg4: memref<98x96xbf16, #tpu.memory_space<vmem>>) attributes {dimension_semantics = [#tpu.dimension_semantics<parallel>], iteration_bounds = array<i64: 1>, scalar_prefetch = 0 : i64, scratch_operands = 0 : i64, tpu.core_type = #tpu.core_type<tc>, window_params = [{transform_indices = @transform_0, window_bounds = array<i64: 98, 576>}, {pipeline_mode = #tpu.pipeline_mode<synchronous>, transform_indices = @transform_1, window_bounds = array<i64: 576, 96>}, {pipeline_mode = #tpu.pipeline_mode<synchronous>, transform_indices = @transform_2, window_bounds = array<i64: 1, 96>}, {transform_indices = @transform_3, window_bounds = array<i64: 98, 96>}]} {
    %c0 = arith.constant 0 : index
    %c0_0 = arith.constant 0 : index
    %0 = vector.load %arg1[%c0, %c0_0] : memref<98x576xbf16, #tpu.memory_space<vmem>>, vector<98x576xbf16>
    %c0_1 = arith.constant 0 : index
    %c0_2 = arith.constant 0 : index
    %1 = vector.load %arg2[%c0_1, %c0_2] : memref<576x96xbf16, #tpu.memory_space<vmem>>, vector<576x96xbf16>
    %cst = arith.constant dense<0.000000e+00> : vector<98x96xf32>
    %2 = tpu.matmul %0, %1, %cst {dimension_numbers = #tpu.dot_dimension_numbers<[1], [0], [0], [1], [0, 0, 1, 1], [], []>} : vector<98x576xbf16>, vector<576x96xbf16>, vector<98x96xf32> -> vector<98x96xf32>
    %c0_3 = arith.constant 0 : index
    %c0_4 = arith.constant 0 : index
    %3 = vector.load %arg3[%c0_3, %c0_4] : memref<1x96xf32, #tpu.memory_space<vmem>>, vector<1x96xf32>
    %4 = vector.broadcast %3 : vector<1x96xf32> to vector<98x96xf32>
    %5 = arith.addf %2, %4 : vector<98x96xf32>
    %cst_5 = arith.constant 0.000000e+00 : f32
    %6 = vector.broadcast %cst_5 : f32 to vector<98x96xf32>
    %7 = arith.maximumf %5, %6 : vector<98x96xf32>
    %8 = arith.truncf %7 : vector<98x96xf32> to vector<98x96xbf16>
    %c0_6 = arith.constant 0 : index
    %c0_7 = arith.constant 0 : index
    %9 = vector.load %arg4[%c0_6, %c0_7] : memref<98x96xbf16, #tpu.memory_space<vmem>>, vector<98x96xbf16>
    tpu.vector_store %arg4[%c0_6, %c0_7], %8 {strides = array<i32>} : memref<98x96xbf16, #tpu.memory_space<vmem>>, vector<98x96xbf16>,
    return
  }
  func.func @transform_0(%arg0: i32) -> (i32, i32) {
    %c0_i32 = arith.constant 0 : i32
    %c0_i32_0 = arith.constant 0 : i32
    return %arg0, %c0_i32 : i32, i32
  }
  func.func @transform_1(%arg0: i32) -> (i32, i32) {
    %c0_i32 = arith.constant 0 : i32
    %c0_i32_0 = arith.constant 0 : i32
    %c0_i32_1 = arith.constant 0 : i32
    return %c0_i32, %c0_i32_0 : i32, i32
  }
  func.func @transform_2(%arg0: i32) -> (i32, i32) {
    %c0_i32 = arith.constant 0 : i32
    %c0_i32_0 = arith.constant 0 : i32
    %c0_i32_1 = arith.constant 0 : i32
    return %c0_i32, %c0_i32_0 : i32, i32
  }
  func.func @transform_3(%arg0: i32) -> (i32, i32) {
    %c0_i32 = arith.constant 0 : i32
    %c0_i32_0 = arith.constant 0 : i32
    return %arg0, %c0_i32 : i32, i32
  }
}

module attributes {stable_mosaic.version = 11 : i64} {
  func.func @_conv_bn_relu_kernel(%arg0: i32, %arg1: memref<98x160xbf16, #tpu.memory_space<vmem>>, %arg2: memref<160x128xbf16, #tpu.memory_space<vmem>>, %arg3: memref<1x128xf32, #tpu.memory_space<vmem>>, %arg4: memref<98x128xbf16, #tpu.memory_space<vmem>>) attributes {dimension_semantics = [#tpu.dimension_semantics<parallel>], iteration_bounds = array<i64: 1>, scalar_prefetch = 0 : i64, scratch_operands = 0 : i64, tpu.core_type = #tpu.core_type<tc>, window_params = [{transform_indices = @transform_0, window_bounds = array<i64: 98, 160>}, {pipeline_mode = #tpu.pipeline_mode<synchronous>, transform_indices = @transform_1, window_bounds = array<i64: 160, 128>}, {pipeline_mode = #tpu.pipeline_mode<synchronous>, transform_indices = @transform_2, window_bounds = array<i64: 1, 128>}, {transform_indices = @transform_3, window_bounds = array<i64: 98, 128>}]} {
    %c0 = arith.constant 0 : index
    %c0_0 = arith.constant 0 : index
    %0 = vector.load %arg1[%c0, %c0_0] : memref<98x160xbf16, #tpu.memory_space<vmem>>, vector<98x160xbf16>
    %c0_1 = arith.constant 0 : index
    %c0_2 = arith.constant 0 : index
    %1 = vector.load %arg2[%c0_1, %c0_2] : memref<160x128xbf16, #tpu.memory_space<vmem>>, vector<160x128xbf16>
    %cst = arith.constant dense<0.000000e+00> : vector<98x128xf32>
    %2 = tpu.matmul %0, %1, %cst {dimension_numbers = #tpu.dot_dimension_numbers<[1], [0], [0], [1], [0, 0, 1, 1], [], []>} : vector<98x160xbf16>, vector<160x128xbf16>, vector<98x128xf32> -> vector<98x128xf32>
    %c0_3 = arith.constant 0 : index
    %c0_4 = arith.constant 0 : index
    %3 = vector.load %arg3[%c0_3, %c0_4] : memref<1x128xf32, #tpu.memory_space<vmem>>, vector<1x128xf32>
    %4 = vector.broadcast %3 : vector<1x128xf32> to vector<98x128xf32>
    %5 = arith.addf %2, %4 : vector<98x128xf32>
    %cst_5 = arith.constant 0.000000e+00 : f32
    %6 = vector.broadcast %cst_5 : f32 to vector<98x128xf32>
    %7 = arith.maximumf %5, %6 : vector<98x128xf32>
    %8 = arith.truncf %7 : vector<98x128xf32> to vector<98x128xbf16>
    %c0_6 = arith.constant 0 : index
    %c0_7 = arith.constant 0 : index
    %9 = vector.load %arg4[%c0_6, %c0_7] : memref<98x128xbf16, #tpu.memory_space<vmem>>, vector<98x128xbf16>
    tpu.vector_store %arg4[%c0_6, %c0_7], %8 {strides = array<i32>} : memref<98x128xbf16, #tpu.memory_space<vmem>>, vector<98x128xbf16>,
    return
  }
  func.func @transform_0(%arg0: i32) -> (i32, i32) {
    %c0_i32 = arith.constant 0 : i32
    %c0_i32_0 = arith.constant 0 : i32
    return %arg0, %c0_i32 : i32, i32
  }
  func.func @transform_1(%arg0: i32) -> (i32, i32) {
    %c0_i32 = arith.constant 0 : i32
    %c0_i32_0 = arith.constant 0 : i32
    %c0_i32_1 = arith.constant 0 : i32
    return %c0_i32, %c0_i32_0 : i32, i32
  }
  func.func @transform_2(%arg0: i32) -> (i32, i32) {
    %c0_i32 = arith.constant 0 : i32
    %c0_i32_0 = arith.constant 0 : i32
    %c0_i32_1 = arith.constant 0 : i32
    return %c0_i32, %c0_i32_0 : i32, i32
  }
  func.func @transform_3(%arg0: i32) -> (i32, i32) {
    %c0_i32 = arith.constant 0 : i32
    %c0_i32_0 = arith.constant 0 : i32
    return %arg0, %c0_i32 : i32, i32
  }
}

module attributes {stable_mosaic.version = 11 : i64} {
  func.func @_conv_bn_relu_kernel(%arg0: i32, %arg1: memref<98x448xbf16, #tpu.memory_space<vmem>>, %arg2: memref<448x64xbf16, #tpu.memory_space<vmem>>, %arg3: memref<1x64xf32, #tpu.memory_space<vmem>>, %arg4: memref<98x64xbf16, #tpu.memory_space<vmem>>) attributes {dimension_semantics = [#tpu.dimension_semantics<parallel>], iteration_bounds = array<i64: 1>, scalar_prefetch = 0 : i64, scratch_operands = 0 : i64, tpu.core_type = #tpu.core_type<tc>, window_params = [{transform_indices = @transform_0, window_bounds = array<i64: 98, 448>}, {pipeline_mode = #tpu.pipeline_mode<synchronous>, transform_indices = @transform_1, window_bounds = array<i64: 448, 64>}, {pipeline_mode = #tpu.pipeline_mode<synchronous>, transform_indices = @transform_2, window_bounds = array<i64: 1, 64>}, {transform_indices = @transform_3, window_bounds = array<i64: 98, 64>}]} {
    %c0 = arith.constant 0 : index
    %c0_0 = arith.constant 0 : index
    %0 = vector.load %arg1[%c0, %c0_0] : memref<98x448xbf16, #tpu.memory_space<vmem>>, vector<98x448xbf16>
    %c0_1 = arith.constant 0 : index
    %c0_2 = arith.constant 0 : index
    %1 = vector.load %arg2[%c0_1, %c0_2] : memref<448x64xbf16, #tpu.memory_space<vmem>>, vector<448x64xbf16>
    %cst = arith.constant dense<0.000000e+00> : vector<98x64xf32>
    %2 = tpu.matmul %0, %1, %cst {dimension_numbers = #tpu.dot_dimension_numbers<[1], [0], [0], [1], [0, 0, 1, 1], [], []>} : vector<98x448xbf16>, vector<448x64xbf16>, vector<98x64xf32> -> vector<98x64xf32>
    %c0_3 = arith.constant 0 : index
    %c0_4 = arith.constant 0 : index
    %3 = vector.load %arg3[%c0_3, %c0_4] : memref<1x64xf32, #tpu.memory_space<vmem>>, vector<1x64xf32>
    %4 = vector.broadcast %3 : vector<1x64xf32> to vector<98x64xf32>
    %5 = arith.addf %2, %4 : vector<98x64xf32>
    %cst_5 = arith.constant 0.000000e+00 : f32
    %6 = vector.broadcast %cst_5 : f32 to vector<98x64xf32>
    %7 = arith.maximumf %5, %6 : vector<98x64xf32>
    %8 = arith.truncf %7 : vector<98x64xf32> to vector<98x64xbf16>
    %c0_6 = arith.constant 0 : index
    %c0_7 = arith.constant 0 : index
    %9 = vector.load %arg4[%c0_6, %c0_7] : memref<98x64xbf16, #tpu.memory_space<vmem>>, vector<98x64xbf16>
    tpu.vector_store %arg4[%c0_6, %c0_7], %8 {strides = array<i32>} : memref<98x64xbf16, #tpu.memory_space<vmem>>, vector<98x64xbf16>,
    return
  }
  func.func @transform_0(%arg0: i32) -> (i32, i32) {
    %c0_i32 = arith.constant 0 : i32
    %c0_i32_0 = arith.constant 0 : i32
    return %arg0, %c0_i32 : i32, i32
  }
  func.func @transform_1(%arg0: i32) -> (i32, i32) {
    %c0_i32 = arith.constant 0 : i32
    %c0_i32_0 = arith.constant 0 : i32
    %c0_i32_1 = arith.constant 0 : i32
    return %c0_i32, %c0_i32_0 : i32, i32
  }
  func.func @transform_2(%arg0: i32) -> (i32, i32) {
    %c0_i32 = arith.constant 0 : i32
    %c0_i32_0 = arith.constant 0 : i32
    %c0_i32_1 = arith.constant 0 : i32
    return %c0_i32, %c0_i32_0 : i32, i32
  }
  func.func @transform_3(%arg0: i32) -> (i32, i32) {
    %c0_i32 = arith.constant 0 : i32
    %c0_i32_0 = arith.constant 0 : i32
    return %arg0, %c0_i32 : i32, i32
  }
}

module attributes {stable_mosaic.version = 11 : i64} {
  func.func @_grouped_conv_bn_relu_kernel(%arg0: i32, %arg1: i32, %arg2: memref<1x50x576xbf16, #tpu.memory_space<vmem>>, %arg3: memref<1x576x96xbf16, #tpu.memory_space<vmem>>, %arg4: memref<1x1x96xf32, #tpu.memory_space<vmem>>, %arg5: memref<1x50x96xbf16, #tpu.memory_space<vmem>>) attributes {dimension_semantics = [#tpu.dimension_semantics<parallel>, #tpu.dimension_semantics<parallel>], iteration_bounds = array<i64: 2, 1>, scalar_prefetch = 0 : i64, scratch_operands = 0 : i64, tpu.core_type = #tpu.core_type<tc>, window_params = [{transform_indices = @transform_0, window_bounds = array<i64: 1, 50, 576>}, {transform_indices = @transform_1, window_bounds = array<i64: 1, 576, 96>}, {transform_indices = @transform_2, window_bounds = array<i64: 1, 1, 96>}, {transform_indices = @transform_3, window_bounds = array<i64: 1, 50, 96>}]} {
    %c0 = arith.constant 0 : index
    %c0_0 = arith.constant 0 : index
    %c0_1 = arith.constant 0 : index
    %0 = vector.load %arg2[%c0, %c0_0, %c0_1] : memref<1x50x576xbf16, #tpu.memory_space<vmem>>, vector<1x50x576xbf16>
    %1 = vector.shape_cast %0 : vector<1x50x576xbf16> to vector<50x576xbf16>
    %c0_2 = arith.constant 0 : index
    %c0_3 = arith.constant 0 : index
    %c0_4 = arith.constant 0 : index
    %2 = vector.load %arg3[%c0_2, %c0_3, %c0_4] : memref<1x576x96xbf16, #tpu.memory_space<vmem>>, vector<1x576x96xbf16>
    %3 = vector.shape_cast %2 : vector<1x576x96xbf16> to vector<576x96xbf16>
    %cst = arith.constant dense<0.000000e+00> : vector<50x96xf32>
    %4 = tpu.matmul %1, %3, %cst {dimension_numbers = #tpu.dot_dimension_numbers<[1], [0], [0], [1], [0, 0, 1, 1], [], []>} : vector<50x576xbf16>, vector<576x96xbf16>, vector<50x96xf32> -> vector<50x96xf32>
    %c0_5 = arith.constant 0 : index
    %c0_6 = arith.constant 0 : index
    %c0_7 = arith.constant 0 : index
    %5 = vector.load %arg4[%c0_5, %c0_6, %c0_7] : memref<1x1x96xf32, #tpu.memory_space<vmem>>, vector<1x1x96xf32>
    %6 = vector.shape_cast %5 : vector<1x1x96xf32> to vector<1x96xf32>
    %7 = vector.broadcast %6 : vector<1x96xf32> to vector<50x96xf32>
    %8 = arith.addf %4, %7 : vector<50x96xf32>
    %cst_8 = arith.constant 0.000000e+00 : f32
    %9 = vector.broadcast %cst_8 : f32 to vector<50x96xf32>
    %10 = arith.maximumf %8, %9 : vector<50x96xf32>
    %11 = arith.truncf %10 : vector<50x96xf32> to vector<50x96xbf16>
    %c0_9 = arith.constant 0 : index
    %c0_10 = arith.constant 0 : index
    %c0_11 = arith.constant 0 : index
    %12 = vector.load %arg5[%c0_9, %c0_10, %c0_11] : memref<1x50x96xbf16, #tpu.memory_space<vmem>>, vector<1x50x96xbf16>
    %13 = vector.shape_cast %12 : vector<1x50x96xbf16> to vector<50x96xbf16>
    %14 = vector.shape_cast %11 : vector<50x96xbf16> to vector<1x50x96xbf16>
    tpu.vector_store %arg5[%c0_9, %c0_10, %c0_11], %14 {strides = array<i32>} : memref<1x50x96xbf16, #tpu.memory_space<vmem>>, vector<1x50x96xbf16>,
    return
  }
  func.func @transform_0(%arg0: i32, %arg1: i32) -> (i32, i32, i32) {
    %c0_i32 = arith.constant 0 : i32
    %c0_i32_0 = arith.constant 0 : i32
    return %arg0, %arg1, %c0_i32 : i32, i32, i32
  }
  func.func @transform_1(%arg0: i32, %arg1: i32) -> (i32, i32, i32) {
    %c0_i32 = arith.constant 0 : i32
    %c0_i32_0 = arith.constant 0 : i32
    %c0_i32_1 = arith.constant 0 : i32
    return %arg0, %c0_i32, %c0_i32_0 : i32, i32, i32
  }
  func.func @transform_2(%arg0: i32, %arg1: i32) -> (i32, i32, i32) {
    %c0_i32 = arith.constant 0 : i32
    %c0_i32_0 = arith.constant 0 : i32
    %c0_i32_1 = arith.constant 0 : i32
    return %arg0, %c0_i32, %c0_i32_0 : i32, i32, i32
  }
  func.func @transform_3(%arg0: i32, %arg1: i32) -> (i32, i32, i32) {
    %c0_i32 = arith.constant 0 : i32
    %c0_i32_0 = arith.constant 0 : i32
    return %arg0, %arg1, %c0_i32 : i32, i32, i32
  }
}

module attributes {stable_mosaic.version = 11 : i64} {
  func.func @_conv_bn_relu_kernel(%arg0: i32, %arg1: memref<8x1728xbf16, #tpu.memory_space<vmem>>, %arg2: memref<1728x192xbf16, #tpu.memory_space<vmem>>, %arg3: memref<1x192xf32, #tpu.memory_space<vmem>>, %arg4: memref<8x192xbf16, #tpu.memory_space<vmem>>) attributes {dimension_semantics = [#tpu.dimension_semantics<parallel>], iteration_bounds = array<i64: 1>, scalar_prefetch = 0 : i64, scratch_operands = 0 : i64, tpu.core_type = #tpu.core_type<tc>, window_params = [{transform_indices = @transform_0, window_bounds = array<i64: 8, 1728>}, {pipeline_mode = #tpu.pipeline_mode<synchronous>, transform_indices = @transform_1, window_bounds = array<i64: 1728, 192>}, {pipeline_mode = #tpu.pipeline_mode<synchronous>, transform_indices = @transform_2, window_bounds = array<i64: 1, 192>}, {transform_indices = @transform_3, window_bounds = array<i64: 8, 192>}]} {
    %c0 = arith.constant 0 : index
    %c0_0 = arith.constant 0 : index
    %0 = vector.load %arg1[%c0, %c0_0] : memref<8x1728xbf16, #tpu.memory_space<vmem>>, vector<8x1728xbf16>
    %c0_1 = arith.constant 0 : index
    %c0_2 = arith.constant 0 : index
    %1 = vector.load %arg2[%c0_1, %c0_2] : memref<1728x192xbf16, #tpu.memory_space<vmem>>, vector<1728x192xbf16>
    %cst = arith.constant dense<0.000000e+00> : vector<8x192xf32>
    %2 = tpu.matmul %0, %1, %cst {dimension_numbers = #tpu.dot_dimension_numbers<[1], [0], [0], [1], [0, 0, 1, 1], [], []>} : vector<8x1728xbf16>, vector<1728x192xbf16>, vector<8x192xf32> -> vector<8x192xf32>
    %c0_3 = arith.constant 0 : index
    %c0_4 = arith.constant 0 : index
    %3 = vector.load %arg3[%c0_3, %c0_4] : memref<1x192xf32, #tpu.memory_space<vmem>>, vector<1x192xf32>
    %4 = vector.broadcast %3 : vector<1x192xf32> to vector<8x192xf32>
    %5 = arith.addf %2, %4 : vector<8x192xf32>
    %cst_5 = arith.constant 0.000000e+00 : f32
    %6 = vector.broadcast %cst_5 : f32 to vector<8x192xf32>
    %7 = arith.maximumf %5, %6 : vector<8x192xf32>
    %8 = arith.truncf %7 : vector<8x192xf32> to vector<8x192xbf16>
    %c0_6 = arith.constant 0 : index
    %c0_7 = arith.constant 0 : index
    %9 = vector.load %arg4[%c0_6, %c0_7] : memref<8x192xbf16, #tpu.memory_space<vmem>>, vector<8x192xbf16>
    tpu.vector_store %arg4[%c0_6, %c0_7], %8 {strides = array<i32>} : memref<8x192xbf16, #tpu.memory_space<vmem>>, vector<8x192xbf16>,
    return
  }
  func.func @transform_0(%arg0: i32) -> (i32, i32) {
    %c0_i32 = arith.constant 0 : i32
    %c0_i32_0 = arith.constant 0 : i32
    return %arg0, %c0_i32 : i32, i32
  }
  func.func @transform_1(%arg0: i32) -> (i32, i32) {
    %c0_i32 = arith.constant 0 : i32
    %c0_i32_0 = arith.constant 0 : i32
    %c0_i32_1 = arith.constant 0 : i32
    return %c0_i32, %c0_i32_0 : i32, i32
  }
  func.func @transform_2(%arg0: i32) -> (i32, i32) {
    %c0_i32 = arith.constant 0 : i32
    %c0_i32_0 = arith.constant 0 : i32
    %c0_i32_1 = arith.constant 0 : i32
    return %c0_i32, %c0_i32_0 : i32, i32
  }
  func.func @transform_3(%arg0: i32) -> (i32, i32) {
    %c0_i32 = arith.constant 0 : i32
    %c0_i32_0 = arith.constant 0 : i32
    return %arg0, %c0_i32 : i32, i32
  }
}

module attributes {stable_mosaic.version = 11 : i64} {
  func.func @_maxpool_kernel(%arg0: i32, %arg1: memref<2x3x2x192xbf16, #tpu.memory_space<vmem>>, %arg2: memref<2x3x2x192xbf16, #tpu.memory_space<vmem>>, %arg3: memref<2x2x2x192xbf16, #tpu.memory_space<vmem>>, %arg4: memref<2x2x2x192xbf16, #tpu.memory_space<vmem>>, %arg5: memref<2x3x2x192xbf16, #tpu.memory_space<vmem>>, %arg6: memref<2x2x2x192xbf16, #tpu.memory_space<vmem>>, %arg7: memref<2x2x2x192xbf16, #tpu.memory_space<vmem>>) attributes {dimension_semantics = [#tpu.dimension_semantics<arbitrary>], iteration_bounds = array<i64: 1>, scalar_prefetch = 0 : i64, scratch_operands = 0 : i64, tpu.core_type = #tpu.core_type<tc>, window_params = [{pipeline_mode = #tpu.pipeline_mode<synchronous>, transform_indices = @transform_0, window_bounds = array<i64: 2, 3, 2, 192>}, {pipeline_mode = #tpu.pipeline_mode<synchronous>, transform_indices = @transform_1, window_bounds = array<i64: 2, 3, 2, 192>}, {pipeline_mode = #tpu.pipeline_mode<synchronous>, transform_indices = @transform_2, window_bounds = array<i64: 2, 2, 2, 192>}, {pipeline_mode = #tpu.pipeline_mode<synchronous>, transform_indices = @transform_3, window_bounds = array<i64: 2, 2, 2, 192>}, {pipeline_mode = #tpu.pipeline_mode<synchronous>, transform_indices = @transform_4, window_bounds = array<i64: 2, 3, 2, 192>}, {pipeline_mode = #tpu.pipeline_mode<synchronous>, transform_indices = @transform_5, window_bounds = array<i64: 2, 2, 2, 192>}, {pipeline_mode = #tpu.pipeline_mode<synchronous>, transform_indices = @transform_6, window_bounds = array<i64: 2, 2, 2, 192>}]} {
    %c0 = arith.constant 0 : index
    %c0_0 = arith.constant 0 : index
    %c0_1 = arith.constant 0 : index
    %c0_2 = arith.constant 0 : index
    %0 = vector.load %arg1[%c0, %c0_0, %c0_1, %c0_2] : memref<2x3x2x192xbf16, #tpu.memory_space<vmem>>, vector<2x2x2x192xbf16>
    %c0_3 = arith.constant 0 : index
    %c0_4 = arith.constant 0 : index
    %c0_5 = arith.constant 0 : index
    %c0_6 = arith.constant 0 : index
    %1 = vector.load %arg2[%c0_3, %c0_4, %c0_5, %c0_6] : memref<2x3x2x192xbf16, #tpu.memory_space<vmem>>, vector<2x2x2x192xbf16>
    %2 = arith.maximumf %0, %1 : vector<2x2x2x192xbf16>
    %c0_7 = arith.constant 0 : index
    %c0_8 = arith.constant 0 : index
    %c0_9 = arith.constant 0 : index
    %c0_10 = arith.constant 0 : index
    %3 = vector.load %arg5[%c0_7, %c0_8, %c0_9, %c0_10] : memref<2x3x2x192xbf16, #tpu.memory_space<vmem>>, vector<2x2x2x192xbf16>
    %4 = arith.maximumf %2, %3 : vector<2x2x2x192xbf16>
    %c0_11 = arith.constant 0 : index
    %c0_12 = arith.constant 0 : index
    %c0_13 = arith.constant 0 : index
    %c0_14 = arith.constant 0 : index
    %5 = vector.load %arg3[%c0_11, %c0_12, %c0_13, %c0_14] : memref<2x2x2x192xbf16, #tpu.memory_space<vmem>>, vector<2x2x2x192xbf16>
    %6 = arith.maximumf %4, %5 : vector<2x2x2x192xbf16>
    %c0_15 = arith.constant 0 : index
    %c0_16 = arith.constant 0 : index
    %c0_17 = arith.constant 0 : index
    %c0_18 = arith.constant 0 : index
    %7 = vector.load %arg4[%c0_15, %c0_16, %c0_17, %c0_18] : memref<2x2x2x192xbf16, #tpu.memory_space<vmem>>, vector<2x2x2x192xbf16>
    %8 = arith.maximumf %6, %7 : vector<2x2x2x192xbf16>
    %c0_19 = arith.constant 0 : index
    %c0_20 = arith.constant 0 : index
    %c0_21 = arith.constant 0 : index
    %c0_22 = arith.constant 0 : index
    %9 = vector.load %arg6[%c0_19, %c0_20, %c0_21, %c0_22] : memref<2x2x2x192xbf16, #tpu.memory_space<vmem>>, vector<2x2x2x192xbf16>
    %10 = arith.maximumf %8, %9 : vector<2x2x2x192xbf16>
    %c0_23 = arith.constant 0 : index
    %c1 = arith.constant 1 : index
    %c0_24 = arith.constant 0 : index
    %c0_25 = arith.constant 0 : index
    %11 = vector.load %arg1[%c0_23, %c1, %c0_24, %c0_25] : memref<2x3x2x192xbf16, #tpu.memory_space<vmem>>, vector<2x2x2x192xbf16>
    %12 = arith.maximumf %10, %11 : vector<2x2x2x192xbf16>
    %c0_26 = arith.constant 0 : index
    %c1_27 = arith.constant 1 : index
    %c0_28 = arith.constant 0 : index
    %c0_29 = arith.constant 0 : index
    %13 = vector.load %arg2[%c0_26, %c1_27, %c0_28, %c0_29] : memref<2x3x2x192xbf16, #tpu.memory_space<vmem>>, vector<2x2x2x192xbf16>
    %14 = arith.maximumf %12, %13 : vector<2x2x2x192xbf16>
    %c0_30 = arith.constant 0 : index
    %c1_31 = arith.constant 1 : index
    %c0_32 = arith.constant 0 : index
    %c0_33 = arith.constant 0 : index
    %15 = vector.load %arg5[%c0_30, %c1_31, %c0_32, %c0_33] : memref<2x3x2x192xbf16, #tpu.memory_space<vmem>>, vector<2x2x2x192xbf16>
    %16 = arith.maximumf %14, %15 : vector<2x2x2x192xbf16>
    %c0_34 = arith.constant 0 : index
    %c0_35 = arith.constant 0 : index
    %c0_36 = arith.constant 0 : index
    %c0_37 = arith.constant 0 : index
    %17 = vector.load %arg7[%c0_34, %c0_35, %c0_36, %c0_37] : memref<2x2x2x192xbf16, #tpu.memory_space<vmem>>, vector<2x2x2x192xbf16>
    tpu.vector_store %arg7[%c0_34, %c0_35, %c0_36, %c0_37], %16 {strides = array<i32>} : memref<2x2x2x192xbf16, #tpu.memory_space<vmem>>, vector<2x2x2x192xbf16>,
    return
  }
  func.func @transform_0(%arg0: i32) -> (i32, i32, i32, i32) {
    %c0_i32 = arith.constant 0 : i32
    %c0_i32_0 = arith.constant 0 : i32
    %c0_i32_1 = arith.constant 0 : i32
    %c0_i32_2 = arith.constant 0 : i32
    %c0_i32_3 = arith.constant 0 : i32
    return %c0_i32, %c0_i32_0, %c0_i32_1, %c0_i32_2 : i32, i32, i32, i32
  }
  func.func @transform_1(%arg0: i32) -> (i32, i32, i32, i32) {
    %c0_i32 = arith.constant 0 : i32
    %c0_i32_0 = arith.constant 0 : i32
    %c0_i32_1 = arith.constant 0 : i32
    %c0_i32_2 = arith.constant 0 : i32
    %c0_i32_3 = arith.constant 0 : i32
    return %c0_i32, %c0_i32_0, %c0_i32_1, %c0_i32_2 : i32, i32, i32, i32
  }
  func.func @transform_2(%arg0: i32) -> (i32, i32, i32, i32) {
    %c0_i32 = arith.constant 0 : i32
    %c0_i32_0 = arith.constant 0 : i32
    %c0_i32_1 = arith.constant 0 : i32
    %c0_i32_2 = arith.constant 0 : i32
    %c0_i32_3 = arith.constant 0 : i32
    return %c0_i32, %c0_i32_0, %c0_i32_1, %c0_i32_2 : i32, i32, i32, i32
  }
  func.func @transform_3(%arg0: i32) -> (i32, i32, i32, i32) {
    %c0_i32 = arith.constant 0 : i32
    %c0_i32_0 = arith.constant 0 : i32
    %c0_i32_1 = arith.constant 0 : i32
    %c0_i32_2 = arith.constant 0 : i32
    %c0_i32_3 = arith.constant 0 : i32
    return %c0_i32, %c0_i32_0, %c0_i32_1, %c0_i32_2 : i32, i32, i32, i32
  }
  func.func @transform_4(%arg0: i32) -> (i32, i32, i32, i32) {
    %c0_i32 = arith.constant 0 : i32
    %c0_i32_0 = arith.constant 0 : i32
    %c0_i32_1 = arith.constant 0 : i32
    %c0_i32_2 = arith.constant 0 : i32
    %c0_i32_3 = arith.constant 0 : i32
    return %c0_i32, %c0_i32_0, %c0_i32_1, %c0_i32_2 : i32, i32, i32, i32
  }
  func.func @transform_5(%arg0: i32) -> (i32, i32, i32, i32) {
    %c0_i32 = arith.constant 0 : i32
    %c0_i32_0 = arith.constant 0 : i32
    %c0_i32_1 = arith.constant 0 : i32
    %c0_i32_2 = arith.constant 0 : i32
    %c0_i32_3 = arith.constant 0 : i32
    return %c0_i32, %c0_i32_0, %c0_i32_1, %c0_i32_2 : i32, i32, i32, i32
  }
  func.func @transform_6(%arg0: i32) -> (i32, i32, i32, i32) {
    %c0_i32 = arith.constant 0 : i32
    %c0_i32_0 = arith.constant 0 : i32
    %c0_i32_1 = arith.constant 0 : i32
    %c0_i32_2 = arith.constant 0 : i32
    %c0_i32_3 = arith.constant 0 : i32
    return %c0_i32, %c0_i32_0, %c0_i32_1, %c0_i32_2 : i32, i32, i32, i32
  }
}

</mosaic_0001>

<bundles_post_ra>
// kernel: stem_block_forward.11
= control target key start
LH: loop header
LB: loop body
LE: loop exit
PB: predicated region body
PF: predicated region fallthrough
CT: control target
= control target key end

     0   :  { %s1477_s12 = smov 0   ;;  %s1479_s13 = smov 0   ;;  %s1793_s0 = inlined_call_operand.vmem [shape: bf16[578,27], index: 0, kind: input, shape index: {}]   ;;  %s1794_s1 = inlined_call_operand.vmem [shape: bf16[27,32], index: 1, kind: input, shape index: {}]   ;;  %s1795_s2 = inlined_call_operand.vmem [shape: f32[1,32], index: 2, kind: input, shape index: {}]   ;;  %s1796_s3 = inlined_call_operand.vmem [shape: bf16[578,32], index: 3, kind: output, shape index: {}]  }
   0x1   :  { %s1481_s14 = smov 0  }
   0x2 LB: > { %s1490_s15 = sadd.s32 4294967295, %s1422_s14   ;;  %s1492_s16 = sadd.s32 1, %s1422_s14   ;;  %s1422_s14 = sphi %s1481_s14, %s1803_s14   ;;  %s1418_s13 = sphi %s1479_s13, %s1802_s13   ;;  %s1414_s12 = sphi %s1477_s12, %s1801_s12  }
   0x3   : > { %s85_s17 = ssub.s32 %s1422_s14, %s1492_s16  ;;  %s88_s18 = sadd.s32 1, %s1418_s13 }
   0x4   : > { %p86_p0 = scmp.eq.s32.totalorder %s85_s17, 0  ;;  %p98_p1 = scmp.ne.s32.totalorder %s1418_s13, %s1414_s12 }
   0x5   : > { %p99_p2 = scmp.eq.s32.totalorder %s1490_s15, 2  ;;  %p1080_p3 = scmp.ge.s32.totalorder %s1422_s14, 1 }
   0x6   : > { %s1500_s19 = scalar_select %p86_p0, %s1418_s13, %s88_s18  }
   0x7   : > { %p1502_p4 = por %p99_p2, %p98_p1  ;;  %p146_p5 = scmp.lt.s32.totalorder %s1422_s14, 4 }
   0x9   : > { %p147_p6 = pnand %p1080_p3, %p146_p5 }
   0xa   : > { %s1510_s23 = sshll.u32 (!%p147_p6), %s1490_s15, 5  ;;  %s170_s4 = sand.u32 (!%p147_p6), 1, %s1414_s12  }
   0xb   : > { %150 = sbr.rel (%p147_p6) target bundleno = 320 (0x140), region = 32  ;;  %p178_p7 = scmp.lt.s32.totalorder (!%p147_p6), %s1510_s23, 72 }
   0xc   : > { %s1081_s7 = sshll.u32 (!%p147_p6), %s170_s4, 7 }
   0xd   : > { %s1566_s8 = scalar_lea.vmem (!%p147_p6), [#allocation2], %s1081_s7  }
  0x10   : > { %v1350_v0 = vld [vmem:[%s1794_s1 + $0x8] sm:$0x3f]   ;;  %vm376_vm0 = vcmask 1044480   ;;  %vm377_vm1 = vcmask 1045504   ;;  %v1456_v1 = vmov 65535   ;;  %v1351_v5 = vld [vmem:[%s1794_s1] sm:$0xff]  }
  0x11   : > { %v378_v2 = vsel %vm376_vm0, 4294967295, %v1456_v1  ;;  %s179_s26 = scalar_select %p178_p7, %s1510_s23, 72  ;;  %vm327_vm2 = vcmask 220160   ;;  %v1558_v22 = vld [vmem:[%s1795_s2] ss:$0 sm:$0xff]  ;;  %vm704_vm3 = vcmask 257024  }
  0x12   : > { %v379_v3 = vsel %vm377_vm1, %v378_v2, 0  ;;  %s745_s9 = ssub.s32 (%p1502_p4), 73, %s1510_s23  ;;  %s1200_s10 = sshll.u32 (%p1502_p4), %s1490_s15, 7 }
  0x13   : > { %v381_v4 = vand.u32 %v1350_v0, %v379_v3  ;;  %s1083_s27 = sshll.u32 %s179_s26, 2  ;;  %p746_p8 = scmp.lt.s32.totalorder (%p1502_p4), %s745_s9, 32 }
  0x14   : > { %s1520_s30 = scalar_lea.vmem %s1793_s0, %s1083_s27  ;;  %s1665_s14 = scalar_lea.vmem (%p1502_p4), %s1796_s3, %s1200_s10  }
  0x15   : > { %1221 = vmatprep.subr.bf16.mxu0 %v381_v4  ;;  %1257 = vmatprep.subr.bf16.mxu1 %v381_v4  ;;  %v1352_v6 = vld [vmem:[%s1520_s30] sm:$0xff]   ;;  %v1354_v8 = vld [vmem:[%s1520_s30 + $0x8] sm:$0xff]   ;;  %v1356_v10 = vld [vmem:[%s1520_s30 + $0x10] sm:$0xff]  }
  0x16   : > { %1222 = vmatpush3.bf16.msra.mxu0 %v381_v4  ;;  %1259 = vmatpush3.bf16.msra.mxu1 %v381_v4  ;;  %v1353_v7 = vld [vmem:[%s1520_s30 + $0x40] sm:$0xff]   ;;  %v1355_v9 = vld [vmem:[%s1520_s30 + $0x48] sm:$0xff]   ;;  %v1357_v11 = vld [vmem:[%s1520_s30 + $0x50] sm:$0xff]  }
  0x17   : > { %1223 = vmatprep.subr.bf16.mxu0 %v1351_v5  ;;  %1258 = vmatprep.subr.bf16.mxu1 %v1351_v5  ;;  %v1358_v12 = vld [vmem:[%s1520_s30 + $0x18] sm:$0xff]   ;;  %v1360_v14 = vld [vmem:[%s1520_s30 + $0x20] sm:$0xff]   ;;  %v1362_v16 = vld [vmem:[%s1520_s30 + $0x28] sm:$0xff]  }
  0x18   : > { %1225 = vmatprep.mubr.msk.bf16.mxu0 %vm327_vm2, %v1352_v6  ;;  %1241 = vmatprep.mubr.msk.bf16.mxu1 %vm327_vm2, %v1353_v7  ;;  %v1359_v13 = vld [vmem:[%s1520_s30 + $0x58] sm:$0xff]   ;;  %v1361_v15 = vld [vmem:[%s1520_s30 + $0x60] sm:$0xff]   ;;  %v1363_v17 = vld [vmem:[%s1520_s30 + $0x68] sm:$0xff]  }
  0x19   : > { %v1364_v18 = vld [vmem:[%s1520_s30 + $0x30] sm:$0xff]   ;;  %v1366_v20 = vld [vmem:[%s1520_s30 + $0x38] sm:$0xff]  }
  0x1a   : > { %1224 = vmatpush3.bf16.msra.mxu0 %v1351_v5  ;;  %1260 = vmatpush3.bf16.msra.mxu1 %v1351_v5  ;;  %v1365_v19 = vld [vmem:[%s1520_s30 + $0x70] sm:$0xff]   ;;  %v1367_v21 = vld [vmem:[%s1520_s30 + $0x78] sm:$0xff]  }
  0x1d   : > { %1226 = vmatmul.mubr.msk.bf16.vlgmr.msra.gmra.mxu0 %vm327_vm2, %v1354_v8  ;;  %1242 = vmatmul.mubr.msk.bf16.vlgmr.msra.gmra.mxu1 %vm327_vm2, %v1355_v9 }
  0x1e   : > { %1229 = vmatprep.mubr.msk.bf16.mxu0 %vm327_vm2, %v1356_v10  ;;  %1245 = vmatprep.mubr.msk.bf16.mxu1 %vm327_vm2, %v1357_v11 }
  0x25   : > { %1230 = vmatmul.mubr.msk.bf16.gmra.mxu0 %vm327_vm2, %v1358_v12  ;;  %1246 = vmatmul.mubr.msk.bf16.gmra.mxu1 %vm327_vm2, %v1359_v13 }
  0x26   : > { %1233 = vmatprep.mubr.msk.bf16.mxu0 %vm327_vm2, %v1360_v14  ;;  %1249 = vmatprep.mubr.msk.bf16.mxu1 %vm327_vm2, %v1361_v15 }
  0x2d   : > { %1234 = vmatmul.mubr.msk.bf16.gmra.mxu0 %vm327_vm2, %v1362_v16  ;;  %1250 = vmatmul.mubr.msk.bf16.gmra.mxu1 %vm327_vm2, %v1363_v17 }
  0x2e   : > { %1237 = vmatprep.mubr.msk.bf16.mxu0 %vm327_vm2, %v1364_v18  ;;  %1253 = vmatprep.mubr.msk.bf16.mxu1 %vm327_vm2, %v1365_v19 }
  0x35   : > { %1238 = vmatmul.mubr.msk.bf16.gmra.mxu0 %vm327_vm2, %v1366_v20  ;;  %1254 = vmatmul.mubr.msk.bf16.gmra.mxu1 %vm327_vm2, %v1367_v21 }
  0xdd   : > { %v1227_v23 = vpop.f32.mrf.mxu0  ;;  %v1243_v24 = vpop.f32.mrf.mxu1 }
  0xde   : > { %v426_v25 = vadd.f32 %v1227_v23, %v1558_v22  ;;  %v490_v26 = vadd.f32 %v1243_v24, %v1558_v22 }
  0xdf   : > { %v417_v27 = vpop.f32.mrf.mxu0  ;;  %v481_v28 = vpop.f32.mrf.mxu1 }
  0xe0   : > { %v546_v29 = vmax.f32 %v426_v25, 0.0  ;;  %v562_v30 = vmax.f32 %v490_v26, 0.0  ;;  %v418_v31 = vadd.f32 %v1558_v22, %v417_v27  ;;  %v482_v32 = vadd.f32 %v1558_v22, %v481_v28 }
  0xe1   : > { %v1228_v33 = vpop.f32.mrf.mxu0  ;;  %v1244_v34 = vpop.f32.mrf.mxu1 }
  0xe2   : > { %v1170_v35 = vpack.c.bf16 %v546_v29, %v546_v29  ;;  %v1186_v36 = vpack.c.bf16 %v562_v30, %v562_v30  ;;  %v544_v37 = vmax.f32 %v418_v31, 0.0  ;;  %v560_v38 = vmax.f32 %v482_v32, 0.0 }
  0xe3   : > { %v429_v39 = vadd.f32 %v1228_v33, %v1558_v22  ;;  %v493_v40 = vadd.f32 %v1244_v34, %v1558_v22  ;;  %v420_v41 = vpop.f32.mrf.mxu0  ;;  %v484_v42 = vpop.f32.mrf.mxu1 }
  0xe4   : > { %707 = vst.msk [vmem:[%s1566_s8 + $0x8] sm:$0xf] %vm704_vm3, %v1170_v35  ;;  %723 = vst.msk [vmem:[%s1566_s8 + $0x48] sm:$0xf] %vm704_vm3, %v1186_v36  ;;  %v1168_v43 = vpack.c.bf16 %v544_v37, %v544_v37  ;;  %v1184_v44 = vpack.c.bf16 %v560_v38, %v560_v38  ;;  %v421_v45 = vadd.f32 %v1558_v22, %v420_v41 }
  0xe5   : > { %v485_v46 = vadd.f32 %v1558_v22, %v484_v42  ;;  %v547_v47 = vmax.f32 %v429_v39, 0.0  ;;  %v563_v48 = vmax.f32 %v493_v40, 0.0  ;;  %v1231_v49 = vpop.f32.mrf.mxu0  ;;  %v1247_v50 = vpop.f32.mrf.mxu1 }
  0xe6   : > { %705 = vst.msk [vmem:[%s1566_s8] sm:$0xf] %vm704_vm3, %v1168_v43  ;;  %721 = vst.msk [vmem:[%s1566_s8 + $0x40] sm:$0xf] %vm704_vm3, %v1184_v44  ;;  %v545_v51 = vmax.f32 %v421_v45, 0.0  ;;  %v442_v53 = vadd.f32 %v1231_v49, %v1558_v22  ;;  %v506_v54 = vadd.f32 %v1247_v50, %v1558_v22 }
  0xe7   : > { %v561_v52 = vmax.f32 %v485_v46, 0.0  ;;  %v1171_v55 = vpack.c.bf16 %v547_v47, %v547_v47  ;;  %v1187_v56 = vpack.c.bf16 %v563_v48, %v563_v48  ;;  %v433_v57 = vpop.f32.mrf.mxu0  ;;  %v497_v58 = vpop.f32.mrf.mxu1 }
  0xe8   : > { %v1169_v59 = vpack.c.bf16 %v545_v51, %v545_v51  ;;  %v550_v61 = vmax.f32 %v442_v53, 0.0  ;;  %v566_v62 = vmax.f32 %v506_v54, 0.0  ;;  %v434_v63 = vadd.f32 %v1558_v22, %v433_v57 }
  0xe9   : > { %v1185_v60 = vpack.c.bf16 %v561_v52, %v561_v52  ;;  %708 = vst.msk [vmem:[%s1566_s8 + $0xc] sm:$0xf] %vm704_vm3, %v1171_v55  ;;  %724 = vst.msk [vmem:[%s1566_s8 + $0x4c] sm:$0xf] %vm704_vm3, %v1187_v56  ;;  %v498_v0 = vadd.f32 %v1558_v22, %v497_v58  ;;  %v1232_v1 = vpop.f32.mrf.mxu0  ;;  %v1248_v2 = vpop.f32.mrf.mxu1 }
  0xea   : > { %706 = vst.msk [vmem:[%s1566_s8 + $0x4] sm:$0xf] %vm704_vm3, %v1169_v59  ;;  %v1174_v3 = vpack.c.bf16 %v550_v61, %v550_v61  ;;  %v1190_v4 = vpack.c.bf16 %v566_v62, %v566_v62  ;;  %v445_v5 = vadd.f32 %v1232_v1, %v1558_v22  ;;  %v509_v6 = vadd.f32 %v1248_v2, %v1558_v22 }
  0xeb   : > { %722 = vst.msk [vmem:[%s1566_s8 + $0x44] sm:$0xf] %vm704_vm3, %v1185_v60  ;;  %v548_v7 = vmax.f32 %v434_v63, 0.0  ;;  %v564_v8 = vmax.f32 %v498_v0, 0.0  ;;  %v436_v9 = vpop.f32.mrf.mxu0  ;;  %v500_v10 = vpop.f32.mrf.mxu1 }
  0xec   : > { %711 = vst.msk [vmem:[%s1566_s8 + $0x18] sm:$0xf] %vm704_vm3, %v1174_v3  ;;  %727 = vst.msk [vmem:[%s1566_s8 + $0x58] sm:$0xf] %vm704_vm3, %v1190_v4  ;;  %v551_v11 = vmax.f32 %v445_v5, 0.0  ;;  %v567_v12 = vmax.f32 %v509_v6, 0.0  ;;  %v437_v13 = vadd.f32 %v1558_v22, %v436_v9  ;;  %v501_v14 = vadd.f32 %v1558_v22, %v500_v10 }
  0xed   : > { %v1172_v15 = vpack.c.bf16 %v548_v7, %v548_v7  ;;  %v1188_v16 = vpack.c.bf16 %v564_v8, %v564_v8  ;;  %v1235_v17 = vpop.f32.mrf.mxu0  ;;  %v1251_v18 = vpop.f32.mrf.mxu1 }
  0xee   : > { %v1175_v19 = vpack.c.bf16 %v551_v11, %v551_v11  ;;  %v1191_v20 = vpack.c.bf16 %v567_v12, %v567_v12  ;;  %v549_v21 = vmax.f32 %v437_v13, 0.0  ;;  %v565_v23 = vmax.f32 %v501_v14, 0.0 }
  0xef   : > { %709 = vst.msk [vmem:[%s1566_s8 + $0x10] sm:$0xf] %vm704_vm3, %v1172_v15  ;;  %725 = vst.msk [vmem:[%s1566_s8 + $0x50] sm:$0xf] %vm704_vm3, %v1188_v16  ;;  %v458_v24 = vadd.f32 %v1235_v17, %v1558_v22  ;;  %v522_v25 = vadd.f32 %v1251_v18, %v1558_v22  ;;  %v449_v26 = vpop.f32.mrf.mxu0  ;;  %v513_v27 = vpop.f32.mrf.mxu1 }
  0xf0   : > { %712 = vst.msk [vmem:[%s1566_s8 + $0x1c] sm:$0xf] %vm704_vm3, %v1175_v19  ;;  %728 = vst.msk [vmem:[%s1566_s8 + $0x5c] sm:$0xf] %vm704_vm3, %v1191_v20  ;;  %v1173_v28 = vpack.c.bf16 %v549_v21, %v549_v21  ;;  %v1189_v29 = vpack.c.bf16 %v565_v23, %v565_v23  ;;  %v450_v30 = vadd.f32 %v1558_v22, %v449_v26 }
  0xf1   : > { %v514_v31 = vadd.f32 %v1558_v22, %v513_v27  ;;  %v554_v32 = vmax.f32 %v458_v24, 0.0  ;;  %v570_v33 = vmax.f32 %v522_v25, 0.0  ;;  %v1236_v34 = vpop.f32.mrf.mxu0  ;;  %v1252_v35 = vpop.f32.mrf.mxu1 }
  0xf2   : > { %710 = vst.msk [vmem:[%s1566_s8 + $0x14] sm:$0xf] %vm704_vm3, %v1173_v28  ;;  %726 = vst.msk [vmem:[%s1566_s8 + $0x54] sm:$0xf] %vm704_vm3, %v1189_v29  ;;  %v552_v36 = vmax.f32 %v450_v30, 0.0  ;;  %v461_v38 = vadd.f32 %v1236_v34, %v1558_v22  ;;  %v525_v39 = vadd.f32 %v1252_v35, %v1558_v22 }
  0xf3   : > { %v568_v37 = vmax.f32 %v514_v31, 0.0  ;;  %v1178_v40 = vpack.c.bf16 %v554_v32, %v554_v32  ;;  %v1194_v41 = vpack.c.bf16 %v570_v33, %v570_v33  ;;  %v452_v42 = vpop.f32.mrf.mxu0  ;;  %v516_v43 = vpop.f32.mrf.mxu1 }
  0xf4   : > { %v1176_v44 = vpack.c.bf16 %v552_v36, %v552_v36  ;;  %v555_v46 = vmax.f32 %v461_v38, 0.0  ;;  %v571_v47 = vmax.f32 %v525_v39, 0.0  ;;  %v453_v48 = vadd.f32 %v1558_v22, %v452_v42 }
  0xf5   : > { %v1192_v45 = vpack.c.bf16 %v568_v37, %v568_v37  ;;  %715 = vst.msk [vmem:[%s1566_s8 + $0x28] sm:$0xf] %vm704_vm3, %v1178_v40  ;;  %731 = vst.msk [vmem:[%s1566_s8 + $0x68] sm:$0xf] %vm704_vm3, %v1194_v41  ;;  %v517_v49 = vadd.f32 %v1558_v22, %v516_v43  ;;  %v1239_v50 = vpop.f32.mrf.mxu0  ;;  %v1255_v51 = vpop.f32.mrf.mxu1 }
  0xf6   : > { %713 = vst.msk [vmem:[%s1566_s8 + $0x20] sm:$0xf] %vm704_vm3, %v1176_v44  ;;  %v1179_v52 = vpack.c.bf16 %v555_v46, %v555_v46  ;;  %v1195_v53 = vpack.c.bf16 %v571_v47, %v571_v47  ;;  %v474_v54 = vadd.f32 %v1239_v50, %v1558_v22  ;;  %v538_v55 = vadd.f32 %v1255_v51, %v1558_v22 }
  0xf7   : > { %729 = vst.msk [vmem:[%s1566_s8 + $0x60] sm:$0xf] %vm704_vm3, %v1192_v45  ;;  %v553_v56 = vmax.f32 %v453_v48, 0.0  ;;  %v569_v57 = vmax.f32 %v517_v49, 0.0  ;;  %v465_v58 = vpop.f32.mrf.mxu0  ;;  %v529_v59 = vpop.f32.mrf.mxu1 }
  0xf8   : > { %716 = vst.msk [vmem:[%s1566_s8 + $0x2c] sm:$0xf] %vm704_vm3, %v1179_v52  ;;  %732 = vst.msk [vmem:[%s1566_s8 + $0x6c] sm:$0xf] %vm704_vm3, %v1195_v53  ;;  %v558_v60 = vmax.f32 %v474_v54, 0.0  ;;  %v574_v61 = vmax.f32 %v538_v55, 0.0  ;;  %v466_v62 = vadd.f32 %v1558_v22, %v465_v58  ;;  %v530_v63 = vadd.f32 %v1558_v22, %v529_v59 }
  0xf9   : > { %v1177_v0 = vpack.c.bf16 %v553_v56, %v553_v56  ;;  %v1193_v1 = vpack.c.bf16 %v569_v57, %v569_v57  ;;  %v1240_v2 = vpop.f32.mrf.mxu0  ;;  %v1256_v3 = vpop.f32.mrf.mxu1 }
  0xfa   : > { %v1182_v4 = vpack.c.bf16 %v558_v60, %v558_v60  ;;  %v1198_v5 = vpack.c.bf16 %v574_v61, %v574_v61  ;;  %v556_v6 = vmax.f32 %v466_v62, 0.0  ;;  %v572_v7 = vmax.f32 %v530_v63, 0.0 }
  0xfb   : > { %714 = vst.msk [vmem:[%s1566_s8 + $0x24] sm:$0xf] %vm704_vm3, %v1177_v0  ;;  %730 = vst.msk [vmem:[%s1566_s8 + $0x64] sm:$0xf] %vm704_vm3, %v1193_v1  ;;  %v477_v8 = vadd.f32 %v1240_v2, %v1558_v22  ;;  %v541_v9 = vadd.f32 %v1256_v3, %v1558_v22  ;;  %v468_v10 = vpop.f32.mrf.mxu0  ;;  %v532_v11 = vpop.f32.mrf.mxu1 }
  0xfc   : > { %719 = vst.msk [vmem:[%s1566_s8 + $0x38] sm:$0xf] %vm704_vm3, %v1182_v4  ;;  %735 = vst.msk [vmem:[%s1566_s8 + $0x78] sm:$0xf] %vm704_vm3, %v1198_v5  ;;  %v1180_v12 = vpack.c.bf16 %v556_v6, %v556_v6  ;;  %v1196_v13 = vpack.c.bf16 %v572_v7, %v572_v7  ;;  %v469_v14 = vadd.f32 %v1558_v22, %v468_v10 }
  0xfd   : > { %v533_v15 = vadd.f32 %v1558_v22, %v532_v11  ;;  %v559_v16 = vmax.f32 %v477_v8, 0.0  ;;  %v575_v17 = vmax.f32 %v541_v9, 0.0 }
  0xfe   : > { %717 = vst.msk [vmem:[%s1566_s8 + $0x30] sm:$0xf] %vm704_vm3, %v1180_v12  ;;  %733 = vst.msk [vmem:[%s1566_s8 + $0x70] sm:$0xf] %vm704_vm3, %v1196_v13  ;;  %v557_v18 = vmax.f32 %v469_v14, 0.0 }
  0xff   : > { %v573_v19 = vmax.f32 %v533_v15, 0.0  ;;  %v1183_v20 = vpack.c.bf16 %v559_v16, %v559_v16  ;;  %v1199_v21 = vpack.c.bf16 %v575_v17, %v575_v17  ;;  %743 = sbr.rel (!%p1502_p4) target bundleno = 320 (0x140), region = 36 }
 0x100   : > { %v1181_v23 = vpack.c.bf16 %v557_v18, %v557_v18 }
 0x101   : > { %v1197_v24 = vpack.c.bf16 %v573_v19, %v573_v19  ;;  %720 = vst.msk [vmem:[%s1566_s8 + $0x3c] sm:$0xf] %vm704_vm3, %v1183_v20  ;;  %736 = vst.msk [vmem:[%s1566_s8 + $0x7c] sm:$0xf] %vm704_vm3, %v1199_v21 }
 0x102   : > { %718 = vst.msk [vmem:[%s1566_s8 + $0x34] sm:$0xf] %vm704_vm3, %v1181_v23 }
 0x103   : > { %734 = vst.msk [vmem:[%s1566_s8 + $0x74] sm:$0xf] %vm704_vm3, %v1197_v24 }
 0x104   : > { %s1805_s9 = smov (!%p746_p8, %s745_s9), 32 }
 0x105   : > { %s1153_s17 = sshll.u32 %s1805_s9, 6 }
 0x106   : > { %p1156_p9 = scmp.eq.s32.totalorder %s1153_s17, 0 }
 0x107   : > { %s1671_s18 = sshrl.u32 (!%p1156_p9), %s1805_s9, 5 }
 0x108   : > { %754 = sbr.rel (%p1156_p9) target bundleno = 320 (0x140), region = 40  ;;  %p1157_p10 = scmp.le.s32.totalorder (!%p1156_p9), %s1671_s18, 0 }
 0x10d   : > { %1033 = sbr.rel (%p1157_p10) target bundleno = 303 (0x12f), region = 112  ;;  %s1798_s15 = smov (!%p1157_p10), %s1665_s14 }
 0x10e   : > { %s1799_s20 = smov (!%p1157_p10), %s1566_s8  ;;  %s1680_s21 = smov (!%p1157_p10), 0  }
 0x10f   : > { %s1682_s22 = smov (!%p1157_p10), 0  }
 0x112 LB: >> { %v771_v22 = vld [vmem:[%s1430_s20] sm:$0xf]  ;;  %v773_v25 = vld [vmem:[%s1430_s20 + $0x4] sm:$0xf]  ;;  %v775_v26 = vld [vmem:[%s1430_s20 + $0x8] sm:$0xf]  ;;  %s1438_s22 = sphi %s1682_s22, %s765_s22   ;;  %s1434_s21 = sphi %s1680_s21, %s1800_s21   ;;  %s1430_s20 = sphi %s1799_s20, %s840_s20   ;;  %s1426_s15 = sphi %s1798_s15, %s841_s15  }
 0x113   : >> { %772 = vst [vmem:[%s1426_s15] sm:$0xf] %v771_v22  ;;  %774 = vst [vmem:[%s1426_s15 + $0x4] sm:$0xf] %v773_v25  ;;  %v777_v27 = vld [vmem:[%s1430_s20 + $0xc] sm:$0xf]  ;;  %s835_s23 = sadd.s32 1, %s1434_s21 }
 0x114   : >> { %776 = vst [vmem:[%s1426_s15 + $0x8] sm:$0xf] %v775_v26  ;;  %v779_v28 = vld [vmem:[%s1430_s20 + $0x10] sm:$0xf]  ;;  %v781_v29 = vld [vmem:[%s1430_s20 + $0x14] sm:$0xf]  ;;  %p836_p11 = scmp.ge.s32.totalorder %s835_s23, %s1671_s18 }
 0x115   : >> { %778 = vst [vmem:[%s1426_s15 + $0xc] sm:$0xf] %v777_v27  ;;  %780 = vst [vmem:[%s1426_s15 + $0x10] sm:$0xf] %v779_v28  ;;  %v783_v30 = vld [vmem:[%s1430_s20 + $0x18] sm:$0xf] }
 0x116   : >> { %782 = vst [vmem:[%s1426_s15 + $0x14] sm:$0xf] %v781_v29  ;;  %v785_v31 = vld [vmem:[%s1430_s20 + $0x1c] sm:$0xf]  ;;  %v787_v32 = vld [vmem:[%s1430_s20 + $0x20] sm:$0xf] }
 0x117   : >> { %784 = vst [vmem:[%s1426_s15 + $0x18] sm:$0xf] %v783_v30  ;;  %786 = vst [vmem:[%s1426_s15 + $0x1c] sm:$0xf] %v785_v31  ;;  %v789_v33 = vld [vmem:[%s1430_s20 + $0x24] sm:$0xf] }
 0x118   : >> { %788 = vst [vmem:[%s1426_s15 + $0x20] sm:$0xf] %v787_v32  ;;  %v791_v34 = vld [vmem:[%s1430_s20 + $0x28] sm:$0xf]  ;;  %v793_v35 = vld [vmem:[%s1430_s20 + $0x2c] sm:$0xf] }
 0x119   : >> { %790 = vst [vmem:[%s1426_s15 + $0x24] sm:$0xf] %v789_v33  ;;  %792 = vst [vmem:[%s1426_s15 + $0x28] sm:$0xf] %v791_v34  ;;  %v795_v36 = vld [vmem:[%s1430_s20 + $0x30] sm:$0xf] }
 0x11a   : >> { %794 = vst [vmem:[%s1426_s15 + $0x2c] sm:$0xf] %v793_v35  ;;  %v797_v37 = vld [vmem:[%s1430_s20 + $0x34] sm:$0xf]  ;;  %v799_v38 = vld [vmem:[%s1430_s20 + $0x38] sm:$0xf] }
 0x11b   : >> { %796 = vst [vmem:[%s1426_s15 + $0x30] sm:$0xf] %v795_v36  ;;  %798 = vst [vmem:[%s1426_s15 + $0x34] sm:$0xf] %v797_v37  ;;  %v801_v39 = vld [vmem:[%s1430_s20 + $0x3c] sm:$0xf] }
 0x11c   : >> { %800 = vst [vmem:[%s1426_s15 + $0x38] sm:$0xf] %v799_v38  ;;  %v803_v40 = vld [vmem:[%s1430_s20 + $0x40] sm:$0xf]  ;;  %v805_v41 = vld [vmem:[%s1430_s20 + $0x44] sm:$0xf] }
 0x11d   : >> { %802 = vst [vmem:[%s1426_s15 + $0x3c] sm:$0xf] %v801_v39  ;;  %804 = vst [vmem:[%s1426_s15 + $0x40] sm:$0xf] %v803_v40  ;;  %v807_v42 = vld [vmem:[%s1430_s20 + $0x48] sm:$0xf] }
 0x11e   : >> { %806 = vst [vmem:[%s1426_s15 + $0x44] sm:$0xf] %v805_v41  ;;  %v809_v43 = vld [vmem:[%s1430_s20 + $0x4c] sm:$0xf]  ;;  %v811_v44 = vld [vmem:[%s1430_s20 + $0x50] sm:$0xf] }
 0x11f   : >> { %808 = vst [vmem:[%s1426_s15 + $0x48] sm:$0xf] %v807_v42  ;;  %810 = vst [vmem:[%s1426_s15 + $0x4c] sm:$0xf] %v809_v43  ;;  %v813_v45 = vld [vmem:[%s1430_s20 + $0x54] sm:$0xf] }
 0x120   : >> { %812 = vst [vmem:[%s1426_s15 + $0x50] sm:$0xf] %v811_v44  ;;  %v815_v46 = vld [vmem:[%s1430_s20 + $0x58] sm:$0xf]  ;;  %v817_v47 = vld [vmem:[%s1430_s20 + $0x5c] sm:$0xf] }
 0x121   : >> { %814 = vst [vmem:[%s1426_s15 + $0x54] sm:$0xf] %v813_v45  ;;  %816 = vst [vmem:[%s1426_s15 + $0x58] sm:$0xf] %v815_v46  ;;  %v819_v48 = vld [vmem:[%s1430_s20 + $0x60] sm:$0xf] }
 0x122   : >> { %818 = vst [vmem:[%s1426_s15 + $0x5c] sm:$0xf] %v817_v47  ;;  %v821_v49 = vld [vmem:[%s1430_s20 + $0x64] sm:$0xf]  ;;  %v823_v50 = vld [vmem:[%s1430_s20 + $0x68] sm:$0xf] }
 0x123   : >> { %820 = vst [vmem:[%s1426_s15 + $0x60] sm:$0xf] %v819_v48  ;;  %822 = vst [vmem:[%s1426_s15 + $0x64] sm:$0xf] %v821_v49  ;;  %v825_v51 = vld [vmem:[%s1430_s20 + $0x6c] sm:$0xf] }
 0x124   : >> { %824 = vst [vmem:[%s1426_s15 + $0x68] sm:$0xf] %v823_v50  ;;  %v827_v52 = vld [vmem:[%s1430_s20 + $0x70] sm:$0xf]  ;;  %v829_v53 = vld [vmem:[%s1430_s20 + $0x74] sm:$0xf] }
 0x125   : >> { %826 = vst [vmem:[%s1426_s15 + $0x6c] sm:$0xf] %v825_v51  ;;  %828 = vst [vmem:[%s1426_s15 + $0x70] sm:$0xf] %v827_v52  ;;  %v831_v54 = vld [vmem:[%s1430_s20 + $0x78] sm:$0xf] }
 0x126   : >> { %830 = vst [vmem:[%s1426_s15 + $0x74] sm:$0xf] %v829_v53  ;;  %v833_v55 = vld [vmem:[%s1430_s20 + $0x7c] sm:$0xf]  ;;  %832 = vst [vmem:[%s1426_s15 + $0x78] sm:$0xf] %v831_v54 }
 0x127   : >> { %834 = vst [vmem:[%s1426_s15 + $0x7c] sm:$0xf] %v833_v55  ;;  %s1807_s23 = smov (%p836_p11, %s835_s23), 0  ;;  %s765_s22 = sadd.s32 1, %s1438_s22  }
 0x128   : >> { %s1158_s24 = sshll.u32 %s1807_s23, 7  ;;  %p764_p12 = scmp.ge.s32.totalorder %s765_s22, %s1671_s18 }
 0x129   : >> { %s840_s20 = scalar_lea.vmem %s1566_s8, %s1158_s24 [#allocation2]   ;;  %s841_s15 = scalar_lea.vmem %s1665_s14, %s1158_s24  }
 0x12a   : >> { %s1800_s21 = smov %s1807_s23  ;;  %767 = sbr.rel (!%p764_p12) target bundleno = 274 (0x112), region = 118 }
 0x12f PF: > { %s1775_s25 = sand.u32 31, %s1805_s9   ;;  %s1201_s26 = sshll.u32 %s1671_s18, 7 }
 0x130   : > { %s846_s27 = scalar_lea.vmem %s1566_s8, %s1201_s26 [#allocation2]   ;;  %s848_s28 = scalar_lea.vmem %s1665_s14, %s1201_s26  }
 0x131   : > { %p1163_p13 = scmp.le.s32.totalorder %s1775_s25, 0 }
 0x132   : > { %s1440_s29 = smov (!%p1163_p13), %s848_s28   ;;  %s1444_s30 = smov (!%p1163_p13), %s846_s27  }
 0x133   : > { %1047 = sbr.rel (%p1163_p13) target bundleno = 320 (0x140), region = 123  ;;  %s1448_s4 = smov (!%p1163_p13), 0  }
 0x134   : > { %s1452_s5 = smov (!%p1163_p13), 0  }
 0x138 LB: >> { %v858_v56 = vld [vmem:[%s1446_s30] sm:$0xf]  ;;  %s860_s6 = sadd.s32 1, %s1450_s4  ;;  %s852_s5 = sadd.s32 1, %s1454_s5   ;;  %s1454_s5 = sphi %s1452_s5, %s852_s5   ;;  %s1450_s4 = sphi %s1448_s4, %s1449_s4   ;;  %s1446_s30 = sphi %s1444_s30, %s865_s30   ;;  %s1442_s29 = sphi %s1440_s29, %s866_s29  }
 0x139   : >> { %859 = vst [vmem:[%s1442_s29] sm:$0xf] %v858_v56  ;;  %p861_p0 = scmp.ge.s32.totalorder %s860_s6, %s1775_s25  ;;  %p851_p1 = scmp.ge.s32.totalorder %s852_s5, %s1775_s25 }
 0x13b   : >> { %s1809_s6 = smov (%p861_p0, %s860_s6), 0  ;;  %854 = sbr.rel (!%p851_p1) target bundleno = 312 (0x138), region = 129 }
 0x13c   : >> { %s1164_s7 = sshll.u32 %s1809_s6, 2  ;;  %s1449_s4 = smov %s1809_s6  }
 0x13d   : >> { %s865_s30 = scalar_lea.vmem %s846_s27, %s1164_s7 [#allocation2]   ;;  %s866_s29 = scalar_lea.vmem %s848_s28, %s1164_s7  }
 0x140 PF: > { %p10_p2 = scmp.ge.s32.totalorder %s1492_s16, 5   ;;  %s1801_s12 = smov %s1418_s13 }
 0x141   : > { %s1802_s13 = smov %s1500_s19  ;;  %s1803_s14 = smov %s1492_s16 }
 0x142   :  { %12 = sbr.rel (!%p10_p2) target bundleno = 2 (0x2), region = 140 }

// kernel: stem_block_forward.12
= control target key start
LH: loop header
LB: loop body
LE: loop exit
PB: predicated region body
PF: predicated region fallthrough
CT: control target
= control target key end

     0   :  { %s2195_s12 = smov 0   ;;  %s2197_s13 = smov 0   ;;  %s2627_s0 = inlined_call_operand.vmem [shape: bf16[578,288], index: 0, kind: input, shape index: {}]   ;;  %s2628_s1 = inlined_call_operand.vmem [shape: bf16[288,32], index: 1, kind: input, shape index: {}]   ;;  %s2629_s2 = inlined_call_operand.vmem [shape: f32[1,32], index: 2, kind: input, shape index: {}]   ;;  %s2630_s3 = inlined_call_operand.vmem [shape: bf16[578,32], index: 3, kind: output, shape index: {}]  }
   0x1   :  { %s2199_s14 = smov 0  }
   0x2 LB: > { %s2208_s15 = sadd.s32 4294967295, %s2141_s14   ;;  %s2210_s16 = sadd.s32 1, %s2141_s14   ;;  %s2141_s14 = sphi %s2199_s14, %s2637_s14   ;;  %s2137_s13 = sphi %s2197_s13, %s2636_s13   ;;  %s2133_s12 = sphi %s2195_s12, %s2635_s12  }
   0x3   : > { %s85_s17 = ssub.s32 %s2141_s14, %s2210_s16  ;;  %s88_s18 = sadd.s32 1, %s2137_s13 }
   0x4   : > { %p86_p0 = scmp.eq.s32.totalorder %s85_s17, 0  ;;  %p98_p1 = scmp.ne.s32.totalorder %s2137_s13, %s2133_s12 }
   0x5   : > { %p99_p2 = scmp.eq.s32.totalorder %s2208_s15, 2  ;;  %p1563_p3 = scmp.ge.s32.totalorder %s2141_s14, 1 }
   0x6   : > { %s2218_s19 = scalar_select %p86_p0, %s2137_s13, %s88_s18  }
   0x7   : > { %p2220_p4 = por %p99_p2, %p98_p1  ;;  %p149_p5 = scmp.lt.s32.totalorder %s2141_s14, 4 }
   0x9   : > { %p150_p6 = pnand %p1563_p3, %p149_p5 }
   0xa   : > { %s2228_s23 = sshll.u32 (!%p150_p6), %s2208_s15, 5  ;;  %s175_s22 = sand.u32 (!%p150_p6), 1, %s2133_s12  }
   0xb   : > { %153 = sbr.rel (%p150_p6) target bundleno = 407 (0x197), region = 32  ;;  %p184_p7 = scmp.lt.s32.totalorder (!%p150_p6), %s2228_s23, 72 }
   0xc   : > { %s1564_s26 = sshll.u32 (!%p150_p6), %s175_s22, 7 }
   0xd   : > { %s2382_s12 = scalar_lea.vmem (!%p150_p6), [#allocation2], %s1564_s26  }
  0x10   : > { %v2005_v0 = vld [vmem:[%s2628_s1 + $0x78] sm:$0xff]   ;;  %v2007_v2 = vld [vmem:[%s2628_s1 + $0x70] sm:$0xff]   ;;  %v2009_v4 = vld [vmem:[%s2628_s1 + $0x68] sm:$0xff]   ;;  %s185_s5 = scalar_select %p184_p7, %s2228_s23, 72  ;;  %vm656_vm0 = vcmask 261120   ;;  %vm1187_vm1 = vcmask 257024  }
  0x11   : > { %v2006_v1 = vld [vmem:[%s2628_s1 + $0x38] sm:$0xff]   ;;  %1734 = vmatprep.subr.bf16.mxu0 %v2005_v0  ;;  %1900 = vmatprep.subr.bf16.mxu1 %v2005_v0  ;;  %v2008_v3 = vld [vmem:[%s2628_s1 + $0x30] sm:$0xff]   ;;  %v2010_v5 = vld [vmem:[%s2628_s1 + $0x28] sm:$0xff]   ;;  %s1228_s27 = ssub.s32 (%p2220_p4), 73, %s2228_s23  ;;  %s1731_s28 = sshll.u32 (%p2220_p4), %s2208_s15, 7 }
  0x12   : > { %1735 = vmatpush3.bf16.msra.mxu0 %v2006_v1  ;;  %1908 = vmatpush3.bf16.msra.mxu1 %v2006_v1  ;;  %v2011_v6 = vld [vmem:[%s2628_s1 + $0x60] sm:$0xff]   ;;  %s1916_s10 = smul.u32 12, %s185_s5  ;;  %v2013_v8 = vld [vmem:[%s2628_s1 + $0x58] sm:$0xff]   ;;  %v2015_v10 = vld [vmem:[%s2628_s1 + $0x50] sm:$0xff]   ;;  %p1229_p8 = scmp.lt.s32.totalorder (%p2220_p4), %s1228_s27, 32 }
  0x13   : > { %1736 = vmatprep.subr.bf16.mxu0 %v2007_v2  ;;  %1901 = vmatprep.subr.bf16.mxu1 %v2007_v2  ;;  %v2012_v7 = vld [vmem:[%s2628_s1 + $0x20] sm:$0xff]   ;;  %v2014_v9 = vld [vmem:[%s2628_s1 + $0x18] sm:$0xff]   ;;  %v2016_v13 = vld [vmem:[%s2628_s1 + $0x10] sm:$0xff]   ;;  %s2499_s4 = scalar_lea.vmem (%p2220_p4), %s2630_s3, %s1731_s28  }
  0x14   : > { %s2259_s24 = scalar_lea.vmem %s2627_s0, %s1916_s10  ;;  %v2017_v14 = vld [vmem:[%s2628_s1 + $0x48] sm:$0xff]   ;;  %v2019_v16 = vld [vmem:[%s2628_s1 + $0x40] sm:$0xff]  }
  0x15   : > { %v2023_v11 = vld [vmem:[%s2259_s24 + $0x4] ss:$12 sps:$4 sm:$0xff]   ;;  %v2018_v15 = vld [vmem:[%s2628_s1 + $0x8] sm:$0xff]   ;;  %v2034_v26 = vld [vmem:[%s2259_s24 + $0x34] ss:$12 sps:$4 sm:$0xff]  }
  0x16   : > { %1737 = vmatpush3.bf16.msra.mxu0 %v2008_v3  ;;  %1909 = vmatpush3.bf16.msra.mxu1 %v2008_v3  ;;  %v2026_v12 = vld [vmem:[%s2259_s24 + $0x124] ss:$12 sps:$4 sm:$0xff]   ;;  %v2027_v18 = vld [vmem:[%s2628_s1 + $0x88] sm:$0xff]   ;;  %v2036_v27 = vld [vmem:[%s2259_s24 + $0x154] ss:$12 sps:$4 sm:$0xff]  }
  0x17   : > { %1738 = vmatprep.subr.bf16.mxu0 %v2009_v4  ;;  %1902 = vmatprep.subr.bf16.mxu1 %v2009_v4  ;;  %v2020_v17 = vld [vmem:[%s2628_s1] sm:$0xff]   ;;  %v2028_v21 = vld [vmem:[%s2259_s24 + $0x1c] ss:$12 sps:$4 sm:$0xff]   ;;  %v2041_v30 = vld [vmem:[%s2259_s24 + $0x4c] ss:$12 sps:$4 sm:$0xff]  }
  0x18   : > { %737 = vmatprep.mubr.bf16.mxu0 %v2023_v11  ;;  %833 = vmatprep.mubr.bf16.mxu1 %v2026_v12  ;;  %v2021_v19 = vld [vmem:[%s2259_s24] ss:$12 sps:$4 sm:$0xff]   ;;  %v2030_v22 = vld [vmem:[%s2259_s24 + $0x13c] ss:$12 sps:$4 sm:$0xff]   ;;  %v2032_v24 = vld [vmem:[%s2259_s24 + $0x18] ss:$12 sps:$4 sm:$0xff]  }
  0x19   : > { %v2024_v20 = vld [vmem:[%s2259_s24 + $0x120] ss:$12 sps:$4 sm:$0xff]   ;;  %v2033_v25 = vld [vmem:[%s2259_s24 + $0x138] ss:$12 sps:$4 sm:$0xff]   ;;  %v2038_v28 = vld [vmem:[%s2259_s24 + $0x30] ss:$12 sps:$4 sm:$0xff]  }
  0x1a   : > { %1739 = vmatpush3.bf16.msra.mxu0 %v2010_v5  ;;  %1910 = vmatpush3.bf16.msra.mxu1 %v2010_v5  ;;  %v2040_v23 = vld [vmem:[%s2628_s1 + $0x80] sm:$0xff]   ;;  %v2039_v29 = vld [vmem:[%s2259_s24 + $0x150] ss:$12 sps:$4 sm:$0xff]   ;;  %v2043_v31 = vld [vmem:[%s2259_s24 + $0x16c] ss:$12 sps:$4 sm:$0xff]  }
  0x1b   : > { %1740 = vmatprep.subr.bf16.mxu0 %v2011_v6  ;;  %1903 = vmatprep.subr.bf16.mxu1 %v2011_v6  ;;  %v2045_v32 = vld [vmem:[%s2259_s24 + $0x48] ss:$12 sps:$4 sm:$0xff]   ;;  %v2047_v34 = vld [vmem:[%s2259_s24 + $0x64] ss:$12 sps:$4 sm:$0xff]   ;;  %v2050_v36 = vld [vmem:[%s2259_s24 + $0x60] ss:$12 sps:$4 sm:$0xff]  }
  0x1c   : > { %v2046_v33 = vld [vmem:[%s2259_s24 + $0x168] ss:$12 sps:$4 sm:$0xff]   ;;  %v2051_v37 = vld [vmem:[%s2259_s24 + $0x20] ss:$12 sps:$4 sm:$0xff]   ;;  %v2054_v39 = vld [vmem:[%s2259_s24 + $0x38] ss:$12 sps:$4 sm:$0xff]  }
  0x1d   : > { %v2049_v35 = vld [vmem:[%s2259_s24 + $0x8] ss:$12 sps:$4 sm:$0xff]   ;;  %v2055_v40 = vld [vmem:[%s2259_s24 + $0x78] ss:$12 sps:$4 sm:$0xff]   ;;  %v2056_v41 = vld [vmem:[%s2259_s24 + $0x50] ss:$12 sps:$4 sm:$0xff]  }
  0x1e   : > { %1741 = vmatpush3.bf16.msra.mxu0 %v2012_v7  ;;  %1911 = vmatpush3.bf16.msra.mxu1 %v2012_v7  ;;  %v2052_v38 = vld [vmem:[%s2259_s24 + $0x7c] ss:$12 sps:$4 sm:$0xff]   ;;  %v2057_v42 = vld [vmem:[%s2259_s24 + $0x94] ss:$12 sps:$4 sm:$0xff]   ;;  %v2062_v46 = vld [vmem:[%s2259_s24 + $0xac] ss:$12 sps:$4 sm:$0xff]  }
  0x1f   : > { %1742 = vmatprep.subr.bf16.mxu0 %v2013_v8  ;;  %1904 = vmatprep.subr.bf16.mxu1 %v2013_v8  ;;  %v2059_v43 = vld [vmem:[%s2259_s24 + $0x68] ss:$12 sps:$4 sm:$0xff]   ;;  %v2060_v44 = vld [vmem:[%s2259_s24 + $0x90] ss:$12 sps:$4 sm:$0xff]   ;;  %v2061_v45 = vld [vmem:[%s2259_s24 + $0x80] ss:$12 sps:$4 sm:$0xff]  }
  0x20   : > { %v2064_v47 = vld [vmem:[%s2259_s24 + $0x98] ss:$12 sps:$4 sm:$0xff]   ;;  %v2065_v48 = vld [vmem:[%s2259_s24 + $0xa8] ss:$12 sps:$4 sm:$0xff]   ;;  %v2066_v49 = vld [vmem:[%s2259_s24 + $0xb0] ss:$12 sps:$4 sm:$0xff]  }
  0x21   : > { %v2067_v50 = vld [vmem:[%s2259_s24 + $0xc4] ss:$12 sps:$4 sm:$0xff]   ;;  %v2069_v51 = vld [vmem:[%s2259_s24 + $0xc8] ss:$12 sps:$4 sm:$0xff]   ;;  %v2070_v52 = vld [vmem:[%s2259_s24 + $0xc0] ss:$12 sps:$4 sm:$0xff]  }
  0x22   : > { %1743 = vmatpush3.bf16.msra.mxu0 %v2014_v9  ;;  %1912 = vmatpush3.bf16.msra.mxu1 %v2014_v9  ;;  %v2071_v53 = vld [vmem:[%s2259_s24 + $0xe0] ss:$12 sps:$4 sm:$0xff]   ;;  %v2072_v54 = vld [vmem:[%s2259_s24 + $0xdc] ss:$12 sps:$4 sm:$0xff]   ;;  %v2074_v55 = vld [vmem:[%s2259_s24 + $0xf8] ss:$12 sps:$4 sm:$0xff]  }
  0x23   : > { %1744 = vmatprep.subr.bf16.mxu0 %v2015_v10  ;;  %1905 = vmatprep.subr.bf16.mxu1 %v2015_v10  ;;  %v2075_v56 = vld [vmem:[%s2259_s24 + $0xd8] ss:$12 sps:$4 sm:$0xff]   ;;  %v2076_v57 = vld [vmem:[%s2259_s24 + $0x110] ss:$12 sps:$4 sm:$0xff]   ;;  %v2077_v58 = vld [vmem:[%s2259_s24 + $0xf4] ss:$12 sps:$4 sm:$0xff]  }
  0x24   : > { %v2079_v59 = vld [vmem:[%s2259_s24 + $0x128] ss:$12 sps:$4 sm:$0xff]   ;;  %v2080_v60 = vld [vmem:[%s2259_s24 + $0xf0] ss:$12 sps:$4 sm:$0xff]   ;;  %v2081_v61 = vld [vmem:[%s2259_s24 + $0x140] ss:$12 sps:$4 sm:$0xff]  }
  0x25   : > { %v2082_v62 = vld [vmem:[%s2259_s24 + $0x10c] ss:$12 sps:$4 sm:$0xff]   ;;  %v2085_v0 = vld [vmem:[%s2259_s24 + $0x108] ss:$12 sps:$4 sm:$0xff]   ;;  %v2086_v1 = vld [vmem:[%s2259_s24 + $0x170] ss:$12 sps:$4 sm:$0xff]  }
  0x26   : > { %1745 = vmatpush3.bf16.msra.mxu0 %v2016_v13  ;;  %1913 = vmatpush3.bf16.msra.mxu1 %v2016_v13  ;;  %v2084_v63 = vld [vmem:[%s2259_s24 + $0x158] ss:$12 sps:$4 sm:$0xff]  }
  0x27   : > { %1746 = vmatprep.subr.bf16.mxu0 %v2017_v14  ;;  %1906 = vmatprep.subr.bf16.mxu1 %v2017_v14 }
  0x2a   : > { %1747 = vmatpush3.bf16.msra.mxu0 %v2018_v15  ;;  %1914 = vmatpush3.bf16.msra.mxu1 %v2018_v15 }
  0x2b   : > { %1748 = vmatprep.subr.bf16.mxu0 %v2019_v16  ;;  %1907 = vmatprep.subr.bf16.mxu1 %v2019_v16 }
  0x2e   : > { %1749 = vmatpush3.bf16.msra.mxu0 %v2020_v17  ;;  %1915 = vmatpush3.bf16.msra.mxu1 %v2020_v17 }
  0x2f   : > { %1864 = vmatprep.subr.bf16.mxu1 %v2027_v18 }
  0x31   : > { %738 = vmatmul.mubr.bf16.vlgmr.msra.gmra.mxu0 %v2021_v19  ;;  %834 = vmatmul.mubr.bf16.vlgmr.msra.gmra.mxu1 %v2024_v20 }
  0x32   : > { %1865 = vmatpush3.bf16.msra.mxu1 %v2027_v18  ;;  %745 = vmatprep.mubr.bf16.mxu0 %v2028_v21 }
  0x33   : > { %841 = vmatprep.mubr.bf16.mxu1 %v2030_v22  ;;  %1866 = vmatprep.subr.bf16.mxu1 %v2040_v23 }
  0x36   : > { %1867 = vmatpush3.bf16.msra.mxu1 %v2040_v23 }
  0x39   : > { %746 = vmatmul.mubr.bf16.gmra.mxu0 %v2032_v24  ;;  %842 = vmatmul.mubr.bf16.gmra.mxu1 %v2033_v25 }
  0x3a   : > { %753 = vmatprep.mubr.bf16.mxu0 %v2034_v26  ;;  %849 = vmatprep.mubr.bf16.mxu1 %v2036_v27 }
  0x41   : > { %754 = vmatmul.mubr.bf16.gmra.mxu0 %v2038_v28  ;;  %850 = vmatmul.mubr.bf16.gmra.mxu1 %v2039_v29 }
  0x42   : > { %761 = vmatprep.mubr.bf16.mxu0 %v2041_v30  ;;  %857 = vmatprep.mubr.bf16.mxu1 %v2043_v31 }
  0x49   : > { %762 = vmatmul.mubr.bf16.gmra.mxu0 %v2045_v32  ;;  %858 = vmatmul.mubr.bf16.gmra.mxu1 %v2046_v33 }
  0x4a   : > { %769 = vmatprep.mubr.bf16.mxu0 %v2047_v34  ;;  %1868 = vmatprep.mubr.msk.bf16.mxu1 %vm656_vm0, %v2049_v35 }
  0x51   : > { %770 = vmatmul.mubr.bf16.gmra.mxu0 %v2050_v36  ;;  %1869 = vmatmul.mubr.msk.bf16.vlgmr.msra.gmra.mxu1 %vm656_vm0, %v2051_v37 }
  0x52   : > { %777 = vmatprep.mubr.bf16.mxu0 %v2052_v38  ;;  %1872 = vmatprep.mubr.msk.bf16.mxu1 %vm656_vm0, %v2054_v39 }
  0x59   : > { %778 = vmatmul.mubr.bf16.gmra.mxu0 %v2055_v40  ;;  %1873 = vmatmul.mubr.msk.bf16.gmra.mxu1 %vm656_vm0, %v2056_v41 }
  0x5a   : > { %785 = vmatprep.mubr.bf16.mxu0 %v2057_v42  ;;  %1876 = vmatprep.mubr.msk.bf16.mxu1 %vm656_vm0, %v2059_v43  ;;  %v2376_v42 = vld [vmem:[%s2629_s2] ss:$0 sm:$0xff] }
  0x61   : > { %786 = vmatmul.mubr.bf16.gmra.mxu0 %v2060_v44  ;;  %1877 = vmatmul.mubr.msk.bf16.gmra.mxu1 %vm656_vm0, %v2061_v45 }
  0x62   : > { %793 = vmatprep.mubr.bf16.mxu0 %v2062_v46  ;;  %1880 = vmatprep.mubr.msk.bf16.mxu1 %vm656_vm0, %v2064_v47 }
  0x69   : > { %794 = vmatmul.mubr.bf16.gmra.mxu0 %v2065_v48  ;;  %1881 = vmatmul.mubr.msk.bf16.gmra.mxu1 %vm656_vm0, %v2066_v49 }
  0x6a   : > { %801 = vmatprep.mubr.bf16.mxu0 %v2067_v50  ;;  %1884 = vmatprep.mubr.msk.bf16.mxu1 %vm656_vm0, %v2069_v51 }
  0x71   : > { %802 = vmatmul.mubr.bf16.gmra.mxu0 %v2070_v52  ;;  %1885 = vmatmul.mubr.msk.bf16.gmra.mxu1 %vm656_vm0, %v2071_v53 }
  0x72   : > { %809 = vmatprep.mubr.bf16.mxu0 %v2072_v54  ;;  %1888 = vmatprep.mubr.msk.bf16.mxu1 %vm656_vm0, %v2074_v55 }
  0x79   : > { %810 = vmatmul.mubr.bf16.gmra.mxu0 %v2075_v56  ;;  %1889 = vmatmul.mubr.msk.bf16.gmra.mxu1 %vm656_vm0, %v2076_v57 }
  0x7a   : > { %817 = vmatprep.mubr.bf16.mxu0 %v2077_v58  ;;  %1892 = vmatprep.mubr.msk.bf16.mxu1 %vm656_vm0, %v2079_v59 }
  0x81   : > { %818 = vmatmul.mubr.bf16.gmra.mxu0 %v2080_v60  ;;  %1893 = vmatmul.mubr.msk.bf16.gmra.mxu1 %vm656_vm0, %v2081_v61 }
  0x82   : > { %825 = vmatprep.mubr.bf16.mxu0 %v2082_v62  ;;  %1896 = vmatprep.mubr.msk.bf16.mxu1 %vm656_vm0, %v2084_v63 }
  0x89   : > { %826 = vmatmul.mubr.bf16.gmra.mxu0 %v2085_v0  ;;  %1897 = vmatmul.mubr.msk.bf16.gmra.mxu1 %vm656_vm0, %v2086_v1 }
  0xf1   : > { %v1750_v2 = vpop.f32.mrf.mxu0  ;;  %v1822_v3 = vpop.f32.mrf.mxu1 }
  0xf3   : > { %v1751_v4 = vpop.f32.mrf.mxu0  ;;  %v1823_v5 = vpop.f32.mrf.mxu1 }
  0xf4   : > { %v2352_v6 = vadd.f32 %v1823_v5, %v1822_v3  ;;  %v1752_v39 = vadd.f32 %v1751_v4, %v1750_v2 }
  0xf5   : > { %v1753_v7 = vpop.f32.mrf.mxu0  ;;  %v1825_v8 = vpop.f32.mrf.mxu1 }
  0xf6   : > { %v740_v49 = vadd.f32 %v1752_v39, %v2376_v42 }
  0xf7   : > { %v1754_v9 = vpop.f32.mrf.mxu0  ;;  %v1826_v10 = vpop.f32.mrf.mxu1 }
  0xf8   : > { %v2354_v11 = vadd.f32 %v1826_v10, %v1825_v8  ;;  %v1755_v45 = vadd.f32 %v1754_v9, %v1753_v7 }
  0xf9   : > { %v1756_v12 = vpop.f32.mrf.mxu0  ;;  %v1828_v13 = vpop.f32.mrf.mxu1 }
  0xfa   : > { %v743_v58 = vadd.f32 %v1755_v45, %v2376_v42 }
  0xfb   : > { %v1757_v14 = vpop.f32.mrf.mxu0  ;;  %v1829_v15 = vpop.f32.mrf.mxu1 }
  0xfc   : > { %v2356_v16 = vadd.f32 %v1829_v15, %v1828_v13  ;;  %v1758_v36 = vadd.f32 %v1757_v14, %v1756_v12 }
  0xfd   : > { %v1759_v17 = vpop.f32.mrf.mxu0  ;;  %v1831_v18 = vpop.f32.mrf.mxu1 }
  0xfe   : > { %v748_v44 = vadd.f32 %v1758_v36, %v2376_v42 }
  0xff   : > { %v1760_v19 = vpop.f32.mrf.mxu0  ;;  %v1832_v20 = vpop.f32.mrf.mxu1 }
 0x100   : > { %v2358_v21 = vadd.f32 %v1832_v20, %v1831_v18  ;;  %v1761_v43 = vadd.f32 %v1760_v19, %v1759_v17 }
 0x101   : > { %v1762_v22 = vpop.f32.mrf.mxu0  ;;  %v1834_v23 = vpop.f32.mrf.mxu1 }
 0x102   : > { %v751_v55 = vadd.f32 %v1761_v43, %v2376_v42 }
 0x103   : > { %v1763_v24 = vpop.f32.mrf.mxu0  ;;  %v1835_v25 = vpop.f32.mrf.mxu1 }
 0x104   : > { %v2360_v26 = vadd.f32 %v1835_v25, %v1834_v23  ;;  %v1764_v59 = vadd.f32 %v1763_v24, %v1762_v22 }
 0x105   : > { %v1765_v27 = vpop.f32.mrf.mxu0  ;;  %v1837_v28 = vpop.f32.mrf.mxu1 }
 0x106   : > { %v756_v14 = vadd.f32 %v1764_v59, %v2376_v42 }
 0x107   : > { %v1766_v29 = vpop.f32.mrf.mxu0  ;;  %v1838_v30 = vpop.f32.mrf.mxu1 }
 0x108   : > { %v2362_v31 = vadd.f32 %v1838_v30, %v1837_v28  ;;  %v1767_v7 = vadd.f32 %v1766_v29, %v1765_v27 }
 0x109   : > { %v1768_v32 = vpop.f32.mrf.mxu0  ;;  %v2364_v33 = vpop.f32.mrf.mxu1 }
 0x10a   : > { %v759_v27 = vadd.f32 %v1767_v7, %v2376_v42 }
 0x10b   : > { %v1769_v34 = vpop.f32.mrf.mxu0  ;;  %v2366_v35 = vpop.f32.mrf.mxu1 }
 0x10c   : > { %v1770_v52 = vadd.f32 %v1769_v34, %v1768_v32 }
 0x10d   : > { %v1771_v37 = vpop.f32.mrf.mxu0  ;;  %v2368_v38 = vpop.f32.mrf.mxu1 }
 0x10e   : > { %v764_v5 = vadd.f32 %v1770_v52, %v2376_v42 }
 0x10f   : > { %v1772_v40 = vpop.f32.mrf.mxu0  ;;  %v2370_v41 = vpop.f32.mrf.mxu1 }
 0x110   : > { %v1773_v63 = vadd.f32 %v1772_v40, %v1771_v37 }
 0x111   : > { %v1774_v46 = vpop.f32.mrf.mxu0  ;;  %v1870_v47 = vpop.f32.mrf.mxu1 }
 0x112   : > { %v909_v48 = vadd.f32 %v1870_v47, %v748_v44  ;;  %v767_v18 = vadd.f32 %v1773_v63, %v2376_v42 }
 0x113   : > { %v1775_v50 = vpop.f32.mrf.mxu0  ;;  %v900_v51 = vpop.f32.mrf.mxu1 }
 0x114   : > { %v1029_v53 = vmax.f32 %v909_v48, 0.0  ;;  %v901_v54 = vadd.f32 %v900_v51, %v740_v49  ;;  %v1776_v28 = vadd.f32 %v1775_v50, %v1774_v46 }
 0x115   : > { %v1777_v56 = vpop.f32.mrf.mxu0  ;;  %v1871_v57 = vpop.f32.mrf.mxu1 }
 0x116   : > { %v1701_v60 = vpack.c.bf16 %v1029_v53, %v1029_v53  ;;  %v1027_v61 = vmax.f32 %v901_v54, 0.0  ;;  %v912_v62 = vadd.f32 %v1871_v57, %v751_v55  ;;  %v772_v51 = vadd.f32 %v1776_v28, %v2376_v42 }
 0x117   : > { %v1778_v0 = vpop.f32.mrf.mxu0  ;;  %v903_v1 = vpop.f32.mrf.mxu1 }
 0x118   : > { %1190 = vst.msk [vmem:[%s2382_s12 + $0x8] sm:$0xf] %vm1187_vm1, %v1701_v60  ;;  %v1699_v2 = vpack.c.bf16 %v1027_v61, %v1027_v61  ;;  %v1030_v3 = vmax.f32 %v912_v62, 0.0  ;;  %v904_v4 = vadd.f32 %v903_v1, %v743_v58  ;;  %v1779_v45 = vadd.f32 %v1778_v0, %v1777_v56 }
 0x119   : > { %v1780_v8 = vpop.f32.mrf.mxu0  ;;  %v1874_v9 = vpop.f32.mrf.mxu1 }
 0x11a   : > { %1188 = vst.msk [vmem:[%s2382_s12] sm:$0xf] %vm1187_vm1, %v1699_v2  ;;  %v1702_v10 = vpack.c.bf16 %v1030_v3, %v1030_v3  ;;  %v1028_v12 = vmax.f32 %v904_v4, 0.0  ;;  %v925_v13 = vadd.f32 %v1874_v9, %v764_v5  ;;  %v775_v60 = vadd.f32 %v1779_v45, %v2376_v42 }
 0x11b   : > { %v1781_v15 = vpop.f32.mrf.mxu0  ;;  %v916_v17 = vpop.f32.mrf.mxu1 }
 0x11c   : > { %1191 = vst.msk [vmem:[%s2382_s12 + $0xc] sm:$0xf] %vm1187_vm1, %v1702_v10  ;;  %v1700_v19 = vpack.c.bf16 %v1028_v12, %v1028_v12  ;;  %v1033_v20 = vmax.f32 %v925_v13, 0.0  ;;  %v1782_v22 = vadd.f32 %v1781_v15, %v1780_v8  ;;  %v917_v23 = vadd.f32 %v916_v17, %v756_v14 }
 0x11d   : > { %v1783_v24 = vpop.f32.mrf.mxu0  ;;  %v1875_v25 = vpop.f32.mrf.mxu1 }
 0x11e   : > { %1189 = vst.msk [vmem:[%s2382_s12 + $0x4] sm:$0xf] %vm1187_vm1, %v1700_v19  ;;  %v1705_v29 = vpack.c.bf16 %v1033_v20, %v1033_v20  ;;  %v1031_v30 = vmax.f32 %v917_v23, 0.0  ;;  %v928_v32 = vadd.f32 %v1875_v25, %v767_v18  ;;  %v780_v37 = vadd.f32 %v1782_v22, %v2376_v42 }
 0x11f   : > { %v1784_v34 = vpop.f32.mrf.mxu0  ;;  %v919_v36 = vpop.f32.mrf.mxu1 }
 0x120   : > { %1194 = vst.msk [vmem:[%s2382_s12 + $0x18] sm:$0xf] %vm1187_vm1, %v1705_v29  ;;  %v1703_v39 = vpack.c.bf16 %v1031_v30, %v1031_v30  ;;  %v1034_v40 = vmax.f32 %v928_v32, 0.0  ;;  %v1785_v43 = vadd.f32 %v1784_v34, %v1783_v24  ;;  %v920_v44 = vadd.f32 %v919_v36, %v759_v27 }
 0x121   : > { %v1786_v47 = vpop.f32.mrf.mxu0  ;;  %v1878_v46 = vpop.f32.mrf.mxu1 }
 0x122   : > { %1192 = vst.msk [vmem:[%s2382_s12 + $0x10] sm:$0xf] %vm1187_vm1, %v1703_v39  ;;  %v1706_v48 = vpack.c.bf16 %v1034_v40, %v1034_v40  ;;  %v1032_v49 = vmax.f32 %v920_v44, 0.0  ;;  %v941_v50 = vadd.f32 %v1878_v46, %v780_v37  ;;  %v783_v56 = vadd.f32 %v1785_v43, %v2376_v42 }
 0x123   : > { %v1787_v52 = vpop.f32.mrf.mxu0  ;;  %v932_v53 = vpop.f32.mrf.mxu1 }
 0x124   : > { %1195 = vst.msk [vmem:[%s2382_s12 + $0x1c] sm:$0xf] %vm1187_vm1, %v1706_v48  ;;  %v1704_v54 = vpack.c.bf16 %v1032_v49, %v1032_v49  ;;  %v1037_v55 = vmax.f32 %v941_v50, 0.0  ;;  %v933_v57 = vadd.f32 %v932_v53, %v772_v51  ;;  %v1788_v62 = vadd.f32 %v1787_v52, %v1786_v47 }
 0x125   : > { %v1789_v58 = vpop.f32.mrf.mxu0  ;;  %v1879_v59 = vpop.f32.mrf.mxu1 }
 0x126   : > { %1193 = vst.msk [vmem:[%s2382_s12 + $0x14] sm:$0xf] %vm1187_vm1, %v1704_v54  ;;  %v1709_v61 = vpack.c.bf16 %v1037_v55, %v1037_v55  ;;  %v1035_v63 = vmax.f32 %v933_v57, 0.0  ;;  %v944_v0 = vadd.f32 %v1879_v59, %v783_v56  ;;  %v788_v13 = vadd.f32 %v1788_v62, %v2376_v42 }
 0x127   : > { %v1790_v1 = vpop.f32.mrf.mxu0  ;;  %v935_v2 = vpop.f32.mrf.mxu1 }
 0x128   : > { %1198 = vst.msk [vmem:[%s2382_s12 + $0x28] sm:$0xf] %vm1187_vm1, %v1709_v61  ;;  %v1707_v3 = vpack.c.bf16 %v1035_v63, %v1035_v63  ;;  %v1038_v4 = vmax.f32 %v944_v0, 0.0  ;;  %v936_v5 = vadd.f32 %v935_v2, %v775_v60  ;;  %v1791_v10 = vadd.f32 %v1790_v1, %v1789_v58 }
 0x129   : > { %v1792_v7 = vpop.f32.mrf.mxu0  ;;  %v1882_v8 = vpop.f32.mrf.mxu1 }
 0x12a   : > { %1196 = vst.msk [vmem:[%s2382_s12 + $0x20] sm:$0xf] %vm1187_vm1, %v1707_v3  ;;  %v1710_v9 = vpack.c.bf16 %v1038_v4, %v1038_v4  ;;  %v1036_v12 = vmax.f32 %v936_v5, 0.0  ;;  %v791_v25 = vadd.f32 %v1791_v10, %v2376_v42 }
 0x12b   : > { %v1793_v14 = vpop.f32.mrf.mxu0  ;;  %v948_v15 = vpop.f32.mrf.mxu1 }
 0x12c   : > { %1199 = vst.msk [vmem:[%s2382_s12 + $0x2c] sm:$0xf] %vm1187_vm1, %v1710_v9  ;;  %v1708_v17 = vpack.c.bf16 %v1036_v12, %v1036_v12  ;;  %v1794_v18 = vadd.f32 %v1793_v14, %v1792_v7  ;;  %v949_v19 = vadd.f32 %v948_v15, %v788_v13  ;;  %v844_v15 = vadd.f32 %v2356_v16, %v2376_v42 }
 0x12d   : > { %v1795_v20 = vpop.f32.mrf.mxu0  ;;  %v1883_v22 = vpop.f32.mrf.mxu1  ;;  %v847_v16 = vadd.f32 %v2358_v21, %v2376_v42 }
 0x12e   : > { %1197 = vst.msk [vmem:[%s2382_s12 + $0x24] sm:$0xf] %vm1187_vm1, %v1708_v17  ;;  %v796_v23 = vadd.f32 %v1794_v18, %v2376_v42  ;;  %v1039_v24 = vmax.f32 %v949_v19, 0.0 }
 0x12f   : > { %v1796_v27 = vpop.f32.mrf.mxu0  ;;  %v951_v28 = vpop.f32.mrf.mxu1 }
 0x130   : > { %v957_v29 = vadd.f32 %v1882_v8, %v796_v23  ;;  %v1711_v30 = vpack.c.bf16 %v1039_v24, %v1039_v24  ;;  %v1797_v32 = vadd.f32 %v1796_v27, %v1795_v20  ;;  %v952_v34 = vadd.f32 %v951_v28, %v791_v25 }
 0x131   : > { %v1798_v36 = vpop.f32.mrf.mxu0  ;;  %v1886_v37 = vpop.f32.mrf.mxu1  ;;  %v1842_v23 = vadd.f32 %v2366_v35, %v2364_v33  ;;  %v836_v25 = vadd.f32 %v2352_v6, %v2376_v42  ;;  %v1845_v6 = vadd.f32 %v2370_v41, %v2368_v38 }
 0x132   : > { %v1041_v39 = vmax.f32 %v957_v29, 0.0  ;;  %1200 = vst.msk [vmem:[%s2382_s12 + $0x30] sm:$0xf] %vm1187_vm1, %v1711_v30  ;;  %v799_v40 = vadd.f32 %v1797_v32, %v2376_v42  ;;  %v1040_v43 = vmax.f32 %v952_v34, 0.0 }
 0x133   : > { %v1799_v44 = vpop.f32.mrf.mxu0  ;;  %v964_v45 = vpop.f32.mrf.mxu1 }
 0x134   : > { %v1713_v47 = vpack.c.bf16 %v1041_v39, %v1041_v39  ;;  %v960_v46 = vadd.f32 %v1883_v22, %v799_v40  ;;  %v1712_v48 = vpack.c.bf16 %v1040_v43, %v1040_v43  ;;  %v1800_v49 = vadd.f32 %v1799_v44, %v1798_v36 }
 0x135   : > { %v1801_v50 = vpop.f32.mrf.mxu0  ;;  %v1887_v51 = vpop.f32.mrf.mxu1  ;;  %v839_v44 = vadd.f32 %v2354_v11, %v2376_v42 }
 0x136   : > { %1202 = vst.msk [vmem:[%s2382_s12 + $0x38] sm:$0xf] %vm1187_vm1, %v1713_v47  ;;  %v1042_v52 = vmax.f32 %v960_v46, 0.0  ;;  %1201 = vst.msk [vmem:[%s2382_s12 + $0x34] sm:$0xf] %vm1187_vm1, %v1712_v48  ;;  %v804_v53 = vadd.f32 %v1800_v49, %v2376_v42  ;;  %v860_v47 = vadd.f32 %v1842_v23, %v2376_v42 }
 0x137   : > { %v1802_v54 = vpop.f32.mrf.mxu0  ;;  %v967_v55 = vpop.f32.mrf.mxu1 }
 0x138   : > { %v1714_v57 = vpack.c.bf16 %v1042_v52, %v1042_v52  ;;  %v965_v56 = vadd.f32 %v964_v45, %v804_v53  ;;  %v1803_v58 = vadd.f32 %v1802_v54, %v1801_v50 }
 0x139   : > { %v1804_v59 = vpop.f32.mrf.mxu0  ;;  %v2427_v60 = vpop.f32.mrf.mxu1 }
 0x13a   : > { %1203 = vst.msk [vmem:[%s2382_s12 + $0x3c] sm:$0xf] %vm1187_vm1, %v1714_v57  ;;  %v1043_v61 = vmax.f32 %v965_v56, 0.0  ;;  %v807_v62 = vadd.f32 %v1803_v58, %v2376_v42  ;;  %v852_v58 = vadd.f32 %v2360_v26, %v2376_v42 }
 0x13b   : > { %v1805_v63 = vpop.f32.mrf.mxu0  ;;  %v980_v0 = vpop.f32.mrf.mxu1 }
 0x13c   : > { %v1715_v1 = vpack.c.bf16 %v1043_v61, %v1043_v61  ;;  %v968_v2 = vadd.f32 %v967_v55, %v807_v62  ;;  %v1806_v3 = vadd.f32 %v1805_v63, %v1804_v59  ;;  %v863_v61 = vadd.f32 %v1845_v6, %v2376_v42 }
 0x13d   : > { %v1807_v4 = vpop.f32.mrf.mxu0  ;;  %v2432_v5 = vpop.f32.mrf.mxu1 }
 0x13e   : > { %1204 = vst.msk [vmem:[%s2382_s12 + $0x40] sm:$0xf] %vm1187_vm1, %v1715_v1  ;;  %v1044_v7 = vmax.f32 %v968_v2, 0.0  ;;  %v812_v8 = vadd.f32 %v1806_v3, %v2376_v42 }
 0x13f   : > { %v1808_v9 = vpop.f32.mrf.mxu0  ;;  %v983_v10 = vpop.f32.mrf.mxu1 }
 0x140   : > { %v1716_v12 = vpack.c.bf16 %v1044_v7, %v1044_v7  ;;  %v973_v13 = vadd.f32 %v1886_v37, %v812_v8  ;;  %v1809_v14 = vadd.f32 %v1808_v9, %v1807_v4 }
 0x141   : > { %v1810_v17 = vpop.f32.mrf.mxu0  ;;  %v1894_v18 = vpop.f32.mrf.mxu1 }
 0x142   : > { %1205 = vst.msk [vmem:[%s2382_s12 + $0x44] sm:$0xf] %vm1187_vm1, %v1716_v12  ;;  %v1045_v19 = vmax.f32 %v973_v13, 0.0  ;;  %v815_v20 = vadd.f32 %v1809_v14, %v2376_v42  ;;  %v1005_v22 = vadd.f32 %v1894_v18, %v844_v15  ;;  %v855_v14 = vadd.f32 %v2362_v31, %v2376_v42 }
 0x143   : > { %v1811_v24 = vpop.f32.mrf.mxu0  ;;  %v996_v27 = vpop.f32.mrf.mxu1 }
 0x144   : > { %v1717_v28 = vpack.c.bf16 %v1045_v19, %v1045_v19  ;;  %v976_v29 = vadd.f32 %v1887_v51, %v815_v20  ;;  %v1053_v30 = vmax.f32 %v1005_v22, 0.0  ;;  %v1812_v32 = vadd.f32 %v1811_v24, %v1810_v17 }
 0x145   : > { %v997_v34 = vadd.f32 %v996_v27, %v836_v25  ;;  %v1813_v36 = vpop.f32.mrf.mxu0  ;;  %v1895_v37 = vpop.f32.mrf.mxu1 }
 0x146   : > { %1206 = vst.msk [vmem:[%s2382_s12 + $0x48] sm:$0xf] %vm1187_vm1, %v1717_v28  ;;  %v1046_v39 = vmax.f32 %v976_v29, 0.0  ;;  %v1725_v33 = vpack.c.bf16 %v1053_v30, %v1053_v30  ;;  %v820_v35 = vadd.f32 %v1812_v32, %v2376_v42  ;;  %v1008_v40 = vadd.f32 %v1895_v37, %v847_v16 }
 0x147   : > { %v1051_v21 = vmax.f32 %v997_v34, 0.0  ;;  %v1814_v43 = vpop.f32.mrf.mxu0  ;;  %v999_v45 = vpop.f32.mrf.mxu1 }
 0x148   : > { %v1718_v46 = vpack.c.bf16 %v1046_v39, %v1046_v39  ;;  %1214 = vst.msk [vmem:[%s2382_s12 + $0x68] sm:$0xf] %vm1187_vm1, %v1725_v33  ;;  %v981_v48 = vadd.f32 %v980_v0, %v820_v35  ;;  %v1054_v49 = vmax.f32 %v1008_v40, 0.0  ;;  %v1815_v50 = vadd.f32 %v1814_v43, %v1813_v36 }
 0x149   : > { %v1723_v51 = vpack.c.bf16 %v1051_v21, %v1051_v21  ;;  %v1000_v52 = vadd.f32 %v999_v45, %v839_v44  ;;  %v1816_v53 = vpop.f32.mrf.mxu0  ;;  %v1898_v38 = vpop.f32.mrf.mxu1 }
 0x14a   : > { %1207 = vst.msk [vmem:[%s2382_s12 + $0x4c] sm:$0xf] %vm1187_vm1, %v1718_v46  ;;  %v1047_v41 = vmax.f32 %v981_v48, 0.0  ;;  %v1726_v54 = vpack.c.bf16 %v1054_v49, %v1054_v49  ;;  %v823_v11 = vadd.f32 %v1815_v50, %v2376_v42  ;;  %v1021_v55 = vadd.f32 %v1898_v38, %v860_v47 }
 0x14b   : > { %1212 = vst.msk [vmem:[%s2382_s12 + $0x60] sm:$0xf] %vm1187_vm1, %v1723_v51  ;;  %v1052_v57 = vmax.f32 %v1000_v52, 0.0  ;;  %v1817_v56 = vpop.f32.mrf.mxu0  ;;  %v1012_v59 = vpop.f32.mrf.mxu1 }
 0x14c   : > { %v1719_v62 = vpack.c.bf16 %v1047_v41, %v1047_v41  ;;  %1215 = vst.msk [vmem:[%s2382_s12 + $0x6c] sm:$0xf] %vm1187_vm1, %v1726_v54  ;;  %v984_v63 = vadd.f32 %v983_v10, %v823_v11  ;;  %v1057_v0 = vmax.f32 %v1021_v55, 0.0  ;;  %v1818_v1 = vadd.f32 %v1817_v56, %v1816_v53 }
 0x14d   : > { %v1724_v2 = vpack.c.bf16 %v1052_v57, %v1052_v57  ;;  %v1013_v3 = vadd.f32 %v1012_v59, %v852_v58  ;;  %v1819_v4 = vpop.f32.mrf.mxu0  ;;  %v1899_v7 = vpop.f32.mrf.mxu1 }
 0x14e   : > { %1208 = vst.msk [vmem:[%s2382_s12 + $0x50] sm:$0xf] %vm1187_vm1, %v1719_v62  ;;  %v1048_v8 = vmax.f32 %v984_v63, 0.0  ;;  %v1729_v26 = vpack.c.bf16 %v1057_v0, %v1057_v0  ;;  %v828_v9 = vadd.f32 %v1818_v1, %v2376_v42  ;;  %v1024_v12 = vadd.f32 %v1899_v7, %v863_v61 }
 0x14f   : > { %1213 = vst.msk [vmem:[%s2382_s12 + $0x64] sm:$0xf] %vm1187_vm1, %v1724_v2  ;;  %v1055_v13 = vmax.f32 %v1013_v3, 0.0  ;;  %v1820_v10 = vpop.f32.mrf.mxu0  ;;  %v1015_v15 = vpop.f32.mrf.mxu1 }
 0x150   : > { %v1720_v17 = vpack.c.bf16 %v1048_v8, %v1048_v8  ;;  %1218 = vst.msk [vmem:[%s2382_s12 + $0x78] sm:$0xf] %vm1187_vm1, %v1729_v26  ;;  %v989_v18 = vadd.f32 %v2427_v60, %v828_v9  ;;  %v1058_v19 = vmax.f32 %v1024_v12, 0.0  ;;  %v1821_v20 = vadd.f32 %v1820_v10, %v1819_v4 }
 0x151   : > { %v1727_v22 = vpack.c.bf16 %v1055_v13, %v1055_v13  ;;  %v1016_v23 = vadd.f32 %v1015_v15, %v855_v14 }
 0x152   : > { %1209 = vst.msk [vmem:[%s2382_s12 + $0x54] sm:$0xf] %vm1187_vm1, %v1720_v17  ;;  %v1049_v24 = vmax.f32 %v989_v18, 0.0  ;;  %v1730_v25 = vpack.c.bf16 %v1058_v19, %v1058_v19  ;;  %v831_v31 = vadd.f32 %v1821_v20, %v2376_v42 }
 0x153   : > { %1216 = vst.msk [vmem:[%s2382_s12 + $0x70] sm:$0xf] %vm1187_vm1, %v1727_v22  ;;  %v1056_v27 = vmax.f32 %v1016_v23, 0.0 }
 0x154   : > { %v1721_v16 = vpack.c.bf16 %v1049_v24, %v1049_v24  ;;  %1219 = vst.msk [vmem:[%s2382_s12 + $0x7c] sm:$0xf] %vm1187_vm1, %v1730_v25  ;;  %v992_v60 = vadd.f32 %v2432_v5, %v831_v31 }
 0x155   : > { %v1728_v28 = vpack.c.bf16 %v1056_v27, %v1056_v27 }
 0x156   : > { %1210 = vst.msk [vmem:[%s2382_s12 + $0x58] sm:$0xf] %vm1187_vm1, %v1721_v16  ;;  %v1050_v29 = vmax.f32 %v992_v60, 0.0  ;;  %1226 = sbr.rel (!%p2220_p4) target bundleno = 407 (0x197), region = 36 }
 0x157   : > { %1217 = vst.msk [vmem:[%s2382_s12 + $0x74] sm:$0xf] %vm1187_vm1, %v1728_v28 }
 0x158   : > { %v1722_v30 = vpack.c.bf16 %v1050_v29, %v1050_v29 }
 0x15a   : > { %1211 = vst.msk [vmem:[%s2382_s12 + $0x5c] sm:$0xf] %vm1187_vm1, %v1722_v30 }
 0x15b   : > { %s2639_s27 = smov (!%p1229_p8, %s1228_s27), 32 }
 0x15c   : > { %s1684_s5 = sshll.u32 %s2639_s27, 6 }
 0x15d   : > { %p1687_p9 = scmp.eq.s32.totalorder %s1684_s5, 0 }
 0x15e   : > { %s2505_s6 = sshrl.u32 (!%p1687_p9), %s2639_s27, 5 }
 0x15f   : > { %1237 = sbr.rel (%p1687_p9) target bundleno = 407 (0x197), region = 40  ;;  %p1688_p10 = scmp.le.s32.totalorder (!%p1687_p9), %s2505_s6, 0 }
 0x164   : > { %1516 = sbr.rel (%p1688_p10) target bundleno = 390 (0x186), region = 112  ;;  %s2632_s15 = smov (!%p1688_p10), %s2499_s4 }
 0x165   : > { %s2633_s20 = smov (!%p1688_p10), %s2382_s12  ;;  %s2514_s23 = smov (!%p1688_p10), 0  }
 0x166   : > { %s2516_s7 = smov (!%p1688_p10), 0  }
 0x169 LB: >> { %v1254_v42 = vld [vmem:[%s2149_s20] sm:$0xf]  ;;  %v1256_v5 = vld [vmem:[%s2149_s20 + $0x4] sm:$0xf]  ;;  %v1258_v32 = vld [vmem:[%s2149_s20 + $0x8] sm:$0xf]  ;;  %s2157_s7 = sphi %s2516_s7, %s1248_s7   ;;  %s2153_s23 = sphi %s2514_s23, %s2634_s23   ;;  %s2149_s20 = sphi %s2633_s20, %s1323_s20   ;;  %s2145_s15 = sphi %s2632_s15, %s1324_s15  }
 0x16a   : >> { %1255 = vst [vmem:[%s2145_s15] sm:$0xf] %v1254_v42  ;;  %1257 = vst [vmem:[%s2145_s15 + $0x4] sm:$0xf] %v1256_v5  ;;  %v1260_v34 = vld [vmem:[%s2149_s20 + $0xc] sm:$0xf]  ;;  %s1318_s8 = sadd.s32 1, %s2153_s23 }
 0x16b   : >> { %1259 = vst [vmem:[%s2145_s15 + $0x8] sm:$0xf] %v1258_v32  ;;  %v1262_v36 = vld [vmem:[%s2149_s20 + $0x10] sm:$0xf]  ;;  %v1264_v37 = vld [vmem:[%s2149_s20 + $0x14] sm:$0xf]  ;;  %p1319_p11 = scmp.ge.s32.totalorder %s1318_s8, %s2505_s6 }
 0x16c   : >> { %1261 = vst [vmem:[%s2145_s15 + $0xc] sm:$0xf] %v1260_v34  ;;  %1263 = vst [vmem:[%s2145_s15 + $0x10] sm:$0xf] %v1262_v36  ;;  %v1266_v39 = vld [vmem:[%s2149_s20 + $0x18] sm:$0xf] }
 0x16d   : >> { %1265 = vst [vmem:[%s2145_s15 + $0x14] sm:$0xf] %v1264_v37  ;;  %v1268_v33 = vld [vmem:[%s2149_s20 + $0x1c] sm:$0xf]  ;;  %v1270_v35 = vld [vmem:[%s2149_s20 + $0x20] sm:$0xf] }
 0x16e   : >> { %1267 = vst [vmem:[%s2145_s15 + $0x18] sm:$0xf] %v1266_v39  ;;  %1269 = vst [vmem:[%s2145_s15 + $0x1c] sm:$0xf] %v1268_v33  ;;  %v1272_v40 = vld [vmem:[%s2149_s20 + $0x24] sm:$0xf] }
 0x16f   : >> { %1271 = vst [vmem:[%s2145_s15 + $0x20] sm:$0xf] %v1270_v35  ;;  %v1274_v6 = vld [vmem:[%s2149_s20 + $0x28] sm:$0xf]  ;;  %v1276_v21 = vld [vmem:[%s2149_s20 + $0x2c] sm:$0xf] }
 0x170   : >> { %1273 = vst [vmem:[%s2145_s15 + $0x24] sm:$0xf] %v1272_v40  ;;  %1275 = vst [vmem:[%s2145_s15 + $0x28] sm:$0xf] %v1274_v6  ;;  %v1278_v43 = vld [vmem:[%s2149_s20 + $0x30] sm:$0xf] }
 0x171   : >> { %1277 = vst [vmem:[%s2145_s15 + $0x2c] sm:$0xf] %v1276_v21  ;;  %v1280_v44 = vld [vmem:[%s2149_s20 + $0x34] sm:$0xf]  ;;  %v1282_v45 = vld [vmem:[%s2149_s20 + $0x38] sm:$0xf] }
 0x172   : >> { %1279 = vst [vmem:[%s2145_s15 + $0x30] sm:$0xf] %v1278_v43  ;;  %1281 = vst [vmem:[%s2145_s15 + $0x34] sm:$0xf] %v1280_v44  ;;  %v1284_v47 = vld [vmem:[%s2149_s20 + $0x3c] sm:$0xf] }
 0x173   : >> { %1283 = vst [vmem:[%s2145_s15 + $0x38] sm:$0xf] %v1282_v45  ;;  %v1286_v46 = vld [vmem:[%s2149_s20 + $0x40] sm:$0xf]  ;;  %v1288_v48 = vld [vmem:[%s2149_s20 + $0x44] sm:$0xf] }
 0x174   : >> { %1285 = vst [vmem:[%s2145_s15 + $0x3c] sm:$0xf] %v1284_v47  ;;  %1287 = vst [vmem:[%s2145_s15 + $0x40] sm:$0xf] %v1286_v46  ;;  %v1290_v49 = vld [vmem:[%s2149_s20 + $0x48] sm:$0xf] }
 0x175   : >> { %1289 = vst [vmem:[%s2145_s15 + $0x44] sm:$0xf] %v1288_v48  ;;  %v1292_v50 = vld [vmem:[%s2149_s20 + $0x4c] sm:$0xf]  ;;  %v1294_v51 = vld [vmem:[%s2149_s20 + $0x50] sm:$0xf] }
 0x176   : >> { %1291 = vst [vmem:[%s2145_s15 + $0x48] sm:$0xf] %v1290_v49  ;;  %1293 = vst [vmem:[%s2145_s15 + $0x4c] sm:$0xf] %v1292_v50  ;;  %v1296_v52 = vld [vmem:[%s2149_s20 + $0x54] sm:$0xf] }
 0x177   : >> { %1295 = vst [vmem:[%s2145_s15 + $0x50] sm:$0xf] %v1294_v51  ;;  %v1298_v53 = vld [vmem:[%s2149_s20 + $0x58] sm:$0xf]  ;;  %v1300_v38 = vld [vmem:[%s2149_s20 + $0x5c] sm:$0xf] }
 0x178   : >> { %1297 = vst [vmem:[%s2145_s15 + $0x54] sm:$0xf] %v1296_v52  ;;  %1299 = vst [vmem:[%s2145_s15 + $0x58] sm:$0xf] %v1298_v53  ;;  %v1302_v41 = vld [vmem:[%s2149_s20 + $0x60] sm:$0xf] }
 0x179   : >> { %1301 = vst [vmem:[%s2145_s15 + $0x5c] sm:$0xf] %v1300_v38  ;;  %v1304_v54 = vld [vmem:[%s2149_s20 + $0x64] sm:$0xf]  ;;  %v1306_v11 = vld [vmem:[%s2149_s20 + $0x68] sm:$0xf] }
 0x17a   : >> { %1303 = vst [vmem:[%s2145_s15 + $0x60] sm:$0xf] %v1302_v41  ;;  %1305 = vst [vmem:[%s2145_s15 + $0x64] sm:$0xf] %v1304_v54  ;;  %v1308_v55 = vld [vmem:[%s2149_s20 + $0x6c] sm:$0xf] }
 0x17b   : >> { %1307 = vst [vmem:[%s2145_s15 + $0x68] sm:$0xf] %v1306_v11  ;;  %v1310_v57 = vld [vmem:[%s2149_s20 + $0x70] sm:$0xf]  ;;  %v1312_v56 = vld [vmem:[%s2149_s20 + $0x74] sm:$0xf] }
 0x17c   : >> { %1309 = vst [vmem:[%s2145_s15 + $0x6c] sm:$0xf] %v1308_v55  ;;  %1311 = vst [vmem:[%s2145_s15 + $0x70] sm:$0xf] %v1310_v57  ;;  %v1314_v58 = vld [vmem:[%s2149_s20 + $0x78] sm:$0xf] }
 0x17d   : >> { %1313 = vst [vmem:[%s2145_s15 + $0x74] sm:$0xf] %v1312_v56  ;;  %v1316_v59 = vld [vmem:[%s2149_s20 + $0x7c] sm:$0xf]  ;;  %1315 = vst [vmem:[%s2145_s15 + $0x78] sm:$0xf] %v1314_v58 }
 0x17e   : >> { %1317 = vst [vmem:[%s2145_s15 + $0x7c] sm:$0xf] %v1316_v59  ;;  %s2641_s8 = smov (%p1319_p11, %s1318_s8), 0  ;;  %s1248_s7 = sadd.s32 1, %s2157_s7  }
 0x17f   : >> { %s1689_s9 = sshll.u32 %s2641_s8, 7  ;;  %p1247_p12 = scmp.ge.s32.totalorder %s1248_s7, %s2505_s6 }
 0x180   : >> { %s1323_s20 = scalar_lea.vmem %s2382_s12, %s1689_s9 [#allocation2]   ;;  %s1324_s15 = scalar_lea.vmem %s2499_s4, %s1689_s9  }
 0x181   : >> { %s2634_s23 = smov %s2641_s8  ;;  %1250 = sbr.rel (!%p1247_p12) target bundleno = 361 (0x169), region = 118 }
 0x186 PF: > { %s2609_s10 = sand.u32 31, %s2639_s27   ;;  %s1732_s11 = sshll.u32 %s2505_s6, 7 }
 0x187   : > { %s1329_s14 = scalar_lea.vmem %s2382_s12, %s1732_s11 [#allocation2]   ;;  %s1331_s17 = scalar_lea.vmem %s2499_s4, %s1732_s11  }
 0x188   : > { %p1694_p13 = scmp.le.s32.totalorder %s2609_s10, 0 }
 0x189   : > { %s2159_s18 = smov (!%p1694_p13), %s1331_s17   ;;  %s2163_s21 = smov (!%p1694_p13), %s1329_s14  }
 0x18a   : > { %1530 = sbr.rel (%p1694_p13) target bundleno = 407 (0x197), region = 123  ;;  %s2167_s22 = smov (!%p1694_p13), 0  }
 0x18b   : > { %s2171_s24 = smov (!%p1694_p13), 0  }
 0x18f LB: >> { %v1341_v61 = vld [vmem:[%s2165_s21] sm:$0xf]  ;;  %s1343_s25 = sadd.s32 1, %s2169_s22  ;;  %s1335_s24 = sadd.s32 1, %s2173_s24   ;;  %s2173_s24 = sphi %s2171_s24, %s1335_s24   ;;  %s2169_s22 = sphi %s2167_s22, %s2168_s22   ;;  %s2165_s21 = sphi %s2163_s21, %s1348_s21   ;;  %s2161_s18 = sphi %s2159_s18, %s1349_s18  }
 0x190   : >> { %1342 = vst [vmem:[%s2161_s18] sm:$0xf] %v1341_v61  ;;  %p1344_p0 = scmp.ge.s32.totalorder %s1343_s25, %s2609_s10  ;;  %p1334_p1 = scmp.ge.s32.totalorder %s1335_s24, %s2609_s10 }
 0x192   : >> { %s2643_s25 = smov (%p1344_p0, %s1343_s25), 0  ;;  %1337 = sbr.rel (!%p1334_p1) target bundleno = 399 (0x18f), region = 129 }
 0x193   : >> { %s1695_s26 = sshll.u32 %s2643_s25, 2  ;;  %s2168_s22 = smov %s2643_s25  }
 0x194   : >> { %s1348_s21 = scalar_lea.vmem %s1329_s14, %s1695_s26 [#allocation2]   ;;  %s1349_s18 = scalar_lea.vmem %s1331_s17, %s1695_s26  }
 0x197 PF: > { %p10_p2 = scmp.ge.s32.totalorder %s2210_s16, 5   ;;  %s2635_s12 = smov %s2137_s13 }
 0x198   : > { %s2636_s13 = smov %s2218_s19  ;;  %s2637_s14 = smov %s2210_s16 }
 0x199   :  { %12 = sbr.rel (!%p10_p2) target bundleno = 2 (0x2), region = 140 }

// kernel: stem_block_forward.13
= control target key start
LH: loop header
LB: loop body
LE: loop exit
PB: predicated region body
PF: predicated region fallthrough
CT: control target
= control target key end

     0   :  { %s2195_s12 = smov 0   ;;  %s2197_s13 = smov 0   ;;  %s2627_s0 = inlined_call_operand.vmem [shape: bf16[450,288], index: 0, kind: input, shape index: {}]   ;;  %s2628_s1 = inlined_call_operand.vmem [shape: bf16[288,64], index: 1, kind: input, shape index: {}]   ;;  %s2629_s2 = inlined_call_operand.vmem [shape: f32[1,64], index: 2, kind: input, shape index: {}]   ;;  %s2630_s3 = inlined_call_operand.vmem [shape: bf16[450,64], index: 3, kind: output, shape index: {}]  }
   0x1   :  { %s2199_s14 = smov 0  }
   0x2 LB: > { %s2208_s15 = sadd.s32 4294967295, %s2141_s14   ;;  %s2210_s16 = sadd.s32 1, %s2141_s14   ;;  %s2141_s14 = sphi %s2199_s14, %s2637_s14   ;;  %s2137_s13 = sphi %s2197_s13, %s2636_s13   ;;  %s2133_s12 = sphi %s2195_s12, %s2635_s12  }
   0x3   : > { %s85_s17 = ssub.s32 %s2141_s14, %s2210_s16  ;;  %s88_s18 = sadd.s32 1, %s2137_s13 }
   0x4   : > { %p86_p0 = scmp.eq.s32.totalorder %s85_s17, 0  ;;  %p98_p1 = scmp.ne.s32.totalorder %s2137_s13, %s2133_s12 }
   0x5   : > { %p99_p2 = scmp.eq.s32.totalorder %s2208_s15, 1  ;;  %p1563_p3 = scmp.ge.s32.totalorder %s2141_s14, 1 }
   0x6   : > { %s2218_s19 = scalar_select %p86_p0, %s2137_s13, %s88_s18  }
   0x7   : > { %p2220_p4 = por %p99_p2, %p98_p1  ;;  %p149_p5 = scmp.lt.s32.totalorder %s2141_s14, 3 }
   0x9   : > { %p150_p6 = pnand %p1563_p3, %p149_p5 }
   0xa   : > { %s2228_s23 = sshll.u32 (!%p150_p6), %s2208_s15, 5  ;;  %s175_s22 = sand.u32 (!%p150_p6), 1, %s2133_s12  }
   0xb   : > { %153 = sbr.rel (%p150_p6) target bundleno = 407 (0x197), region = 32  ;;  %p184_p7 = scmp.lt.s32.totalorder (!%p150_p6), %s2228_s23, 56 }
   0xc   : > { %s1564_s26 = sshll.u32 (!%p150_p6), %s175_s22, 7 }
   0xd   : > { %s2382_s12 = scalar_lea.vmem (!%p150_p6), [#allocation2], %s1564_s26  }
  0x10   : > { %v2005_v0 = vld [vmem:[%s2628_s1 + $0x78] sm:$0xff]   ;;  %v2007_v2 = vld [vmem:[%s2628_s1 + $0x70] sm:$0xff]   ;;  %v2009_v4 = vld [vmem:[%s2628_s1 + $0x68] sm:$0xff]   ;;  %s185_s5 = scalar_select %p184_p7, %s2228_s23, 56  ;;  %vm656_vm0 = vcmask 261120   ;;  %vm1187_vm1 = vcmask 519168  }
  0x11   : > { %v2006_v1 = vld [vmem:[%s2628_s1 + $0x38] sm:$0xff]   ;;  %1734 = vmatprep.subr.bf16.mxu0 %v2005_v0  ;;  %1900 = vmatprep.subr.bf16.mxu1 %v2005_v0  ;;  %v2008_v3 = vld [vmem:[%s2628_s1 + $0x30] sm:$0xff]   ;;  %v2010_v5 = vld [vmem:[%s2628_s1 + $0x28] sm:$0xff]   ;;  %s1228_s27 = ssub.s32 (%p2220_p4), 57, %s2228_s23  ;;  %s1731_s28 = sshll.u32 (%p2220_p4), %s2208_s15, 7 }
  0x12   : > { %1735 = vmatpush3.bf16.msra.mxu0 %v2006_v1  ;;  %1908 = vmatpush3.bf16.msra.mxu1 %v2006_v1  ;;  %v2011_v6 = vld [vmem:[%s2628_s1 + $0x60] sm:$0xff]   ;;  %s1916_s10 = smul.u32 12, %s185_s5  ;;  %v2013_v8 = vld [vmem:[%s2628_s1 + $0x58] sm:$0xff]   ;;  %v2015_v10 = vld [vmem:[%s2628_s1 + $0x50] sm:$0xff]   ;;  %p1229_p8 = scmp.lt.s32.totalorder (%p2220_p4), %s1228_s27, 32 }
  0x13   : > { %1736 = vmatprep.subr.bf16.mxu0 %v2007_v2  ;;  %1901 = vmatprep.subr.bf16.mxu1 %v2007_v2  ;;  %v2012_v7 = vld [vmem:[%s2628_s1 + $0x20] sm:$0xff]   ;;  %v2014_v9 = vld [vmem:[%s2628_s1 + $0x18] sm:$0xff]   ;;  %v2016_v13 = vld [vmem:[%s2628_s1 + $0x10] sm:$0xff]   ;;  %s2499_s4 = scalar_lea.vmem (%p2220_p4), %s2630_s3, %s1731_s28  }
  0x14   : > { %s2259_s24 = scalar_lea.vmem %s2627_s0, %s1916_s10  ;;  %v2017_v14 = vld [vmem:[%s2628_s1 + $0x48] sm:$0xff]   ;;  %v2019_v16 = vld [vmem:[%s2628_s1 + $0x40] sm:$0xff]  }
  0x15   : > { %v2023_v11 = vld [vmem:[%s2259_s24 + $0x4] ss:$12 sps:$4 sm:$0xff]   ;;  %v2018_v15 = vld [vmem:[%s2628_s1 + $0x8] sm:$0xff]   ;;  %v2034_v26 = vld [vmem:[%s2259_s24 + $0x34] ss:$12 sps:$4 sm:$0xff]  }
  0x16   : > { %1737 = vmatpush3.bf16.msra.mxu0 %v2008_v3  ;;  %1909 = vmatpush3.bf16.msra.mxu1 %v2008_v3  ;;  %v2026_v12 = vld [vmem:[%s2259_s24 + $0x124] ss:$12 sps:$4 sm:$0xff]   ;;  %v2027_v18 = vld [vmem:[%s2628_s1 + $0x88] sm:$0xff]   ;;  %v2036_v27 = vld [vmem:[%s2259_s24 + $0x154] ss:$12 sps:$4 sm:$0xff]  }
  0x17   : > { %1738 = vmatprep.subr.bf16.mxu0 %v2009_v4  ;;  %1902 = vmatprep.subr.bf16.mxu1 %v2009_v4  ;;  %v2020_v17 = vld [vmem:[%s2628_s1] sm:$0xff]   ;;  %v2028_v21 = vld [vmem:[%s2259_s24 + $0x1c] ss:$12 sps:$4 sm:$0xff]   ;;  %v2041_v30 = vld [vmem:[%s2259_s24 + $0x4c] ss:$12 sps:$4 sm:$0xff]  }
  0x18   : > { %737 = vmatprep.mubr.bf16.mxu0 %v2023_v11  ;;  %833 = vmatprep.mubr.bf16.mxu1 %v2026_v12  ;;  %v2021_v19 = vld [vmem:[%s2259_s24] ss:$12 sps:$4 sm:$0xff]   ;;  %v2030_v22 = vld [vmem:[%s2259_s24 + $0x13c] ss:$12 sps:$4 sm:$0xff]   ;;  %v2032_v24 = vld [vmem:[%s2259_s24 + $0x18] ss:$12 sps:$4 sm:$0xff]  }
  0x19   : > { %v2024_v20 = vld [vmem:[%s2259_s24 + $0x120] ss:$12 sps:$4 sm:$0xff]   ;;  %v2033_v25 = vld [vmem:[%s2259_s24 + $0x138] ss:$12 sps:$4 sm:$0xff]   ;;  %v2038_v28 = vld [vmem:[%s2259_s24 + $0x30] ss:$12 sps:$4 sm:$0xff]  }
  0x1a   : > { %1739 = vmatpush3.bf16.msra.mxu0 %v2010_v5  ;;  %1910 = vmatpush3.bf16.msra.mxu1 %v2010_v5  ;;  %v2040_v23 = vld [vmem:[%s2628_s1 + $0x80] sm:$0xff]   ;;  %v2039_v29 = vld [vmem:[%s2259_s24 + $0x150] ss:$12 sps:$4 sm:$0xff]   ;;  %v2043_v31 = vld [vmem:[%s2259_s24 + $0x16c] ss:$12 sps:$4 sm:$0xff]  }
  0x1b   : > { %1740 = vmatprep.subr.bf16.mxu0 %v2011_v6  ;;  %1903 = vmatprep.subr.bf16.mxu1 %v2011_v6  ;;  %v2045_v32 = vld [vmem:[%s2259_s24 + $0x48] ss:$12 sps:$4 sm:$0xff]   ;;  %v2047_v34 = vld [vmem:[%s2259_s24 + $0x64] ss:$12 sps:$4 sm:$0xff]   ;;  %v2050_v36 = vld [vmem:[%s2259_s24 + $0x60] ss:$12 sps:$4 sm:$0xff]  }
  0x1c   : > { %v2046_v33 = vld [vmem:[%s2259_s24 + $0x168] ss:$12 sps:$4 sm:$0xff]   ;;  %v2051_v37 = vld [vmem:[%s2259_s24 + $0x20] ss:$12 sps:$4 sm:$0xff]   ;;  %v2054_v39 = vld [vmem:[%s2259_s24 + $0x38] ss:$12 sps:$4 sm:$0xff]  }
  0x1d   : > { %v2049_v35 = vld [vmem:[%s2259_s24 + $0x8] ss:$12 sps:$4 sm:$0xff]   ;;  %v2055_v40 = vld [vmem:[%s2259_s24 + $0x78] ss:$12 sps:$4 sm:$0xff]   ;;  %v2056_v41 = vld [vmem:[%s2259_s24 + $0x50] ss:$12 sps:$4 sm:$0xff]  }
  0x1e   : > { %1741 = vmatpush3.bf16.msra.mxu0 %v2012_v7  ;;  %1911 = vmatpush3.bf16.msra.mxu1 %v2012_v7  ;;  %v2052_v38 = vld [vmem:[%s2259_s24 + $0x7c] ss:$12 sps:$4 sm:$0xff]   ;;  %v2057_v42 = vld [vmem:[%s2259_s24 + $0x94] ss:$12 sps:$4 sm:$0xff]   ;;  %v2062_v46 = vld [vmem:[%s2259_s24 + $0xac] ss:$12 sps:$4 sm:$0xff]  }
  0x1f   : > { %1742 = vmatprep.subr.bf16.mxu0 %v2013_v8  ;;  %1904 = vmatprep.subr.bf16.mxu1 %v2013_v8  ;;  %v2059_v43 = vld [vmem:[%s2259_s24 + $0x68] ss:$12 sps:$4 sm:$0xff]   ;;  %v2060_v44 = vld [vmem:[%s2259_s24 + $0x90] ss:$12 sps:$4 sm:$0xff]   ;;  %v2061_v45 = vld [vmem:[%s2259_s24 + $0x80] ss:$12 sps:$4 sm:$0xff]  }
  0x20   : > { %v2064_v47 = vld [vmem:[%s2259_s24 + $0x98] ss:$12 sps:$4 sm:$0xff]   ;;  %v2065_v48 = vld [vmem:[%s2259_s24 + $0xa8] ss:$12 sps:$4 sm:$0xff]   ;;  %v2066_v49 = vld [vmem:[%s2259_s24 + $0xb0] ss:$12 sps:$4 sm:$0xff]  }
  0x21   : > { %v2067_v50 = vld [vmem:[%s2259_s24 + $0xc4] ss:$12 sps:$4 sm:$0xff]   ;;  %v2069_v51 = vld [vmem:[%s2259_s24 + $0xc8] ss:$12 sps:$4 sm:$0xff]   ;;  %v2070_v52 = vld [vmem:[%s2259_s24 + $0xc0] ss:$12 sps:$4 sm:$0xff]  }
  0x22   : > { %1743 = vmatpush3.bf16.msra.mxu0 %v2014_v9  ;;  %1912 = vmatpush3.bf16.msra.mxu1 %v2014_v9  ;;  %v2071_v53 = vld [vmem:[%s2259_s24 + $0xe0] ss:$12 sps:$4 sm:$0xff]   ;;  %v2072_v54 = vld [vmem:[%s2259_s24 + $0xdc] ss:$12 sps:$4 sm:$0xff]   ;;  %v2074_v55 = vld [vmem:[%s2259_s24 + $0xf8] ss:$12 sps:$4 sm:$0xff]  }
  0x23   : > { %1744 = vmatprep.subr.bf16.mxu0 %v2015_v10  ;;  %1905 = vmatprep.subr.bf16.mxu1 %v2015_v10  ;;  %v2075_v56 = vld [vmem:[%s2259_s24 + $0xd8] ss:$12 sps:$4 sm:$0xff]   ;;  %v2076_v57 = vld [vmem:[%s2259_s24 + $0x110] ss:$12 sps:$4 sm:$0xff]   ;;  %v2077_v58 = vld [vmem:[%s2259_s24 + $0xf4] ss:$12 sps:$4 sm:$0xff]  }
  0x24   : > { %v2079_v59 = vld [vmem:[%s2259_s24 + $0x128] ss:$12 sps:$4 sm:$0xff]   ;;  %v2080_v60 = vld [vmem:[%s2259_s24 + $0xf0] ss:$12 sps:$4 sm:$0xff]   ;;  %v2081_v61 = vld [vmem:[%s2259_s24 + $0x140] ss:$12 sps:$4 sm:$0xff]  }
  0x25   : > { %v2082_v62 = vld [vmem:[%s2259_s24 + $0x10c] ss:$12 sps:$4 sm:$0xff]   ;;  %v2085_v0 = vld [vmem:[%s2259_s24 + $0x108] ss:$12 sps:$4 sm:$0xff]   ;;  %v2086_v1 = vld [vmem:[%s2259_s24 + $0x170] ss:$12 sps:$4 sm:$0xff]  }
  0x26   : > { %1745 = vmatpush3.bf16.msra.mxu0 %v2016_v13  ;;  %1913 = vmatpush3.bf16.msra.mxu1 %v2016_v13  ;;  %v2084_v63 = vld [vmem:[%s2259_s24 + $0x158] ss:$12 sps:$4 sm:$0xff]  }
  0x27   : > { %1746 = vmatprep.subr.bf16.mxu0 %v2017_v14  ;;  %1906 = vmatprep.subr.bf16.mxu1 %v2017_v14 }
  0x2a   : > { %1747 = vmatpush3.bf16.msra.mxu0 %v2018_v15  ;;  %1914 = vmatpush3.bf16.msra.mxu1 %v2018_v15 }
  0x2b   : > { %1748 = vmatprep.subr.bf16.mxu0 %v2019_v16  ;;  %1907 = vmatprep.subr.bf16.mxu1 %v2019_v16 }
  0x2e   : > { %1749 = vmatpush3.bf16.msra.mxu0 %v2020_v17  ;;  %1915 = vmatpush3.bf16.msra.mxu1 %v2020_v17 }
  0x2f   : > { %1864 = vmatprep.subr.bf16.mxu1 %v2027_v18 }
  0x31   : > { %738 = vmatmul.mubr.bf16.vlgmr.msra.gmra.mxu0 %v2021_v19  ;;  %834 = vmatmul.mubr.bf16.vlgmr.msra.gmra.mxu1 %v2024_v20 }
  0x32   : > { %1865 = vmatpush3.bf16.msra.mxu1 %v2027_v18  ;;  %745 = vmatprep.mubr.bf16.mxu0 %v2028_v21 }
  0x33   : > { %841 = vmatprep.mubr.bf16.mxu1 %v2030_v22  ;;  %1866 = vmatprep.subr.bf16.mxu1 %v2040_v23 }
  0x36   : > { %1867 = vmatpush3.bf16.msra.mxu1 %v2040_v23 }
  0x39   : > { %746 = vmatmul.mubr.bf16.gmra.mxu0 %v2032_v24  ;;  %842 = vmatmul.mubr.bf16.gmra.mxu1 %v2033_v25 }
  0x3a   : > { %753 = vmatprep.mubr.bf16.mxu0 %v2034_v26  ;;  %849 = vmatprep.mubr.bf16.mxu1 %v2036_v27 }
  0x41   : > { %754 = vmatmul.mubr.bf16.gmra.mxu0 %v2038_v28  ;;  %850 = vmatmul.mubr.bf16.gmra.mxu1 %v2039_v29 }
  0x42   : > { %761 = vmatprep.mubr.bf16.mxu0 %v2041_v30  ;;  %857 = vmatprep.mubr.bf16.mxu1 %v2043_v31 }
  0x49   : > { %762 = vmatmul.mubr.bf16.gmra.mxu0 %v2045_v32  ;;  %858 = vmatmul.mubr.bf16.gmra.mxu1 %v2046_v33 }
  0x4a   : > { %769 = vmatprep.mubr.bf16.mxu0 %v2047_v34  ;;  %1868 = vmatprep.mubr.msk.bf16.mxu1 %vm656_vm0, %v2049_v35 }
  0x51   : > { %770 = vmatmul.mubr.bf16.gmra.mxu0 %v2050_v36  ;;  %1869 = vmatmul.mubr.msk.bf16.vlgmr.msra.gmra.mxu1 %vm656_vm0, %v2051_v37 }
  0x52   : > { %777 = vmatprep.mubr.bf16.mxu0 %v2052_v38  ;;  %1872 = vmatprep.mubr.msk.bf16.mxu1 %vm656_vm0, %v2054_v39 }
  0x59   : > { %778 = vmatmul.mubr.bf16.gmra.mxu0 %v2055_v40  ;;  %1873 = vmatmul.mubr.msk.bf16.gmra.mxu1 %vm656_vm0, %v2056_v41 }
  0x5a   : > { %785 = vmatprep.mubr.bf16.mxu0 %v2057_v42  ;;  %1876 = vmatprep.mubr.msk.bf16.mxu1 %vm656_vm0, %v2059_v43  ;;  %v2376_v42 = vld [vmem:[%s2629_s2] ss:$0 sm:$0xff] }
  0x61   : > { %786 = vmatmul.mubr.bf16.gmra.mxu0 %v2060_v44  ;;  %1877 = vmatmul.mubr.msk.bf16.gmra.mxu1 %vm656_vm0, %v2061_v45 }
  0x62   : > { %793 = vmatprep.mubr.bf16.mxu0 %v2062_v46  ;;  %1880 = vmatprep.mubr.msk.bf16.mxu1 %vm656_vm0, %v2064_v47 }
  0x69   : > { %794 = vmatmul.mubr.bf16.gmra.mxu0 %v2065_v48  ;;  %1881 = vmatmul.mubr.msk.bf16.gmra.mxu1 %vm656_vm0, %v2066_v49 }
  0x6a   : > { %801 = vmatprep.mubr.bf16.mxu0 %v2067_v50  ;;  %1884 = vmatprep.mubr.msk.bf16.mxu1 %vm656_vm0, %v2069_v51 }
  0x71   : > { %802 = vmatmul.mubr.bf16.gmra.mxu0 %v2070_v52  ;;  %1885 = vmatmul.mubr.msk.bf16.gmra.mxu1 %vm656_vm0, %v2071_v53 }
  0x72   : > { %809 = vmatprep.mubr.bf16.mxu0 %v2072_v54  ;;  %1888 = vmatprep.mubr.msk.bf16.mxu1 %vm656_vm0, %v2074_v55 }
  0x79   : > { %810 = vmatmul.mubr.bf16.gmra.mxu0 %v2075_v56  ;;  %1889 = vmatmul.mubr.msk.bf16.gmra.mxu1 %vm656_vm0, %v2076_v57 }
  0x7a   : > { %817 = vmatprep.mubr.bf16.mxu0 %v2077_v58  ;;  %1892 = vmatprep.mubr.msk.bf16.mxu1 %vm656_vm0, %v2079_v59 }
  0x81   : > { %818 = vmatmul.mubr.bf16.gmra.mxu0 %v2080_v60  ;;  %1893 = vmatmul.mubr.msk.bf16.gmra.mxu1 %vm656_vm0, %v2081_v61 }
  0x82   : > { %825 = vmatprep.mubr.bf16.mxu0 %v2082_v62  ;;  %1896 = vmatprep.mubr.msk.bf16.mxu1 %vm656_vm0, %v2084_v63 }
  0x89   : > { %826 = vmatmul.mubr.bf16.gmra.mxu0 %v2085_v0  ;;  %1897 = vmatmul.mubr.msk.bf16.gmra.mxu1 %vm656_vm0, %v2086_v1 }
  0xf1   : > { %v1750_v2 = vpop.f32.mrf.mxu0  ;;  %v1822_v3 = vpop.f32.mrf.mxu1 }
  0xf3   : > { %v1751_v4 = vpop.f32.mrf.mxu0  ;;  %v1823_v5 = vpop.f32.mrf.mxu1 }
  0xf4   : > { %v2352_v6 = vadd.f32 %v1823_v5, %v1822_v3  ;;  %v1752_v39 = vadd.f32 %v1751_v4, %v1750_v2 }
  0xf5   : > { %v1753_v7 = vpop.f32.mrf.mxu0  ;;  %v1825_v8 = vpop.f32.mrf.mxu1 }
  0xf6   : > { %v740_v49 = vadd.f32 %v1752_v39, %v2376_v42 }
  0xf7   : > { %v1754_v9 = vpop.f32.mrf.mxu0  ;;  %v1826_v10 = vpop.f32.mrf.mxu1 }
  0xf8   : > { %v2354_v11 = vadd.f32 %v1826_v10, %v1825_v8  ;;  %v1755_v45 = vadd.f32 %v1754_v9, %v1753_v7 }
  0xf9   : > { %v1756_v12 = vpop.f32.mrf.mxu0  ;;  %v1828_v13 = vpop.f32.mrf.mxu1 }
  0xfa   : > { %v743_v58 = vadd.f32 %v1755_v45, %v2376_v42 }
  0xfb   : > { %v1757_v14 = vpop.f32.mrf.mxu0  ;;  %v1829_v15 = vpop.f32.mrf.mxu1 }
  0xfc   : > { %v2356_v16 = vadd.f32 %v1829_v15, %v1828_v13  ;;  %v1758_v36 = vadd.f32 %v1757_v14, %v1756_v12 }
  0xfd   : > { %v1759_v17 = vpop.f32.mrf.mxu0  ;;  %v1831_v18 = vpop.f32.mrf.mxu1 }
  0xfe   : > { %v748_v44 = vadd.f32 %v1758_v36, %v2376_v42 }
  0xff   : > { %v1760_v19 = vpop.f32.mrf.mxu0  ;;  %v1832_v20 = vpop.f32.mrf.mxu1 }
 0x100   : > { %v2358_v21 = vadd.f32 %v1832_v20, %v1831_v18  ;;  %v1761_v43 = vadd.f32 %v1760_v19, %v1759_v17 }
 0x101   : > { %v1762_v22 = vpop.f32.mrf.mxu0  ;;  %v1834_v23 = vpop.f32.mrf.mxu1 }
 0x102   : > { %v751_v55 = vadd.f32 %v1761_v43, %v2376_v42 }
 0x103   : > { %v1763_v24 = vpop.f32.mrf.mxu0  ;;  %v1835_v25 = vpop.f32.mrf.mxu1 }
 0x104   : > { %v2360_v26 = vadd.f32 %v1835_v25, %v1834_v23  ;;  %v1764_v59 = vadd.f32 %v1763_v24, %v1762_v22 }
 0x105   : > { %v1765_v27 = vpop.f32.mrf.mxu0  ;;  %v1837_v28 = vpop.f32.mrf.mxu1 }
 0x106   : > { %v756_v14 = vadd.f32 %v1764_v59, %v2376_v42 }
 0x107   : > { %v1766_v29 = vpop.f32.mrf.mxu0  ;;  %v1838_v30 = vpop.f32.mrf.mxu1 }
 0x108   : > { %v2362_v31 = vadd.f32 %v1838_v30, %v1837_v28  ;;  %v1767_v7 = vadd.f32 %v1766_v29, %v1765_v27 }
 0x109   : > { %v1768_v32 = vpop.f32.mrf.mxu0  ;;  %v2364_v33 = vpop.f32.mrf.mxu1 }
 0x10a   : > { %v759_v27 = vadd.f32 %v1767_v7, %v2376_v42 }
 0x10b   : > { %v1769_v34 = vpop.f32.mrf.mxu0  ;;  %v2366_v35 = vpop.f32.mrf.mxu1 }
 0x10c   : > { %v1770_v52 = vadd.f32 %v1769_v34, %v1768_v32 }
 0x10d   : > { %v1771_v37 = vpop.f32.mrf.mxu0  ;;  %v2368_v38 = vpop.f32.mrf.mxu1 }
 0x10e   : > { %v764_v5 = vadd.f32 %v1770_v52, %v2376_v42 }
 0x10f   : > { %v1772_v40 = vpop.f32.mrf.mxu0  ;;  %v2370_v41 = vpop.f32.mrf.mxu1 }
 0x110   : > { %v1773_v63 = vadd.f32 %v1772_v40, %v1771_v37 }
 0x111   : > { %v1774_v46 = vpop.f32.mrf.mxu0  ;;  %v1870_v47 = vpop.f32.mrf.mxu1 }
 0x112   : > { %v909_v48 = vadd.f32 %v1870_v47, %v748_v44  ;;  %v767_v18 = vadd.f32 %v1773_v63, %v2376_v42 }
 0x113   : > { %v1775_v50 = vpop.f32.mrf.mxu0  ;;  %v900_v51 = vpop.f32.mrf.mxu1 }
 0x114   : > { %v1029_v53 = vmax.f32 %v909_v48, 0.0  ;;  %v901_v54 = vadd.f32 %v900_v51, %v740_v49  ;;  %v1776_v28 = vadd.f32 %v1775_v50, %v1774_v46 }
 0x115   : > { %v1777_v56 = vpop.f32.mrf.mxu0  ;;  %v1871_v57 = vpop.f32.mrf.mxu1 }
 0x116   : > { %v1701_v60 = vpack.c.bf16 %v1029_v53, %v1029_v53  ;;  %v1027_v61 = vmax.f32 %v901_v54, 0.0  ;;  %v912_v62 = vadd.f32 %v1871_v57, %v751_v55  ;;  %v772_v51 = vadd.f32 %v1776_v28, %v2376_v42 }
 0x117   : > { %v1778_v0 = vpop.f32.mrf.mxu0  ;;  %v903_v1 = vpop.f32.mrf.mxu1 }
 0x118   : > { %1190 = vst.msk [vmem:[%s2382_s12 + $0x8] sm:$0xf] %vm1187_vm1, %v1701_v60  ;;  %v1699_v2 = vpack.c.bf16 %v1027_v61, %v1027_v61  ;;  %v1030_v3 = vmax.f32 %v912_v62, 0.0  ;;  %v904_v4 = vadd.f32 %v903_v1, %v743_v58  ;;  %v1779_v45 = vadd.f32 %v1778_v0, %v1777_v56 }
 0x119   : > { %v1780_v8 = vpop.f32.mrf.mxu0  ;;  %v1874_v9 = vpop.f32.mrf.mxu1 }
 0x11a   : > { %1188 = vst.msk [vmem:[%s2382_s12] sm:$0xf] %vm1187_vm1, %v1699_v2  ;;  %v1702_v10 = vpack.c.bf16 %v1030_v3, %v1030_v3  ;;  %v1028_v12 = vmax.f32 %v904_v4, 0.0  ;;  %v925_v13 = vadd.f32 %v1874_v9, %v764_v5  ;;  %v775_v60 = vadd.f32 %v1779_v45, %v2376_v42 }
 0x11b   : > { %v1781_v15 = vpop.f32.mrf.mxu0  ;;  %v916_v17 = vpop.f32.mrf.mxu1 }
 0x11c   : > { %1191 = vst.msk [vmem:[%s2382_s12 + $0xc] sm:$0xf] %vm1187_vm1, %v1702_v10  ;;  %v1700_v19 = vpack.c.bf16 %v1028_v12, %v1028_v12  ;;  %v1033_v20 = vmax.f32 %v925_v13, 0.0  ;;  %v1782_v22 = vadd.f32 %v1781_v15, %v1780_v8  ;;  %v917_v23 = vadd.f32 %v916_v17, %v756_v14 }
 0x11d   : > { %v1783_v24 = vpop.f32.mrf.mxu0  ;;  %v1875_v25 = vpop.f32.mrf.mxu1 }
 0x11e   : > { %1189 = vst.msk [vmem:[%s2382_s12 + $0x4] sm:$0xf] %vm1187_vm1, %v1700_v19  ;;  %v1705_v29 = vpack.c.bf16 %v1033_v20, %v1033_v20  ;;  %v1031_v30 = vmax.f32 %v917_v23, 0.0  ;;  %v928_v32 = vadd.f32 %v1875_v25, %v767_v18  ;;  %v780_v37 = vadd.f32 %v1782_v22, %v2376_v42 }
 0x11f   : > { %v1784_v34 = vpop.f32.mrf.mxu0  ;;  %v919_v36 = vpop.f32.mrf.mxu1 }
 0x120   : > { %1194 = vst.msk [vmem:[%s2382_s12 + $0x18] sm:$0xf] %vm1187_vm1, %v1705_v29  ;;  %v1703_v39 = vpack.c.bf16 %v1031_v30, %v1031_v30  ;;  %v1034_v40 = vmax.f32 %v928_v32, 0.0  ;;  %v1785_v43 = vadd.f32 %v1784_v34, %v1783_v24  ;;  %v920_v44 = vadd.f32 %v919_v36, %v759_v27 }
 0x121   : > { %v1786_v47 = vpop.f32.mrf.mxu0  ;;  %v1878_v46 = vpop.f32.mrf.mxu1 }
 0x122   : > { %1192 = vst.msk [vmem:[%s2382_s12 + $0x10] sm:$0xf] %vm1187_vm1, %v1703_v39  ;;  %v1706_v48 = vpack.c.bf16 %v1034_v40, %v1034_v40  ;;  %v1032_v49 = vmax.f32 %v920_v44, 0.0  ;;  %v941_v50 = vadd.f32 %v1878_v46, %v780_v37  ;;  %v783_v56 = vadd.f32 %v1785_v43, %v2376_v42 }
 0x123   : > { %v1787_v52 = vpop.f32.mrf.mxu0  ;;  %v932_v53 = vpop.f32.mrf.mxu1 }
 0x124   : > { %1195 = vst.msk [vmem:[%s2382_s12 + $0x1c] sm:$0xf] %vm1187_vm1, %v1706_v48  ;;  %v1704_v54 = vpack.c.bf16 %v1032_v49, %v1032_v49  ;;  %v1037_v55 = vmax.f32 %v941_v50, 0.0  ;;  %v933_v57 = vadd.f32 %v932_v53, %v772_v51  ;;  %v1788_v62 = vadd.f32 %v1787_v52, %v1786_v47 }
 0x125   : > { %v1789_v58 = vpop.f32.mrf.mxu0  ;;  %v1879_v59 = vpop.f32.mrf.mxu1 }
 0x126   : > { %1193 = vst.msk [vmem:[%s2382_s12 + $0x14] sm:$0xf] %vm1187_vm1, %v1704_v54  ;;  %v1709_v61 = vpack.c.bf16 %v1037_v55, %v1037_v55  ;;  %v1035_v63 = vmax.f32 %v933_v57, 0.0  ;;  %v944_v0 = vadd.f32 %v1879_v59, %v783_v56  ;;  %v788_v13 = vadd.f32 %v1788_v62, %v2376_v42 }
 0x127   : > { %v1790_v1 = vpop.f32.mrf.mxu0  ;;  %v935_v2 = vpop.f32.mrf.mxu1 }
 0x128   : > { %1198 = vst.msk [vmem:[%s2382_s12 + $0x28] sm:$0xf] %vm1187_vm1, %v1709_v61  ;;  %v1707_v3 = vpack.c.bf16 %v1035_v63, %v1035_v63  ;;  %v1038_v4 = vmax.f32 %v944_v0, 0.0  ;;  %v936_v5 = vadd.f32 %v935_v2, %v775_v60  ;;  %v1791_v10 = vadd.f32 %v1790_v1, %v1789_v58 }
 0x129   : > { %v1792_v7 = vpop.f32.mrf.mxu0  ;;  %v1882_v8 = vpop.f32.mrf.mxu1 }
 0x12a   : > { %1196 = vst.msk [vmem:[%s2382_s12 + $0x20] sm:$0xf] %vm1187_vm1, %v1707_v3  ;;  %v1710_v9 = vpack.c.bf16 %v1038_v4, %v1038_v4  ;;  %v1036_v12 = vmax.f32 %v936_v5, 0.0  ;;  %v791_v25 = vadd.f32 %v1791_v10, %v2376_v42 }
 0x12b   : > { %v1793_v14 = vpop.f32.mrf.mxu0  ;;  %v948_v15 = vpop.f32.mrf.mxu1 }
 0x12c   : > { %1199 = vst.msk [vmem:[%s2382_s12 + $0x2c] sm:$0xf] %vm1187_vm1, %v1710_v9  ;;  %v1708_v17 = vpack.c.bf16 %v1036_v12, %v1036_v12  ;;  %v1794_v18 = vadd.f32 %v1793_v14, %v1792_v7  ;;  %v949_v19 = vadd.f32 %v948_v15, %v788_v13  ;;  %v844_v15 = vadd.f32 %v2356_v16, %v2376_v42 }
 0x12d   : > { %v1795_v20 = vpop.f32.mrf.mxu0  ;;  %v1883_v22 = vpop.f32.mrf.mxu1  ;;  %v847_v16 = vadd.f32 %v2358_v21, %v2376_v42 }
 0x12e   : > { %1197 = vst.msk [vmem:[%s2382_s12 + $0x24] sm:$0xf] %vm1187_vm1, %v1708_v17  ;;  %v796_v23 = vadd.f32 %v1794_v18, %v2376_v42  ;;  %v1039_v24 = vmax.f32 %v949_v19, 0.0 }
 0x12f   : > { %v1796_v27 = vpop.f32.mrf.mxu0  ;;  %v951_v28 = vpop.f32.mrf.mxu1 }
 0x130   : > { %v957_v29 = vadd.f32 %v1882_v8, %v796_v23  ;;  %v1711_v30 = vpack.c.bf16 %v1039_v24, %v1039_v24  ;;  %v1797_v32 = vadd.f32 %v1796_v27, %v1795_v20  ;;  %v952_v34 = vadd.f32 %v951_v28, %v791_v25 }
 0x131   : > { %v1798_v36 = vpop.f32.mrf.mxu0  ;;  %v1886_v37 = vpop.f32.mrf.mxu1  ;;  %v1842_v23 = vadd.f32 %v2366_v35, %v2364_v33  ;;  %v836_v25 = vadd.f32 %v2352_v6, %v2376_v42  ;;  %v1845_v6 = vadd.f32 %v2370_v41, %v2368_v38 }
 0x132   : > { %v1041_v39 = vmax.f32 %v957_v29, 0.0  ;;  %1200 = vst.msk [vmem:[%s2382_s12 + $0x30] sm:$0xf] %vm1187_vm1, %v1711_v30  ;;  %v799_v40 = vadd.f32 %v1797_v32, %v2376_v42  ;;  %v1040_v43 = vmax.f32 %v952_v34, 0.0 }
 0x133   : > { %v1799_v44 = vpop.f32.mrf.mxu0  ;;  %v964_v45 = vpop.f32.mrf.mxu1 }
 0x134   : > { %v1713_v47 = vpack.c.bf16 %v1041_v39, %v1041_v39  ;;  %v960_v46 = vadd.f32 %v1883_v22, %v799_v40  ;;  %v1712_v48 = vpack.c.bf16 %v1040_v43, %v1040_v43  ;;  %v1800_v49 = vadd.f32 %v1799_v44, %v1798_v36 }
 0x135   : > { %v1801_v50 = vpop.f32.mrf.mxu0  ;;  %v1887_v51 = vpop.f32.mrf.mxu1  ;;  %v839_v44 = vadd.f32 %v2354_v11, %v2376_v42 }
 0x136   : > { %1202 = vst.msk [vmem:[%s2382_s12 + $0x38] sm:$0xf] %vm1187_vm1, %v1713_v47  ;;  %v1042_v52 = vmax.f32 %v960_v46, 0.0  ;;  %1201 = vst.msk [vmem:[%s2382_s12 + $0x34] sm:$0xf] %vm1187_vm1, %v1712_v48  ;;  %v804_v53 = vadd.f32 %v1800_v49, %v2376_v42  ;;  %v860_v47 = vadd.f32 %v1842_v23, %v2376_v42 }
 0x137   : > { %v1802_v54 = vpop.f32.mrf.mxu0  ;;  %v967_v55 = vpop.f32.mrf.mxu1 }
 0x138   : > { %v1714_v57 = vpack.c.bf16 %v1042_v52, %v1042_v52  ;;  %v965_v56 = vadd.f32 %v964_v45, %v804_v53  ;;  %v1803_v58 = vadd.f32 %v1802_v54, %v1801_v50 }
 0x139   : > { %v1804_v59 = vpop.f32.mrf.mxu0  ;;  %v2427_v60 = vpop.f32.mrf.mxu1 }
 0x13a   : > { %1203 = vst.msk [vmem:[%s2382_s12 + $0x3c] sm:$0xf] %vm1187_vm1, %v1714_v57  ;;  %v1043_v61 = vmax.f32 %v965_v56, 0.0  ;;  %v807_v62 = vadd.f32 %v1803_v58, %v2376_v42  ;;  %v852_v58 = vadd.f32 %v2360_v26, %v2376_v42 }
 0x13b   : > { %v1805_v63 = vpop.f32.mrf.mxu0  ;;  %v980_v0 = vpop.f32.mrf.mxu1 }
 0x13c   : > { %v1715_v1 = vpack.c.bf16 %v1043_v61, %v1043_v61  ;;  %v968_v2 = vadd.f32 %v967_v55, %v807_v62  ;;  %v1806_v3 = vadd.f32 %v1805_v63, %v1804_v59  ;;  %v863_v61 = vadd.f32 %v1845_v6, %v2376_v42 }
 0x13d   : > { %v1807_v4 = vpop.f32.mrf.mxu0  ;;  %v2432_v5 = vpop.f32.mrf.mxu1 }
 0x13e   : > { %1204 = vst.msk [vmem:[%s2382_s12 + $0x40] sm:$0xf] %vm1187_vm1, %v1715_v1  ;;  %v1044_v7 = vmax.f32 %v968_v2, 0.0  ;;  %v812_v8 = vadd.f32 %v1806_v3, %v2376_v42 }
 0x13f   : > { %v1808_v9 = vpop.f32.mrf.mxu0  ;;  %v983_v10 = vpop.f32.mrf.mxu1 }
 0x140   : > { %v1716_v12 = vpack.c.bf16 %v1044_v7, %v1044_v7  ;;  %v973_v13 = vadd.f32 %v1886_v37, %v812_v8  ;;  %v1809_v14 = vadd.f32 %v1808_v9, %v1807_v4 }
 0x141   : > { %v1810_v17 = vpop.f32.mrf.mxu0  ;;  %v1894_v18 = vpop.f32.mrf.mxu1 }
 0x142   : > { %1205 = vst.msk [vmem:[%s2382_s12 + $0x44] sm:$0xf] %vm1187_vm1, %v1716_v12  ;;  %v1045_v19 = vmax.f32 %v973_v13, 0.0  ;;  %v815_v20 = vadd.f32 %v1809_v14, %v2376_v42  ;;  %v1005_v22 = vadd.f32 %v1894_v18, %v844_v15  ;;  %v855_v14 = vadd.f32 %v2362_v31, %v2376_v42 }
 0x143   : > { %v1811_v24 = vpop.f32.mrf.mxu0  ;;  %v996_v27 = vpop.f32.mrf.mxu1 }
 0x144   : > { %v1717_v28 = vpack.c.bf16 %v1045_v19, %v1045_v19  ;;  %v976_v29 = vadd.f32 %v1887_v51, %v815_v20  ;;  %v1053_v30 = vmax.f32 %v1005_v22, 0.0  ;;  %v1812_v32 = vadd.f32 %v1811_v24, %v1810_v17 }
 0x145   : > { %v997_v34 = vadd.f32 %v996_v27, %v836_v25  ;;  %v1813_v36 = vpop.f32.mrf.mxu0  ;;  %v1895_v37 = vpop.f32.mrf.mxu1 }
 0x146   : > { %1206 = vst.msk [vmem:[%s2382_s12 + $0x48] sm:$0xf] %vm1187_vm1, %v1717_v28  ;;  %v1046_v39 = vmax.f32 %v976_v29, 0.0  ;;  %v1725_v33 = vpack.c.bf16 %v1053_v30, %v1053_v30  ;;  %v820_v35 = vadd.f32 %v1812_v32, %v2376_v42  ;;  %v1008_v40 = vadd.f32 %v1895_v37, %v847_v16 }
 0x147   : > { %v1051_v21 = vmax.f32 %v997_v34, 0.0  ;;  %v1814_v43 = vpop.f32.mrf.mxu0  ;;  %v999_v45 = vpop.f32.mrf.mxu1 }
 0x148   : > { %v1718_v46 = vpack.c.bf16 %v1046_v39, %v1046_v39  ;;  %1214 = vst.msk [vmem:[%s2382_s12 + $0x68] sm:$0xf] %vm1187_vm1, %v1725_v33  ;;  %v981_v48 = vadd.f32 %v980_v0, %v820_v35  ;;  %v1054_v49 = vmax.f32 %v1008_v40, 0.0  ;;  %v1815_v50 = vadd.f32 %v1814_v43, %v1813_v36 }
 0x149   : > { %v1723_v51 = vpack.c.bf16 %v1051_v21, %v1051_v21  ;;  %v1000_v52 = vadd.f32 %v999_v45, %v839_v44  ;;  %v1816_v53 = vpop.f32.mrf.mxu0  ;;  %v1898_v38 = vpop.f32.mrf.mxu1 }
 0x14a   : > { %1207 = vst.msk [vmem:[%s2382_s12 + $0x4c] sm:$0xf] %vm1187_vm1, %v1718_v46  ;;  %v1047_v41 = vmax.f32 %v981_v48, 0.0  ;;  %v1726_v54 = vpack.c.bf16 %v1054_v49, %v1054_v49  ;;  %v823_v11 = vadd.f32 %v1815_v50, %v2376_v42  ;;  %v1021_v55 = vadd.f32 %v1898_v38, %v860_v47 }
 0x14b   : > { %1212 = vst.msk [vmem:[%s2382_s12 + $0x60] sm:$0xf] %vm1187_vm1, %v1723_v51  ;;  %v1052_v57 = vmax.f32 %v1000_v52, 0.0  ;;  %v1817_v56 = vpop.f32.mrf.mxu0  ;;  %v1012_v59 = vpop.f32.mrf.mxu1 }
 0x14c   : > { %v1719_v62 = vpack.c.bf16 %v1047_v41, %v1047_v41  ;;  %1215 = vst.msk [vmem:[%s2382_s12 + $0x6c] sm:$0xf] %vm1187_vm1, %v1726_v54  ;;  %v984_v63 = vadd.f32 %v983_v10, %v823_v11  ;;  %v1057_v0 = vmax.f32 %v1021_v55, 0.0  ;;  %v1818_v1 = vadd.f32 %v1817_v56, %v1816_v53 }
 0x14d   : > { %v1724_v2 = vpack.c.bf16 %v1052_v57, %v1052_v57  ;;  %v1013_v3 = vadd.f32 %v1012_v59, %v852_v58  ;;  %v1819_v4 = vpop.f32.mrf.mxu0  ;;  %v1899_v7 = vpop.f32.mrf.mxu1 }
 0x14e   : > { %1208 = vst.msk [vmem:[%s2382_s12 + $0x50] sm:$0xf] %vm1187_vm1, %v1719_v62  ;;  %v1048_v8 = vmax.f32 %v984_v63, 0.0  ;;  %v1729_v26 = vpack.c.bf16 %v1057_v0, %v1057_v0  ;;  %v828_v9 = vadd.f32 %v1818_v1, %v2376_v42  ;;  %v1024_v12 = vadd.f32 %v1899_v7, %v863_v61 }
 0x14f   : > { %1213 = vst.msk [vmem:[%s2382_s12 + $0x64] sm:$0xf] %vm1187_vm1, %v1724_v2  ;;  %v1055_v13 = vmax.f32 %v1013_v3, 0.0  ;;  %v1820_v10 = vpop.f32.mrf.mxu0  ;;  %v1015_v15 = vpop.f32.mrf.mxu1 }
 0x150   : > { %v1720_v17 = vpack.c.bf16 %v1048_v8, %v1048_v8  ;;  %1218 = vst.msk [vmem:[%s2382_s12 + $0x78] sm:$0xf] %vm1187_vm1, %v1729_v26  ;;  %v989_v18 = vadd.f32 %v2427_v60, %v828_v9  ;;  %v1058_v19 = vmax.f32 %v1024_v12, 0.0  ;;  %v1821_v20 = vadd.f32 %v1820_v10, %v1819_v4 }
 0x151   : > { %v1727_v22 = vpack.c.bf16 %v1055_v13, %v1055_v13  ;;  %v1016_v23 = vadd.f32 %v1015_v15, %v855_v14 }
 0x152   : > { %1209 = vst.msk [vmem:[%s2382_s12 + $0x54] sm:$0xf] %vm1187_vm1, %v1720_v17  ;;  %v1049_v24 = vmax.f32 %v989_v18, 0.0  ;;  %v1730_v25 = vpack.c.bf16 %v1058_v19, %v1058_v19  ;;  %v831_v31 = vadd.f32 %v1821_v20, %v2376_v42 }
 0x153   : > { %1216 = vst.msk [vmem:[%s2382_s12 + $0x70] sm:$0xf] %vm1187_vm1, %v1727_v22  ;;  %v1056_v27 = vmax.f32 %v1016_v23, 0.0 }
 0x154   : > { %v1721_v16 = vpack.c.bf16 %v1049_v24, %v1049_v24  ;;  %1219 = vst.msk [vmem:[%s2382_s12 + $0x7c] sm:$0xf] %vm1187_vm1, %v1730_v25  ;;  %v992_v60 = vadd.f32 %v2432_v5, %v831_v31 }
 0x155   : > { %v1728_v28 = vpack.c.bf16 %v1056_v27, %v1056_v27 }
 0x156   : > { %1210 = vst.msk [vmem:[%s2382_s12 + $0x58] sm:$0xf] %vm1187_vm1, %v1721_v16  ;;  %v1050_v29 = vmax.f32 %v992_v60, 0.0  ;;  %1226 = sbr.rel (!%p2220_p4) target bundleno = 407 (0x197), region = 36 }
 0x157   : > { %1217 = vst.msk [vmem:[%s2382_s12 + $0x74] sm:$0xf] %vm1187_vm1, %v1728_v28 }
 0x158   : > { %v1722_v30 = vpack.c.bf16 %v1050_v29, %v1050_v29 }
 0x15a   : > { %1211 = vst.msk [vmem:[%s2382_s12 + $0x5c] sm:$0xf] %vm1187_vm1, %v1722_v30 }
 0x15b   : > { %s2639_s27 = smov (!%p1229_p8, %s1228_s27), 32 }
 0x15c   : > { %s1684_s5 = sshll.u32 %s2639_s27, 6 }
 0x15d   : > { %p1687_p9 = scmp.eq.s32.totalorder %s1684_s5, 0 }
 0x15e   : > { %s2505_s6 = sshrl.u32 (!%p1687_p9), %s2639_s27, 5 }
 0x15f   : > { %1237 = sbr.rel (%p1687_p9) target bundleno = 407 (0x197), region = 40  ;;  %p1688_p10 = scmp.le.s32.totalorder (!%p1687_p9), %s2505_s6, 0 }
 0x164   : > { %1516 = sbr.rel (%p1688_p10) target bundleno = 390 (0x186), region = 112  ;;  %s2632_s15 = smov (!%p1688_p10), %s2499_s4 }
 0x165   : > { %s2633_s20 = smov (!%p1688_p10), %s2382_s12  ;;  %s2514_s23 = smov (!%p1688_p10), 0  }
 0x166   : > { %s2516_s7 = smov (!%p1688_p10), 0  }
 0x169 LB: >> { %v1254_v42 = vld [vmem:[%s2149_s20] sm:$0xf]  ;;  %v1256_v5 = vld [vmem:[%s2149_s20 + $0x4] sm:$0xf]  ;;  %v1258_v32 = vld [vmem:[%s2149_s20 + $0x8] sm:$0xf]  ;;  %s2157_s7 = sphi %s2516_s7, %s1248_s7   ;;  %s2153_s23 = sphi %s2514_s23, %s2634_s23   ;;  %s2149_s20 = sphi %s2633_s20, %s1323_s20   ;;  %s2145_s15 = sphi %s2632_s15, %s1324_s15  }
 0x16a   : >> { %1255 = vst [vmem:[%s2145_s15] sm:$0xf] %v1254_v42  ;;  %1257 = vst [vmem:[%s2145_s15 + $0x4] sm:$0xf] %v1256_v5  ;;  %v1260_v34 = vld [vmem:[%s2149_s20 + $0xc] sm:$0xf]  ;;  %s1318_s8 = sadd.s32 1, %s2153_s23 }
 0x16b   : >> { %1259 = vst [vmem:[%s2145_s15 + $0x8] sm:$0xf] %v1258_v32  ;;  %v1262_v36 = vld [vmem:[%s2149_s20 + $0x10] sm:$0xf]  ;;  %v1264_v37 = vld [vmem:[%s2149_s20 + $0x14] sm:$0xf]  ;;  %p1319_p11 = scmp.ge.s32.totalorder %s1318_s8, %s2505_s6 }
 0x16c   : >> { %1261 = vst [vmem:[%s2145_s15 + $0xc] sm:$0xf] %v1260_v34  ;;  %1263 = vst [vmem:[%s2145_s15 + $0x10] sm:$0xf] %v1262_v36  ;;  %v1266_v39 = vld [vmem:[%s2149_s20 + $0x18] sm:$0xf] }
 0x16d   : >> { %1265 = vst [vmem:[%s2145_s15 + $0x14] sm:$0xf] %v1264_v37  ;;  %v1268_v33 = vld [vmem:[%s2149_s20 + $0x1c] sm:$0xf]  ;;  %v1270_v35 = vld [vmem:[%s2149_s20 + $0x20] sm:$0xf] }
 0x16e   : >> { %1267 = vst [vmem:[%s2145_s15 + $0x18] sm:$0xf] %v1266_v39  ;;  %1269 = vst [vmem:[%s2145_s15 + $0x1c] sm:$0xf] %v1268_v33  ;;  %v1272_v40 = vld [vmem:[%s2149_s20 + $0x24] sm:$0xf] }
 0x16f   : >> { %1271 = vst [vmem:[%s2145_s15 + $0x20] sm:$0xf] %v1270_v35  ;;  %v1274_v6 = vld [vmem:[%s2149_s20 + $0x28] sm:$0xf]  ;;  %v1276_v21 = vld [vmem:[%s2149_s20 + $0x2c] sm:$0xf] }
 0x170   : >> { %1273 = vst [vmem:[%s2145_s15 + $0x24] sm:$0xf] %v1272_v40  ;;  %1275 = vst [vmem:[%s2145_s15 + $0x28] sm:$0xf] %v1274_v6  ;;  %v1278_v43 = vld [vmem:[%s2149_s20 + $0x30] sm:$0xf] }
 0x171   : >> { %1277 = vst [vmem:[%s2145_s15 + $0x2c] sm:$0xf] %v1276_v21  ;;  %v1280_v44 = vld [vmem:[%s2149_s20 + $0x34] sm:$0xf]  ;;  %v1282_v45 = vld [vmem:[%s2149_s20 + $0x38] sm:$0xf] }
 0x172   : >> { %1279 = vst [vmem:[%s2145_s15 + $0x30] sm:$0xf] %v1278_v43  ;;  %1281 = vst [vmem:[%s2145_s15 + $0x34] sm:$0xf] %v1280_v44  ;;  %v1284_v47 = vld [vmem:[%s2149_s20 + $0x3c] sm:$0xf] }
 0x173   : >> { %1283 = vst [vmem:[%s2145_s15 + $0x38] sm:$0xf] %v1282_v45  ;;  %v1286_v46 = vld [vmem:[%s2149_s20 + $0x40] sm:$0xf]  ;;  %v1288_v48 = vld [vmem:[%s2149_s20 + $0x44] sm:$0xf] }
 0x174   : >> { %1285 = vst [vmem:[%s2145_s15 + $0x3c] sm:$0xf] %v1284_v47  ;;  %1287 = vst [vmem:[%s2145_s15 + $0x40] sm:$0xf] %v1286_v46  ;;  %v1290_v49 = vld [vmem:[%s2149_s20 + $0x48] sm:$0xf] }
 0x175   : >> { %1289 = vst [vmem:[%s2145_s15 + $0x44] sm:$0xf] %v1288_v48  ;;  %v1292_v50 = vld [vmem:[%s2149_s20 + $0x4c] sm:$0xf]  ;;  %v1294_v51 = vld [vmem:[%s2149_s20 + $0x50] sm:$0xf] }
 0x176   : >> { %1291 = vst [vmem:[%s2145_s15 + $0x48] sm:$0xf] %v1290_v49  ;;  %1293 = vst [vmem:[%s2145_s15 + $0x4c] sm:$0xf] %v1292_v50  ;;  %v1296_v52 = vld [vmem:[%s2149_s20 + $0x54] sm:$0xf] }
 0x177   : >> { %1295 = vst [vmem:[%s2145_s15 + $0x50] sm:$0xf] %v1294_v51  ;;  %v1298_v53 = vld [vmem:[%s2149_s20 + $0x58] sm:$0xf]  ;;  %v1300_v38 = vld [vmem:[%s2149_s20 + $0x5c] sm:$0xf] }
 0x178   : >> { %1297 = vst [vmem:[%s2145_s15 + $0x54] sm:$0xf] %v1296_v52  ;;  %1299 = vst [vmem:[%s2145_s15 + $0x58] sm:$0xf] %v1298_v53  ;;  %v1302_v41 = vld [vmem:[%s2149_s20 + $0x60] sm:$0xf] }
 0x179   : >> { %1301 = vst [vmem:[%s2145_s15 + $0x5c] sm:$0xf] %v1300_v38  ;;  %v1304_v54 = vld [vmem:[%s2149_s20 + $0x64] sm:$0xf]  ;;  %v1306_v11 = vld [vmem:[%s2149_s20 + $0x68] sm:$0xf] }
 0x17a   : >> { %1303 = vst [vmem:[%s2145_s15 + $0x60] sm:$0xf] %v1302_v41  ;;  %1305 = vst [vmem:[%s2145_s15 + $0x64] sm:$0xf] %v1304_v54  ;;  %v1308_v55 = vld [vmem:[%s2149_s20 + $0x6c] sm:$0xf] }
 0x17b   : >> { %1307 = vst [vmem:[%s2145_s15 + $0x68] sm:$0xf] %v1306_v11  ;;  %v1310_v57 = vld [vmem:[%s2149_s20 + $0x70] sm:$0xf]  ;;  %v1312_v56 = vld [vmem:[%s2149_s20 + $0x74] sm:$0xf] }
 0x17c   : >> { %1309 = vst [vmem:[%s2145_s15 + $0x6c] sm:$0xf] %v1308_v55  ;;  %1311 = vst [vmem:[%s2145_s15 + $0x70] sm:$0xf] %v1310_v57  ;;  %v1314_v58 = vld [vmem:[%s2149_s20 + $0x78] sm:$0xf] }
 0x17d   : >> { %1313 = vst [vmem:[%s2145_s15 + $0x74] sm:$0xf] %v1312_v56  ;;  %v1316_v59 = vld [vmem:[%s2149_s20 + $0x7c] sm:$0xf]  ;;  %1315 = vst [vmem:[%s2145_s15 + $0x78] sm:$0xf] %v1314_v58 }
 0x17e   : >> { %1317 = vst [vmem:[%s2145_s15 + $0x7c] sm:$0xf] %v1316_v59  ;;  %s2641_s8 = smov (%p1319_p11, %s1318_s8), 0  ;;  %s1248_s7 = sadd.s32 1, %s2157_s7  }
 0x17f   : >> { %s1689_s9 = sshll.u32 %s2641_s8, 7  ;;  %p1247_p12 = scmp.ge.s32.totalorder %s1248_s7, %s2505_s6 }
 0x180   : >> { %s1323_s20 = scalar_lea.vmem %s2382_s12, %s1689_s9 [#allocation2]   ;;  %s1324_s15 = scalar_lea.vmem %s2499_s4, %s1689_s9  }
 0x181   : >> { %s2634_s23 = smov %s2641_s8  ;;  %1250 = sbr.rel (!%p1247_p12) target bundleno = 361 (0x169), region = 118 }
 0x186 PF: > { %s2609_s10 = sand.u32 31, %s2639_s27   ;;  %s1732_s11 = sshll.u32 %s2505_s6, 7 }
 0x187   : > { %s1329_s14 = scalar_lea.vmem %s2382_s12, %s1732_s11 [#allocation2]   ;;  %s1331_s17 = scalar_lea.vmem %s2499_s4, %s1732_s11  }
 0x188   : > { %p1694_p13 = scmp.le.s32.totalorder %s2609_s10, 0 }
 0x189   : > { %s2159_s18 = smov (!%p1694_p13), %s1331_s17   ;;  %s2163_s21 = smov (!%p1694_p13), %s1329_s14  }
 0x18a   : > { %1530 = sbr.rel (%p1694_p13) target bundleno = 407 (0x197), region = 123  ;;  %s2167_s22 = smov (!%p1694_p13), 0  }
 0x18b   : > { %s2171_s24 = smov (!%p1694_p13), 0  }
 0x18f LB: >> { %v1341_v61 = vld [vmem:[%s2165_s21] sm:$0xf]  ;;  %s1343_s25 = sadd.s32 1, %s2169_s22  ;;  %s1335_s24 = sadd.s32 1, %s2173_s24   ;;  %s2173_s24 = sphi %s2171_s24, %s1335_s24   ;;  %s2169_s22 = sphi %s2167_s22, %s2168_s22   ;;  %s2165_s21 = sphi %s2163_s21, %s1348_s21   ;;  %s2161_s18 = sphi %s2159_s18, %s1349_s18  }
 0x190   : >> { %1342 = vst [vmem:[%s2161_s18] sm:$0xf] %v1341_v61  ;;  %p1344_p0 = scmp.ge.s32.totalorder %s1343_s25, %s2609_s10  ;;  %p1334_p1 = scmp.ge.s32.totalorder %s1335_s24, %s2609_s10 }
 0x192   : >> { %s2643_s25 = smov (%p1344_p0, %s1343_s25), 0  ;;  %1337 = sbr.rel (!%p1334_p1) target bundleno = 399 (0x18f), region = 129 }
 0x193   : >> { %s1695_s26 = sshll.u32 %s2643_s25, 2  ;;  %s2168_s22 = smov %s2643_s25  }
 0x194   : >> { %s1348_s21 = scalar_lea.vmem %s1329_s14, %s1695_s26 [#allocation2]   ;;  %s1349_s18 = scalar_lea.vmem %s1331_s17, %s1695_s26  }
 0x197 PF: > { %p10_p2 = scmp.ge.s32.totalorder %s2210_s16, 4   ;;  %s2635_s12 = smov %s2137_s13 }
 0x198   : > { %s2636_s13 = smov %s2218_s19  ;;  %s2637_s14 = smov %s2210_s16 }
 0x199   :  { %12 = sbr.rel (!%p10_p2) target bundleno = 2 (0x2), region = 140 }

// kernel: stem_block_forward.14
= control target key start
LH: loop header
LB: loop body
LE: loop exit
PB: predicated region body
PF: predicated region fallthrough
CT: control target
= control target key end

     0   :  { %vm264_vm0 = vcmask 519168   ;;  %vm265_vm1 = vsmask.f32 3328  ;;  %s885_s0 = inlined_call_operand.vmem [shape: bf16[2,8,7,64], index: 0, kind: input, shape index: {}]   ;;  %s886_s1 = inlined_call_operand.vmem [shape: bf16[2,8,7,64], index: 1, kind: input, shape index: {}]   ;;  %s887_s2 = inlined_call_operand.vmem [shape: bf16[2,7,7,64], index: 2, kind: input, shape index: {}]   ;;  %s888_s4 = inlined_call_operand.vmem [shape: bf16[2,8,7,64], index: 4, kind: input, shape index: {}]   ;;  %s889_s3 = inlined_call_operand.vmem [shape: bf16[2,7,7,64], index: 3, kind: input, shape index: {}]   ;;  %s890_s5 = inlined_call_operand.vmem [shape: bf16[2,7,7,64], index: 5, kind: input, shape index: {}]   ;;  %s891_s6 = inlined_call_operand.vmem [shape: bf16[2,7,7,64], index: 6, kind: output, shape index: {}]  }
   0x1   :  { %v23_v0 = vld [vmem:[%s885_s0] sm:$0xf]  ;;  %v24_v6 = vld [vmem:[%s885_s0 + $0x4] sm:$0xf]  ;;  %v25_v16 = vld [vmem:[%s885_s0 + $0x8] sm:$0xf] }
   0x2   :  { %v37_v1 = vld [vmem:[%s886_s1] sm:$0xf]  ;;  %v38_v8 = vld [vmem:[%s886_s1 + $0x4] sm:$0xf]  ;;  %v39_v17 = vld [vmem:[%s886_s1 + $0x8] sm:$0xf] }
   0x3   :  { %v65_v2 = vld [vmem:[%s888_s4] sm:$0xf]  ;;  %v51_v3 = vmax.bf16 %v37_v1, %v23_v0  ;;  %v66_v9 = vld [vmem:[%s888_s4 + $0x4] sm:$0xf]  ;;  %v52_v11 = vmax.bf16 %v38_v8, %v24_v6  ;;  %v67_v18 = vld [vmem:[%s888_s4 + $0x8] sm:$0xf]  ;;  %v53_v21 = vmax.bf16 %v39_v17, %v25_v16 }
   0x4   :  { %v93_v4 = vld [vmem:[%s887_s2] sm:$0xf]  ;;  %v94_v13 = vld [vmem:[%s887_s2 + $0x4] sm:$0xf]  ;;  %v95_v25 = vld [vmem:[%s887_s2 + $0x8] sm:$0xf] }
   0x5   :  { %v79_v5 = vmax.bf16 %v65_v2, %v51_v3  ;;  %v121_v7 = vld [vmem:[%s889_s3] sm:$0xf]  ;;  %v80_v15 = vmax.bf16 %v66_v9, %v52_v11  ;;  %v313_v19 = vld [vmem:[%s885_s0 + $0x4] sm:$0xf]  ;;  %v81_v28 = vmax.bf16 %v67_v18, %v53_v21  ;;  %v26_v29 = vld [vmem:[%s885_s0 + $0xc] sm:$0xf] }
   0x6   :  { %v149_v12 = vld [vmem:[%s890_s5] sm:$0xf]  ;;  %v122_v20 = vld [vmem:[%s889_s3 + $0x4] sm:$0xf]  ;;  %v40_v30 = vld [vmem:[%s886_s1 + $0xc] sm:$0xf] }
   0x7   :  { %v107_v10 = vmax.bf16 %v93_v4, %v79_v5  ;;  %v327_v23 = vld [vmem:[%s886_s1 + $0x4] sm:$0xf]  ;;  %v108_v24 = vmax.bf16 %v94_v13, %v80_v15  ;;  %vm454_vm2 = vmand %vm264_vm0, %vm265_vm1  ;;  %v123_v34 = vld [vmem:[%s889_s3 + $0x8] sm:$0xf]  ;;  %v54_v35 = vmax.bf16 %v40_v30, %v26_v29  ;;  %v109_v39 = vmax.bf16 %v95_v25, %v81_v28 }
   0x8   :  { %v341_v26 = vld [vmem:[%s888_s4 + $0x4] sm:$0xf]  ;;  %v68_v36 = vld [vmem:[%s888_s4 + $0xc] sm:$0xf]  ;;  %v267_v37 = vld [vmem:[%s891_s6] sm:$0xf] }
   0x9   :  { %v135_v14 = vmax.bf16 %v121_v7, %v107_v10  ;;  %v150_v27 = vld [vmem:[%s890_s5 + $0x4] sm:$0xf]  ;;  %v136_v33 = vmax.bf16 %v122_v20, %v108_v24  ;;  %v314_v38 = vld [vmem:[%s885_s0 + $0x8] sm:$0xf]  ;;  %v96_v40 = vld [vmem:[%s887_s2 + $0xc] sm:$0xf]  ;;  %v82_v45 = vmax.bf16 %v68_v36, %v54_v35  ;;  %v137_v47 = vmax.bf16 %v123_v34, %v109_v39 }
   0xa   :  { %v328_v43 = vld [vmem:[%s886_s1 + $0x8] sm:$0xf]  ;;  %v27_v46 = vld [vmem:[%s885_s0 + $0x10] sm:$0xf]  ;;  %v124_v48 = vld [vmem:[%s889_s3 + $0xc] sm:$0xf] }
   0xb   :  { %v163_v22 = vmax.bf16 %v149_v12, %v135_v14  ;;  %v164_v42 = vmax.bf16 %v150_v27, %v136_v33  ;;  %v151_v44 = vld [vmem:[%s890_s5 + $0x8] sm:$0xf]  ;;  %v41_v49 = vld [vmem:[%s886_s1 + $0x10] sm:$0xf]  ;;  %v315_v54 = vld [vmem:[%s885_s0 + $0xc] sm:$0xf]  ;;  %v110_v55 = vmax.bf16 %v96_v40, %v82_v45 }
   0xc   :  { %v69_v50 = vld [vmem:[%s888_s4 + $0x10] sm:$0xf]  ;;  %v342_v53 = vld [vmem:[%s888_s4 + $0x8] sm:$0xf]  ;;  %v55_v56 = vmax.bf16 %v41_v49, %v27_v46  ;;  %v270_v57 = vld [vmem:[%s891_s6 + $0x4] sm:$0xf]  ;;  %v165_v58 = vmax.bf16 %v151_v44, %v137_v47 }
   0xd   :  { %v192_v31 = vmax.bf16 %v313_v19, %v163_v22  ;;  %v193_v52 = vmax.bf16 %v314_v38, %v164_v42  ;;  %v329_v59 = vld [vmem:[%s886_s1 + $0xc] sm:$0xf]  ;;  %v97_v61 = vld [vmem:[%s887_s2 + $0x10] sm:$0xf]  ;;  %v138_v0 = vmax.bf16 %v124_v48, %v110_v55  ;;  %v28_v2 = vld [vmem:[%s885_s0 + $0x14] sm:$0xf] }
   0xe   :  { %v152_v60 = vld [vmem:[%s890_s5 + $0xc] sm:$0xf]  ;;  %v83_v1 = vmax.bf16 %v69_v50, %v55_v56  ;;  %v42_v3 = vld [vmem:[%s886_s1 + $0x14] sm:$0xf]  ;;  %v194_v5 = vmax.bf16 %v315_v54, %v165_v58  ;;  %v316_v7 = vld [vmem:[%s885_s0 + $0x10] sm:$0xf] }
   0xf   :  { %v221_v41 = vmax.bf16 %v327_v23, %v192_v31  ;;  %v222_v63 = vmax.bf16 %v328_v43, %v193_v52  ;;  %v70_v4 = vld [vmem:[%s888_s4 + $0x14] sm:$0xf]  ;;  %v343_v6 = vld [vmem:[%s888_s4 + $0xc] sm:$0xf]  ;;  %v125_v8 = vld [vmem:[%s889_s3 + $0x10] sm:$0xf]  ;;  %v56_v9 = vmax.bf16 %v42_v3, %v28_v2  ;;  %v166_v12 = vmax.bf16 %v152_v60, %v138_v0 }
  0x10   :  { %v273_v11 = vld [vmem:[%s891_s6 + $0x8] sm:$0xf]  ;;  %v330_v13 = vld [vmem:[%s886_s1 + $0x10] sm:$0xf]  ;;  %v111_v14 = vmax.bf16 %v97_v61, %v83_v1  ;;  %v98_v15 = vld [vmem:[%s887_s2 + $0x14] sm:$0xf]  ;;  %v223_v16 = vmax.bf16 %v329_v59, %v194_v5 }
  0x11   :  { %v250_v51 = vmax.bf16 %v341_v26, %v221_v41  ;;  %v251_v10 = vmax.bf16 %v342_v53, %v222_v63  ;;  %v153_v17 = vld [vmem:[%s890_s5 + $0x10] sm:$0xf]  ;;  %v84_v18 = vmax.bf16 %v70_v4, %v56_v9  ;;  %v29_v19 = vld [vmem:[%s885_s0 + $0x18] sm:$0xf]  ;;  %v195_v22 = vmax.bf16 %v316_v7, %v166_v12  ;;  %v126_v25 = vld [vmem:[%s889_s3 + $0x14] sm:$0xf] }
  0x12   :  { %v43_v20 = vld [vmem:[%s886_s1 + $0x18] sm:$0xf]  ;;  %v344_v23 = vld [vmem:[%s888_s4 + $0x10] sm:$0xf]  ;;  %v139_v24 = vmax.bf16 %v125_v8, %v111_v14  ;;  %v252_v28 = vmax.bf16 %v343_v6, %v223_v16  ;;  %v276_v29 = vld [vmem:[%s891_s6 + $0xc] sm:$0xf] }
  0x13   :  { %v268_v62 = vsel %vm454_vm2, %v250_v51, %v267_v37  ;;  %v271_v21 = vsel %vm454_vm2, %v251_v10, %v270_v57  ;;  %v57_v26 = vmax.bf16 %v43_v20, %v29_v19  ;;  %v71_v27 = vld [vmem:[%s888_s4 + $0x18] sm:$0xf]  ;;  %v317_v30 = vld [vmem:[%s885_s0 + $0x14] sm:$0xf]  ;;  %v112_v31 = vmax.bf16 %v98_v15, %v84_v18  ;;  %v30_v39 = vld [vmem:[%s885_s0 + $0x20] sm:$0xf] }
  0x14   :  { %269 = vst [vmem:[%s891_s6] sm:$0xf] %v268_v62  ;;  %272 = vst [vmem:[%s891_s6 + $0x4] sm:$0xf] %v271_v21  ;;  %v99_v33 = vld [vmem:[%s887_s2 + $0x18] sm:$0xf]  ;;  %v224_v34 = vmax.bf16 %v330_v13, %v195_v22  ;;  %v167_v35 = vmax.bf16 %v153_v17, %v139_v24  ;;  %v274_v40 = vsel %vm454_vm2, %v252_v28, %v273_v11 }
  0x15   :  { %v331_v36 = vld [vmem:[%s886_s1 + $0x14] sm:$0xf]  ;;  %v85_v38 = vmax.bf16 %v71_v27, %v57_v26  ;;  %v140_v41 = vmax.bf16 %v126_v25, %v112_v31  ;;  %v127_v42 = vld [vmem:[%s889_s3 + $0x18] sm:$0xf]  ;;  %v44_v43 = vld [vmem:[%s886_s1 + $0x20] sm:$0xf] }
  0x16   :  { %v154_v37 = vld [vmem:[%s890_s5 + $0x14] sm:$0xf]  ;;  %v72_v44 = vld [vmem:[%s888_s4 + $0x20] sm:$0xf]  ;;  %275 = vst [vmem:[%s891_s6 + $0x8] sm:$0xf] %v274_v40  ;;  %v253_v45 = vmax.bf16 %v344_v23, %v224_v34  ;;  %v196_v46 = vmax.bf16 %v317_v30, %v167_v35  ;;  %v58_v50 = vmax.bf16 %v44_v43, %v30_v39 }
  0x17   :  { %v345_v47 = vld [vmem:[%s888_s4 + $0x14] sm:$0xf]  ;;  %v318_v48 = vld [vmem:[%s885_s0 + $0x18] sm:$0xf]  ;;  %v113_v49 = vmax.bf16 %v99_v33, %v85_v38  ;;  %v279_v51 = vld [vmem:[%s891_s6 + $0x10] sm:$0xf]  ;;  %v168_v52 = vmax.bf16 %v154_v37, %v140_v41 }
  0x18   :  { %v332_v53 = vld [vmem:[%s886_s1 + $0x18] sm:$0xf]  ;;  %v100_v55 = vld [vmem:[%s887_s2 + $0x1c] sm:$0xf]  ;;  %v277_v56 = vsel %vm454_vm2, %v253_v45, %v276_v29  ;;  %v225_v57 = vmax.bf16 %v331_v36, %v196_v46  ;;  %v86_v59 = vmax.bf16 %v72_v44, %v58_v50  ;;  %v31_v60 = vld [vmem:[%s885_s0 + $0x24] sm:$0xf] }
  0x19   :  { %v155_v54 = vld [vmem:[%s890_s5 + $0x18] sm:$0xf]  ;;  %v141_v58 = vmax.bf16 %v127_v42, %v113_v49  ;;  %v45_v61 = vld [vmem:[%s886_s1 + $0x24] sm:$0xf]  ;;  %278 = vst [vmem:[%s891_s6 + $0xc] sm:$0xf] %v277_v56  ;;  %v197_v63 = vmax.bf16 %v318_v48, %v168_v52 }
  0x1a   :  { %v73_v62 = vld [vmem:[%s888_s4 + $0x24] sm:$0xf]  ;;  %v346_v0 = vld [vmem:[%s888_s4 + $0x18] sm:$0xf]  ;;  %v319_v1 = vld [vmem:[%s885_s0 + $0x1c] sm:$0xf]  ;;  %v59_v3 = vmax.bf16 %v45_v61, %v31_v60  ;;  %v254_v4 = vmax.bf16 %v345_v47, %v225_v57  ;;  %v114_v8 = vmax.bf16 %v100_v55, %v86_v59 }
  0x1b   :  { %v128_v2 = vld [vmem:[%s889_s3 + $0x1c] sm:$0xf]  ;;  %v282_v5 = vld [vmem:[%s891_s6 + $0x14] sm:$0xf]  ;;  %v169_v6 = vmax.bf16 %v155_v54, %v141_v58  ;;  %v101_v9 = vld [vmem:[%s887_s2 + $0x20] sm:$0xf]  ;;  %v226_v10 = vmax.bf16 %v332_v53, %v197_v63 }
  0x1c   :  { %v333_v7 = vld [vmem:[%s886_s1 + $0x1c] sm:$0xf]  ;;  %v87_v12 = vmax.bf16 %v73_v62, %v59_v3  ;;  %v32_v13 = vld [vmem:[%s885_s0 + $0x28] sm:$0xf]  ;;  %v280_v15 = vsel %vm454_vm2, %v254_v4, %v279_v51  ;;  %v142_v18 = vmax.bf16 %v128_v2, %v114_v8  ;;  %v129_v19 = vld [vmem:[%s889_s3 + $0x20] sm:$0xf] }
  0x1d   :  { %v156_v11 = vld [vmem:[%s890_s5 + $0x1c] sm:$0xf]  ;;  %v46_v14 = vld [vmem:[%s886_s1 + $0x28] sm:$0xf]  ;;  %v198_v16 = vmax.bf16 %v319_v1, %v169_v6  ;;  %281 = vst [vmem:[%s891_s6 + $0x10] sm:$0xf] %v280_v15  ;;  %v255_v22 = vmax.bf16 %v346_v0, %v226_v10 }
  0x1e   :  { %v347_v17 = vld [vmem:[%s888_s4 + $0x1c] sm:$0xf]  ;;  %v60_v20 = vmax.bf16 %v46_v14, %v32_v13  ;;  %v74_v21 = vld [vmem:[%s888_s4 + $0x28] sm:$0xf]  ;;  %v285_v23 = vld [vmem:[%s891_s6 + $0x18] sm:$0xf]  ;;  %v115_v25 = vmax.bf16 %v101_v9, %v87_v12  ;;  %v170_v28 = vmax.bf16 %v156_v11, %v142_v18 }
  0x1f   :  { %v320_v24 = vld [vmem:[%s885_s0 + $0x24] sm:$0xf]  ;;  %v227_v27 = vmax.bf16 %v333_v7, %v198_v16  ;;  %v157_v30 = vld [vmem:[%s890_s5 + $0x20] sm:$0xf]  ;;  %v33_v33 = vld [vmem:[%s885_s0 + $0x2c] sm:$0xf]  ;;  %v283_v34 = vsel %vm454_vm2, %v255_v22, %v282_v5 }
  0x20   :  { %v102_v26 = vld [vmem:[%s887_s2 + $0x24] sm:$0xf]  ;;  %v88_v31 = vmax.bf16 %v74_v21, %v60_v20  ;;  %v143_v35 = vmax.bf16 %v129_v19, %v115_v25  ;;  %v47_v37 = vld [vmem:[%s886_s1 + $0x2c] sm:$0xf]  ;;  %284 = vst [vmem:[%s891_s6 + $0x14] sm:$0xf] %v283_v34  ;;  %v199_v40 = vmax.bf16 %v320_v24, %v170_v28 }
  0x21   :  { %v334_v29 = vld [vmem:[%s886_s1 + $0x24] sm:$0xf]  ;;  %v75_v38 = vld [vmem:[%s888_s4 + $0x2c] sm:$0xf]  ;;  %v256_v39 = vmax.bf16 %v347_v17, %v227_v27  ;;  %v321_v42 = vld [vmem:[%s885_s0 + $0x28] sm:$0xf]  ;;  %v61_v44 = vmax.bf16 %v47_v37, %v33_v33 }
  0x22   :  { %v130_v36 = vld [vmem:[%s889_s3 + $0x24] sm:$0xf]  ;;  %v116_v43 = vmax.bf16 %v102_v26, %v88_v31  ;;  %v288_v45 = vld [vmem:[%s891_s6 + $0x1c] sm:$0xf]  ;;  %v171_v46 = vmax.bf16 %v157_v30, %v143_v35  ;;  %v335_v47 = vld [vmem:[%s886_s1 + $0x28] sm:$0xf]  ;;  %v228_v51 = vmax.bf16 %v334_v29, %v199_v40 }
  0x23   :  { %v348_v41 = vld [vmem:[%s888_s4 + $0x24] sm:$0xf]  ;;  %v103_v49 = vld [vmem:[%s887_s2 + $0x28] sm:$0xf]  ;;  %v286_v50 = vsel %vm454_vm2, %v256_v39, %v285_v23  ;;  %v89_v53 = vmax.bf16 %v75_v38, %v61_v44  ;;  %v34_v54 = vld [vmem:[%s885_s0 + $0x30] sm:$0xf] }
  0x24   :  { %v158_v48 = vld [vmem:[%s890_s5 + $0x24] sm:$0xf]  ;;  %v144_v52 = vmax.bf16 %v130_v36, %v116_v43  ;;  %v48_v55 = vld [vmem:[%s886_s1 + $0x30] sm:$0xf]  ;;  %287 = vst [vmem:[%s891_s6 + $0x18] sm:$0xf] %v286_v50  ;;  %v200_v57 = vmax.bf16 %v321_v42, %v171_v46  ;;  %v257_v62 = vmax.bf16 %v348_v41, %v228_v51 }
  0x25   :  { %v76_v56 = vld [vmem:[%s888_s4 + $0x30] sm:$0xf]  ;;  %v349_v58 = vld [vmem:[%s888_s4 + $0x28] sm:$0xf]  ;;  %v322_v59 = vld [vmem:[%s885_s0 + $0x2c] sm:$0xf]  ;;  %v62_v61 = vmax.bf16 %v48_v55, %v34_v54  ;;  %v117_v2 = vmax.bf16 %v103_v49, %v89_v53 }
  0x26   :  { %v131_v60 = vld [vmem:[%s889_s3 + $0x28] sm:$0xf]  ;;  %v291_v63 = vld [vmem:[%s891_s6 + $0x20] sm:$0xf]  ;;  %v172_v0 = vmax.bf16 %v158_v48, %v144_v52  ;;  %v336_v1 = vld [vmem:[%s886_s1 + $0x2c] sm:$0xf]  ;;  %v229_v4 = vmax.bf16 %v335_v47, %v200_v57  ;;  %v289_v9 = vsel %vm454_vm2, %v257_v62, %v288_v45 }
  0x27   :  { %v104_v3 = vld [vmem:[%s887_s2 + $0x2c] sm:$0xf]  ;;  %v159_v5 = vld [vmem:[%s890_s5 + $0x28] sm:$0xf]  ;;  %v90_v6 = vmax.bf16 %v76_v56, %v62_v61  ;;  %v35_v7 = vld [vmem:[%s885_s0 + $0x34] sm:$0xf]  ;;  %v145_v12 = vmax.bf16 %v131_v60, %v117_v2 }
  0x28   :  { %v49_v8 = vld [vmem:[%s886_s1 + $0x34] sm:$0xf]  ;;  %v201_v10 = vmax.bf16 %v322_v59, %v172_v0  ;;  %v350_v11 = vld [vmem:[%s888_s4 + $0x2c] sm:$0xf]  ;;  %290 = vst [vmem:[%s891_s6 + $0x1c] sm:$0xf] %v289_v9  ;;  %v258_v16 = vmax.bf16 %v349_v58, %v229_v4 }
  0x29   :  { %v132_v13 = vld [vmem:[%s889_s3 + $0x2c] sm:$0xf]  ;;  %v63_v14 = vmax.bf16 %v49_v8, %v35_v7  ;;  %v77_v15 = vld [vmem:[%s888_s4 + $0x34] sm:$0xf]  ;;  %v294_v17 = vld [vmem:[%s891_s6 + $0x24] sm:$0xf]  ;;  %v118_v19 = vmax.bf16 %v104_v3, %v90_v6  ;;  %v173_v22 = vmax.bf16 %v159_v5, %v145_v12 }
  0x2a   :  { %v323_v18 = vld [vmem:[%s885_s0 + $0x30] sm:$0xf]  ;;  %v230_v21 = vmax.bf16 %v336_v1, %v201_v10  ;;  %v160_v24 = vld [vmem:[%s890_s5 + $0x2c] sm:$0xf]  ;;  %v36_v26 = vld [vmem:[%s885_s0 + $0x38] sm:$0xf]  ;;  %v292_v27 = vsel %vm454_vm2, %v258_v16, %v291_v63 }
  0x2b   :  { %v105_v20 = vld [vmem:[%s887_s2 + $0x30] sm:$0xf]  ;;  %v91_v25 = vmax.bf16 %v77_v15, %v63_v14  ;;  %v146_v28 = vmax.bf16 %v132_v13, %v118_v19  ;;  %v50_v30 = vld [vmem:[%s886_s1 + $0x38] sm:$0xf]  ;;  %293 = vst [vmem:[%s891_s6 + $0x20] sm:$0xf] %v292_v27  ;;  %v202_v34 = vmax.bf16 %v323_v18, %v173_v22 }
  0x2c   :  { %v337_v23 = vld [vmem:[%s886_s1 + $0x30] sm:$0xf]  ;;  %v78_v31 = vld [vmem:[%s888_s4 + $0x38] sm:$0xf]  ;;  %v259_v33 = vmax.bf16 %v350_v11, %v230_v21  ;;  %v324_v35 = vld [vmem:[%s885_s0 + $0x34] sm:$0xf]  ;;  %v64_v37 = vmax.bf16 %v50_v30, %v36_v26 }
  0x2d   :  { %v133_v29 = vld [vmem:[%s889_s3 + $0x30] sm:$0xf]  ;;  %v119_v36 = vmax.bf16 %v105_v20, %v91_v25  ;;  %v174_v39 = vmax.bf16 %v160_v24, %v146_v28  ;;  %v106_v41 = vld [vmem:[%s887_s2 + $0x34] sm:$0xf]  ;;  %v231_v43 = vmax.bf16 %v337_v23, %v202_v34  ;;  %v297_v47 = vld [vmem:[%s891_s6 + $0x28] sm:$0xf] }
  0x2e   :  { %v351_v38 = vld [vmem:[%s888_s4 + $0x30] sm:$0xf]  ;;  %v295_v42 = vsel %vm454_vm2, %v259_v33, %v294_v17  ;;  %v338_v44 = vld [vmem:[%s886_s1 + $0x34] sm:$0xf]  ;;  %v92_v46 = vmax.bf16 %v78_v31, %v64_v37  ;;  %v325_v49 = vld [vmem:[%s885_s0 + $0x38] sm:$0xf] }
  0x2f   :  { %v161_v40 = vld [vmem:[%s890_s5 + $0x30] sm:$0xf]  ;;  %v147_v45 = vmax.bf16 %v133_v29, %v119_v36  ;;  %296 = vst [vmem:[%s891_s6 + $0x24] sm:$0xf] %v295_v42  ;;  %v203_v48 = vmax.bf16 %v324_v35, %v174_v39  ;;  %v134_v50 = vld [vmem:[%s889_s3 + $0x34] sm:$0xf]  ;;  %v260_v51 = vmax.bf16 %v351_v38, %v231_v43 }
  0x30   :  { %v352_v52 = vld [vmem:[%s888_s4 + $0x34] sm:$0xf]  ;;  %v120_v54 = vmax.bf16 %v106_v41, %v92_v46  ;;  %v339_v56 = vld [vmem:[%s886_s1 + $0x38] sm:$0xf]  ;;  %v300_v59 = vld [vmem:[%s891_s6 + $0x2c] sm:$0xf] }
  0x31   :  { %v175_v53 = vmax.bf16 %v161_v40, %v147_v45  ;;  %v232_v55 = vmax.bf16 %v338_v44, %v203_v48  ;;  %v162_v57 = vld [vmem:[%s890_s5 + $0x34] sm:$0xf]  ;;  %v298_v58 = vsel %vm454_vm2, %v260_v51, %v297_v47  ;;  %v353_v63 = vld [vmem:[%s888_s4 + $0x38] sm:$0xf]  ;;  %v326_v0 = vld [vmem:[%s885_s0 + $0x3c] sm:$0xf] }
  0x32   :  { %v148_v61 = vmax.bf16 %v134_v50, %v120_v54  ;;  %299 = vst [vmem:[%s891_s6 + $0x28] sm:$0xf] %v298_v58  ;;  %v303_v4 = vld [vmem:[%s891_s6 + $0x30] sm:$0xf]  ;;  %v340_v5 = vld [vmem:[%s886_s1 + $0x3c] sm:$0xf] }
  0x33   :  { %v204_v60 = vmax.bf16 %v325_v49, %v175_v53  ;;  %v261_v62 = vmax.bf16 %v352_v52, %v232_v55  ;;  %v354_v8 = vld [vmem:[%s888_s4 + $0x3c] sm:$0xf]  ;;  %v306_v11 = vld [vmem:[%s891_s6 + $0x34] sm:$0xf] }
  0x34   :  { %v176_v2 = vmax.bf16 %v162_v57, %v148_v61 }
  0x35   :  { %v233_v1 = vmax.bf16 %v339_v56, %v204_v60  ;;  %v301_v3 = vsel %vm454_vm2, %v261_v62, %v300_v59 }
  0x36   :  { %302 = vst [vmem:[%s891_s6 + $0x2c] sm:$0xf] %v301_v3  ;;  %v205_v7 = vmax.bf16 %v326_v0, %v176_v2 }
  0x37   :  { %v262_v6 = vmax.bf16 %v353_v63, %v233_v1 }
  0x38   :  { %v234_v10 = vmax.bf16 %v340_v5, %v205_v7 }
  0x39   :  { %v304_v9 = vsel %vm454_vm2, %v262_v6, %v303_v4 }
  0x3a   :  { %305 = vst [vmem:[%s891_s6 + $0x30] sm:$0xf] %v304_v9  ;;  %v263_v12 = vmax.bf16 %v354_v8, %v234_v10 }
  0x3c   :  { %v307_v13 = vsel %vm454_vm2, %v263_v12, %v306_v11 }
  0x3d   :  { %308 = vst [vmem:[%s891_s6 + $0x34] sm:$0xf] %v307_v13 }

// kernel: stem_block_forward.15
= control target key start
LH: loop header
LB: loop body
LE: loop exit
PB: predicated region body
PF: predicated region fallthrough
CT: control target
= control target key end

     0   :  { %v1248_v34 = vmov 0.0   ;;  %vm1249_vm0 = vmmov 0   ;;  %vm516_vm1 = vcmask 523264   ;;  %vm868_vm2 = vcmask 781312   ;;  %s1647_s1 = inlined_call_operand.vmem [shape: bf16[576,96], index: 1, kind: input, shape index: {}]   ;;  %s1648_s0 = inlined_call_operand.vmem [shape: bf16[98,576], index: 0, kind: input, shape index: {}]   ;;  %s1649_s2 = inlined_call_operand.vmem [shape: f32[1,96], index: 2, kind: input, shape index: {}]   ;;  %s1650_s3 = inlined_call_operand.vmem [shape: bf16[98,96], index: 3, kind: output, shape index: {}]  }
   0x1   :  { %v1165_v0 = vld [vmem:[%s1647_s1 + $0x78] sm:$0xff]   ;;  %v1169_v4 = vld [vmem:[%s1647_s1 + $0x70] sm:$0xff]   ;;  %v1173_v8 = vld [vmem:[%s1647_s1 + $0x68] sm:$0xff]   ;;  %vm881_vm3 = vcmask 778240  }
   0x2   :  { %v1166_v1 = vld [vmem:[%s1647_s1 + $0xf8] sm:$0xff]   ;;  %992 = vmatprep.subr.bf16.mxu0 %v1165_v0  ;;  %v1170_v5 = vld [vmem:[%s1647_s1 + $0xf0] sm:$0xff]   ;;  %v1174_v9 = vld [vmem:[%s1647_s1 + $0xe8] sm:$0xff]  }
   0x3   :  { %v1167_v2 = vld [vmem:[%s1647_s1 + $0x38] sm:$0xff]   ;;  %1050 = vmatprep.subr.bf16.mxu1 %v1166_v1  ;;  %v1171_v6 = vld [vmem:[%s1647_s1 + $0x30] sm:$0xff]   ;;  %v1175_v10 = vld [vmem:[%s1647_s1 + $0x28] sm:$0xff]  }
   0x4   :  { %v1168_v3 = vld [vmem:[%s1647_s1 + $0xb8] sm:$0xff]   ;;  %993 = vmatpush3.bf16.msra.mxu0 %v1167_v2  ;;  %v1172_v7 = vld [vmem:[%s1647_s1 + $0xb0] sm:$0xff]   ;;  %v1176_v11 = vld [vmem:[%s1647_s1 + $0xa8] sm:$0xff]  }
   0x5   :  { %1051 = vmatpush3.bf16.msra.mxu1 %v1168_v3  ;;  %994 = vmatprep.subr.bf16.mxu0 %v1169_v4  ;;  %v1177_v12 = vld [vmem:[%s1647_s1 + $0x60] sm:$0xff]   ;;  %v1181_v16 = vld [vmem:[%s1647_s1 + $0x58] sm:$0xff]   ;;  %v1185_v20 = vld [vmem:[%s1647_s1 + $0x50] sm:$0xff]  }
   0x6   :  { %1052 = vmatprep.subr.bf16.mxu1 %v1170_v5  ;;  %v1178_v13 = vld [vmem:[%s1647_s1 + $0xe0] sm:$0xff]   ;;  %v1182_v17 = vld [vmem:[%s1647_s1 + $0xd8] sm:$0xff]   ;;  %v1186_v21 = vld [vmem:[%s1647_s1 + $0xd0] sm:$0xff]  }
   0x7   :  { %v1179_v14 = vld [vmem:[%s1647_s1 + $0x20] sm:$0xff]   ;;  %v1183_v18 = vld [vmem:[%s1647_s1 + $0x18] sm:$0xff]   ;;  %v1187_v22 = vld [vmem:[%s1647_s1 + $0x10] sm:$0xff]  }
   0x8   :  { %995 = vmatpush3.bf16.msra.mxu0 %v1171_v6  ;;  %v1180_v15 = vld [vmem:[%s1647_s1 + $0xa0] sm:$0xff]   ;;  %v1184_v19 = vld [vmem:[%s1647_s1 + $0x98] sm:$0xff]   ;;  %v1188_v23 = vld [vmem:[%s1647_s1 + $0x90] sm:$0xff]  }
   0x9   :  { %1053 = vmatpush3.bf16.msra.mxu1 %v1172_v7  ;;  %996 = vmatprep.subr.bf16.mxu0 %v1173_v8  ;;  %v1189_v24 = vld [vmem:[%s1647_s1 + $0x48] sm:$0xff]   ;;  %v1193_v28 = vld [vmem:[%s1647_s1 + $0x40] sm:$0xff]   ;;  %v1203_v37 = vld [vmem:[%s1647_s1 + $0x118] sm:$0xff]  }
   0xa   :  { %1054 = vmatprep.subr.bf16.mxu1 %v1174_v9  ;;  %v1190_v25 = vld [vmem:[%s1647_s1 + $0xc8] sm:$0xff]   ;;  %v1194_v29 = vld [vmem:[%s1647_s1 + $0xc0] sm:$0xff]   ;;  %v1214_v43 = vld [vmem:[%s1647_s1 + $0x110] sm:$0xff]  }
   0xb   :  { %v1191_v26 = vld [vmem:[%s1647_s1 + $0x8] sm:$0xff]   ;;  %v1195_v30 = vld [vmem:[%s1647_s1] sm:$0xff]   ;;  %v1212_v44 = vld [vmem:[%s1648_s0 + $0x5c] ss:$20 sps:$4 sm:$0xff]  }
   0xc   :  { %997 = vmatpush3.bf16.msra.mxu0 %v1175_v10  ;;  %v1192_v27 = vld [vmem:[%s1647_s1 + $0x88] sm:$0xff]   ;;  %v1196_v31 = vld [vmem:[%s1647_s1 + $0x80] sm:$0xff]   ;;  %v1217_v48 = vld [vmem:[%s1648_s0 + $0x7c] ss:$20 sps:$4 sm:$0xff]  }
   0xd   :  { %1055 = vmatpush3.bf16.msra.mxu1 %v1176_v11  ;;  %998 = vmatprep.subr.bf16.mxu0 %v1177_v12  ;;  %v1197_v32 = vld [vmem:[%s1648_s0] ss:$20 sps:$4 sm:$0xff]   ;;  %v1199_v33 = vld [vmem:[%s1648_s0 + $0x4] ss:$20 sps:$4 sm:$0xff]   ;;  %v1200_v35 = vld [vmem:[%s1648_s0 + $0x8] ss:$20 sps:$4 sm:$0xff]  }
   0xe   :  { %1056 = vmatprep.subr.bf16.mxu1 %v1178_v13  ;;  %v1202_v36 = vld [vmem:[%s1648_s0 + $0xc] ss:$20 sps:$4 sm:$0xff]   ;;  %570 = vmatprep.mubr.bf16.mxu0 %v1199_v33  ;;  %v1206_v39 = vld [vmem:[%s1648_s0 + $0x34] ss:$20 sps:$4 sm:$0xff]   ;;  %v1209_v41 = vld [vmem:[%s1648_s0 + $0x30] ss:$20 sps:$4 sm:$0xff]  }
   0xf   :  { %658 = vmatprep.mubr.bf16.mxu1 %v1202_v36  ;;  %v1204_v38 = vld [vmem:[%s1648_s0 + $0x2c] ss:$20 sps:$4 sm:$0xff]   ;;  %v1208_v40 = vld [vmem:[%s1648_s0 + $0x28] ss:$20 sps:$4 sm:$0xff]   ;;  %v1215_v46 = vld [vmem:[%s1648_s0 + $0x50] ss:$20 sps:$4 sm:$0xff]  }
  0x10   :  { %999 = vmatpush3.bf16.msra.mxu0 %v1179_v14  ;;  %v1210_v42 = vld [vmem:[%s1648_s0 + $0x54] ss:$20 sps:$4 sm:$0xff]   ;;  %v1216_v47 = vld [vmem:[%s1648_s0 + $0x58] ss:$20 sps:$4 sm:$0xff]   ;;  %v1236_v50 = vld [vmem:[%s1647_s1 + $0x100] sm:$0xff]  }
  0x11   :  { %1057 = vmatpush3.bf16.msra.mxu1 %v1180_v15  ;;  %1000 = vmatprep.subr.bf16.mxu0 %v1181_v16  ;;  %v1223_v45 = vld [vmem:[%s1647_s1 + $0x108] sm:$0xff]   ;;  %v1219_v49 = vld [vmem:[%s1648_s0 + $0x84] ss:$20 sps:$4 sm:$0xff]   ;;  %v1222_v52 = vld [vmem:[%s1648_s0 + $0x80] ss:$20 sps:$4 sm:$0xff]  }
  0x12   :  { %1058 = vmatprep.subr.bf16.mxu1 %v1182_v17  ;;  %v1221_v51 = vld [vmem:[%s1648_s0 + $0x78] ss:$20 sps:$4 sm:$0xff]   ;;  %v1228_v55 = vld [vmem:[%s1648_s0 + $0xa0] ss:$20 sps:$4 sm:$0xff]   ;;  %v1229_v56 = vld [vmem:[%s1648_s0 + $0xa8] ss:$20 sps:$4 sm:$0xff]  }
  0x13   :  { %v1224_v53 = vld [vmem:[%s1648_s0 + $0xa4] ss:$20 sps:$4 sm:$0xff]   ;;  %v1226_v54 = vld [vmem:[%s1648_s0 + $0xac] ss:$20 sps:$4 sm:$0xff]   ;;  %v1232_v58 = vld [vmem:[%s1648_s0 + $0xd4] ss:$20 sps:$4 sm:$0xff]  }
  0x14   :  { %1001 = vmatpush3.bf16.msra.mxu0 %v1183_v18  ;;  %v1230_v57 = vld [vmem:[%s1648_s0 + $0xcc] ss:$20 sps:$4 sm:$0xff]   ;;  %v51_v59 = vld [vmem:[%s1648_s0 + $0xf0] sm:$0x11]  ;;  %v52_v60 = vld [vmem:[%s1648_s0 + $0xf8] sm:$0x11] }
  0x15   :  { %1059 = vmatpush3.bf16.msra.mxu1 %v1184_v19  ;;  %1002 = vmatprep.subr.bf16.mxu0 %v1185_v20  ;;  %v1234_v61 = vld [vmem:[%s1648_s0 + $0xc8] ss:$20 sps:$4 sm:$0xff]   ;;  %v1235_v62 = vld [vmem:[%s1648_s0 + $0xd0] ss:$20 sps:$4 sm:$0xff]   ;;  %v919_v63 = vcombine.high %v51_v59, %v51_v59  ;;  %v921_v0 = vcombine.high %v52_v60, %v52_v60  ;;  %v918_v1 = vcombine.low %v51_v59, %v51_v59  ;;  %v1243_v5 = vld [vmem:[%s1648_s0 + $0x38] ss:$20 sps:$4 sm:$0xff]  }
  0x16   :  { %1060 = vmatprep.subr.bf16.mxu1 %v1186_v21  ;;  %v920_v2 = vcombine.low %v52_v60, %v52_v60  ;;  %v1241_v3 = vld [vmem:[%s1648_s0 + $0x10] ss:$20 sps:$4 sm:$0xff]   ;;  %v1244_v6 = vld [vmem:[%s1648_s0 + $0xd8] ss:$20 sps:$4 sm:$0xff]   ;;  %v1245_v7 = vld [vmem:[%s1648_s0 + $0x60] ss:$20 sps:$4 sm:$0xff]  }
  0x17   :  { %v1242_v4 = vld [vmem:[%s1648_s0 + $0xb0] ss:$20 sps:$4 sm:$0xff]   ;;  %v1246_v8 = vld [vmem:[%s1648_s0 + $0x100] ss:$0 sps:$4 sm:$0x11]  }
  0x18   :  { %1003 = vmatpush3.bf16.msra.mxu0 %v1187_v22  ;;  %v1247_v9 = vld [vmem:[%s1648_s0 + $0x88] ss:$20 sps:$4 sm:$0xff]   ;;  %v1553_v59 = vld [vmem:[%s1649_s2] ss:$0 sm:$0xff] }
  0x19   :  { %1061 = vmatpush3.bf16.msra.mxu1 %v1188_v23  ;;  %1004 = vmatprep.subr.bf16.mxu0 %v1189_v24 }
  0x1a   :  { %1062 = vmatprep.subr.bf16.mxu1 %v1190_v25 }
  0x1c   :  { %1005 = vmatpush3.bf16.msra.mxu0 %v1191_v26 }
  0x1d   :  { %1063 = vmatpush3.bf16.msra.mxu1 %v1192_v27  ;;  %1006 = vmatprep.subr.bf16.mxu0 %v1193_v28 }
  0x1e   :  { %1064 = vmatprep.subr.bf16.mxu1 %v1194_v29 }
  0x20   :  { %1007 = vmatpush3.bf16.msra.mxu0 %v1195_v30 }
  0x21   :  { %1065 = vmatpush3.bf16.msra.mxu1 %v1196_v31  ;;  %1119 = vmatprep.subr.bf16.mxu0 %v1248_v34 }
  0x22   :  { %1155 = vmatprep.subr.bf16.mxu1 %v1248_v34 }
  0x23   :  { %571 = vmatmul.mubr.bf16.vlgmr.msra.gmra.mxu0 %v1197_v32 }
  0x24   :  { %659 = vmatmul.mubr.bf16.vlgmr.msra.gmra.mxu1 %v1200_v35  ;;  %1120 = vmatpush3.bf16.msra.mxu0 %v1203_v37 }
  0x25   :  { %578 = vmatprep.mubr.bf16.mxu0 %v1204_v38  ;;  %1159 = vmatpush3.bf16.msra.mxu1 %v1203_v37 }
  0x26   :  { %666 = vmatprep.mubr.bf16.mxu1 %v1206_v39  ;;  %1121 = vmatprep.subr.bf16.mxu0 %v1248_v34 }
  0x27   :  { %1156 = vmatprep.subr.bf16.mxu1 %v1248_v34 }
  0x28   :  { %1122 = vmatpush3.bf16.msra.mxu0 %v1214_v43 }
  0x29   :  { %1160 = vmatpush3.bf16.msra.mxu1 %v1214_v43  ;;  %1123 = vmatprep.subr.bf16.mxu0 %v1248_v34 }
  0x2a   :  { %1157 = vmatprep.subr.bf16.mxu1 %v1248_v34 }
  0x2b   :  { %579 = vmatmul.mubr.bf16.gmra.mxu0 %v1208_v40 }
  0x2c   :  { %667 = vmatmul.mubr.bf16.gmra.mxu1 %v1209_v41  ;;  %586 = vmatprep.mubr.bf16.mxu0 %v1210_v42 }
  0x2d   :  { %674 = vmatprep.mubr.bf16.mxu1 %v1212_v44  ;;  %1124 = vmatpush3.bf16.msra.mxu0 %v1223_v45 }
  0x2e   :  { %1161 = vmatpush3.bf16.msra.mxu1 %v1223_v45  ;;  %1125 = vmatprep.subr.bf16.mxu0 %v1248_v34 }
  0x2f   :  { %1158 = vmatprep.subr.bf16.mxu1 %v1248_v34 }
  0x31   :  { %1126 = vmatpush3.bf16.msra.mxu0 %v1236_v50 }
  0x32   :  { %1162 = vmatpush3.bf16.msra.mxu1 %v1236_v50 }
  0x33   :  { %587 = vmatmul.mubr.bf16.gmra.mxu0 %v1215_v46 }
  0x34   :  { %675 = vmatmul.mubr.bf16.gmra.mxu1 %v1216_v47  ;;  %594 = vmatprep.mubr.bf16.mxu0 %v1217_v48 }
  0x35   :  { %682 = vmatprep.mubr.bf16.mxu1 %v1219_v49 }
  0x3b   :  { %595 = vmatmul.mubr.bf16.gmra.mxu0 %v1221_v51 }
  0x3c   :  { %683 = vmatmul.mubr.bf16.gmra.mxu1 %v1222_v52  ;;  %602 = vmatprep.mubr.bf16.mxu0 %v1224_v53 }
  0x3d   :  { %690 = vmatprep.mubr.bf16.mxu1 %v1226_v54 }
  0x43   :  { %603 = vmatmul.mubr.bf16.gmra.mxu0 %v1228_v55 }
  0x44   :  { %691 = vmatmul.mubr.bf16.gmra.mxu1 %v1229_v56  ;;  %610 = vmatprep.mubr.bf16.mxu0 %v1230_v57 }
  0x45   :  { %698 = vmatprep.mubr.bf16.mxu1 %v1232_v58 }
  0x4b   :  { %611 = vmatmul.mubr.bf16.gmra.mxu0 %v1234_v61 }
  0x4c   :  { %699 = vmatmul.mubr.bf16.gmra.mxu1 %v1235_v62  ;;  %618 = vmatprep.mubr.bf16.mxu0 %v919_v63 }
  0x4d   :  { %706 = vmatprep.mubr.bf16.mxu1 %v921_v0 }
  0x53   :  { %619 = vmatmul.mubr.bf16.gmra.mxu0 %v918_v1 }
  0x54   :  { %707 = vmatmul.mubr.bf16.gmra.mxu1 %v920_v2  ;;  %1127 = vmatprep.mubr.msk.bf16.mxu0 %vm1249_vm0, %v1248_v34 }
  0x55   :  { %1143 = vmatprep.mubr.msk.bf16.mxu1 %vm1249_vm0, %v1248_v34 }
  0x5b   :  { %1128 = vmatmul.mubr.msk.bf16.vlgmr.msra.gmra.mxu0 %vm516_vm1, %v1241_v3 }
  0x5c   :  { %1144 = vmatmul.mubr.msk.bf16.vlgmr.msra.gmra.mxu1 %vm516_vm1, %v1242_v4  ;;  %1131 = vmatprep.mubr.msk.bf16.mxu0 %vm1249_vm0, %v1248_v34 }
  0x5d   :  { %1147 = vmatprep.mubr.msk.bf16.mxu1 %vm1249_vm0, %v1248_v34 }
  0x63   :  { %1132 = vmatmul.mubr.msk.bf16.gmra.mxu0 %vm516_vm1, %v1243_v5 }
  0x64   :  { %1148 = vmatmul.mubr.msk.bf16.gmra.mxu1 %vm516_vm1, %v1244_v6  ;;  %1135 = vmatprep.mubr.msk.bf16.mxu0 %vm1249_vm0, %v1248_v34 }
  0x65   :  { %1151 = vmatprep.mubr.msk.bf16.mxu1 %vm1249_vm0, %v1248_v34 }
  0x6b   :  { %1136 = vmatmul.mubr.msk.bf16.gmra.mxu0 %vm516_vm1, %v1245_v7 }
  0x6c   :  { %1152 = vmatmul.mubr.msk.bf16.gmra.mxu1 %vm516_vm1, %v1246_v8  ;;  %1139 = vmatprep.mubr.msk.bf16.mxu0 %vm1249_vm0, %v1248_v34 }
  0x73   :  { %1140 = vmatmul.mubr.msk.bf16.gmra.mxu0 %vm516_vm1, %v1247_v9 }
  0xe3   :  { %v1008_v10 = vpop.f32.mrf.mxu0 }
  0xe4   :  { %v1066_v11 = vpop.f32.mrf.mxu1 }
  0xe5   :  { %v1009_v12 = vpop.f32.mrf.mxu0 }
  0xe6   :  { %v1067_v13 = vpop.f32.mrf.mxu1  ;;  %v1010_v57 = vadd.f32 %v1009_v12, %v1008_v10 }
  0xe7   :  { %v1011_v14 = vpop.f32.mrf.mxu0  ;;  %v1068_v2 = vadd.f32 %v1067_v13, %v1066_v11 }
  0xe8   :  { %v1069_v15 = vpop.f32.mrf.mxu1  ;;  %v573_v1 = vadd.f32 %v1010_v57, %v1553_v59 }
  0xe9   :  { %v1012_v16 = vpop.f32.mrf.mxu0 }
  0xea   :  { %v1070_v17 = vpop.f32.mrf.mxu1  ;;  %v1013_v63 = vadd.f32 %v1012_v16, %v1011_v14  ;;  %v661_v14 = vadd.f32 %v1068_v2, %v573_v1 }
  0xeb   :  { %v1014_v18 = vpop.f32.mrf.mxu0  ;;  %v1071_v10 = vadd.f32 %v1070_v17, %v1069_v15 }
  0xec   :  { %v1506_v19 = vpop.f32.mrf.mxu1  ;;  %v576_v9 = vadd.f32 %v1013_v63, %v1553_v59 }
  0xed   :  { %v1015_v20 = vpop.f32.mrf.mxu0 }
  0xee   :  { %v1508_v21 = vpop.f32.mrf.mxu1  ;;  %v1016_v12 = vadd.f32 %v1015_v20, %v1014_v18  ;;  %v664_v15 = vadd.f32 %v1071_v10, %v576_v9 }
  0xef   :  { %v1510_v22 = vpop.f32.mrf.mxu0 }
  0xf0   :  { %v1512_v23 = vpop.f32.mrf.mxu1 }
  0xf1   :  { %v1514_v24 = vpop.f32.mrf.mxu0 }
  0xf2   :  { %v1516_v25 = vpop.f32.mrf.mxu1  ;;  %v1019_v17 = vadd.f32 %v1514_v24, %v1510_v22 }
  0xf3   :  { %v1518_v26 = vpop.f32.mrf.mxu0 }
  0xf4   :  { %v1520_v27 = vpop.f32.mrf.mxu1  ;;  %v584_v24 = vadd.f32 %v1019_v17, %v1553_v59 }
  0xf5   :  { %v1522_v28 = vpop.f32.mrf.mxu0 }
  0xf6   :  { %v1524_v29 = vpop.f32.mrf.mxu1 }
  0xf7   :  { %v1526_v30 = vpop.f32.mrf.mxu0 }
  0xf8   :  { %v1528_v31 = vpop.f32.mrf.mxu1 }
  0xf9   :  { %v1530_v32 = vpop.f32.mrf.mxu0 }
  0xfa   :  { %v1532_v33 = vpop.f32.mrf.mxu1 }
  0xfb   :  { %v1534_v34 = vpop.f32.mrf.mxu0 }
  0xfc   :  { %v1536_v35 = vpop.f32.mrf.mxu1 }
  0xfd   :  { %v1538_v36 = vpop.f32.mrf.mxu0 }
  0xfe   :  { %v1540_v37 = vpop.f32.mrf.mxu1 }
  0xff   :  { %v1542_v38 = vpop.f32.mrf.mxu0 }
 0x100   :  { %v1544_v39 = vpop.f32.mrf.mxu1 }
 0x101   :  { %1651 = vst [vmem:[#allocation2_spill] sm:$0xff] %v1544_v39  ;;  %v1546_v40 = vpop.f32.mrf.mxu0 }
 0x102   :  { %1652 = vst [vmem:[#allocation3_spill] sm:$0xff] %v1546_v40  ;;  %v1548_v41 = vpop.f32.mrf.mxu1 }
 0x103   :  { %1653 = vst [vmem:[#allocation4_spill] sm:$0xff] %v1548_v41  ;;  %v1032_v42 = vpop.f32.mrf.mxu0 }
 0x104   :  { %v1090_v43 = vpop.f32.mrf.mxu1 }
 0x105   :  { %v1033_v44 = vpop.f32.mrf.mxu0 }
 0x106   :  { %v1091_v45 = vpop.f32.mrf.mxu1  ;;  %v1034_v60 = vadd.f32 %v1033_v44, %v1032_v42 }
 0x107   :  { %v1035_v46 = vpop.f32.mrf.mxu0  ;;  %v1092_v5 = vadd.f32 %v1091_v45, %v1090_v43  ;;  %v581_v43 = vadd.f32 %v1016_v12, %v1553_v59  ;;  %v1074_v45 = vadd.f32 %v1508_v21, %v1506_v19  ;;  %v1077_v19 = vadd.f32 %v1516_v25, %v1512_v23 }
 0x108   :  { %v1093_v47 = vpop.f32.mrf.mxu1  ;;  %v605_v4 = vadd.f32 %v1034_v60, %v1553_v59 }
 0x109   :  { %v1036_v48 = vpop.f32.mrf.mxu0  ;;  %v669_v22 = vadd.f32 %v1074_v45, %v581_v43 }
 0x10a   :  { %v1094_v49 = vpop.f32.mrf.mxu1  ;;  %v1037_v6 = vadd.f32 %v1036_v48, %v1035_v46  ;;  %v693_v13 = vadd.f32 %v1092_v5, %v605_v4 }
 0x10b   :  { %v1038_v50 = vpop.f32.mrf.mxu0  ;;  %v1095_v57 = vadd.f32 %v1094_v49, %v1093_v47 }
 0x10c   :  { %v1096_v51 = vpop.f32.mrf.mxu1  ;;  %v608_v16 = vadd.f32 %v1037_v6, %v1553_v59 }
 0x10d   :  { %v1039_v52 = vpop.f32.mrf.mxu0 }
 0x10e   :  { %v1097_v53 = vpop.f32.mrf.mxu1  ;;  %v1040_v44 = vadd.f32 %v1039_v52, %v1038_v50  ;;  %v696_v60 = vadd.f32 %v1095_v57, %v608_v16 }
 0x10f   :  { %v1041_v54 = vpop.f32.mrf.mxu0  ;;  %v1098_v20 = vadd.f32 %v1097_v53, %v1096_v51 }
 0x110   :  { %v1099_v55 = vpop.f32.mrf.mxu1  ;;  %v613_v18 = vadd.f32 %v1040_v44, %v1553_v59 }
 0x111   :  { %v1042_v56 = vpop.f32.mrf.mxu0 }
 0x112   :  { %v1100_v58 = vpop.f32.mrf.mxu1  ;;  %v1043_v49 = vadd.f32 %v1042_v56, %v1041_v54  ;;  %v701_v54 = vadd.f32 %v1098_v20, %v613_v18 }
 0x113   :  { %v1044_v61 = vpop.f32.mrf.mxu0  ;;  %v1101_v23 = vadd.f32 %v1100_v58, %v1099_v55  ;;  %v1080_v55 = vadd.f32 %v1524_v29, %v1520_v27 }
 0x114   :  { %v1555_v62 = vpop.f32.mrf.mxu1  ;;  %v616_v56 = vadd.f32 %v1043_v49, %v1553_v59 }
 0x115   :  { %v1045_v0 = vpop.f32.mrf.mxu0 }
 0x116   :  { %v1558_v3 = vpop.f32.mrf.mxu1  ;;  %v1046_v25 = vadd.f32 %v1045_v0, %v1044_v61  ;;  %v672_v0 = vadd.f32 %v1077_v19, %v584_v24  ;;  %v704_v29 = vadd.f32 %v1101_v23, %v616_v56  ;;  %v1655_v24 = vld [vmem:[#allocation2_spill] sm:$0xff] }
 0x117   :  { %v1047_v7 = vpop.f32.mrf.mxu0 }
 0x118   :  { %v1105_v8 = vpop.f32.mrf.mxu1  ;;  %v621_v44 = vadd.f32 %v1046_v25, %v1553_v59 }
 0x119   :  { %v1048_v42 = vpop.f32.mrf.mxu0  ;;  %v1025_v8 = vadd.f32 %v1530_v32, %v1526_v30  ;;  %v1104_v30 = vadd.f32 %v1558_v3, %v1555_v62  ;;  %v1028_v62 = vadd.f32 %v1538_v36, %v1534_v34 }
 0x11a   :  { %v1106_v41 = vpop.f32.mrf.mxu1 }
 0x11b   :  { %v748_v11 = vpop.f32.mrf.mxu0  ;;  %v709_v17 = vadd.f32 %v1104_v30, %v621_v44 }
 0x11c   :  { %v749_v39 = vadd.f32 %v748_v11, %v661_v14  ;;  %v780_v40 = vpop.f32.mrf.mxu1  ;;  %v592_v11 = vadd.f32 %v1025_v8, %v1553_v59 }
 0x11d   :  { %v781_v46 = vadd.f32 %v780_v40, %v693_v13  ;;  %v1129_v48 = vpop.f32.mrf.mxu0  ;;  %v1083_v13 = vadd.f32 %v1532_v33, %v1528_v31 }
 0x11e   :  { %v802_v41 = vmax.f32 %v749_v39, 0.0  ;;  %v1145_v47 = vpop.f32.mrf.mxu1  ;;  %v1022_v39 = vadd.f32 %v1522_v28, %v1518_v26 }
 0x11f   :  { %v810_v50 = vmax.f32 %v781_v46, 0.0  ;;  %v751_v52 = vpop.f32.mrf.mxu0  ;;  %v680_v49 = vadd.f32 %v1083_v13, %v592_v11 }
 0x120   :  { %v979_v63 = vpack.c.bf16 %v802_v41, %v802_v41  ;;  %v752_v1 = vadd.f32 %v751_v52, %v664_v15  ;;  %v783_v2 = vpop.f32.mrf.mxu1  ;;  %v589_v42 = vadd.f32 %v1022_v39, %v1553_v59  ;;  %v1086_v52 = vadd.f32 %v1540_v37, %v1536_v35  ;;  %v1656_v39 = vld [vmem:[#allocation4_spill] sm:$0xff] }
 0x121   :  { %v987_v21 = vpack.c.bf16 %v810_v50, %v810_v50  ;;  %v784_v40 = vadd.f32 %v783_v2, %v696_v60  ;;  %v1130_v4 = vpop.f32.mrf.mxu0  ;;  %v597_v50 = vadd.f32 %v1028_v62, %v1553_v59  ;;  %v1654_v60 = vld [vmem:[#allocation3_spill] sm:$0xff] }
 0x122   :  { %869 = vst.msk [vmem:[%s1650_s3] sm:$0xf] %vm868_vm2, %v979_v63  ;;  %v803_v51 = vmax.f32 %v752_v1, 0.0  ;;  %v1146_v53 = vpop.f32.mrf.mxu1  ;;  %v677_v15 = vadd.f32 %v1080_v55, %v589_v42  ;;  %v1031_v63 = vadd.f32 %v1654_v60, %v1542_v38 }
 0x123   :  { %877 = vst.msk [vmem:[%s1650_s3 + $0x20] sm:$0xf] %vm868_vm2, %v987_v21  ;;  %v811_v5 = vmax.f32 %v784_v40, 0.0  ;;  %v756_v6 = vpop.f32.mrf.mxu0 }
 0x124   :  { %v980_v26 = vpack.c.bf16 %v803_v51, %v803_v51  ;;  %v757_v28 = vadd.f32 %v756_v6, %v669_v22  ;;  %v788_v7 = vpop.f32.mrf.mxu1  ;;  %v600_v22 = vadd.f32 %v1031_v63, %v1553_v59  ;;  %v1089_v51 = vadd.f32 %v1656_v39, %v1655_v24 }
 0x125   :  { %v988_v9 = vpack.c.bf16 %v811_v5, %v811_v5  ;;  %v789_v10 = vadd.f32 %v788_v7, %v701_v54  ;;  %v1133_v12 = vpop.f32.mrf.mxu0  ;;  %v685_v54 = vadd.f32 %v1086_v52, %v597_v50 }
 0x126   :  { %870 = vst.msk [vmem:[%s1650_s3 + $0x4] sm:$0xf] %vm868_vm2, %v980_v26  ;;  %v804_v58 = vmax.f32 %v757_v28, 0.0  ;;  %v1149_v61 = vpop.f32.mrf.mxu1  ;;  %v688_v26 = vadd.f32 %v1089_v51, %v600_v22 }
 0x127   :  { %878 = vst.msk [vmem:[%s1650_s3 + $0x24] sm:$0xf] %vm868_vm2, %v988_v9  ;;  %v812_v32 = vmax.f32 %v789_v10, 0.0  ;;  %v759_v27 = vpop.f32.mrf.mxu0 }
 0x128   :  { %v981_v14 = vpack.c.bf16 %v804_v58, %v804_v58  ;;  %v760_v16 = vadd.f32 %v759_v27, %v672_v0  ;;  %v791_v57 = vpop.f32.mrf.mxu1 }
 0x129   :  { %v989_v43 = vpack.c.bf16 %v812_v32, %v812_v32  ;;  %v792_v45 = vadd.f32 %v791_v57, %v704_v29  ;;  %v1134_v46 = vpop.f32.mrf.mxu0 }
 0x12a   :  { %871 = vst.msk [vmem:[%s1650_s3 + $0x8] sm:$0xf] %vm868_vm2, %v981_v14  ;;  %v805_v3 = vmax.f32 %v760_v16, 0.0  ;;  %v1150_v48 = vpop.f32.mrf.mxu1 }
 0x12b   :  { %879 = vst.msk [vmem:[%s1650_s3 + $0x28] sm:$0xf] %vm868_vm2, %v989_v43  ;;  %v813_v31 = vmax.f32 %v792_v45, 0.0  ;;  %v764_v33 = vpop.f32.mrf.mxu0 }
 0x12c   :  { %v982_v18 = vpack.c.bf16 %v805_v3, %v805_v3  ;;  %v765_v20 = vadd.f32 %v764_v33, %v677_v15  ;;  %v796_v41 = vpop.f32.mrf.mxu1 }
 0x12d   :  { %v990_v34 = vpack.c.bf16 %v813_v31, %v813_v31  ;;  %v797_v36 = vadd.f32 %v796_v41, %v709_v17  ;;  %v1137_v47 = vpop.f32.mrf.mxu0 }
 0x12e   :  { %872 = vst.msk [vmem:[%s1650_s3 + $0xc] sm:$0xf] %vm868_vm2, %v982_v18  ;;  %v806_v1 = vmax.f32 %v765_v20, 0.0  ;;  %v1153_v2 = vpop.f32.mrf.mxu1 }
 0x12f   :  { %880 = vst.msk [vmem:[%s1650_s3 + $0x2c] sm:$0xf] %vm868_vm2, %v990_v34  ;;  %v814_v19 = vmax.f32 %v797_v36, 0.0  ;;  %v767_v21 = vpop.f32.mrf.mxu0 }
 0x130   :  { %v983_v40 = vpack.c.bf16 %v806_v1, %v806_v1  ;;  %v768_v35 = vadd.f32 %v767_v21, %v680_v49  ;;  %v799_v37 = vpop.f32.mrf.mxu1 }
 0x131   :  { %v991_v4 = vpack.c.bf16 %v814_v19, %v814_v19  ;;  %v1138_v38 = vpop.f32.mrf.mxu0 }
 0x132   :  { %873 = vst.msk [vmem:[%s1650_s3 + $0x10] sm:$0xf] %vm868_vm2, %v983_v40  ;;  %v807_v53 = vmax.f32 %v768_v35, 0.0  ;;  %v1154_v56 = vpop.f32.mrf.mxu1 }
 0x133   :  { %882 = vst.msk [vmem:[%s1650_s3 + $0x30] sm:$0x1] %vm881_vm3, %v991_v4  ;;  %v772_v23 = vpop.f32.mrf.mxu0 }
 0x134   :  { %v984_v25 = vpack.c.bf16 %v807_v53, %v807_v53  ;;  %v773_v5 = vadd.f32 %v772_v23, %v685_v54 }
 0x135   :  { %v1141_v6 = vpop.f32.mrf.mxu0 }
 0x136   :  { %874 = vst.msk [vmem:[%s1650_s3 + $0x14] sm:$0xf] %vm868_vm2, %v984_v25  ;;  %v808_v59 = vmax.f32 %v773_v5, 0.0 }
 0x137   :  { %v775_v28 = vpop.f32.mrf.mxu0 }
 0x138   :  { %v985_v7 = vpack.c.bf16 %v808_v59, %v808_v59  ;;  %v776_v8 = vadd.f32 %v775_v28, %v688_v26 }
 0x139   :  { %v1142_v9 = vpop.f32.mrf.mxu0 }
 0x13a   :  { %875 = vst.msk [vmem:[%s1650_s3 + $0x18] sm:$0xf] %vm868_vm2, %v985_v7  ;;  %v809_v10 = vmax.f32 %v776_v8, 0.0 }
 0x13c   :  { %v986_v12 = vpack.c.bf16 %v809_v10, %v809_v10 }
 0x13e   :  { %876 = vst.msk [vmem:[%s1650_s3 + $0x1c] sm:$0xf] %vm868_vm2, %v986_v12 }

// kernel: stem_block_forward.16
= control target key start
LH: loop header
LB: loop body
LE: loop exit
PB: predicated region body
PF: predicated region fallthrough
CT: control target
= control target key end

     0   :  { %v512_v0 = vmov 0   ;;  %vm175_vm0 = vcmask 261120   ;;  %s648_s1 = inlined_call_operand.vmem [shape: bf16[160,128], index: 1, kind: input, shape index: {}]   ;;  %s649_s0 = inlined_call_operand.vmem [shape: bf16[98,160], index: 0, kind: input, shape index: {}]   ;;  %s650_s2 = inlined_call_operand.vmem [shape: f32[1,128], index: 2, kind: input, shape index: {}]   ;;  %s651_s3 = inlined_call_operand.vmem [shape: bf16[98,128], index: 3, kind: output, shape index: {}]  }
   0x1   :  { %197 = vmatprep.subr.bf16.mxu0 %v512_v0  ;;  %v482_v1 = vld [vmem:[%s648_s1 + $0x38] sm:$0xff]   ;;  %461 = vmatprep.subr.bf16.mxu1 %v512_v0  ;;  %v483_v2 = vld [vmem:[%s648_s1 + $0x30] sm:$0xff]   ;;  %v484_v3 = vld [vmem:[%s648_s1 + $0x28] sm:$0xff]  }
   0x2   :  { %198 = vmatpush1.bf16.msra.mxu0 %v482_v1  ;;  %471 = vmatpush1.bf16.msra.mxu1 %v482_v1  ;;  %v485_v4 = vld [vmem:[%s648_s1 + $0x20] sm:$0xff]   ;;  %v486_v7 = vld [vmem:[%s648_s1 + $0x18] sm:$0xff]   ;;  %v487_v8 = vld [vmem:[%s648_s1 + $0x10] sm:$0xff]  }
   0x3   :  { %199 = vmatprep.subr.bf16.mxu0 %v512_v0  ;;  %462 = vmatprep.subr.bf16.mxu1 %v512_v0  ;;  %v494_v5 = vld [vmem:[%s649_s0 + $0x4] ss:$8 sps:$4 sm:$0xff]   ;;  %v492_v13 = vld [vmem:[%s649_s0] ss:$8 sps:$4 sm:$0xff]   ;;  %v498_v15 = vld [vmem:[%s649_s0 + $0x14] ss:$8 sps:$4 sm:$0xff]  }
   0x4   :  { %v497_v6 = vld [vmem:[%s649_s0 + $0x44] ss:$8 sps:$4 sm:$0xff]   ;;  %393 = vmatprep.mubr.msk.bf16.mxu0 %vm175_vm0, %v494_v5  ;;  %v495_v14 = vld [vmem:[%s649_s0 + $0x40] ss:$8 sps:$4 sm:$0xff]   ;;  %v501_v16 = vld [vmem:[%s649_s0 + $0x54] ss:$8 sps:$4 sm:$0xff]  }
   0x5   :  { %397 = vmatprep.mubr.msk.bf16.mxu1 %vm175_vm0, %v497_v6  ;;  %v488_v9 = vld [vmem:[%s648_s1 + $0x8] sm:$0xff]   ;;  %v489_v10 = vld [vmem:[%s648_s1] sm:$0xff]   ;;  %v500_v18 = vld [vmem:[%s649_s0 + $0x10] ss:$8 sps:$4 sm:$0xff]  }
   0x6   :  { %200 = vmatpush1.bf16.msra.mxu0 %v483_v2  ;;  %472 = vmatpush1.bf16.msra.mxu1 %v483_v2  ;;  %v490_v11 = vld [vmem:[%s648_s1 + $0x48] sm:$0xff]   ;;  %v491_v12 = vld [vmem:[%s648_s1 + $0x40] sm:$0xff]   ;;  %v503_v19 = vld [vmem:[%s649_s0 + $0x50] ss:$8 sps:$4 sm:$0xff]  }
   0x7   :  { %201 = vmatprep.subr.bf16.mxu0 %v512_v0  ;;  %463 = vmatprep.subr.bf16.mxu1 %v512_v0  ;;  %v27_v17 = vld [vmem:[%s649_s0 + $0x60] sm:$0x11]  ;;  %v509_v24 = vld [vmem:[%s649_s0 + $0x34] ss:$8 sps:$4 sm:$0xff]   ;;  %v511_v25 = vld [vmem:[%s649_s0 + $0x30] ss:$8 sps:$4 sm:$0xff]  }
   0x8   :  { %v504_v20 = vld [vmem:[%s649_s0 + $0x24] ss:$8 sps:$4 sm:$0xff]   ;;  %v382_v21 = vcombine.high %v27_v17, %v27_v17  ;;  %v506_v22 = vld [vmem:[%s649_s0 + $0x20] ss:$8 sps:$4 sm:$0xff]   ;;  %v381_v23 = vcombine.low %v27_v17, %v27_v17 }
   0x9   :  { %v612_v26 = vld [vmem:[%s650_s2] ss:$0 sm:$0xff] }
   0xa   :  { %202 = vmatpush1.bf16.msra.mxu0 %v484_v3  ;;  %473 = vmatpush1.bf16.msra.mxu1 %v484_v3 }
   0xb   :  { %203 = vmatprep.subr.bf16.mxu0 %v512_v0  ;;  %464 = vmatprep.subr.bf16.mxu1 %v512_v0 }
   0xe   :  { %204 = vmatpush1.bf16.msra.mxu0 %v485_v4  ;;  %474 = vmatpush1.bf16.msra.mxu1 %v485_v4 }
   0xf   :  { %205 = vmatprep.subr.bf16.mxu0 %v512_v0  ;;  %465 = vmatprep.subr.bf16.mxu1 %v512_v0 }
  0x12   :  { %206 = vmatpush1.bf16.msra.mxu0 %v486_v7  ;;  %475 = vmatpush1.bf16.msra.mxu1 %v486_v7 }
  0x13   :  { %207 = vmatprep.subr.bf16.mxu0 %v512_v0  ;;  %466 = vmatprep.subr.bf16.mxu1 %v512_v0 }
  0x16   :  { %208 = vmatpush1.bf16.msra.mxu0 %v487_v8  ;;  %476 = vmatpush1.bf16.msra.mxu1 %v487_v8 }
  0x17   :  { %209 = vmatprep.subr.bf16.mxu0 %v512_v0  ;;  %467 = vmatprep.subr.bf16.mxu1 %v512_v0 }
  0x1a   :  { %210 = vmatpush1.bf16.msra.mxu0 %v488_v9  ;;  %477 = vmatpush1.bf16.msra.mxu1 %v488_v9 }
  0x1b   :  { %211 = vmatprep.subr.bf16.mxu0 %v512_v0  ;;  %468 = vmatprep.subr.bf16.mxu1 %v512_v0 }
  0x1e   :  { %212 = vmatpush1.bf16.msra.mxu0 %v489_v10  ;;  %478 = vmatpush1.bf16.msra.mxu1 %v489_v10 }
  0x1f   :  { %225 = vmatprep.subr.bf16.mxu0 %v512_v0  ;;  %469 = vmatprep.subr.bf16.mxu1 %v512_v0 }
  0x22   :  { %226 = vmatpush2.bf16.msra.mxu0 %v490_v11  ;;  %479 = vmatpush2.bf16.msra.mxu1 %v490_v11 }
  0x23   :  { %227 = vmatprep.subr.bf16.mxu0 %v512_v0  ;;  %470 = vmatprep.subr.bf16.mxu1 %v512_v0 }
  0x26   :  { %228 = vmatpush2.bf16.msra.mxu0 %v491_v12  ;;  %480 = vmatpush2.bf16.msra.mxu1 %v491_v12 }
  0x29   :  { %230 = vmatmul.mubr.bf16.vlgmr.msra.gmra.mxu0 %v492_v13  ;;  %262 = vmatmul.mubr.bf16.vlgmr.msra.gmra.mxu1 %v495_v14 }
  0x2a   :  { %394 = vmatprep.mubr.msk.bf16.mxu0 %vm175_vm0, %v498_v15  ;;  %398 = vmatprep.mubr.msk.bf16.mxu1 %vm175_vm0, %v501_v16 }
  0x31   :  { %238 = vmatmul.mubr.bf16.gmra.mxu0 %v500_v18  ;;  %270 = vmatmul.mubr.bf16.gmra.mxu1 %v503_v19 }
  0x32   :  { %395 = vmatprep.mubr.msk.bf16.mxu0 %vm175_vm0, %v504_v20  ;;  %399 = vmatprep.mubr.msk.bf16.mxu1 %vm175_vm0, %v382_v21 }
  0x39   :  { %246 = vmatmul.mubr.bf16.gmra.mxu0 %v506_v22  ;;  %278 = vmatmul.mubr.bf16.gmra.mxu1 %v381_v23 }
  0x3a   :  { %396 = vmatprep.mubr.msk.bf16.mxu0 %vm175_vm0, %v509_v24 }
  0x41   :  { %254 = vmatmul.mubr.bf16.gmra.mxu0 %v511_v25 }
  0xe9   :  { %v231_v27 = vpop.f32.mrf.mxu0  ;;  %v263_v28 = vpop.f32.mrf.mxu1 }
  0xea   :  { %v264_v29 = vadd.f32 %v612_v26, %v263_v28  ;;  %v232_v32 = vadd.f32 %v612_v26, %v231_v27 }
  0xeb   :  { %v233_v30 = vpop.f32.mrf.mxu0  ;;  %v265_v31 = vpop.f32.mrf.mxu1 }
  0xec   :  { %v293_v36 = vmax.f32 %v264_v29, 0.0  ;;  %v285_v40 = vmax.f32 %v232_v32, 0.0 }
  0xed   :  { %v234_v33 = vpop.f32.mrf.mxu0  ;;  %v266_v34 = vpop.f32.mrf.mxu1 }
  0xee   :  { %v235_v35 = vadd.f32 %v612_v26, %v234_v33  ;;  %v267_v37 = vadd.f32 %v612_v26, %v266_v34 }
  0xef   :  { %v236_v38 = vpop.f32.mrf.mxu0  ;;  %v268_v39 = vpop.f32.mrf.mxu1 }
  0xf0   :  { %v286_v41 = vmax.f32 %v235_v35, 0.0  ;;  %v294_v42 = vmax.f32 %v267_v37, 0.0 }
  0xf1   :  { %v239_v43 = vpop.f32.mrf.mxu0  ;;  %v271_v44 = vpop.f32.mrf.mxu1 }
  0xf2   :  { %v429_v45 = vpack.c.bf16 %v286_v41, %v285_v40  ;;  %v449_v46 = vpack.c.bf16 %v294_v42, %v293_v36  ;;  %v272_v47 = vadd.f32 %v612_v26, %v271_v44  ;;  %v240_v50 = vadd.f32 %v612_v26, %v239_v43 }
  0xf3   :  { %v241_v48 = vpop.f32.mrf.mxu0  ;;  %v273_v49 = vpop.f32.mrf.mxu1 }
  0xf4   :  { %430 = vst [vmem:[%s651_s3] sm:$0xff] %v429_v45   ;;  %459 = vst [vmem:[%s651_s3 + $0x20] sm:$0xff] %v449_v46   ;;  %v295_v54 = vmax.f32 %v272_v47, 0.0  ;;  %v287_v58 = vmax.f32 %v240_v50, 0.0 }
  0xf5   :  { %v242_v51 = vpop.f32.mrf.mxu0  ;;  %v274_v52 = vpop.f32.mrf.mxu1 }
  0xf6   :  { %v243_v53 = vadd.f32 %v612_v26, %v242_v51  ;;  %v275_v55 = vadd.f32 %v612_v26, %v274_v52 }
  0xf7   :  { %v244_v56 = vpop.f32.mrf.mxu0  ;;  %v276_v57 = vpop.f32.mrf.mxu1 }
  0xf8   :  { %v288_v59 = vmax.f32 %v243_v53, 0.0  ;;  %v296_v60 = vmax.f32 %v275_v55, 0.0 }
  0xf9   :  { %v247_v61 = vpop.f32.mrf.mxu0  ;;  %v279_v62 = vpop.f32.mrf.mxu1 }
  0xfa   :  { %v434_v63 = vpack.c.bf16 %v288_v59, %v287_v58  ;;  %v454_v0 = vpack.c.bf16 %v296_v60, %v295_v54  ;;  %v280_v1 = vadd.f32 %v612_v26, %v279_v62  ;;  %v248_v4 = vadd.f32 %v612_v26, %v247_v61 }
  0xfb   :  { %v249_v2 = vpop.f32.mrf.mxu0  ;;  %v281_v3 = vpop.f32.mrf.mxu1 }
  0xfc   :  { %456 = vst [vmem:[%s651_s3 + $0x8] sm:$0xff] %v434_v63   ;;  %460 = vst [vmem:[%s651_s3 + $0x28] sm:$0xff] %v454_v0   ;;  %v297_v5 = vmax.f32 %v280_v1, 0.0  ;;  %v289_v12 = vmax.f32 %v248_v4, 0.0 }
  0xfd   :  { %v250_v6 = vpop.f32.mrf.mxu0  ;;  %v282_v7 = vpop.f32.mrf.mxu1 }
  0xfe   :  { %v251_v8 = vadd.f32 %v612_v26, %v250_v6  ;;  %v425_v9 = vpack.c.bf16 %v297_v5, %v297_v5 }
  0xff   :  { %v252_v10 = vpop.f32.mrf.mxu0  ;;  %v283_v11 = vpop.f32.mrf.mxu1 }
 0x100   :  { %v290_v13 = vmax.f32 %v251_v8, 0.0  ;;  %363 = vst [vmem:[%s651_s3 + $0x30] sm:$0x1] %v425_v9 }
 0x101   :  { %v255_v14 = vpop.f32.mrf.mxu0 }
 0x102   :  { %v439_v15 = vpack.c.bf16 %v290_v13, %v289_v12  ;;  %v256_v17 = vadd.f32 %v612_v26, %v255_v14 }
 0x103   :  { %v257_v16 = vpop.f32.mrf.mxu0 }
 0x104   :  { %457 = vst [vmem:[%s651_s3 + $0x10] sm:$0xff] %v439_v15   ;;  %v291_v21 = vmax.f32 %v256_v17, 0.0 }
 0x105   :  { %v258_v18 = vpop.f32.mrf.mxu0 }
 0x106   :  { %v259_v19 = vadd.f32 %v612_v26, %v258_v18 }
 0x107   :  { %v260_v20 = vpop.f32.mrf.mxu0 }
 0x108   :  { %v292_v22 = vmax.f32 %v259_v19, 0.0 }
 0x10a   :  { %v444_v23 = vpack.c.bf16 %v292_v22, %v291_v21 }
 0x10c   :  { %458 = vst [vmem:[%s651_s3 + $0x18] sm:$0xff] %v444_v23  }

// kernel: stem_block_forward.17
= control target key start
LH: loop header
LB: loop body
LE: loop exit
PB: predicated region body
PF: predicated region fallthrough
CT: control target
= control target key end

     0   :  { %v923_v0 = vmov 0   ;;  %vm399_vm0 = vcmask 523264   ;;  %vm663_vm1 = vcmask 519168   ;;  %vm676_vm2 = vcmask 516096   ;;  %s1250_s1 = inlined_call_operand.vmem [shape: bf16[448,64], index: 1, kind: input, shape index: {}]   ;;  %s1251_s0 = inlined_call_operand.vmem [shape: bf16[98,448], index: 0, kind: input, shape index: {}]   ;;  %s1252_s2 = inlined_call_operand.vmem [shape: f32[1,64], index: 2, kind: input, shape index: {}]   ;;  %s1253_s3 = inlined_call_operand.vmem [shape: bf16[98,64], index: 3, kind: output, shape index: {}]  }
   0x1   :  { %830 = vmatprep.subr.bf16.mxu1 %v923_v0  ;;  %v855_v1 = vld [vmem:[%s1250_s1 + $0x78] sm:$0xff]   ;;  %v858_v4 = vld [vmem:[%s1250_s1 + $0x70] sm:$0xff]   ;;  %v861_v7 = vld [vmem:[%s1250_s1 + $0x68] sm:$0xff]  }
   0x2   :  { %v951_v2 = vld [vmem:[%s1250_s1 + $0xb8] sm:$0xff]   ;;  %772 = vmatprep.subr.bf16.mxu0 %v855_v1  ;;  %v964_v5 = vld [vmem:[%s1250_s1 + $0xb0] sm:$0xff]   ;;  %v976_v8 = vld [vmem:[%s1250_s1 + $0xa8] sm:$0xff]  }
   0x3   :  { %v857_v3 = vld [vmem:[%s1250_s1 + $0x38] sm:$0xff]   ;;  %842 = vmatpush1.bf16.msra.mxu1 %v951_v2  ;;  %v860_v6 = vld [vmem:[%s1250_s1 + $0x30] sm:$0xff]   ;;  %v863_v9 = vld [vmem:[%s1250_s1 + $0x28] sm:$0xff]  }
   0x4   :  { %773 = vmatpush3.bf16.msra.mxu0 %v857_v3  ;;  %831 = vmatprep.subr.bf16.mxu1 %v923_v0  ;;  %v864_v10 = vld [vmem:[%s1250_s1 + $0x60] sm:$0xff]   ;;  %v867_v13 = vld [vmem:[%s1250_s1 + $0x58] sm:$0xff]   ;;  %v870_v16 = vld [vmem:[%s1250_s1 + $0x50] sm:$0xff]  }
   0x5   :  { %774 = vmatprep.subr.bf16.mxu0 %v858_v4  ;;  %v989_v11 = vld [vmem:[%s1250_s1 + $0xa0] sm:$0xff]   ;;  %v1002_v14 = vld [vmem:[%s1250_s1 + $0x98] sm:$0xff]   ;;  %v1015_v17 = vld [vmem:[%s1250_s1 + $0x90] sm:$0xff]  }
   0x6   :  { %v866_v12 = vld [vmem:[%s1250_s1 + $0x20] sm:$0xff]   ;;  %v869_v15 = vld [vmem:[%s1250_s1 + $0x18] sm:$0xff]   ;;  %v872_v18 = vld [vmem:[%s1250_s1 + $0x10] sm:$0xff]  }
   0x7   :  { %843 = vmatpush1.bf16.msra.mxu1 %v964_v5  ;;  %v873_v19 = vld [vmem:[%s1250_s1 + $0x48] sm:$0xff]   ;;  %v876_v22 = vld [vmem:[%s1250_s1 + $0x40] sm:$0xff]   ;;  %v882_v27 = vld [vmem:[%s1250_s1 + $0xd8] sm:$0xff]  }
   0x8   :  { %775 = vmatpush3.bf16.msra.mxu0 %v860_v6  ;;  %832 = vmatprep.subr.bf16.mxu1 %v923_v0  ;;  %v1027_v20 = vld [vmem:[%s1250_s1 + $0x88] sm:$0xff]   ;;  %v881_v23 = vld [vmem:[%s1251_s0 + $0x4] ss:$16 sps:$4 sm:$0xff]   ;;  %v879_v26 = vld [vmem:[%s1251_s0] ss:$16 sps:$4 sm:$0xff]  }
   0x9   :  { %776 = vmatprep.subr.bf16.mxu0 %v861_v7  ;;  %v875_v21 = vld [vmem:[%s1250_s1 + $0x8] sm:$0xff]   ;;  %v1044_v24 = vld [vmem:[%s1250_s1 + $0x80] sm:$0xff]   ;;  %453 = vmatprep.mubr.bf16.mxu0 %v881_v23  ;;  %v883_v30 = vld [vmem:[%s1250_s1 + $0xd0] sm:$0xff]  }
   0xa   :  { %v878_v25 = vld [vmem:[%s1250_s1] sm:$0xff]   ;;  %v891_v28 = vld [vmem:[%s1251_s0 + $0x2c] ss:$16 sps:$4 sm:$0xff]   ;;  %v889_v35 = vld [vmem:[%s1251_s0 + $0x28] ss:$16 sps:$4 sm:$0xff]  }
   0xb   :  { %844 = vmatpush1.bf16.msra.mxu1 %v976_v8  ;;  %v884_v29 = vld [vmem:[%s1251_s0 + $0x24] ss:$16 sps:$4 sm:$0xff]   ;;  %740 = vmatprep.mubr.msk.bf16.mxu1 %vm399_vm0, %v891_v28  ;;  %v886_v31 = vld [vmem:[%s1251_s0 + $0x20] ss:$16 sps:$4 sm:$0xff]   ;;  %v887_v32 = vld [vmem:[%s1250_s1 + $0xc8] sm:$0xff]  }
   0xc   :  { %777 = vmatpush3.bf16.msra.mxu0 %v863_v9  ;;  %833 = vmatprep.subr.bf16.mxu1 %v923_v0  ;;  %v892_v33 = vld [vmem:[%s1251_s0 + $0x44] ss:$16 sps:$4 sm:$0xff]   ;;  %v894_v36 = vld [vmem:[%s1251_s0 + $0x40] ss:$16 sps:$4 sm:$0xff]   ;;  %v895_v37 = vld [vmem:[%s1251_s0 + $0x4c] ss:$16 sps:$4 sm:$0xff]  }
   0xd   :  { %778 = vmatprep.subr.bf16.mxu0 %v864_v10  ;;  %v888_v34 = vld [vmem:[%s1250_s1 + $0xc0] sm:$0xff]   ;;  %v899_v39 = vld [vmem:[%s1251_s0 + $0x48] ss:$16 sps:$4 sm:$0xff]   ;;  %v901_v41 = vld [vmem:[%s1251_s0 + $0x6c] ss:$16 sps:$4 sm:$0xff]  }
   0xe   :  { %v897_v38 = vld [vmem:[%s1251_s0 + $0x64] ss:$16 sps:$4 sm:$0xff]   ;;  %v900_v40 = vld [vmem:[%s1251_s0 + $0x60] ss:$16 sps:$4 sm:$0xff]   ;;  %v905_v43 = vld [vmem:[%s1251_s0 + $0x68] ss:$16 sps:$4 sm:$0xff]  }
   0xf   :  { %845 = vmatpush1.bf16.msra.mxu1 %v989_v11  ;;  %v903_v42 = vld [vmem:[%s1251_s0 + $0x84] ss:$16 sps:$4 sm:$0xff]   ;;  %v906_v44 = vld [vmem:[%s1251_s0 + $0x80] ss:$16 sps:$4 sm:$0xff]   ;;  %v907_v45 = vld [vmem:[%s1251_s0 + $0x8c] ss:$16 sps:$4 sm:$0xff]  }
  0x10   :  { %779 = vmatpush3.bf16.msra.mxu0 %v866_v12  ;;  %834 = vmatprep.subr.bf16.mxu1 %v923_v0  ;;  %v909_v46 = vld [vmem:[%s1251_s0 + $0xa4] ss:$16 sps:$4 sm:$0xff]   ;;  %v911_v48 = vld [vmem:[%s1251_s0 + $0x88] ss:$16 sps:$4 sm:$0xff]   ;;  %v912_v49 = vld [vmem:[%s1251_s0 + $0xa0] ss:$16 sps:$4 sm:$0xff]  }
  0x11   :  { %780 = vmatprep.subr.bf16.mxu0 %v867_v13  ;;  %v39_v47 = vld [vmem:[%s1251_s0 + $0xc0] sm:$0x11]  ;;  %v913_v50 = vld [vmem:[%s1251_s0 + $0xac] ss:$16 sps:$4 sm:$0xff]   ;;  %v916_v53 = vld [vmem:[%s1251_s0 + $0xa8] ss:$16 sps:$4 sm:$0xff]  }
  0x12   :  { %v708_v51 = vcombine.high %v39_v47, %v39_v47  ;;  %v40_v52 = vld [vmem:[%s1251_s0 + $0xc8] sm:$0x11]  ;;  %v707_v54 = vcombine.low %v39_v47, %v39_v47  ;;  %v1180_v3 = vld [vmem:[%s1252_s2] ss:$0 sm:$0xff] }
  0x13   :  { %846 = vmatpush1.bf16.msra.mxu1 %v1002_v14  ;;  %v710_v55 = vcombine.high %v40_v52, %v40_v52  ;;  %v921_v56 = vld [vmem:[%s1251_s0 + $0xc] ss:$16 sps:$4 sm:$0xff]   ;;  %v709_v57 = vcombine.low %v40_v52, %v40_v52  ;;  %v919_v58 = vld [vmem:[%s1251_s0 + $0x8] ss:$16 sps:$4 sm:$0xff]  }
  0x14   :  { %781 = vmatpush3.bf16.msra.mxu0 %v869_v15  ;;  %835 = vmatprep.subr.bf16.mxu1 %v923_v0 }
  0x15   :  { %782 = vmatprep.subr.bf16.mxu0 %v870_v16 }
  0x17   :  { %847 = vmatpush1.bf16.msra.mxu1 %v1015_v17 }
  0x18   :  { %783 = vmatpush3.bf16.msra.mxu0 %v872_v18  ;;  %836 = vmatprep.subr.bf16.mxu1 %v923_v0 }
  0x19   :  { %784 = vmatprep.subr.bf16.mxu0 %v873_v19 }
  0x1b   :  { %848 = vmatpush1.bf16.msra.mxu1 %v1027_v20 }
  0x1c   :  { %785 = vmatpush3.bf16.msra.mxu0 %v875_v21  ;;  %837 = vmatprep.subr.bf16.mxu1 %v923_v0 }
  0x1d   :  { %786 = vmatprep.subr.bf16.mxu0 %v876_v22 }
  0x1f   :  { %849 = vmatpush1.bf16.msra.mxu1 %v1044_v24 }
  0x20   :  { %787 = vmatpush3.bf16.msra.mxu0 %v878_v25  ;;  %838 = vmatprep.subr.bf16.mxu1 %v923_v0 }
  0x21   :  { %509 = vmatprep.subr.bf16.mxu0 %v923_v0 }
  0x23   :  { %454 = vmatmul.mubr.bf16.vlgmr.msra.gmra.mxu0 %v879_v26  ;;  %850 = vmatpush2.bf16.msra.mxu1 %v882_v27 }
  0x24   :  { %510 = vmatpush1.bf16.msra.mxu0 %v951_v2  ;;  %839 = vmatprep.subr.bf16.mxu1 %v923_v0 }
  0x25   :  { %511 = vmatprep.subr.bf16.mxu0 %v923_v0  ;;  %461 = vmatprep.mubr.bf16.mxu0 %v884_v29 }
  0x27   :  { %851 = vmatpush2.bf16.msra.mxu1 %v883_v30 }
  0x28   :  { %512 = vmatpush1.bf16.msra.mxu0 %v964_v5  ;;  %840 = vmatprep.subr.bf16.mxu1 %v923_v0 }
  0x29   :  { %513 = vmatprep.subr.bf16.mxu0 %v923_v0 }
  0x2b   :  { %462 = vmatmul.mubr.bf16.gmra.mxu0 %v886_v31  ;;  %852 = vmatpush2.bf16.msra.mxu1 %v887_v32 }
  0x2c   :  { %514 = vmatpush1.bf16.msra.mxu0 %v976_v8  ;;  %841 = vmatprep.subr.bf16.mxu1 %v923_v0 }
  0x2d   :  { %515 = vmatprep.subr.bf16.mxu0 %v923_v0  ;;  %469 = vmatprep.mubr.bf16.mxu0 %v892_v33 }
  0x2f   :  { %853 = vmatpush2.bf16.msra.mxu1 %v888_v34 }
  0x30   :  { %516 = vmatpush1.bf16.msra.mxu0 %v989_v11 }
  0x31   :  { %517 = vmatprep.subr.bf16.mxu0 %v923_v0 }
  0x32   :  { %550 = vmatmul.mubr.bf16.vlgmr.msra.gmra.mxu1 %v889_v35 }
  0x33   :  { %470 = vmatmul.mubr.bf16.gmra.mxu0 %v894_v36  ;;  %741 = vmatprep.mubr.msk.bf16.mxu1 %vm399_vm0, %v895_v37 }
  0x34   :  { %518 = vmatpush1.bf16.msra.mxu0 %v1002_v14  ;;  %477 = vmatprep.mubr.bf16.mxu0 %v897_v38 }
  0x35   :  { %519 = vmatprep.subr.bf16.mxu0 %v923_v0 }
  0x38   :  { %520 = vmatpush1.bf16.msra.mxu0 %v1015_v17 }
  0x39   :  { %521 = vmatprep.subr.bf16.mxu0 %v923_v0 }
  0x3a   :  { %558 = vmatmul.mubr.bf16.gmra.mxu1 %v899_v39 }
  0x3b   :  { %478 = vmatmul.mubr.bf16.gmra.mxu0 %v900_v40  ;;  %742 = vmatprep.mubr.msk.bf16.mxu1 %vm399_vm0, %v901_v41 }
  0x3c   :  { %522 = vmatpush1.bf16.msra.mxu0 %v1027_v20  ;;  %485 = vmatprep.mubr.bf16.mxu0 %v903_v42 }
  0x3d   :  { %523 = vmatprep.subr.bf16.mxu0 %v923_v0 }
  0x40   :  { %524 = vmatpush1.bf16.msra.mxu0 %v1044_v24 }
  0x41   :  { %533 = vmatprep.subr.bf16.mxu0 %v923_v0 }
  0x42   :  { %566 = vmatmul.mubr.bf16.gmra.mxu1 %v905_v43 }
  0x43   :  { %486 = vmatmul.mubr.bf16.gmra.mxu0 %v906_v44  ;;  %743 = vmatprep.mubr.msk.bf16.mxu1 %vm399_vm0, %v907_v45 }
  0x44   :  { %493 = vmatprep.mubr.bf16.mxu0 %v909_v46  ;;  %534 = vmatpush2.bf16.msra.mxu0 %v882_v27 }
  0x45   :  { %535 = vmatprep.subr.bf16.mxu0 %v923_v0 }
  0x48   :  { %536 = vmatpush2.bf16.msra.mxu0 %v883_v30 }
  0x49   :  { %537 = vmatprep.subr.bf16.mxu0 %v923_v0 }
  0x4a   :  { %574 = vmatmul.mubr.bf16.gmra.mxu1 %v911_v48 }
  0x4b   :  { %494 = vmatmul.mubr.bf16.gmra.mxu0 %v912_v49  ;;  %744 = vmatprep.mubr.msk.bf16.mxu1 %vm399_vm0, %v913_v50 }
  0x4c   :  { %501 = vmatprep.mubr.bf16.mxu0 %v708_v51  ;;  %538 = vmatpush2.bf16.msra.mxu0 %v887_v32 }
  0x4d   :  { %539 = vmatprep.subr.bf16.mxu0 %v923_v0 }
  0x50   :  { %540 = vmatpush2.bf16.msra.mxu0 %v888_v34 }
  0x52   :  { %582 = vmatmul.mubr.bf16.gmra.mxu1 %v916_v53 }
  0x53   :  { %502 = vmatmul.mubr.bf16.gmra.mxu0 %v707_v54  ;;  %745 = vmatprep.mubr.msk.bf16.mxu1 %vm399_vm0, %v710_v55 }
  0x54   :  { %739 = vmatprep.mubr.msk.bf16.mxu0 %vm399_vm0, %v921_v56 }
  0x5a   :  { %590 = vmatmul.mubr.bf16.gmra.mxu1 %v709_v57 }
  0x5b   :  { %542 = vmatmul.mubr.bf16.vlgmr.msra.gmra.mxu0 %v919_v58 }
  0xe3   :  { %v1169_v59 = vpop.f32.mrf.mxu0 }
  0xe5   :  { %v1171_v60 = vpop.f32.mrf.mxu0 }
  0xe7   :  { %v1173_v61 = vpop.f32.mrf.mxu0 }
  0xe9   :  { %v1175_v62 = vpop.f32.mrf.mxu0 }
  0xeb   :  { %v794_v63 = vpop.f32.mrf.mxu0 }
  0xed   :  { %v795_v0 = vpop.f32.mrf.mxu0 }
  0xee   :  { %v796_v1 = vadd.f32 %v795_v0, %v794_v63 }
  0xef   :  { %v797_v2 = vpop.f32.mrf.mxu0 }
  0xf0   :  { %v464_v4 = vadd.f32 %v796_v1, %v1180_v3 }
  0xf1   :  { %v798_v5 = vpop.f32.mrf.mxu0 }
  0xf2   :  { %v799_v6 = vadd.f32 %v798_v5, %v797_v2  ;;  %v551_v7 = vpop.f32.mrf.mxu1 }
  0xf3   :  { %v552_v8 = vadd.f32 %v551_v7, %v464_v4  ;;  %v800_v9 = vpop.f32.mrf.mxu0 }
  0xf4   :  { %v553_v10 = vpop.f32.mrf.mxu1  ;;  %v467_v11 = vadd.f32 %v799_v6, %v1180_v3 }
  0xf5   :  { %v599_v12 = vmax.f32 %v552_v8, 0.0  ;;  %v801_v13 = vpop.f32.mrf.mxu0 }
  0xf6   :  { %v802_v14 = vadd.f32 %v801_v13, %v800_v9  ;;  %v554_v15 = vpop.f32.mrf.mxu1 }
  0xf7   :  { %v761_v16 = vpack.c.bf16 %v599_v12, %v599_v12  ;;  %v555_v17 = vadd.f32 %v554_v15, %v467_v11  ;;  %v803_v18 = vpop.f32.mrf.mxu0 }
  0xf8   :  { %v556_v19 = vpop.f32.mrf.mxu1  ;;  %v472_v20 = vadd.f32 %v802_v14, %v1180_v3 }
  0xf9   :  { %666 = vst.msk [vmem:[%s1253_s3 + $0x8] sm:$0xf] %vm663_vm1, %v761_v16  ;;  %v600_v21 = vmax.f32 %v555_v17, 0.0  ;;  %v804_v22 = vpop.f32.mrf.mxu0 }
  0xfa   :  { %v805_v23 = vadd.f32 %v804_v22, %v803_v18  ;;  %v559_v24 = vpop.f32.mrf.mxu1 }
  0xfb   :  { %v762_v25 = vpack.c.bf16 %v600_v21, %v600_v21  ;;  %v560_v26 = vadd.f32 %v559_v24, %v472_v20  ;;  %v806_v27 = vpop.f32.mrf.mxu0 }
  0xfc   :  { %v561_v28 = vpop.f32.mrf.mxu1  ;;  %v475_v29 = vadd.f32 %v805_v23, %v1180_v3 }
  0xfd   :  { %667 = vst.msk [vmem:[%s1253_s3 + $0xc] sm:$0xf] %vm663_vm1, %v762_v25  ;;  %v601_v30 = vmax.f32 %v560_v26, 0.0  ;;  %v807_v31 = vpop.f32.mrf.mxu0 }
  0xfe   :  { %v808_v32 = vadd.f32 %v807_v31, %v806_v27  ;;  %v562_v33 = vpop.f32.mrf.mxu1  ;;  %v790_v27 = vadd.f32 %v1171_v60, %v1169_v59 }
  0xff   :  { %v763_v34 = vpack.c.bf16 %v601_v30, %v601_v30  ;;  %v563_v35 = vadd.f32 %v562_v33, %v475_v29  ;;  %v809_v36 = vpop.f32.mrf.mxu0 }
 0x100   :  { %v564_v37 = vpop.f32.mrf.mxu1  ;;  %v480_v38 = vadd.f32 %v808_v32, %v1180_v3  ;;  %v456_v59 = vadd.f32 %v790_v27, %v1180_v3 }
 0x101   :  { %668 = vst.msk [vmem:[%s1253_s3 + $0x10] sm:$0xf] %vm663_vm1, %v763_v34  ;;  %v602_v39 = vmax.f32 %v563_v35, 0.0  ;;  %v810_v40 = vpop.f32.mrf.mxu0  ;;  %v793_v37 = vadd.f32 %v1175_v62, %v1173_v61 }
 0x102   :  { %v811_v41 = vadd.f32 %v810_v40, %v809_v36  ;;  %v567_v42 = vpop.f32.mrf.mxu1 }
 0x103   :  { %v764_v43 = vpack.c.bf16 %v602_v39, %v602_v39  ;;  %v568_v44 = vadd.f32 %v567_v42, %v480_v38  ;;  %v812_v45 = vpop.f32.mrf.mxu0  ;;  %v459_v61 = vadd.f32 %v793_v37, %v1180_v3 }
 0x104   :  { %v569_v46 = vpop.f32.mrf.mxu1  ;;  %v483_v47 = vadd.f32 %v811_v41, %v1180_v3 }
 0x105   :  { %669 = vst.msk [vmem:[%s1253_s3 + $0x14] sm:$0xf] %vm663_vm1, %v764_v43  ;;  %v603_v48 = vmax.f32 %v568_v44, 0.0  ;;  %v813_v49 = vpop.f32.mrf.mxu0 }
 0x106   :  { %v814_v50 = vadd.f32 %v813_v49, %v812_v45  ;;  %v570_v51 = vpop.f32.mrf.mxu1 }
 0x107   :  { %v765_v52 = vpack.c.bf16 %v603_v48, %v603_v48  ;;  %v571_v53 = vadd.f32 %v570_v51, %v483_v47  ;;  %v815_v54 = vpop.f32.mrf.mxu0 }
 0x108   :  { %v572_v55 = vpop.f32.mrf.mxu1  ;;  %v488_v56 = vadd.f32 %v814_v50, %v1180_v3 }
 0x109   :  { %670 = vst.msk [vmem:[%s1253_s3 + $0x18] sm:$0xf] %vm663_vm1, %v765_v52  ;;  %v604_v57 = vmax.f32 %v571_v53, 0.0  ;;  %v816_v58 = vpop.f32.mrf.mxu0 }
 0x10a   :  { %v817_v63 = vadd.f32 %v816_v58, %v815_v54  ;;  %v575_v0 = vpop.f32.mrf.mxu1 }
 0x10b   :  { %v766_v1 = vpack.c.bf16 %v604_v57, %v604_v57  ;;  %v576_v2 = vadd.f32 %v575_v0, %v488_v56  ;;  %v818_v4 = vpop.f32.mrf.mxu0 }
 0x10c   :  { %v577_v5 = vpop.f32.mrf.mxu1  ;;  %v491_v6 = vadd.f32 %v817_v63, %v1180_v3 }
 0x10d   :  { %671 = vst.msk [vmem:[%s1253_s3 + $0x1c] sm:$0xf] %vm663_vm1, %v766_v1  ;;  %v605_v7 = vmax.f32 %v576_v2, 0.0  ;;  %v819_v8 = vpop.f32.mrf.mxu0 }
 0x10e   :  { %v820_v9 = vadd.f32 %v819_v8, %v818_v4  ;;  %v578_v10 = vpop.f32.mrf.mxu1 }
 0x10f   :  { %v767_v11 = vpack.c.bf16 %v605_v7, %v605_v7  ;;  %v579_v12 = vadd.f32 %v578_v10, %v491_v6  ;;  %v821_v13 = vpop.f32.mrf.mxu0 }
 0x110   :  { %v580_v14 = vpop.f32.mrf.mxu1  ;;  %v496_v15 = vadd.f32 %v820_v9, %v1180_v3 }
 0x111   :  { %672 = vst.msk [vmem:[%s1253_s3 + $0x20] sm:$0xf] %vm663_vm1, %v767_v11  ;;  %v606_v16 = vmax.f32 %v579_v12, 0.0  ;;  %v822_v17 = vpop.f32.mrf.mxu0 }
 0x112   :  { %v823_v18 = vadd.f32 %v822_v17, %v821_v13  ;;  %v583_v19 = vpop.f32.mrf.mxu1 }
 0x113   :  { %v768_v20 = vpack.c.bf16 %v606_v16, %v606_v16  ;;  %v584_v21 = vadd.f32 %v583_v19, %v496_v15  ;;  %v824_v22 = vpop.f32.mrf.mxu0 }
 0x114   :  { %v585_v23 = vpop.f32.mrf.mxu1  ;;  %v499_v24 = vadd.f32 %v823_v18, %v1180_v3 }
 0x115   :  { %673 = vst.msk [vmem:[%s1253_s3 + $0x24] sm:$0xf] %vm663_vm1, %v768_v20  ;;  %v607_v25 = vmax.f32 %v584_v21, 0.0  ;;  %v825_v26 = vpop.f32.mrf.mxu0 }
 0x116   :  { %v826_v28 = vadd.f32 %v825_v26, %v824_v22  ;;  %v586_v29 = vpop.f32.mrf.mxu1 }
 0x117   :  { %v769_v30 = vpack.c.bf16 %v607_v25, %v607_v25  ;;  %v587_v31 = vadd.f32 %v586_v29, %v499_v24  ;;  %v827_v32 = vpop.f32.mrf.mxu0 }
 0x118   :  { %v588_v33 = vpop.f32.mrf.mxu1  ;;  %v504_v34 = vadd.f32 %v826_v28, %v1180_v3 }
 0x119   :  { %674 = vst.msk [vmem:[%s1253_s3 + $0x28] sm:$0xf] %vm663_vm1, %v769_v30  ;;  %v608_v35 = vmax.f32 %v587_v31, 0.0  ;;  %v828_v36 = vpop.f32.mrf.mxu0 }
 0x11a   :  { %v591_v38 = vpop.f32.mrf.mxu1 }
 0x11b   :  { %v770_v60 = vpack.c.bf16 %v608_v35, %v608_v35  ;;  %v592_v39 = vadd.f32 %v591_v38, %v504_v34  ;;  %v543_v40 = vpop.f32.mrf.mxu0 }
 0x11c   :  { %v544_v41 = vadd.f32 %v543_v40, %v456_v59  ;;  %v593_v42 = vpop.f32.mrf.mxu1 }
 0x11d   :  { %675 = vst.msk [vmem:[%s1253_s3 + $0x2c] sm:$0xf] %vm663_vm1, %v770_v60  ;;  %v609_v43 = vmax.f32 %v592_v39, 0.0  ;;  %v545_v44 = vpop.f32.mrf.mxu0 }
 0x11e   :  { %v597_v45 = vmax.f32 %v544_v41, 0.0  ;;  %v594_v46 = vpop.f32.mrf.mxu1 }
 0x11f   :  { %v771_v62 = vpack.c.bf16 %v609_v43, %v609_v43  ;;  %v546_v47 = vpop.f32.mrf.mxu0 }
 0x120   :  { %v759_v48 = vpack.c.bf16 %v597_v45, %v597_v45  ;;  %v547_v49 = vadd.f32 %v546_v47, %v459_v61  ;;  %v595_v50 = vpop.f32.mrf.mxu1 }
 0x121   :  { %677 = vst.msk [vmem:[%s1253_s3 + $0x30] sm:$0x1] %vm676_vm2, %v771_v62  ;;  %v548_v51 = vpop.f32.mrf.mxu0 }
 0x122   :  { %664 = vst.msk [vmem:[%s1253_s3] sm:$0xf] %vm663_vm1, %v759_v48  ;;  %v598_v52 = vmax.f32 %v547_v49, 0.0 }
 0x124   :  { %v760_v53 = vpack.c.bf16 %v598_v52, %v598_v52 }
 0x126   :  { %665 = vst.msk [vmem:[%s1253_s3 + $0x4] sm:$0xf] %vm663_vm1, %v760_v53 }

// kernel: squeeze.2
= control target key start
LH: loop header
LB: loop body
LE: loop exit
PB: predicated region body
PF: predicated region fallthrough
CT: control target
= control target key end

     0   :  { %vm115_vm0 = vcmask 785408   ;;  %s367_s0 = inlined_call_operand.vmem [shape: bf16[1,50,96], index: 0, kind: input, shape index: {}]   ;;  %s368_s1 = inlined_call_operand.vmem [shape: bf16[2,5,5,96], index: 1, kind: output, shape index: {}]  }
   0x1   :  { %v257_v0 = vld [vmem:[%s367_s0 + $0x18] sm:$0xf]  ;;  %v309_v1 = vld [vmem:[%s367_s0 + $0x10] sm:$0xff]   ;;  %v310_v2 = vld [vmem:[%s367_s0 + $0x8] sm:$0xff]  }
   0x2   :  { %v18_v3 = vunpack.c.l.bf16 %v257_v0  ;;  %v274_v4 = vunpack.c.l.bf16 %v309_v1  ;;  %v275_v5 = vunpack.c.h.bf16 %v309_v1  ;;  %v278_v6 = vunpack.c.l.bf16 %v310_v2  ;;  %v281_v7 = vld [vmem:[%s367_s0] sm:$0xff]  }
   0x3   :  { %v279_v8 = vunpack.c.h.bf16 %v310_v2  ;;  %v282_v9 = vunpack.c.l.bf16 %v281_v7  ;;  %v283_v10 = vunpack.c.h.bf16 %v281_v7 }
   0x4   :  { %21 = vst [vmem:[#allocation1] sm:$0xff] %v18_v3  ;;  %132 = vst.msk [vmem:[#allocation0 + $0x19] sm:$0xf] %vm115_vm0, %v278_v6  }
   0x5   :  { %134 = vst.msk [vmem:[#allocation0 + $0x1c] sm:$0xf0] %vm115_vm0, %v278_v6   ;;  %148 = vst.msk [vmem:[#allocation0 + $0x32] sm:$0x7] %vm115_vm0, %v274_v4  }
   0x6   :  { %150 = vst.msk [vmem:[#allocation0 + $0x35] sm:$0xf8] %vm115_vm0, %v274_v4   ;;  %155 = vst.msk [vmem:[#allocation0 + $0x40] sm:$0x1f] %vm115_vm0, %v275_v5  }
   0x7   :  { %157 = vst.msk [vmem:[#allocation0 + $0x43] sm:$0xe0] %vm115_vm0, %v275_v5   ;;  %116 = vst.msk [vmem:[#allocation0] sm:$0x1f] %vm115_vm0, %v282_v9  }
   0x8   :  { %118 = vst.msk [vmem:[#allocation0 + $0x3] sm:$0xe0] %vm115_vm0, %v282_v9   ;;  %123 = vst.msk [vmem:[#allocation0 + $0xb] sm:$0x3] %vm115_vm0, %v283_v10  }
   0x9   :  { %125 = vst.msk [vmem:[#allocation0 + $0xe] sm:$0x7c] %vm115_vm0, %v283_v10   ;;  %127 = vst.msk [vmem:[#allocation0 + $0x11] sm:$0x80] %vm115_vm0, %v283_v10  }
   0xa   :  { %139 = vst.msk [vmem:[#allocation0 + $0x24] ss:$4 sm:$0x3] %vm115_vm0, %v279_v8   ;;  %141 = vst.msk [vmem:[#allocation0 + $0x27] sm:$0x3c] %vm115_vm0, %v279_v8  }
   0xb   :  { %143 = vst.msk [vmem:[#allocation0 + $0x2a] sm:$0xc0] %vm115_vm0, %v279_v8   ;;  %v159_v11 = vld [vmem:[#allocation1] sm:$0x3]  }
   0xc   :  { %162 = vst.msk [vmem:[#allocation0 + $0x4b] sm:$0x3] %vm115_vm0, %v159_v11  }
   0xd   :  { %v221_v12 = vld [vmem:[#allocation0 + $0x38] sm:$0xff]  ;;  %v229_v24 = vld [vmem:[#allocation0 + $0x40] sm:$0xff] }
   0xe   :  { %v168_v13 = vld [vmem:[#allocation0] sm:$0xff] }
   0xf   :  { %v174_v14 = vld [vmem:[#allocation0 + $0x8] sm:$0xff] }
  0x10   :  { %v181_v15 = vld [vmem:[#allocation0 + $0x10] sm:$0xff]  ;;  %v287_v16 = vpack.c.bf16 %v174_v14, %v168_v13  ;;  %v189_v17 = vld [vmem:[#allocation0 + $0x18] sm:$0xff] }
  0x11   :  { %v197_v18 = vld [vmem:[#allocation0 + $0x20] sm:$0xff]  ;;  %v205_v19 = vld [vmem:[#allocation0 + $0x28] sm:$0xff]  ;;  %v292_v20 = vpack.c.bf16 %v189_v17, %v181_v15 }
  0x12   :  { %v297_v21 = vpack.c.bf16 %v205_v19, %v197_v18  ;;  %v213_v22 = vld [vmem:[#allocation0 + $0x30] sm:$0xff]  ;;  %288 = vst [vmem:[%s368_s1] sm:$0xff] %v287_v16  }
  0x13   :  { %v302_v23 = vpack.c.bf16 %v221_v12, %v213_v22  ;;  %311 = vst [vmem:[%s368_s1 + $0x8] sm:$0xff] %v292_v20   ;;  %v237_v25 = vld [vmem:[#allocation0 + $0x48] sm:$0xff] }
  0x14   :  { %312 = vst [vmem:[%s368_s1 + $0x10] sm:$0xff] %v297_v21   ;;  %v307_v26 = vpack.c.bf16 %v237_v25, %v229_v24 }
  0x15   :  { %313 = vst [vmem:[%s368_s1 + $0x18] sm:$0xff] %v302_v23  }
  0x16   :  { %314 = vst [vmem:[%s368_s1 + $0x20] sm:$0xff] %v307_v26  }

// kernel: stem_block_forward.19
= control target key start
LH: loop header
LB: loop body
LE: loop exit
PB: predicated region body
PF: predicated region fallthrough
CT: control target
= control target key end

     0   :  { %s1347_s12 = smov 0   ;;  %s1349_s13 = smov 0   ;;  %s1466_s0 = inlined_call_operand.vmem [shape: bf16[2,50,576], index: 0, kind: input, shape index: {}]   ;;  %s1467_s1 = inlined_call_operand.vmem [shape: bf16[2,576,96], index: 1, kind: input, shape index: {}]   ;;  %s1468_s2 = inlined_call_operand.vmem [shape: f32[2,1,96], index: 2, kind: input, shape index: {}]   ;;  %s1469_s3 = inlined_call_operand.vmem [shape: bf16[2,50,96], index: 3, kind: output, shape index: {}]  }
   0x1   :  { %s1351_s14 = smov 0  }
   0x2 LB: > { %s25_s15 = sadd.s32 1, %s1321_s13  ;;  %p1021_p0 = scmp.ge.s32.totalorder %s1325_s14, 1  ;;  %s1325_s14 = sphi %s1351_s14, %s13_s14   ;;  %s1321_s13 = sphi %s1349_s13, %s1471_s13   ;;  %s1317_s12 = sphi %s1347_s12, %s1470_s12  }
   0x3   : > { %p27_p1 = scmp.ge.s32.totalorder %s25_s15, 2  ;;  %p177_p2 = scmp.lt.s32.totalorder %s1325_s14, 3 }
   0x5   : > { %s1473_s15 = smov (%p27_p1, %s25_s15), 0  ;;  %p178_p3 = pnand %p1021_p0, %p177_p2 }
   0x6   : > { %p219_p4 = scmp.lt.s32.totalorder (!%p178_p3), %s1317_s12, 1 }
   0x7   : > { %181 = sbr.rel (%p178_p3) target bundleno = 289 (0x121), region = 32 }
   0xc   : > { %s1475_s12 = smov (!%p219_p4, %s1317_s12), 1  ;;  %vm656_vm0 = vcmask 523264   ;;  %vm897_vm1 = vcmask 781312   ;;  %vm904_vm2 = vcmask 778240  }
   0xd   : > { %s1215_s16 = smul.u32 288, %s1475_s12  ;;  %s236_s26 = scalar_lea.vmem %s1468_s2, %s1475_s12 }
   0xe   : > { %s1214_s20 = smul.u32 140, %s1475_s12 }
   0xf   : > { %s1371_s19 = scalar_lea.vmem %s1467_s1, %s1215_s16  ;;  %s1216_s27 = smul.u32 28, %s1475_s12 }
  0x10   : > { %v1241_v0 = vld [vmem:[%s1371_s19 + $0x78] sm:$0xff]   ;;  %v1245_v4 = vld [vmem:[%s1371_s19 + $0x70] sm:$0xff]   ;;  %v1249_v8 = vld [vmem:[%s1371_s19 + $0x68] sm:$0xff]   ;;  %s1407_s23 = scalar_lea.vmem %s1466_s0, %s1214_s20 }
  0x11   : > { %v1242_v1 = vld [vmem:[%s1371_s19 + $0xf8] sm:$0xff]   ;;  %1102 = vmatprep.subr.bf16.mxu0 %v1241_v0  ;;  %v1246_v5 = vld [vmem:[%s1371_s19 + $0xf0] sm:$0xff]   ;;  %v1250_v9 = vld [vmem:[%s1371_s19 + $0xe8] sm:$0xff]   ;;  %s1441_s30 = scalar_lea.vmem %s1469_s3, %s1216_s27 }
  0x12   : > { %v1243_v2 = vld [vmem:[%s1371_s19 + $0x38] sm:$0xff]   ;;  %1142 = vmatprep.subr.bf16.mxu1 %v1242_v1  ;;  %v1247_v6 = vld [vmem:[%s1371_s19 + $0x30] sm:$0xff]   ;;  %v1251_v10 = vld [vmem:[%s1371_s19 + $0x28] sm:$0xff]  }
  0x13   : > { %v1244_v3 = vld [vmem:[%s1371_s19 + $0xb8] sm:$0xff]   ;;  %1103 = vmatpush3.bf16.msra.mxu0 %v1243_v2  ;;  %v1248_v7 = vld [vmem:[%s1371_s19 + $0xb0] sm:$0xff]   ;;  %v1252_v11 = vld [vmem:[%s1371_s19 + $0xa8] sm:$0xff]  }
  0x14   : > { %1143 = vmatpush3.bf16.msra.mxu1 %v1244_v3  ;;  %1104 = vmatprep.subr.bf16.mxu0 %v1245_v4  ;;  %v1253_v12 = vld [vmem:[%s1371_s19 + $0x60] sm:$0xff]   ;;  %v1257_v16 = vld [vmem:[%s1371_s19 + $0x58] sm:$0xff]   ;;  %v1261_v20 = vld [vmem:[%s1371_s19 + $0x50] sm:$0xff]  }
  0x15   : > { %1144 = vmatprep.subr.bf16.mxu1 %v1246_v5  ;;  %v1254_v13 = vld [vmem:[%s1371_s19 + $0xe0] sm:$0xff]   ;;  %v1258_v17 = vld [vmem:[%s1371_s19 + $0xd8] sm:$0xff]   ;;  %v1262_v21 = vld [vmem:[%s1371_s19 + $0xd0] sm:$0xff]  }
  0x16   : > { %v1255_v14 = vld [vmem:[%s1371_s19 + $0x20] sm:$0xff]   ;;  %v1259_v18 = vld [vmem:[%s1371_s19 + $0x18] sm:$0xff]   ;;  %v1263_v22 = vld [vmem:[%s1371_s19 + $0x10] sm:$0xff]  }
  0x17   : > { %1105 = vmatpush3.bf16.msra.mxu0 %v1247_v6  ;;  %v1256_v15 = vld [vmem:[%s1371_s19 + $0xa0] sm:$0xff]   ;;  %v1260_v19 = vld [vmem:[%s1371_s19 + $0x98] sm:$0xff]   ;;  %v1264_v23 = vld [vmem:[%s1371_s19 + $0x90] sm:$0xff]  }
  0x18   : > { %1145 = vmatpush3.bf16.msra.mxu1 %v1248_v7  ;;  %1106 = vmatprep.subr.bf16.mxu0 %v1249_v8  ;;  %v1265_v24 = vld [vmem:[%s1371_s19 + $0x48] sm:$0xff]   ;;  %v1269_v28 = vld [vmem:[%s1371_s19 + $0x40] sm:$0xff]   ;;  %v1279_v36 = vld [vmem:[%s1371_s19 + $0x118] sm:$0xff]  }
  0x19   : > { %1146 = vmatprep.subr.bf16.mxu1 %v1250_v9  ;;  %v1266_v25 = vld [vmem:[%s1371_s19 + $0xc8] sm:$0xff]   ;;  %v1270_v29 = vld [vmem:[%s1371_s19 + $0xc0] sm:$0xff]   ;;  %v1286_v39 = vld [vmem:[%s1371_s19 + $0x110] sm:$0xff]  }
  0x1a   : > { %v1267_v26 = vld [vmem:[%s1371_s19 + $0x8] sm:$0xff]   ;;  %v1271_v30 = vld [vmem:[%s1371_s19] sm:$0xff]   ;;  %v1289_v43 = vld [vmem:[%s1407_s23 + $0x5c] ss:$20 sps:$4 sm:$0xff]  }
  0x1b   : > { %1107 = vmatpush3.bf16.msra.mxu0 %v1251_v10  ;;  %v1268_v27 = vld [vmem:[%s1371_s19 + $0x88] sm:$0xff]   ;;  %v1272_v31 = vld [vmem:[%s1371_s19 + $0x80] sm:$0xff]   ;;  %v266_v46 = vld [vmem:[%s1407_s23 + $0x78] sm:$0x11] }
  0x1c   : > { %1147 = vmatpush3.bf16.msra.mxu1 %v1252_v11  ;;  %1108 = vmatprep.subr.bf16.mxu0 %v1253_v12  ;;  %v1273_v32 = vld [vmem:[%s1407_s23] ss:$20 sps:$4 sm:$0xff]   ;;  %v1275_v33 = vld [vmem:[%s1407_s23 + $0x4] ss:$20 sps:$4 sm:$0xff]   ;;  %v1276_v34 = vld [vmem:[%s1407_s23 + $0x8] ss:$20 sps:$4 sm:$0xff]   ;;  %v1042_v50 = vcombine.high %v266_v46, %v266_v46  ;;  %v1041_v52 = vcombine.low %v266_v46, %v266_v46 }
  0x1d   : > { %1148 = vmatprep.subr.bf16.mxu1 %v1254_v13  ;;  %v1278_v35 = vld [vmem:[%s1407_s23 + $0xc] ss:$20 sps:$4 sm:$0xff]   ;;  %701 = vmatprep.mubr.bf16.mxu0 %v1275_v33  ;;  %v1282_v38 = vld [vmem:[%s1407_s23 + $0x34] ss:$20 sps:$4 sm:$0xff]   ;;  %v1285_v41 = vld [vmem:[%s1407_s23 + $0x30] ss:$20 sps:$4 sm:$0xff]  }
  0x1e   : > { %765 = vmatprep.mubr.bf16.mxu1 %v1278_v35  ;;  %v1280_v37 = vld [vmem:[%s1407_s23 + $0x2c] ss:$20 sps:$4 sm:$0xff]   ;;  %v1284_v40 = vld [vmem:[%s1407_s23 + $0x28] ss:$20 sps:$4 sm:$0xff]   ;;  %v1291_v48 = vld [vmem:[%s1407_s23 + $0x50] ss:$20 sps:$4 sm:$0xff]  }
  0x1f   : > { %1109 = vmatpush3.bf16.msra.mxu0 %v1255_v14  ;;  %v1287_v42 = vld [vmem:[%s1407_s23 + $0x54] ss:$20 sps:$4 sm:$0xff]   ;;  %v1298_v45 = vld [vmem:[%s1371_s19 + $0x100] sm:$0xff]   ;;  %v1292_v49 = vld [vmem:[%s1407_s23 + $0x58] ss:$20 sps:$4 sm:$0xff]  }
  0x20   : > { %1149 = vmatpush3.bf16.msra.mxu1 %v1256_v15  ;;  %1110 = vmatprep.subr.bf16.mxu0 %v1257_v16  ;;  %v1293_v44 = vld [vmem:[%s1371_s19 + $0x108] sm:$0xff]   ;;  %v267_v47 = vld [vmem:[%s1407_s23 + $0x80] sm:$0x11] }
  0x21   : > { %1150 = vmatprep.subr.bf16.mxu1 %v1258_v17  ;;  %v1044_v51 = vcombine.high %v267_v47, %v267_v47  ;;  %v1043_v53 = vcombine.low %v267_v47, %v267_v47  ;;  %v1299_v54 = vld [vmem:[%s1407_s23 + $0x10] ss:$20 sps:$4 sm:$0xff]   ;;  %v1300_v55 = vld [vmem:[%s1407_s23 + $0x60] ss:$20 sps:$4 sm:$0xff]   ;;  %v1301_v56 = vld [vmem:[%s1407_s23 + $0x38] ss:$20 sps:$4 sm:$0xff]  }
  0x22   : > { %v1302_v57 = vld [vmem:[%s1407_s23 + $0x88] ss:$0 sps:$4 sm:$0x11]  }
  0x23   : > { %1111 = vmatpush3.bf16.msra.mxu0 %v1259_v18 }
  0x24   : > { %1151 = vmatpush3.bf16.msra.mxu1 %v1260_v19  ;;  %1112 = vmatprep.subr.bf16.mxu0 %v1261_v20 }
  0x25   : > { %1152 = vmatprep.subr.bf16.mxu1 %v1262_v21  ;;  %v1025_v21 = vld [vmem:[%s236_s26] ss:$0 sm:$0xff] }
  0x27   : > { %1113 = vmatpush3.bf16.msra.mxu0 %v1263_v22 }
  0x28   : > { %1153 = vmatpush3.bf16.msra.mxu1 %v1264_v23  ;;  %1114 = vmatprep.subr.bf16.mxu0 %v1265_v24 }
  0x29   : > { %1154 = vmatprep.subr.bf16.mxu1 %v1266_v25 }
  0x2b   : > { %1115 = vmatpush3.bf16.msra.mxu0 %v1267_v26 }
  0x2c   : > { %1155 = vmatpush3.bf16.msra.mxu1 %v1268_v27  ;;  %1116 = vmatprep.subr.bf16.mxu0 %v1269_v28 }
  0x2d   : > { %1156 = vmatprep.subr.bf16.mxu1 %v1270_v29 }
  0x2f   : > { %1117 = vmatpush3.bf16.msra.mxu0 %v1271_v30 }
  0x30   : > { %1157 = vmatpush3.bf16.msra.mxu1 %v1272_v31  ;;  %1190 = vmatprep.subr.bf16.mxu0 %v1279_v36 }
  0x31   : > { %1206 = vmatprep.subr.bf16.mxu1 %v1279_v36 }
  0x32   : > { %702 = vmatmul.mubr.bf16.vlgmr.msra.gmra.mxu0 %v1273_v32 }
  0x33   : > { %766 = vmatmul.mubr.bf16.vlgmr.msra.gmra.mxu1 %v1276_v34  ;;  %1191 = vmatpush3.bf16.msra.mxu0 %v1279_v36 }
  0x34   : > { %1210 = vmatpush3.bf16.msra.mxu1 %v1279_v36  ;;  %709 = vmatprep.mubr.bf16.mxu0 %v1280_v37 }
  0x35   : > { %773 = vmatprep.mubr.bf16.mxu1 %v1282_v38  ;;  %1192 = vmatprep.subr.bf16.mxu0 %v1286_v39 }
  0x36   : > { %1207 = vmatprep.subr.bf16.mxu1 %v1286_v39 }
  0x37   : > { %1193 = vmatpush3.bf16.msra.mxu0 %v1286_v39 }
  0x38   : > { %1211 = vmatpush3.bf16.msra.mxu1 %v1286_v39  ;;  %1194 = vmatprep.subr.bf16.mxu0 %v1293_v44 }
  0x39   : > { %1208 = vmatprep.subr.bf16.mxu1 %v1293_v44 }
  0x3a   : > { %710 = vmatmul.mubr.bf16.gmra.mxu0 %v1284_v40 }
  0x3b   : > { %774 = vmatmul.mubr.bf16.gmra.mxu1 %v1285_v41  ;;  %717 = vmatprep.mubr.bf16.mxu0 %v1287_v42 }
  0x3c   : > { %781 = vmatprep.mubr.bf16.mxu1 %v1289_v43  ;;  %1195 = vmatpush3.bf16.msra.mxu0 %v1293_v44 }
  0x3d   : > { %1212 = vmatpush3.bf16.msra.mxu1 %v1293_v44  ;;  %1196 = vmatprep.subr.bf16.mxu0 %v1298_v45 }
  0x3e   : > { %1209 = vmatprep.subr.bf16.mxu1 %v1298_v45 }
  0x40   : > { %1197 = vmatpush3.bf16.msra.mxu0 %v1298_v45 }
  0x41   : > { %1213 = vmatpush3.bf16.msra.mxu1 %v1298_v45 }
  0x42   : > { %718 = vmatmul.mubr.bf16.gmra.mxu0 %v1291_v48 }
  0x43   : > { %782 = vmatmul.mubr.bf16.gmra.mxu1 %v1292_v49  ;;  %725 = vmatprep.mubr.bf16.mxu0 %v1042_v50 }
  0x44   : > { %789 = vmatprep.mubr.bf16.mxu1 %v1044_v51 }
  0x4a   : > { %726 = vmatmul.mubr.bf16.gmra.mxu0 %v1041_v52 }
  0x4b   : > { %790 = vmatmul.mubr.bf16.gmra.mxu1 %v1043_v53  ;;  %1198 = vmatprep.mubr.msk.bf16.mxu0 %vm656_vm0, %v1299_v54 }
  0x4c   : > { %1202 = vmatprep.mubr.msk.bf16.mxu1 %vm656_vm0, %v1300_v55 }
  0x52   : > { %1199 = vmatmul.mubr.msk.bf16.vlgmr.msra.gmra.mxu0 %vm656_vm0, %v1301_v56 }
  0x53   : > { %1203 = vmatmul.mubr.msk.bf16.vlgmr.msra.gmra.mxu1 %vm656_vm0, %v1302_v57 }
  0xf2   : > { %v1118_v58 = vpop.f32.mrf.mxu0 }
  0xf3   : > { %v1158_v59 = vpop.f32.mrf.mxu1 }
  0xf4   : > { %v1119_v60 = vpop.f32.mrf.mxu0 }
  0xf5   : > { %v1159_v61 = vpop.f32.mrf.mxu1  ;;  %v1120_v19 = vadd.f32 %v1119_v60, %v1118_v58 }
  0xf6   : > { %v1121_v62 = vpop.f32.mrf.mxu0  ;;  %v1160_v39 = vadd.f32 %v1159_v61, %v1158_v59 }
  0xf7   : > { %v1161_v63 = vpop.f32.mrf.mxu1  ;;  %v704_v29 = vadd.f32 %v1120_v19, %v1025_v21 }
  0xf8   : > { %v1122_v0 = vpop.f32.mrf.mxu0 }
  0xf9   : > { %v1162_v1 = vpop.f32.mrf.mxu1  ;;  %v1123_v31 = vadd.f32 %v1122_v0, %v1121_v62  ;;  %v768_v50 = vadd.f32 %v1160_v39, %v704_v29 }
  0xfa   : > { %v1124_v2 = vpop.f32.mrf.mxu0  ;;  %v1163_v55 = vadd.f32 %v1162_v1, %v1161_v63 }
  0xfb   : > { %v1164_v3 = vpop.f32.mrf.mxu1  ;;  %v707_v46 = vadd.f32 %v1123_v31, %v1025_v21 }
  0xfc   : > { %v1125_v4 = vpop.f32.mrf.mxu0 }
  0xfd   : > { %v1165_v5 = vpop.f32.mrf.mxu1  ;;  %v1126_v17 = vadd.f32 %v1125_v4, %v1124_v2  ;;  %v771_v4 = vadd.f32 %v1163_v55, %v707_v46 }
  0xfe   : > { %v1127_v6 = vpop.f32.mrf.mxu0  ;;  %v1166_v32 = vadd.f32 %v1165_v5, %v1164_v3 }
  0xff   : > { %v1167_v7 = vpop.f32.mrf.mxu1  ;;  %v712_v25 = vadd.f32 %v1126_v17, %v1025_v21 }
 0x100   : > { %v1128_v8 = vpop.f32.mrf.mxu0 }
 0x101   : > { %v1168_v9 = vpop.f32.mrf.mxu1  ;;  %v1129_v26 = vadd.f32 %v1128_v8, %v1127_v6  ;;  %v776_v42 = vadd.f32 %v1166_v32, %v712_v25 }
 0x102   : > { %v1130_v10 = vpop.f32.mrf.mxu0  ;;  %v1169_v47 = vadd.f32 %v1168_v9, %v1167_v7 }
 0x103   : > { %v1170_v11 = vpop.f32.mrf.mxu1  ;;  %v715_v40 = vadd.f32 %v1129_v26, %v1025_v21 }
 0x104   : > { %v1131_v12 = vpop.f32.mrf.mxu0 }
 0x105   : > { %v1171_v13 = vpop.f32.mrf.mxu1  ;;  %v1132_v23 = vadd.f32 %v1131_v12, %v1130_v10  ;;  %v779_v59 = vadd.f32 %v1169_v47, %v715_v40 }
 0x106   : > { %v1133_v14 = vpop.f32.mrf.mxu0  ;;  %v1172_v44 = vadd.f32 %v1171_v13, %v1170_v11 }
 0x107   : > { %v1173_v15 = vpop.f32.mrf.mxu1  ;;  %v720_v36 = vadd.f32 %v1132_v23, %v1025_v21 }
 0x108   : > { %v1134_v16 = vpop.f32.mrf.mxu0 }
 0x109   : > { %v1174_v18 = vpop.f32.mrf.mxu1  ;;  %v1135_v37 = vadd.f32 %v1134_v16, %v1133_v14  ;;  %v784_v54 = vadd.f32 %v1172_v44, %v720_v36 }
 0x10a   : > { %v1136_v20 = vpop.f32.mrf.mxu0  ;;  %v1175_v60 = vadd.f32 %v1174_v18, %v1173_v15 }
 0x10b   : > { %v1176_v22 = vpop.f32.mrf.mxu1  ;;  %v723_v51 = vadd.f32 %v1135_v37, %v1025_v21 }
 0x10c   : > { %v1137_v24 = vpop.f32.mrf.mxu0 }
 0x10d   : > { %v1138_v27 = vadd.f32 %v1137_v24, %v1136_v20  ;;  %v1177_v28 = vpop.f32.mrf.mxu1  ;;  %v787_v8 = vadd.f32 %v1175_v60, %v723_v51 }
 0x10e   : > { %v1139_v30 = vpop.f32.mrf.mxu0  ;;  %v1178_v34 = vadd.f32 %v1177_v28, %v1176_v22 }
 0x10f   : > { %v728_v33 = vadd.f32 %v1138_v27, %v1025_v21  ;;  %v1179_v35 = vpop.f32.mrf.mxu1 }
 0x110   : > { %v1140_v38 = vpop.f32.mrf.mxu0 }
 0x111   : > { %v1180_v41 = vpop.f32.mrf.mxu1  ;;  %v792_v43 = vadd.f32 %v1178_v34, %v728_v33 }
 0x112   : > { %v1200_v45 = vpop.f32.mrf.mxu0 }
 0x113   : > { %v840_v48 = vadd.f32 %v1200_v45, %v776_v42  ;;  %v1204_v49 = vpop.f32.mrf.mxu1 }
 0x114   : > { %v856_v52 = vadd.f32 %v1204_v49, %v792_v43  ;;  %v831_v53 = vpop.f32.mrf.mxu0 }
 0x115   : > { %v863_v56 = vmax.f32 %v840_v48, 0.0  ;;  %v832_v57 = vadd.f32 %v831_v53, %v768_v50  ;;  %v847_v58 = vpop.f32.mrf.mxu1 }
 0x116   : > { %v867_v61 = vmax.f32 %v856_v52, 0.0  ;;  %v848_v62 = vadd.f32 %v847_v58, %v784_v54  ;;  %v1201_v0 = vpop.f32.mrf.mxu0 }
 0x117   : > { %v1097_v2 = vpack.c.bf16 %v863_v56, %v863_v56  ;;  %v861_v3 = vmax.f32 %v832_v57, 0.0  ;;  %v843_v63 = vadd.f32 %v1201_v0, %v779_v59  ;;  %v1205_v1 = vpop.f32.mrf.mxu1 }
 0x118   : > { %v1101_v5 = vpack.c.bf16 %v867_v61, %v867_v61  ;;  %v865_v6 = vmax.f32 %v848_v62, 0.0  ;;  %v834_v7 = vpop.f32.mrf.mxu0 }
 0x119   : > { %900 = vst.msk [vmem:[%s1441_s30 + $0x8] sm:$0xf] %vm897_vm1, %v1097_v2  ;;  %v1095_v9 = vpack.c.bf16 %v861_v3, %v861_v3  ;;  %v864_v10 = vmax.f32 %v843_v63, 0.0  ;;  %v835_v11 = vadd.f32 %v834_v7, %v771_v4  ;;  %v850_v12 = vpop.f32.mrf.mxu1 }
 0x11a   : > { %905 = vst.msk [vmem:[%s1441_s30 + $0x18] sm:$0x1] %vm904_vm2, %v1101_v5  ;;  %v1099_v13 = vpack.c.bf16 %v865_v6, %v865_v6  ;;  %v851_v14 = vadd.f32 %v850_v12, %v787_v8 }
 0x11b   : > { %898 = vst.msk [vmem:[%s1441_s30] sm:$0xf] %vm897_vm1, %v1095_v9  ;;  %v1098_v15 = vpack.c.bf16 %v864_v10, %v864_v10  ;;  %v862_v16 = vmax.f32 %v835_v11, 0.0 }
 0x11c   : > { %902 = vst.msk [vmem:[%s1441_s30 + $0x10] sm:$0xf] %vm897_vm1, %v1099_v13  ;;  %v866_v17 = vmax.f32 %v851_v14, 0.0 }
 0x11d   : > { %901 = vst.msk [vmem:[%s1441_s30 + $0xc] sm:$0xf] %vm897_vm1, %v1098_v15  ;;  %v1096_v18 = vpack.c.bf16 %v862_v16, %v862_v16 }
 0x11e   : > { %v1100_v19 = vpack.c.bf16 %v866_v17, %v866_v17 }
 0x11f   : > { %899 = vst.msk [vmem:[%s1441_s30 + $0x4] sm:$0xf] %vm897_vm1, %v1096_v18 }
 0x120   : > { %903 = vst.msk [vmem:[%s1441_s30 + $0x14] sm:$0xf] %vm897_vm1, %v1100_v19 }
 0x121 PF: > { %s13_s14 = sadd.s32 1, %s1325_s14   ;;  %s1470_s12 = smov %s1321_s13 }
 0x122   : > { %p10_p5 = scmp.ge.s32.totalorder %s13_s14, 4   ;;  %s1471_s13 = smov %s1473_s15 }
 0x124   :  { %12 = sbr.rel (!%p10_p5) target bundleno = 2 (0x2), region = 68 }

// kernel: stem_block_forward.21
= control target key start
LH: loop header
LB: loop body
LE: loop exit
PB: predicated region body
PF: predicated region fallthrough
CT: control target
= control target key end

     0   :  { %vm94_vm0 = vcmask 1040384   ;;  %vm95_vm1 = vcmask 517121   ;;  %s284_s0 = inlined_call_operand.vmem [shape: bf16[2,3,2,192], index: 0, kind: input, shape index: {}]   ;;  %s285_s1 = inlined_call_operand.vmem [shape: bf16[2,3,2,192], index: 1, kind: input, shape index: {}]   ;;  %s286_s2 = inlined_call_operand.vmem [shape: bf16[2,2,2,192], index: 2, kind: input, shape index: {}]   ;;  %s287_s4 = inlined_call_operand.vmem [shape: bf16[2,3,2,192], index: 4, kind: input, shape index: {}]   ;;  %s288_s3 = inlined_call_operand.vmem [shape: bf16[2,2,2,192], index: 3, kind: input, shape index: {}]   ;;  %s289_s5 = inlined_call_operand.vmem [shape: bf16[2,2,2,192], index: 5, kind: input, shape index: {}]   ;;  %s290_s6 = inlined_call_operand.vmem [shape: bf16[2,2,2,192], index: 6, kind: output, shape index: {}]  }
   0x1   :  { %v23_v0 = vld [vmem:[%s284_s0] sm:$0x3]  ;;  %v24_v6 = vld [vmem:[%s284_s0 + $0x2] sm:$0x3]  ;;  %v25_v15 = vld [vmem:[%s284_s0 + $0x6] sm:$0x3] }
   0x2   :  { %v27_v1 = vld [vmem:[%s285_s1] sm:$0x3]  ;;  %v28_v7 = vld [vmem:[%s285_s1 + $0x2] sm:$0x3]  ;;  %v29_v16 = vld [vmem:[%s285_s1 + $0x6] sm:$0x3] }
   0x3   :  { %v35_v2 = vld [vmem:[%s287_s4] sm:$0x3]  ;;  %v31_v3 = vmax.bf16 %v27_v1, %v23_v0  ;;  %v32_v9 = vmax.bf16 %v28_v7, %v24_v6  ;;  %v36_v10 = vld [vmem:[%s287_s4 + $0x2] sm:$0x3]  ;;  %v33_v19 = vmax.bf16 %v29_v16, %v25_v15  ;;  %v37_v20 = vld [vmem:[%s287_s4 + $0x6] sm:$0x3] }
   0x4   :  { %v43_v4 = vld [vmem:[%s286_s2] sm:$0x3]  ;;  %v44_v12 = vld [vmem:[%s286_s2 + $0x2] sm:$0x3]  ;;  %v45_v23 = vld [vmem:[%s286_s2 + $0x4] sm:$0x3] }
   0x5   :  { %v39_v5 = vmax.bf16 %v35_v2, %v31_v3  ;;  %v51_v8 = vld [vmem:[%s288_s3] sm:$0x3]  ;;  %v40_v14 = vmax.bf16 %v36_v10, %v32_v9  ;;  %v52_v18 = vld [vmem:[%s288_s3 + $0x2] sm:$0x3]  ;;  %v41_v26 = vmax.bf16 %v37_v20, %v33_v19  ;;  %v26_v27 = vld [vmem:[%s284_s0 + $0x8] sm:$0x3] }
   0x6   :  { %v59_v13 = vld [vmem:[%s289_s5] sm:$0x3]  ;;  %v105_v21 = vld [vmem:[%s284_s0 + $0x2] sm:$0x3]  ;;  %v30_v28 = vld [vmem:[%s285_s1 + $0x8] sm:$0x3] }
   0x7   :  { %v47_v11 = vmax.bf16 %v43_v4, %v39_v5  ;;  %v48_v22 = vmax.bf16 %v44_v12, %v40_v14  ;;  %v60_v25 = vld [vmem:[%s289_s5 + $0x2] sm:$0x3]  ;;  %v53_v31 = vld [vmem:[%s288_s3 + $0x4] sm:$0x3]  ;;  %v34_v32 = vmax.bf16 %v30_v28, %v26_v27  ;;  %v38_v33 = vld [vmem:[%s287_s4 + $0x8] sm:$0x3]  ;;  %v49_v36 = vmax.bf16 %v45_v23, %v41_v26 }
   0x8   :  { %v109_v29 = vld [vmem:[%s285_s1 + $0x2] sm:$0x3]  ;;  %v106_v35 = vld [vmem:[%s284_s0 + $0x4] sm:$0x3]  ;;  %v46_v37 = vld [vmem:[%s286_s2 + $0x6] sm:$0x3] }
   0x9   :  { %v55_v17 = vmax.bf16 %v51_v8, %v47_v11  ;;  %v56_v30 = vmax.bf16 %v52_v18, %v48_v22  ;;  %v113_v38 = vld [vmem:[%s287_s4 + $0x2] sm:$0x3]  ;;  %v61_v40 = vld [vmem:[%s289_s5 + $0x4] sm:$0x3]  ;;  %v42_v41 = vmax.bf16 %v38_v33, %v34_v32  ;;  %v57_v44 = vmax.bf16 %v53_v31, %v49_v36  ;;  %v54_v45 = vld [vmem:[%s288_s3 + $0x6] sm:$0x3] }
   0xa   :  { %v110_v43 = vld [vmem:[%s285_s1 + $0x4] sm:$0x3]  ;;  %vm236_vm2 = vmor %vm95_vm1, %vm94_vm0  ;;  %v107_v48 = vld [vmem:[%s284_s0 + $0x8] sm:$0x3] }
   0xb   :  { %v63_v24 = vmax.bf16 %v59_v13, %v55_v17  ;;  %v64_v39 = vmax.bf16 %v60_v25, %v56_v30  ;;  %v50_v49 = vmax.bf16 %v46_v37, %v42_v41  ;;  %v114_v51 = vld [vmem:[%s287_s4 + $0x4] sm:$0x3]  ;;  %v65_v52 = vmax.bf16 %v61_v40, %v57_v44  ;;  %v62_v53 = vld [vmem:[%s289_s5 + $0x6] sm:$0x3]  ;;  %v111_v55 = vld [vmem:[%s285_s1 + $0x8] sm:$0x3] }
   0xc   :  { %v108_v58 = vld [vmem:[%s284_s0 + $0xa] sm:$0x3]  ;;  %v115_v60 = vld [vmem:[%s287_s4 + $0x8] sm:$0x3] }
   0xd   :  { %v72_v34 = vmax.bf16 %v105_v21, %v63_v24  ;;  %v73_v47 = vmax.bf16 %v106_v35, %v64_v39  ;;  %v58_v56 = vmax.bf16 %v54_v45, %v50_v49  ;;  %v74_v57 = vmax.bf16 %v107_v48, %v65_v52  ;;  %v112_v63 = vld [vmem:[%s285_s1 + $0xa] sm:$0x3] }
   0xe   :  { %v116_v2 = vld [vmem:[%s287_s4 + $0xa] sm:$0x3] }
   0xf   :  { %v81_v42 = vmax.bf16 %v109_v29, %v72_v34  ;;  %v82_v54 = vmax.bf16 %v110_v43, %v73_v47  ;;  %v66_v61 = vmax.bf16 %v62_v53, %v58_v56  ;;  %v83_v62 = vmax.bf16 %v111_v55, %v74_v57 }
  0x11   :  { %v90_v50 = vmax.bf16 %v113_v38, %v81_v42  ;;  %v91_v59 = vmax.bf16 %v114_v51, %v82_v54  ;;  %v75_v0 = vmax.bf16 %v108_v58, %v66_v61  ;;  %v92_v1 = vmax.bf16 %v115_v60, %v83_v62 }
  0x13   :  { %97 = vst.msk [vmem:[%s290_s6] sm:$0x3] %vm236_vm2, %v90_v50  ;;  %98 = vst.msk [vmem:[%s290_s6 + $0x2] sm:$0x3] %vm236_vm2, %v91_v59  ;;  %v84_v3 = vmax.bf16 %v112_v63, %v75_v0 }
  0x14   :  { %99 = vst.msk [vmem:[%s290_s6 + $0x4] sm:$0x3] %vm236_vm2, %v92_v1 }
  0x15   :  { %v93_v4 = vmax.bf16 %v116_v2, %v84_v3 }
  0x17   :  { %100 = vst.msk [vmem:[%s290_s6 + $0x6] sm:$0x3] %vm236_vm2, %v93_v4 }

// kernel: stem_block_forward.20
= control target key start
LH: loop header
LB: loop body
LE: loop exit
PB: predicated region body
PF: predicated region fallthrough
CT: control target
= control target key end

     0   :  { %vm1378_vm0 = vcmask 523264   ;;  %vm1679_vm1 = vcmask 1043456   ;;  %vm1680_vm2 = vcmask 523268   ;;  %s2977_s1 = inlined_call_operand.vmem [shape: bf16[1728,192], index: 1, kind: input, shape index: {}]   ;;  %s2978_s0 = inlined_call_operand.vmem [shape: bf16[8,1728], index: 0, kind: input, shape index: {}]   ;;  %s2979_s2 = inlined_call_operand.vmem [shape: f32[1,192], index: 2, kind: input, shape index: {}]   ;;  %s2980_s3 = inlined_call_operand.vmem [shape: bf16[8,192], index: 3, kind: output, shape index: {}]  }
   0x1   :  { %v1920_v0 = vld [vmem:[%s2977_s1 + $0x74] ss:$8 sps:$4 sm:$0xff]   ;;  %v1922_v1 = vld [vmem:[%s2977_s1 + $0x70] ss:$8 sps:$4 sm:$0xff]   ;;  %v1926_v4 = vld [vmem:[%s2977_s1 + $0x64] ss:$8 sps:$4 sm:$0xff]  }
   0x2   :  { %1382 = vmatprep.subr.bf16.mxu0 %v1920_v0  ;;  %v1923_v2 = vld [vmem:[%s2977_s1 + $0x174] ss:$8 sps:$4 sm:$0xff]   ;;  %v1925_v3 = vld [vmem:[%s2977_s1 + $0x170] ss:$8 sps:$4 sm:$0xff]   ;;  %v1928_v5 = vld [vmem:[%s2977_s1 + $0x60] ss:$8 sps:$4 sm:$0xff]  }
   0x3   :  { %1383 = vmatpush1.bf16.msra.mxu0 %v1922_v1  ;;  %1423 = vmatprep.subr.bf16.mxu1 %v1923_v2  ;;  %v1929_v6 = vld [vmem:[%s2977_s1 + $0x164] ss:$8 sps:$4 sm:$0xff]   ;;  %v1931_v7 = vld [vmem:[%s2977_s1 + $0x160] ss:$8 sps:$4 sm:$0xff]   ;;  %v1932_v8 = vld [vmem:[%s2977_s1 + $0x54] ss:$8 sps:$4 sm:$0xff]  }
   0x4   :  { %1424 = vmatpush1.bf16.msra.mxu1 %v1925_v3  ;;  %1384 = vmatprep.subr.bf16.mxu0 %v1926_v4  ;;  %v1934_v9 = vld [vmem:[%s2977_s1 + $0x50] ss:$8 sps:$4 sm:$0xff]   ;;  %v1935_v10 = vld [vmem:[%s2977_s1 + $0x154] ss:$8 sps:$4 sm:$0xff]   ;;  %v1938_v11 = vld [vmem:[%s2977_s1 + $0x44] ss:$8 sps:$4 sm:$0xff]  }
   0x5   :  { %1425 = vmatprep.subr.bf16.mxu1 %v1929_v6  ;;  %v1937_v12 = vld [vmem:[%s2977_s1 + $0x150] ss:$8 sps:$4 sm:$0xff]   ;;  %v1941_v13 = vld [vmem:[%s2977_s1 + $0x144] ss:$8 sps:$4 sm:$0xff]   ;;  %v1940_v14 = vld [vmem:[%s2977_s1 + $0x40] ss:$8 sps:$4 sm:$0xff]  }
   0x6   :  { %v1944_v15 = vld [vmem:[%s2977_s1 + $0x34] ss:$8 sps:$4 sm:$0xff]   ;;  %v1943_v16 = vld [vmem:[%s2977_s1 + $0x140] ss:$8 sps:$4 sm:$0xff]   ;;  %v1946_v18 = vld [vmem:[%s2977_s1 + $0x30] ss:$8 sps:$4 sm:$0xff]  }
   0x7   :  { %1385 = vmatpush1.bf16.msra.mxu0 %v1928_v5  ;;  %v1947_v17 = vld [vmem:[%s2977_s1 + $0x134] ss:$8 sps:$4 sm:$0xff]   ;;  %v1950_v19 = vld [vmem:[%s2977_s1 + $0x24] ss:$8 sps:$4 sm:$0xff]   ;;  %v1949_v20 = vld [vmem:[%s2977_s1 + $0x130] ss:$8 sps:$4 sm:$0xff]  }
   0x8   :  { %1386 = vmatprep.subr.bf16.mxu0 %v1932_v8  ;;  %1426 = vmatpush1.bf16.msra.mxu1 %v1931_v7  ;;  %v1953_v21 = vld [vmem:[%s2977_s1 + $0x124] ss:$8 sps:$4 sm:$0xff]   ;;  %v1952_v22 = vld [vmem:[%s2977_s1 + $0x20] ss:$8 sps:$4 sm:$0xff]   ;;  %v1956_v23 = vld [vmem:[%s2977_s1 + $0x14] ss:$8 sps:$4 sm:$0xff]  }
   0x9   :  { %1427 = vmatprep.subr.bf16.mxu1 %v1935_v10  ;;  %v1955_v24 = vld [vmem:[%s2977_s1 + $0x120] ss:$8 sps:$4 sm:$0xff]   ;;  %v1959_v25 = vld [vmem:[%s2977_s1 + $0x114] ss:$8 sps:$4 sm:$0xff]   ;;  %v1958_v26 = vld [vmem:[%s2977_s1 + $0x10] ss:$8 sps:$4 sm:$0xff]  }
   0xa   :  { %v1962_v27 = vld [vmem:[%s2977_s1 + $0x4] ss:$8 sps:$4 sm:$0xff]   ;;  %v1961_v28 = vld [vmem:[%s2977_s1 + $0x110] ss:$8 sps:$4 sm:$0xff]   ;;  %v1964_v30 = vld [vmem:[%s2977_s1] ss:$8 sps:$4 sm:$0xff]  }
   0xb   :  { %1387 = vmatpush1.bf16.msra.mxu0 %v1934_v9  ;;  %v1965_v29 = vld [vmem:[%s2977_s1 + $0x104] ss:$8 sps:$4 sm:$0xff]   ;;  %v1968_v31 = vld [vmem:[%s2977_s1 + $0xf4] ss:$8 sps:$4 sm:$0xff]   ;;  %v1967_v32 = vld [vmem:[%s2977_s1 + $0x100] ss:$8 sps:$4 sm:$0xff]  }
   0xc   :  { %1388 = vmatprep.subr.bf16.mxu0 %v1938_v11  ;;  %1428 = vmatpush1.bf16.msra.mxu1 %v1937_v12  ;;  %v1971_v33 = vld [vmem:[%s2977_s1 + $0x1f4] ss:$8 sps:$4 sm:$0xff]   ;;  %v1970_v34 = vld [vmem:[%s2977_s1 + $0xf0] ss:$8 sps:$4 sm:$0xff]   ;;  %v1974_v35 = vld [vmem:[%s2977_s1 + $0xe4] ss:$8 sps:$4 sm:$0xff]  }
   0xd   :  { %1429 = vmatprep.subr.bf16.mxu1 %v1941_v13  ;;  %v1973_v36 = vld [vmem:[%s2977_s1 + $0x1f0] ss:$8 sps:$4 sm:$0xff]   ;;  %v1977_v37 = vld [vmem:[%s2977_s1 + $0x1e4] ss:$8 sps:$4 sm:$0xff]   ;;  %v1976_v38 = vld [vmem:[%s2977_s1 + $0xe0] ss:$8 sps:$4 sm:$0xff]  }
   0xe   :  { %v1980_v39 = vld [vmem:[%s2977_s1 + $0xd4] ss:$8 sps:$4 sm:$0xff]   ;;  %v1979_v40 = vld [vmem:[%s2977_s1 + $0x1e0] ss:$8 sps:$4 sm:$0xff]   ;;  %v1982_v42 = vld [vmem:[%s2977_s1 + $0xd0] ss:$8 sps:$4 sm:$0xff]  }
   0xf   :  { %1389 = vmatpush1.bf16.msra.mxu0 %v1940_v14  ;;  %v1983_v41 = vld [vmem:[%s2977_s1 + $0x1d4] ss:$8 sps:$4 sm:$0xff]   ;;  %v1986_v43 = vld [vmem:[%s2977_s1 + $0xc4] ss:$8 sps:$4 sm:$0xff]   ;;  %v1985_v44 = vld [vmem:[%s2977_s1 + $0x1d0] ss:$8 sps:$4 sm:$0xff]  }
  0x10   :  { %1390 = vmatprep.subr.bf16.mxu0 %v1944_v15  ;;  %1430 = vmatpush1.bf16.msra.mxu1 %v1943_v16  ;;  %v1989_v45 = vld [vmem:[%s2977_s1 + $0x1c4] ss:$8 sps:$4 sm:$0xff]   ;;  %v1988_v47 = vld [vmem:[%s2977_s1 + $0xc0] ss:$8 sps:$4 sm:$0xff]   ;;  %v1992_v49 = vld [vmem:[%s2977_s1 + $0xb4] ss:$8 sps:$4 sm:$0xff]  }
  0x11   :  { %1431 = vmatprep.subr.bf16.mxu1 %v1947_v17  ;;  %v15_v46 = vld [vmem:[%s2978_s0] sm:$0xff]  ;;  %v16_v50 = vld [vmem:[%s2978_s0 + $0x8] sm:$0xff]  ;;  %v1995_v53 = vld [vmem:[%s2977_s1 + $0x1b4] ss:$8 sps:$4 sm:$0xff]  }
  0x12   :  { %v1688_v48 = vcombine.high %v15_v46, %v15_v46  ;;  %v1991_v51 = vld [vmem:[%s2977_s1 + $0x1c0] ss:$8 sps:$4 sm:$0xff]   ;;  %v1690_v52 = vcombine.high %v16_v50, %v16_v50  ;;  %v1994_v54 = vld [vmem:[%s2977_s1 + $0xb0] ss:$8 sps:$4 sm:$0xff]   ;;  %v1998_v55 = vld [vmem:[%s2977_s1 + $0xa4] ss:$8 sps:$4 sm:$0xff]   ;;  %v1687_v5 = vcombine.low %v15_v46, %v15_v46  ;;  %v1689_v8 = vcombine.low %v16_v50, %v16_v50 }
  0x13   :  { %1391 = vmatpush1.bf16.msra.mxu0 %v1946_v18  ;;  %v1997_v56 = vld [vmem:[%s2977_s1 + $0x1b0] ss:$8 sps:$4 sm:$0xff]   ;;  %v2001_v57 = vld [vmem:[%s2977_s1 + $0x1a4] ss:$8 sps:$4 sm:$0xff]   ;;  %v2000_v58 = vld [vmem:[%s2977_s1 + $0xa0] ss:$8 sps:$4 sm:$0xff]  }
  0x14   :  { %1392 = vmatprep.subr.bf16.mxu0 %v1950_v19  ;;  %1432 = vmatpush1.bf16.msra.mxu1 %v1949_v20  ;;  %v2004_v59 = vld [vmem:[%s2977_s1 + $0x94] ss:$8 sps:$4 sm:$0xff]   ;;  %v2003_v60 = vld [vmem:[%s2977_s1 + $0x1a0] ss:$8 sps:$4 sm:$0xff]   ;;  %v2006_v62 = vld [vmem:[%s2977_s1 + $0x90] ss:$8 sps:$4 sm:$0xff]  }
  0x15   :  { %1433 = vmatprep.subr.bf16.mxu1 %v1953_v21  ;;  %1414 = vmatprep.mubr.bf16.mxu0 %v1688_v48  ;;  %v2007_v61 = vld [vmem:[%s2977_s1 + $0x194] ss:$8 sps:$4 sm:$0xff]   ;;  %v2010_v63 = vld [vmem:[%s2977_s1 + $0x84] ss:$8 sps:$4 sm:$0xff]   ;;  %v2009_v0 = vld [vmem:[%s2977_s1 + $0x190] ss:$8 sps:$4 sm:$0xff]  }
  0x16   :  { %1455 = vmatprep.mubr.bf16.mxu1 %v1690_v52  ;;  %v2013_v1 = vld [vmem:[%s2977_s1 + $0x184] ss:$8 sps:$4 sm:$0xff]   ;;  %v2012_v2 = vld [vmem:[%s2977_s1 + $0x80] ss:$8 sps:$4 sm:$0xff]   ;;  %v2020_v3 = vld [vmem:[%s2977_s1 + $0x274] ss:$8 sps:$4 sm:$0xff]  }
  0x17   :  { %1393 = vmatpush1.bf16.msra.mxu0 %v1952_v22  ;;  %v2017_v4 = vld [vmem:[%s2977_s1 + $0x180] ss:$8 sps:$4 sm:$0xff]   ;;  %v2025_v6 = vld [vmem:[%s2977_s1 + $0x374] ss:$8 sps:$4 sm:$0xff]   ;;  %v2018_v7 = vld [vmem:[%s2977_s1 + $0x270] ss:$8 sps:$4 sm:$0xff]  }
  0x18   :  { %1394 = vmatprep.subr.bf16.mxu0 %v1956_v23  ;;  %1434 = vmatpush1.bf16.msra.mxu1 %v1955_v24  ;;  %v2028_v9 = vld [vmem:[%s2977_s1 + $0x264] ss:$8 sps:$4 sm:$0xff]   ;;  %v2023_v10 = vld [vmem:[%s2977_s1 + $0x370] ss:$8 sps:$4 sm:$0xff]   ;;  %v2026_v12 = vld [vmem:[%s2977_s1 + $0x260] ss:$8 sps:$4 sm:$0xff]  }
  0x19   :  { %1435 = vmatprep.subr.bf16.mxu1 %v1959_v25  ;;  %v2031_v11 = vld [vmem:[%s2977_s1 + $0x364] ss:$8 sps:$4 sm:$0xff]   ;;  %v2034_v13 = vld [vmem:[%s2977_s1 + $0x254] ss:$8 sps:$4 sm:$0xff]   ;;  %v2029_v14 = vld [vmem:[%s2977_s1 + $0x360] ss:$8 sps:$4 sm:$0xff]  }
  0x1a   :  { %v2037_v15 = vld [vmem:[%s2977_s1 + $0x354] ss:$8 sps:$4 sm:$0xff]   ;;  %v2032_v16 = vld [vmem:[%s2977_s1 + $0x250] ss:$8 sps:$4 sm:$0xff]   ;;  %v2040_v17 = vld [vmem:[%s2977_s1 + $0x244] ss:$8 sps:$4 sm:$0xff]  }
  0x1b   :  { %1395 = vmatpush1.bf16.msra.mxu0 %v1958_v26  ;;  %v2035_v18 = vld [vmem:[%s2977_s1 + $0x350] ss:$8 sps:$4 sm:$0xff]   ;;  %v2043_v19 = vld [vmem:[%s2977_s1 + $0x344] ss:$8 sps:$4 sm:$0xff]   ;;  %v2038_v20 = vld [vmem:[%s2977_s1 + $0x240] ss:$8 sps:$4 sm:$0xff]  }
  0x1c   :  { %1396 = vmatprep.subr.bf16.mxu0 %v1962_v27  ;;  %1436 = vmatpush1.bf16.msra.mxu1 %v1961_v28  ;;  %v2046_v21 = vld [vmem:[%s2977_s1 + $0x234] ss:$8 sps:$4 sm:$0xff]   ;;  %v2041_v22 = vld [vmem:[%s2977_s1 + $0x340] ss:$8 sps:$4 sm:$0xff]   ;;  %v2044_v24 = vld [vmem:[%s2977_s1 + $0x230] ss:$8 sps:$4 sm:$0xff]  }
  0x1d   :  { %1437 = vmatprep.subr.bf16.mxu1 %v1965_v29  ;;  %v2049_v23 = vld [vmem:[%s2977_s1 + $0x334] ss:$8 sps:$4 sm:$0xff]   ;;  %v2052_v25 = vld [vmem:[%s2977_s1 + $0x224] ss:$8 sps:$4 sm:$0xff]   ;;  %v2047_v26 = vld [vmem:[%s2977_s1 + $0x330] ss:$8 sps:$4 sm:$0xff]  }
  0x1e   :  { %v2055_v27 = vld [vmem:[%s2977_s1 + $0x324] ss:$8 sps:$4 sm:$0xff]   ;;  %v2050_v28 = vld [vmem:[%s2977_s1 + $0x220] ss:$8 sps:$4 sm:$0xff]   ;;  %v2058_v29 = vld [vmem:[%s2977_s1 + $0x214] ss:$8 sps:$4 sm:$0xff]  }
  0x1f   :  { %1397 = vmatpush1.bf16.msra.mxu0 %v1964_v30  ;;  %v2053_v30 = vld [vmem:[%s2977_s1 + $0x320] ss:$8 sps:$4 sm:$0xff]   ;;  %v2071_v46 = vld [vmem:[%s2977_s1 + $0x3f0] ss:$8 sps:$4 sm:$0xff]   ;;  %vm1681_vm3 = vmor %vm1680_vm2, %vm1679_vm1 }
  0x20   :  { %1398 = vmatprep.subr.bf16.mxu0 %v1968_v31  ;;  %1438 = vmatpush1.bf16.msra.mxu1 %v1967_v32  ;;  %v2061_v31 = vld [vmem:[%s2977_s1 + $0x314] ss:$8 sps:$4 sm:$0xff]   ;;  %v2074_v48 = vld [vmem:[%s2977_s1 + $0x2e0] ss:$8 sps:$4 sm:$0xff]   ;;  %v2080_v52 = vld [vmem:[%s2977_s1 + $0x2d0] ss:$8 sps:$4 sm:$0xff]  }
  0x21   :  { %1439 = vmatprep.subr.bf16.mxu1 %v1971_v33  ;;  %v2557_v32 = vld [vmem:[%s2978_s0 + $0x10] sm:$0xff]  ;;  %v2077_v50 = vld [vmem:[%s2977_s1 + $0x3e0] ss:$8 sps:$4 sm:$0xff]  }
  0x22   :  { %v2056_v33 = vld [vmem:[%s2977_s1 + $0x210] ss:$8 sps:$4 sm:$0xff]  }
  0x23   :  { %1399 = vmatpush2.bf16.msra.mxu0 %v1970_v34  ;;  %v1692_v34 = vcombine.high %v2557_v32, %v2557_v32 }
  0x24   :  { %1400 = vmatprep.subr.bf16.mxu0 %v1974_v35  ;;  %1440 = vmatpush2.bf16.msra.mxu1 %v1973_v36  ;;  %v2567_v35 = vld [vmem:[%s2978_s0 + $0x18] sm:$0xff]  ;;  %v2064_v36 = vld [vmem:[%s2977_s1 + $0x204] ss:$8 sps:$4 sm:$0xff]  }
  0x25   :  { %1441 = vmatprep.subr.bf16.mxu1 %v1977_v37  ;;  %v1694_v37 = vcombine.high %v2567_v35, %v2567_v35 }
  0x27   :  { %1401 = vmatpush2.bf16.msra.mxu0 %v1976_v38  ;;  %v2059_v38 = vld [vmem:[%s2977_s1 + $0x310] ss:$8 sps:$4 sm:$0xff]  }
  0x28   :  { %1402 = vmatprep.subr.bf16.mxu0 %v1980_v39  ;;  %1442 = vmatpush2.bf16.msra.mxu1 %v1979_v40  ;;  %v2067_v39 = vld [vmem:[%s2977_s1 + $0x304] ss:$8 sps:$4 sm:$0xff]   ;;  %v2062_v40 = vld [vmem:[%s2977_s1 + $0x200] ss:$8 sps:$4 sm:$0xff]  }
  0x29   :  { %1443 = vmatprep.subr.bf16.mxu1 %v1983_v41  ;;  %v2070_v41 = vld [vmem:[%s2977_s1 + $0x2f4] ss:$8 sps:$4 sm:$0xff]  }
  0x2b   :  { %1403 = vmatpush2.bf16.msra.mxu0 %v1982_v42  ;;  %v2065_v42 = vld [vmem:[%s2977_s1 + $0x300] ss:$8 sps:$4 sm:$0xff]  }
  0x2c   :  { %1404 = vmatprep.subr.bf16.mxu0 %v1986_v43  ;;  %1444 = vmatpush2.bf16.msra.mxu1 %v1985_v44  ;;  %v2073_v43 = vld [vmem:[%s2977_s1 + $0x3f4] ss:$8 sps:$4 sm:$0xff]   ;;  %v2068_v44 = vld [vmem:[%s2977_s1 + $0x2f0] ss:$8 sps:$4 sm:$0xff]  }
  0x2d   :  { %1445 = vmatprep.subr.bf16.mxu1 %v1989_v45  ;;  %v2076_v45 = vld [vmem:[%s2977_s1 + $0x2e4] ss:$8 sps:$4 sm:$0xff]  }
  0x2f   :  { %1405 = vmatpush2.bf16.msra.mxu0 %v1988_v47  ;;  %v2079_v47 = vld [vmem:[%s2977_s1 + $0x3e4] ss:$8 sps:$4 sm:$0xff]  }
  0x30   :  { %1406 = vmatprep.subr.bf16.mxu0 %v1992_v49  ;;  %1446 = vmatpush2.bf16.msra.mxu1 %v1991_v51  ;;  %v2082_v49 = vld [vmem:[%s2977_s1 + $0x2d4] ss:$8 sps:$4 sm:$0xff]  }
  0x31   :  { %1447 = vmatprep.subr.bf16.mxu1 %v1995_v53  ;;  %v2085_v51 = vld [vmem:[%s2977_s1 + $0x3d4] ss:$8 sps:$4 sm:$0xff]   ;;  %v2088_v53 = vld [vmem:[%s2977_s1 + $0x2c4] ss:$8 sps:$4 sm:$0xff]  }
  0x33   :  { %1407 = vmatpush2.bf16.msra.mxu0 %v1994_v54  ;;  %v2083_v54 = vld [vmem:[%s2977_s1 + $0x3d0] ss:$8 sps:$4 sm:$0xff]  }
  0x34   :  { %1408 = vmatprep.subr.bf16.mxu0 %v1998_v55  ;;  %1448 = vmatpush2.bf16.msra.mxu1 %v1997_v56  ;;  %v2091_v55 = vld [vmem:[%s2977_s1 + $0x3c4] ss:$8 sps:$4 sm:$0xff]   ;;  %v2086_v56 = vld [vmem:[%s2977_s1 + $0x2c0] ss:$8 sps:$4 sm:$0xff]  }
  0x35   :  { %1449 = vmatprep.subr.bf16.mxu1 %v2001_v57  ;;  %v2094_v57 = vld [vmem:[%s2977_s1 + $0x2b4] ss:$8 sps:$4 sm:$0xff]  }
  0x37   :  { %1409 = vmatpush2.bf16.msra.mxu0 %v2000_v58  ;;  %v2089_v58 = vld [vmem:[%s2977_s1 + $0x3c0] ss:$8 sps:$4 sm:$0xff]  }
  0x38   :  { %1410 = vmatprep.subr.bf16.mxu0 %v2004_v59  ;;  %1450 = vmatpush2.bf16.msra.mxu1 %v2003_v60  ;;  %v2097_v59 = vld [vmem:[%s2977_s1 + $0x3b4] ss:$8 sps:$4 sm:$0xff]   ;;  %v2092_v60 = vld [vmem:[%s2977_s1 + $0x2b0] ss:$8 sps:$4 sm:$0xff]  }
  0x39   :  { %1451 = vmatprep.subr.bf16.mxu1 %v2007_v61  ;;  %v2100_v61 = vld [vmem:[%s2977_s1 + $0x2a4] ss:$8 sps:$4 sm:$0xff]  }
  0x3b   :  { %1411 = vmatpush2.bf16.msra.mxu0 %v2006_v62  ;;  %v2095_v62 = vld [vmem:[%s2977_s1 + $0x3b0] ss:$8 sps:$4 sm:$0xff]  }
  0x3c   :  { %1412 = vmatprep.subr.bf16.mxu0 %v2010_v63  ;;  %1452 = vmatpush2.bf16.msra.mxu1 %v2009_v0  ;;  %v2103_v63 = vld [vmem:[%s2977_s1 + $0x3a4] ss:$8 sps:$4 sm:$0xff]   ;;  %v2098_v0 = vld [vmem:[%s2977_s1 + $0x2a0] ss:$8 sps:$4 sm:$0xff]  }
  0x3d   :  { %1453 = vmatprep.subr.bf16.mxu1 %v2013_v1  ;;  %v2106_v1 = vld [vmem:[%s2977_s1 + $0x294] ss:$8 sps:$4 sm:$0xff]  }
  0x3f   :  { %1413 = vmatpush2.bf16.msra.mxu0 %v2012_v2  ;;  %v2101_v2 = vld [vmem:[%s2977_s1 + $0x3a0] ss:$8 sps:$4 sm:$0xff]  }
  0x40   :  { %1464 = vmatprep.subr.bf16.mxu0 %v2020_v3  ;;  %1454 = vmatpush2.bf16.msra.mxu1 %v2017_v4  ;;  %v2109_v3 = vld [vmem:[%s2977_s1 + $0x394] ss:$8 sps:$4 sm:$0xff]   ;;  %v2104_v4 = vld [vmem:[%s2977_s1 + $0x290] ss:$8 sps:$4 sm:$0xff]  }
  0x41   :  { %1505 = vmatprep.subr.bf16.mxu1 %v2025_v6  ;;  %v2107_v6 = vld [vmem:[%s2977_s1 + $0x390] ss:$8 sps:$4 sm:$0xff]  }
  0x42   :  { %1415 = vmatmul.mubr.bf16.vlgmr.msra.gmra.mxu0 %v1687_v5  ;;  %v2112_v5 = vld [vmem:[%s2977_s1 + $0x284] ss:$8 sps:$4 sm:$0xff]  }
  0x43   :  { %1465 = vmatpush1.bf16.msra.mxu0 %v2018_v7  ;;  %1456 = vmatmul.mubr.bf16.vlgmr.msra.gmra.mxu1 %v1689_v8  ;;  %v2115_v7 = vld [vmem:[%s2977_s1 + $0x384] ss:$8 sps:$4 sm:$0xff]   ;;  %v2110_v8 = vld [vmem:[%s2977_s1 + $0x280] ss:$8 sps:$4 sm:$0xff]  }
  0x44   :  { %1466 = vmatprep.subr.bf16.mxu0 %v2028_v9  ;;  %1506 = vmatpush1.bf16.msra.mxu1 %v2023_v10  ;;  %v2120_v9 = vld [vmem:[%s2977_s1 + $0x474] ss:$8 sps:$4 sm:$0xff]   ;;  %v2113_v10 = vld [vmem:[%s2977_s1 + $0x380] ss:$8 sps:$4 sm:$0xff]  }
  0x45   :  { %1507 = vmatprep.subr.bf16.mxu1 %v2031_v11  ;;  %1496 = vmatprep.mubr.bf16.mxu0 %v1692_v34  ;;  %v1691_v11 = vcombine.low %v2557_v32, %v2557_v32  ;;  %v2141_v32 = vld [vmem:[%s2977_s1 + $0x540] ss:$8 sps:$4 sm:$0xff]   ;;  %v2144_v34 = vld [vmem:[%s2977_s1 + $0x430] ss:$8 sps:$4 sm:$0xff]  }
  0x46   :  { %1537 = vmatprep.mubr.bf16.mxu1 %v1694_v37  ;;  %v2155_v37 = vld [vmem:[%s2977_s1 + $0x524] ss:$8 sps:$4 sm:$0xff]  }
  0x47   :  { %1467 = vmatpush1.bf16.msra.mxu0 %v2026_v12  ;;  %v2125_v12 = vld [vmem:[%s2977_s1 + $0x574] ss:$8 sps:$4 sm:$0xff]  }
  0x48   :  { %1468 = vmatprep.subr.bf16.mxu0 %v2034_v13  ;;  %1508 = vmatpush1.bf16.msra.mxu1 %v2029_v14  ;;  %v2118_v13 = vld [vmem:[%s2977_s1 + $0x470] ss:$8 sps:$4 sm:$0xff]   ;;  %v1693_v14 = vcombine.low %v2567_v35, %v2567_v35  ;;  %v2152_v35 = vld [vmem:[%s2977_s1 + $0x424] ss:$8 sps:$4 sm:$0xff]  }
  0x49   :  { %1509 = vmatprep.subr.bf16.mxu1 %v2037_v15  ;;  %v2128_v15 = vld [vmem:[%s2977_s1 + $0x464] ss:$8 sps:$4 sm:$0xff]  }
  0x4b   :  { %1469 = vmatpush1.bf16.msra.mxu0 %v2032_v16  ;;  %v2123_v16 = vld [vmem:[%s2977_s1 + $0x570] ss:$8 sps:$4 sm:$0xff]  }
  0x4c   :  { %1470 = vmatprep.subr.bf16.mxu0 %v2040_v17  ;;  %1510 = vmatpush1.bf16.msra.mxu1 %v2035_v18  ;;  %v2704_v17 = vld [vmem:[%s2978_s0 + $0x20] sm:$0xff] }
  0x4d   :  { %1511 = vmatprep.subr.bf16.mxu1 %v2043_v19  ;;  %v2126_v18 = vld [vmem:[%s2977_s1 + $0x460] ss:$8 sps:$4 sm:$0xff]   ;;  %v2131_v19 = vld [vmem:[%s2977_s1 + $0x564] ss:$8 sps:$4 sm:$0xff]  }
  0x4f   :  { %1471 = vmatpush1.bf16.msra.mxu0 %v2038_v20  ;;  %v1696_v20 = vcombine.high %v2704_v17, %v2704_v17 }
  0x50   :  { %1472 = vmatprep.subr.bf16.mxu0 %v2046_v21  ;;  %1512 = vmatpush1.bf16.msra.mxu1 %v2041_v22  ;;  %v2717_v21 = vld [vmem:[%s2978_s0 + $0x28] sm:$0xff]  ;;  %v2134_v22 = vld [vmem:[%s2977_s1 + $0x454] ss:$8 sps:$4 sm:$0xff]  }
  0x51   :  { %1513 = vmatprep.subr.bf16.mxu1 %v2049_v23  ;;  %v1698_v23 = vcombine.high %v2717_v21, %v2717_v21 }
  0x53   :  { %1473 = vmatpush1.bf16.msra.mxu0 %v2044_v24  ;;  %v2129_v24 = vld [vmem:[%s2977_s1 + $0x560] ss:$8 sps:$4 sm:$0xff]  }
  0x54   :  { %1474 = vmatprep.subr.bf16.mxu0 %v2052_v25  ;;  %1514 = vmatpush1.bf16.msra.mxu1 %v2047_v26  ;;  %v2137_v25 = vld [vmem:[%s2977_s1 + $0x554] ss:$8 sps:$4 sm:$0xff]   ;;  %v2132_v26 = vld [vmem:[%s2977_s1 + $0x450] ss:$8 sps:$4 sm:$0xff]  }
  0x55   :  { %1515 = vmatprep.subr.bf16.mxu1 %v2055_v27  ;;  %v2140_v27 = vld [vmem:[%s2977_s1 + $0x444] ss:$8 sps:$4 sm:$0xff]  }
  0x57   :  { %1475 = vmatpush1.bf16.msra.mxu0 %v2050_v28  ;;  %v2135_v28 = vld [vmem:[%s2977_s1 + $0x550] ss:$8 sps:$4 sm:$0xff]  }
  0x58   :  { %1476 = vmatprep.subr.bf16.mxu0 %v2058_v29  ;;  %1516 = vmatpush1.bf16.msra.mxu1 %v2053_v30  ;;  %v2143_v29 = vld [vmem:[%s2977_s1 + $0x544] ss:$8 sps:$4 sm:$0xff]   ;;  %v2138_v30 = vld [vmem:[%s2977_s1 + $0x440] ss:$8 sps:$4 sm:$0xff]  }
  0x59   :  { %1517 = vmatprep.subr.bf16.mxu1 %v2061_v31  ;;  %v2146_v31 = vld [vmem:[%s2977_s1 + $0x434] ss:$8 sps:$4 sm:$0xff]  }
  0x5b   :  { %1477 = vmatpush1.bf16.msra.mxu0 %v2056_v33  ;;  %v2149_v33 = vld [vmem:[%s2977_s1 + $0x534] ss:$8 sps:$4 sm:$0xff]  }
  0x5c   :  { %1478 = vmatprep.subr.bf16.mxu0 %v2064_v36  ;;  %1518 = vmatpush1.bf16.msra.mxu1 %v2059_v38  ;;  %v2147_v36 = vld [vmem:[%s2977_s1 + $0x530] ss:$8 sps:$4 sm:$0xff]   ;;  %v2150_v38 = vld [vmem:[%s2977_s1 + $0x420] ss:$8 sps:$4 sm:$0xff]  }
  0x5d   :  { %1519 = vmatprep.subr.bf16.mxu1 %v2067_v39  ;;  %v2158_v39 = vld [vmem:[%s2977_s1 + $0x414] ss:$8 sps:$4 sm:$0xff]  }
  0x5f   :  { %1479 = vmatpush1.bf16.msra.mxu0 %v2062_v40  ;;  %v2153_v40 = vld [vmem:[%s2977_s1 + $0x520] ss:$8 sps:$4 sm:$0xff]  }
  0x60   :  { %1480 = vmatprep.subr.bf16.mxu0 %v2070_v41  ;;  %1520 = vmatpush1.bf16.msra.mxu1 %v2065_v42  ;;  %v2161_v41 = vld [vmem:[%s2977_s1 + $0x514] ss:$8 sps:$4 sm:$0xff]   ;;  %v2156_v42 = vld [vmem:[%s2977_s1 + $0x410] ss:$8 sps:$4 sm:$0xff]  }
  0x61   :  { %1521 = vmatprep.subr.bf16.mxu1 %v2073_v43  ;;  %v2164_v43 = vld [vmem:[%s2977_s1 + $0x404] ss:$8 sps:$4 sm:$0xff]  }
  0x63   :  { %1481 = vmatpush2.bf16.msra.mxu0 %v2068_v44  ;;  %v2159_v44 = vld [vmem:[%s2977_s1 + $0x510] ss:$8 sps:$4 sm:$0xff]  }
  0x64   :  { %1482 = vmatprep.subr.bf16.mxu0 %v2076_v45  ;;  %1522 = vmatpush2.bf16.msra.mxu1 %v2071_v46  ;;  %v2167_v45 = vld [vmem:[%s2977_s1 + $0x504] ss:$8 sps:$4 sm:$0xff]   ;;  %v2162_v46 = vld [vmem:[%s2977_s1 + $0x400] ss:$8 sps:$4 sm:$0xff]  }
  0x65   :  { %1523 = vmatprep.subr.bf16.mxu1 %v2079_v47  ;;  %v2170_v47 = vld [vmem:[%s2977_s1 + $0x4f4] ss:$8 sps:$4 sm:$0xff]  }
  0x67   :  { %1483 = vmatpush2.bf16.msra.mxu0 %v2074_v48  ;;  %v2165_v48 = vld [vmem:[%s2977_s1 + $0x500] ss:$8 sps:$4 sm:$0xff]  }
  0x68   :  { %1484 = vmatprep.subr.bf16.mxu0 %v2082_v49  ;;  %1524 = vmatpush2.bf16.msra.mxu1 %v2077_v50  ;;  %v2173_v49 = vld [vmem:[%s2977_s1 + $0x5f4] ss:$8 sps:$4 sm:$0xff]   ;;  %v2168_v50 = vld [vmem:[%s2977_s1 + $0x4f0] ss:$8 sps:$4 sm:$0xff]  }
  0x69   :  { %1525 = vmatprep.subr.bf16.mxu1 %v2085_v51  ;;  %v2176_v51 = vld [vmem:[%s2977_s1 + $0x4e4] ss:$8 sps:$4 sm:$0xff]  }
  0x6b   :  { %1485 = vmatpush2.bf16.msra.mxu0 %v2080_v52  ;;  %v2171_v52 = vld [vmem:[%s2977_s1 + $0x5f0] ss:$8 sps:$4 sm:$0xff]  }
  0x6c   :  { %1486 = vmatprep.subr.bf16.mxu0 %v2088_v53  ;;  %1526 = vmatpush2.bf16.msra.mxu1 %v2083_v54  ;;  %v2179_v53 = vld [vmem:[%s2977_s1 + $0x5e4] ss:$8 sps:$4 sm:$0xff]   ;;  %v2174_v54 = vld [vmem:[%s2977_s1 + $0x4e0] ss:$8 sps:$4 sm:$0xff]  }
  0x6d   :  { %1527 = vmatprep.subr.bf16.mxu1 %v2091_v55  ;;  %v2182_v55 = vld [vmem:[%s2977_s1 + $0x4d4] ss:$8 sps:$4 sm:$0xff]  }
  0x6f   :  { %1487 = vmatpush2.bf16.msra.mxu0 %v2086_v56  ;;  %v2177_v56 = vld [vmem:[%s2977_s1 + $0x5e0] ss:$8 sps:$4 sm:$0xff]  }
  0x70   :  { %1488 = vmatprep.subr.bf16.mxu0 %v2094_v57  ;;  %1528 = vmatpush2.bf16.msra.mxu1 %v2089_v58  ;;  %v2185_v57 = vld [vmem:[%s2977_s1 + $0x5d4] ss:$8 sps:$4 sm:$0xff]   ;;  %v2180_v58 = vld [vmem:[%s2977_s1 + $0x4d0] ss:$8 sps:$4 sm:$0xff]  }
  0x71   :  { %1529 = vmatprep.subr.bf16.mxu1 %v2097_v59  ;;  %v2188_v59 = vld [vmem:[%s2977_s1 + $0x4c4] ss:$8 sps:$4 sm:$0xff]  }
  0x73   :  { %1489 = vmatpush2.bf16.msra.mxu0 %v2092_v60  ;;  %v2183_v60 = vld [vmem:[%s2977_s1 + $0x5d0] ss:$8 sps:$4 sm:$0xff]  }
  0x74   :  { %1490 = vmatprep.subr.bf16.mxu0 %v2100_v61  ;;  %1530 = vmatpush2.bf16.msra.mxu1 %v2095_v62  ;;  %v2191_v61 = vld [vmem:[%s2977_s1 + $0x5c4] ss:$8 sps:$4 sm:$0xff]   ;;  %v2186_v62 = vld [vmem:[%s2977_s1 + $0x4c0] ss:$8 sps:$4 sm:$0xff]  }
  0x75   :  { %1531 = vmatprep.subr.bf16.mxu1 %v2103_v63  ;;  %v2194_v63 = vld [vmem:[%s2977_s1 + $0x4b4] ss:$8 sps:$4 sm:$0xff]  }
  0x77   :  { %1491 = vmatpush2.bf16.msra.mxu0 %v2098_v0  ;;  %v2189_v0 = vld [vmem:[%s2977_s1 + $0x5c0] ss:$8 sps:$4 sm:$0xff]  }
  0x78   :  { %1492 = vmatprep.subr.bf16.mxu0 %v2106_v1  ;;  %1532 = vmatpush2.bf16.msra.mxu1 %v2101_v2  ;;  %v2197_v1 = vld [vmem:[%s2977_s1 + $0x5b4] ss:$8 sps:$4 sm:$0xff]   ;;  %v2192_v2 = vld [vmem:[%s2977_s1 + $0x4b0] ss:$8 sps:$4 sm:$0xff]  }
  0x79   :  { %1533 = vmatprep.subr.bf16.mxu1 %v2109_v3  ;;  %v2200_v3 = vld [vmem:[%s2977_s1 + $0x4a4] ss:$8 sps:$4 sm:$0xff]  }
  0x7b   :  { %1493 = vmatpush2.bf16.msra.mxu0 %v2104_v4  ;;  %v2195_v4 = vld [vmem:[%s2977_s1 + $0x5b0] ss:$8 sps:$4 sm:$0xff]  }
  0x7c   :  { %1494 = vmatprep.subr.bf16.mxu0 %v2112_v5  ;;  %1534 = vmatpush2.bf16.msra.mxu1 %v2107_v6  ;;  %v2203_v5 = vld [vmem:[%s2977_s1 + $0x5a4] ss:$8 sps:$4 sm:$0xff]   ;;  %v2198_v6 = vld [vmem:[%s2977_s1 + $0x4a0] ss:$8 sps:$4 sm:$0xff]  }
  0x7d   :  { %1535 = vmatprep.subr.bf16.mxu1 %v2115_v7  ;;  %v2206_v7 = vld [vmem:[%s2977_s1 + $0x494] ss:$8 sps:$4 sm:$0xff]  }
  0x7f   :  { %1495 = vmatpush2.bf16.msra.mxu0 %v2110_v8  ;;  %v2201_v8 = vld [vmem:[%s2977_s1 + $0x5a0] ss:$8 sps:$4 sm:$0xff]  }
  0x80   :  { %1546 = vmatprep.subr.bf16.mxu0 %v2120_v9  ;;  %1536 = vmatpush2.bf16.msra.mxu1 %v2113_v10  ;;  %v2209_v9 = vld [vmem:[%s2977_s1 + $0x594] ss:$8 sps:$4 sm:$0xff]   ;;  %v2204_v10 = vld [vmem:[%s2977_s1 + $0x490] ss:$8 sps:$4 sm:$0xff]  }
  0x81   :  { %1587 = vmatprep.subr.bf16.mxu1 %v2125_v12  ;;  %v2207_v12 = vld [vmem:[%s2977_s1 + $0x590] ss:$8 sps:$4 sm:$0xff]  }
  0x82   :  { %1497 = vmatmul.mubr.bf16.vlgmr.msra.gmra.mxu0 %v1691_v11  ;;  %v2212_v11 = vld [vmem:[%s2977_s1 + $0x484] ss:$8 sps:$4 sm:$0xff]  }
  0x83   :  { %1547 = vmatpush1.bf16.msra.mxu0 %v2118_v13  ;;  %1538 = vmatmul.mubr.bf16.vlgmr.msra.gmra.mxu1 %v1693_v14  ;;  %v2215_v13 = vld [vmem:[%s2977_s1 + $0x584] ss:$8 sps:$4 sm:$0xff]   ;;  %v2210_v14 = vld [vmem:[%s2977_s1 + $0x480] ss:$8 sps:$4 sm:$0xff]  }
  0x84   :  { %1548 = vmatprep.subr.bf16.mxu0 %v2128_v15  ;;  %1588 = vmatpush1.bf16.msra.mxu1 %v2123_v16  ;;  %v2220_v15 = vld [vmem:[%s2977_s1 + $0x674] ss:$8 sps:$4 sm:$0xff]  }
  0x85   :  { %1578 = vmatprep.mubr.bf16.mxu0 %v1696_v20  ;;  %1589 = vmatprep.subr.bf16.mxu1 %v2131_v19  ;;  %v21_v16 = vld [vmem:[%s2978_s0 + $0x30] sm:$0xff]  ;;  %v1695_v19 = vcombine.low %v2704_v17, %v2704_v17  ;;  %v2223_v17 = vld [vmem:[%s2977_s1 + $0x660] ss:$8 sps:$4 sm:$0xff]  }
  0x86   :  { %1619 = vmatprep.mubr.bf16.mxu1 %v1698_v23  ;;  %v2218_v20 = vld [vmem:[%s2977_s1 + $0x670] ss:$8 sps:$4 sm:$0xff]   ;;  %v1697_v23 = vcombine.low %v2717_v21, %v2717_v21 }
  0x87   :  { %1549 = vmatpush1.bf16.msra.mxu0 %v2126_v18  ;;  %v2213_v18 = vld [vmem:[%s2977_s1 + $0x580] ss:$8 sps:$4 sm:$0xff]   ;;  %v2226_v21 = vld [vmem:[%s2977_s1 + $0x650] ss:$8 sps:$4 sm:$0xff]  }
  0x88   :  { %1550 = vmatprep.subr.bf16.mxu0 %v2134_v22  ;;  %1590 = vmatpush1.bf16.msra.mxu1 %v2129_v24  ;;  %v1700_v22 = vcombine.high %v21_v16, %v21_v16  ;;  %v2225_v24 = vld [vmem:[%s2977_s1 + $0x664] ss:$8 sps:$4 sm:$0xff]  }
  0x89   :  { %1591 = vmatprep.subr.bf16.mxu1 %v2137_v25  ;;  %v2228_v25 = vld [vmem:[%s2977_s1 + $0x654] ss:$8 sps:$4 sm:$0xff]  }
  0x8b   :  { %1551 = vmatpush1.bf16.msra.mxu0 %v2132_v26  ;;  %v2231_v26 = vld [vmem:[%s2977_s1 + $0x644] ss:$8 sps:$4 sm:$0xff]  }
  0x8c   :  { %1552 = vmatprep.subr.bf16.mxu0 %v2140_v27  ;;  %1592 = vmatpush1.bf16.msra.mxu1 %v2135_v28  ;;  %v2229_v27 = vld [vmem:[%s2977_s1 + $0x640] ss:$8 sps:$4 sm:$0xff]   ;;  %v2234_v28 = vld [vmem:[%s2977_s1 + $0x634] ss:$8 sps:$4 sm:$0xff]  }
  0x8d   :  { %1593 = vmatprep.subr.bf16.mxu1 %v2143_v29  ;;  %v2232_v29 = vld [vmem:[%s2977_s1 + $0x630] ss:$8 sps:$4 sm:$0xff]  }
  0x8f   :  { %1553 = vmatpush1.bf16.msra.mxu0 %v2138_v30  ;;  %v2237_v30 = vld [vmem:[%s2977_s1 + $0x624] ss:$8 sps:$4 sm:$0xff]  }
  0x90   :  { %1554 = vmatprep.subr.bf16.mxu0 %v2146_v31  ;;  %1594 = vmatpush1.bf16.msra.mxu1 %v2141_v32  ;;  %v2235_v31 = vld [vmem:[%s2977_s1 + $0x620] ss:$8 sps:$4 sm:$0xff]   ;;  %v2240_v32 = vld [vmem:[%s2977_s1 + $0x614] ss:$8 sps:$4 sm:$0xff]  }
  0x91   :  { %1595 = vmatprep.subr.bf16.mxu1 %v2149_v33  ;;  %v2238_v33 = vld [vmem:[%s2977_s1 + $0x610] ss:$8 sps:$4 sm:$0xff]  }
  0x93   :  { %1555 = vmatpush1.bf16.msra.mxu0 %v2144_v34  ;;  %v2243_v34 = vld [vmem:[%s2977_s1 + $0x604] ss:$8 sps:$4 sm:$0xff]  }
  0x94   :  { %1556 = vmatprep.subr.bf16.mxu0 %v2152_v35  ;;  %1596 = vmatpush1.bf16.msra.mxu1 %v2147_v36  ;;  %v2241_v35 = vld [vmem:[%s2977_s1 + $0x600] ss:$8 sps:$4 sm:$0xff]   ;;  %v2246_v36 = vld [vmem:[%s2977_s1 + $0x6b4] ss:$8 sps:$4 sm:$0xff]  }
  0x95   :  { %1597 = vmatprep.subr.bf16.mxu1 %v2155_v37  ;;  %v2244_v37 = vld [vmem:[%s2977_s1 + $0x6b0] ss:$8 sps:$4 sm:$0xff]  }
  0x97   :  { %1557 = vmatpush1.bf16.msra.mxu0 %v2150_v38  ;;  %v2249_v38 = vld [vmem:[%s2977_s1 + $0x6a4] ss:$8 sps:$4 sm:$0xff]  }
  0x98   :  { %1558 = vmatprep.subr.bf16.mxu0 %v2158_v39  ;;  %1598 = vmatpush1.bf16.msra.mxu1 %v2153_v40  ;;  %v2247_v39 = vld [vmem:[%s2977_s1 + $0x6a0] ss:$8 sps:$4 sm:$0xff]   ;;  %v2252_v40 = vld [vmem:[%s2977_s1 + $0x694] ss:$8 sps:$4 sm:$0xff]  }
  0x99   :  { %1599 = vmatprep.subr.bf16.mxu1 %v2161_v41  ;;  %v2250_v41 = vld [vmem:[%s2977_s1 + $0x690] ss:$8 sps:$4 sm:$0xff]  }
  0x9b   :  { %1559 = vmatpush1.bf16.msra.mxu0 %v2156_v42  ;;  %v2255_v42 = vld [vmem:[%s2977_s1 + $0x684] ss:$8 sps:$4 sm:$0xff]  }
  0x9c   :  { %1560 = vmatprep.subr.bf16.mxu0 %v2164_v43  ;;  %1600 = vmatpush1.bf16.msra.mxu1 %v2159_v44  ;;  %v2253_v43 = vld [vmem:[%s2977_s1 + $0x680] ss:$8 sps:$4 sm:$0xff]   ;;  %v1699_v44 = vcombine.low %v21_v16, %v21_v16 }
  0x9d   :  { %1601 = vmatprep.subr.bf16.mxu1 %v2167_v45  ;;  %v240_v45 = vlaneseq }
  0x9f   :  { %1561 = vmatpush1.bf16.msra.mxu0 %v2162_v46  ;;  %v241_v46 = vshrl.u32 %v240_v45, 7 }
  0xa0   :  { %1562 = vmatprep.subr.bf16.mxu0 %v2170_v47  ;;  %1602 = vmatpush1.bf16.msra.mxu1 %v2165_v48  ;;  %v238_v48 = vld [vmem:[%s2979_s2] sm:$0x3] }
  0xa1   :  { %1603 = vmatprep.subr.bf16.mxu1 %v2173_v49  ;;  %v242_v47 = vsub.s32 0, %v241_v46  ;;  %v246_v49 = vsub.s32 1, %v241_v46 }
  0xa3   :  { %1563 = vmatpush2.bf16.msra.mxu0 %v2168_v50  ;;  %v243_v50 = vrot.slane %v238_v48, %v242_v47 }
  0xa4   :  { %1564 = vmatprep.subr.bf16.mxu0 %v2176_v51  ;;  %1604 = vmatpush2.bf16.msra.mxu1 %v2171_v52  ;;  %v247_v51 = vrot.slane %v238_v48, %v246_v49 }
  0xa5   :  { %1605 = vmatprep.subr.bf16.mxu1 %v2179_v53 }
  0xa7   :  { %1565 = vmatpush2.bf16.msra.mxu0 %v2174_v54 }
  0xa8   :  { %1566 = vmatprep.subr.bf16.mxu0 %v2182_v55  ;;  %1606 = vmatpush2.bf16.msra.mxu1 %v2177_v56 }
  0xa9   :  { %1607 = vmatprep.subr.bf16.mxu1 %v2185_v57 }
  0xab   :  { %1567 = vmatpush2.bf16.msra.mxu0 %v2180_v58 }
  0xac   :  { %1568 = vmatprep.subr.bf16.mxu0 %v2188_v59  ;;  %1608 = vmatpush2.bf16.msra.mxu1 %v2183_v60 }
  0xad   :  { %1609 = vmatprep.subr.bf16.mxu1 %v2191_v61 }
  0xaf   :  { %1569 = vmatpush2.bf16.msra.mxu0 %v2186_v62 }
  0xb0   :  { %1570 = vmatprep.subr.bf16.mxu0 %v2194_v63  ;;  %1610 = vmatpush2.bf16.msra.mxu1 %v2189_v0 }
  0xb1   :  { %1611 = vmatprep.subr.bf16.mxu1 %v2197_v1 }
  0xb3   :  { %1571 = vmatpush2.bf16.msra.mxu0 %v2192_v2 }
  0xb4   :  { %1572 = vmatprep.subr.bf16.mxu0 %v2200_v3  ;;  %1612 = vmatpush2.bf16.msra.mxu1 %v2195_v4 }
  0xb5   :  { %1613 = vmatprep.subr.bf16.mxu1 %v2203_v5 }
  0xb7   :  { %1573 = vmatpush2.bf16.msra.mxu0 %v2198_v6 }
  0xb8   :  { %1574 = vmatprep.subr.bf16.mxu0 %v2206_v7  ;;  %1614 = vmatpush2.bf16.msra.mxu1 %v2201_v8 }
  0xb9   :  { %1615 = vmatprep.subr.bf16.mxu1 %v2209_v9 }
  0xbb   :  { %1575 = vmatpush2.bf16.msra.mxu0 %v2204_v10 }
  0xbc   :  { %1576 = vmatprep.subr.bf16.mxu0 %v2212_v11  ;;  %1616 = vmatpush2.bf16.msra.mxu1 %v2207_v12 }
  0xbd   :  { %1617 = vmatprep.subr.bf16.mxu1 %v2215_v13 }
  0xbf   :  { %1577 = vmatpush2.bf16.msra.mxu0 %v2210_v14 }
  0xc0   :  { %1628 = vmatprep.subr.bf16.mxu0 %v2220_v15  ;;  %1618 = vmatpush2.bf16.msra.mxu1 %v2213_v18 }
  0xc2   :  { %1579 = vmatmul.mubr.bf16.vlgmr.msra.gmra.mxu0 %v1695_v19 }
  0xc3   :  { %1629 = vmatpush1.bf16.msra.mxu0 %v2218_v20  ;;  %1917 = vmatprep.mubr.msk.bf16.mxu0 %vm1378_vm0, %v1700_v22 }
  0xc4   :  { %1620 = vmatmul.mubr.bf16.vlgmr.msra.gmra.mxu1 %v1697_v23  ;;  %1630 = vmatprep.subr.bf16.mxu0 %v2225_v24 }
  0xc7   :  { %1631 = vmatpush1.bf16.msra.mxu0 %v2223_v17 }
  0xc8   :  { %1632 = vmatprep.subr.bf16.mxu0 %v2228_v25 }
  0xcb   :  { %1633 = vmatpush1.bf16.msra.mxu0 %v2226_v21 }
  0xcc   :  { %1634 = vmatprep.subr.bf16.mxu0 %v2231_v26 }
  0xcf   :  { %1635 = vmatpush1.bf16.msra.mxu0 %v2229_v27 }
  0xd0   :  { %1636 = vmatprep.subr.bf16.mxu0 %v2234_v28 }
  0xd3   :  { %1637 = vmatpush1.bf16.msra.mxu0 %v2232_v29 }
  0xd4   :  { %1638 = vmatprep.subr.bf16.mxu0 %v2237_v30 }
  0xd7   :  { %1639 = vmatpush1.bf16.msra.mxu0 %v2235_v31 }
  0xd8   :  { %1640 = vmatprep.subr.bf16.mxu0 %v2240_v32 }
  0xdb   :  { %1641 = vmatpush1.bf16.msra.mxu0 %v2238_v33 }
  0xdc   :  { %1642 = vmatprep.subr.bf16.mxu0 %v2243_v34 }
  0xdf   :  { %1643 = vmatpush1.bf16.msra.mxu0 %v2241_v35 }
  0xe0   :  { %1652 = vmatprep.subr.bf16.mxu0 %v2246_v36 }
  0xe3   :  { %1653 = vmatpush2.bf16.msra.mxu0 %v2244_v37 }
  0xe4   :  { %1654 = vmatprep.subr.bf16.mxu0 %v2249_v38 }
  0xe7   :  { %1655 = vmatpush2.bf16.msra.mxu0 %v2247_v39 }
  0xe8   :  { %1656 = vmatprep.subr.bf16.mxu0 %v2252_v40 }
  0xeb   :  { %1657 = vmatpush2.bf16.msra.mxu0 %v2250_v41 }
  0xec   :  { %1658 = vmatprep.subr.bf16.mxu0 %v2255_v42 }
  0xef   :  { %1659 = vmatpush2.bf16.msra.mxu0 %v2253_v43 }
  0xf2   :  { %1661 = vmatmul.mubr.bf16.vlgmr.msra.gmra.mxu0 %v1699_v44 }
 0x102   :  { %v1416_v52 = vpop.f32.mrf.mxu0 }
 0x103   :  { %v1417_v53 = vadd.f32 %v1416_v52, %v243_v50  ;;  %v1457_v55 = vpop.f32.mrf.mxu1 }
 0x104   :  { %v1418_v54 = vpop.f32.mrf.mxu0 }
 0x105   :  { %v1419_v56 = vadd.f32 %v1418_v54, %v247_v51  ;;  %v1458_v57 = vadd.f32 %v1457_v55, %v1417_v53  ;;  %v1459_v59 = vpop.f32.mrf.mxu1 }
 0x106   :  { %v1420_v58 = vpop.f32.mrf.mxu0 }
 0x107   :  { %v1460_v60 = vadd.f32 %v1459_v59, %v1419_v56  ;;  %v1461_v62 = vpop.f32.mrf.mxu1 }
 0x108   :  { %v1421_v61 = vpop.f32.mrf.mxu0 }
 0x109   :  { %v1462_v63 = vpop.f32.mrf.mxu1 }
 0x142   :  { %v1498_v0 = vpop.f32.mrf.mxu0 }
 0x143   :  { %v1499_v1 = vadd.f32 %v1498_v0, %v1458_v57  ;;  %v1539_v3 = vpop.f32.mrf.mxu1 }
 0x144   :  { %v1500_v2 = vpop.f32.mrf.mxu0 }
 0x145   :  { %v1501_v4 = vadd.f32 %v1500_v2, %v1460_v60  ;;  %v1540_v5 = vadd.f32 %v1539_v3, %v1499_v1  ;;  %v1541_v7 = vpop.f32.mrf.mxu1 }
 0x146   :  { %v1502_v6 = vpop.f32.mrf.mxu0 }
 0x147   :  { %v1542_v8 = vadd.f32 %v1541_v7, %v1501_v4  ;;  %v1543_v10 = vpop.f32.mrf.mxu1 }
 0x148   :  { %v1503_v9 = vpop.f32.mrf.mxu0 }
 0x149   :  { %v1544_v11 = vpop.f32.mrf.mxu1 }
 0x182   :  { %v1580_v12 = vpop.f32.mrf.mxu0 }
 0x183   :  { %v1581_v22 = vadd.f32 %v1580_v12, %v1540_v5 }
 0x184   :  { %v1582_v13 = vpop.f32.mrf.mxu0  ;;  %v1621_v14 = vpop.f32.mrf.mxu1 }
 0x185   :  { %v1583_v23 = vadd.f32 %v1582_v13, %v1542_v8  ;;  %v1622_v24 = vadd.f32 %v1621_v14, %v1581_v22 }
 0x186   :  { %v1584_v15 = vpop.f32.mrf.mxu0  ;;  %v1623_v16 = vpop.f32.mrf.mxu1 }
 0x187   :  { %v1624_v25 = vadd.f32 %v1623_v16, %v1583_v23 }
 0x188   :  { %v1585_v18 = vpop.f32.mrf.mxu0  ;;  %v1625_v19 = vpop.f32.mrf.mxu1 }
 0x18a   :  { %v1626_v20 = vpop.f32.mrf.mxu1 }
 0x1b2   :  { %v1662_v17 = vpop.f32.mrf.mxu0 }
 0x1b3   :  { %v1663_v21 = vadd.f32 %v1662_v17, %v1622_v24 }
 0x1b4   :  { %v1664_v26 = vpop.f32.mrf.mxu0 }
 0x1b5   :  { %v1665_v27 = vadd.f32 %v1664_v26, %v1624_v25  ;;  %v1669_v29 = vmax.f32 %v1663_v21, 0.0 }
 0x1b6   :  { %v1666_v28 = vpop.f32.mrf.mxu0 }
 0x1b7   :  { %v1670_v30 = vmax.f32 %v1665_v27, 0.0 }
 0x1b8   :  { %v1667_v31 = vpop.f32.mrf.mxu0 }
 0x1b9   :  { %v1919_v32 = vpack.c.bf16 %v1670_v30, %v1669_v29 }
 0x1bb   :  { %1682 = vst.msk [vmem:[%s2980_s3] sm:$0xff] %vm1681_vm3, %v1919_v32 }

</bundles_post_ra>
